<compile_context>
chip_gen: v7x
topology: tpu7x:2x2x1
jax: 0.10.0
libtpu: 0.0.40
codegen_flags: <defaults>
</compile_context>

<pallas_src>
import functools

import jax
import jax.numpy as jnp
from jax.experimental import pallas as pl
from jax.experimental.pallas import tpu as pltpu


# ---------------------------------------------------------------------------
# Fused bottleneck block kernel
#   conv1(1x1)+BN+ReLU -> conv2(3x3, stride s, pad 1)+BN+ReLU -> conv3(1x1)+BN
#   -> (+ projection/identity shortcut) -> ReLU
# All intermediates stay in VMEM.  The stride is folded into the spatial phase
# decomposition of the input (done in glue), so all tap reads below are contiguous,
# unit-stride row windows.
# ---------------------------------------------------------------------------
def _block_kernel(*refs, s, n, ho, wo, cin, cb, cout, proj):
    nph = s * s
    xph = refs[0:nph]                       # padded input phases, ((ho+2)*(wo+2)*n, cin) f32
    mask_ref = refs[nph]                    # ((ho+2)*(wo+2)*n, 1) f32 : 1 interior / 0 border
    w1, b1, w2, b2, w3, b3 = refs[nph + 1:nph + 7]
    if proj:
        ws, bs = refs[nph + 7], refs[nph + 8]
        o_ref = refs[nph + 9]
        y1scr = refs[nph + 10:]             # s*s VMEM scratch, ((ho+2)*(wo+2)*n, cb) f32
    else:
        o_ref = refs[nph + 7]
        y1scr = refs[nph + 8:]

    wp2 = wo + 2

    def row(hp, wp):                        # row offset in the padded (hp, wp, n) row space
        return (hp * wp2 + wp) * n

    # --- conv1 (1x1) + folded BN + ReLU, per phase; zero the spatial border via mask so
    #     the scratch is exactly the zero-padded conv1 output (conv2's padded input).
    msk = mask_ref[...]
    for i in range(nph):
        xv = xph[i][...].astype(jnp.bfloat16)
        y1 = jnp.dot(xv, w1[...], preferred_element_type=jnp.float32) + b1[...]
        y1scr[i][...] = jnp.maximum(y1, 0.0) * msk

    chunk = wo * n                          # one output row (all ow, all n)
    for oh in range(ho):
        # --- conv2 (3x3, stride s) : accumulate the 9 taps on the MXU.
        acc = jnp.zeros((chunk, cb), jnp.float32) + b2[...]
        for dh in range(3):
            for dw in range(3):
                p, q = (dh - 1) % s, (dw - 1) % s
                roff, coff = (dh - 1 - p) // s, (dw - 1 - q) // s
                start = row(oh + roff + 1, coff + 1)
                tap = y1scr[p * s + q][start:start + chunk, :].astype(jnp.bfloat16)
                acc = acc + jnp.dot(tap, w2[dh * 3 + dw],
                                    preferred_element_type=jnp.float32)
        y2 = jnp.maximum(acc, 0.0).astype(jnp.bfloat16)

        # --- conv3 (1x1) + folded BN (no ReLU before the residual add).
        y3 = jnp.dot(y2, w3[...], preferred_element_type=jnp.float32) + b3[...]

        # --- shortcut: 1x1 stride-s conv samples phase (0,0) of the input (interior rows).
        sc_start = row(oh + 1, 1)
        sc_rows = xph[0][sc_start:sc_start + chunk, :]
        if proj:
            sc = jnp.dot(sc_rows.astype(jnp.bfloat16), ws[...],
                         preferred_element_type=jnp.float32) + bs[...]
        else:
            sc = sc_rows                     # identity shortcut (s == 1, cin == cout)

        o_ref[oh * chunk:(oh + 1) * chunk, :] = jnp.maximum(y3 + sc, 0.0)


def bottleneck_block(x_hwnc, blk, *, stride):
    H, W, N, Cin = x_hwnc.shape
    s = stride
    Ho, Wo = H // s, W // s
    w1, b1 = blk["conv1"]
    w2, b2 = blk["conv2"]
    w3, b3 = blk["conv3"]
    Cb, Cout = w1.shape[-1], w3.shape[-1]
    proj = "shortcut" in blk

    # Spatial phase decomposition (strided slices in plain JAX -> same total bytes as x),
    # each phase zero-padded by 1 so every 3x3 tap is a contiguous row window.
    phases = []
    for p in range(s):
        for q in range(s):
            ph = jnp.pad(x_hwnc[p::s, q::s], ((1, 1), (1, 1), (0, 0), (0, 0)))
            phases.append(ph.reshape((Ho + 2) * (Wo + 2) * N, Cin))
    mask = jnp.pad(jnp.ones((Ho, Wo), jnp.float32), ((1, 1), (1, 1)))
    mask = jnp.broadcast_to(mask[:, :, None], (Ho + 2, Wo + 2, N)).reshape(-1, 1)

    ops = phases + [mask, w1, b1, w2, b2, w3, b3]
    if proj:
        ops += list(blk["shortcut"])

    kern = functools.partial(_block_kernel, s=s, n=N, ho=Ho, wo=Wo,
                             cin=Cin, cb=Cb, cout=Cout, proj=proj)
    flops = 2 * Ho * Wo * N * (Cin * Cb + 9 * Cb * Cb + Cb * Cout
                               + (Cin * Cout if proj else 0))
    bytes_acc = 4 * (H * W * N * Cin + Ho * Wo * N * Cout) \
        + 2 * (Cin * Cb + 9 * Cb * Cb + Cb * Cout + (Cin * Cout if proj else 0))

    out = pl.pallas_call(
        kern,
        out_shape=jax.ShapeDtypeStruct((Ho * Wo * N, Cout), jnp.float32),
        scratch_shapes=[pltpu.VMEM(((Ho + 2) * (Wo + 2) * N, Cb), jnp.float32)] * (s * s),
        cost_estimate=pl.CostEstimate(flops=flops, transcendentals=0,
                                      bytes_accessed=bytes_acc),
    )(*ops)
    return out.reshape(Ho, Wo, N, Cout)


# ---------------------------------------------------------------------------
# Stem: conv 7x7 stride 2 pad 3 + folded BN + ReLU (49 taps accumulated in-kernel)
# ---------------------------------------------------------------------------
def _stem_kernel(x00, x01, x10, x11, w_ref, b_ref, o_ref, *, n, ho, wo, cin, cout,
                 k, phase_w):
    xph = (x00, x01, x10, x11)
    chunk = wo * n
    bias = b_ref[...]

    def body(oh, carry):
        acc = jnp.zeros((chunk, cout), jnp.float32) + bias
        for dh in range(k):
            for dw in range(k):
                ph = xph[(dh % 2) * 2 + (dw % 2)]
                start = ((oh + dh // 2) * phase_w + dw // 2) * n
                tap = ph[pl.ds(start, chunk), :].astype(jnp.bfloat16)
                acc = acc + jnp.dot(tap, w_ref[dh * k + dw],
                                    preferred_element_type=jnp.float32)
        o_ref[pl.ds(oh * chunk, chunk), :] = jnp.maximum(acc, 0.0)
        return carry

    jax.lax.fori_loop(0, ho, body, 0)


def stem_conv(x_nchw, w, b):
    N, Cin, H, W = x_nchw.shape
    k, s, pad = 7, 2, 3
    x = jnp.transpose(x_nchw, (2, 3, 0, 1)).astype(jnp.float32)      # -> HWNC
    xp = jnp.pad(x, ((pad, pad), (pad, pad), (0, 0), (0, 0)))
    Hp, Wp = H + 2 * pad, W + 2 * pad
    Ho, Wo = (Hp - k) // s + 1, (Wp - k) // s + 1
    Cout = w.shape[-1]

    phases, phase_w = [], None
    for p in range(2):
        for q in range(2):
            ph = xp[p::2, q::2]
            phase_w = ph.shape[1]
            phases.append(ph.reshape(ph.shape[0] * ph.shape[1] * N, Cin))

    kern = functools.partial(_stem_kernel, n=N, ho=Ho, wo=Wo, cin=Cin, cout=Cout,
                             k=k, phase_w=phase_w)
    out = pl.pallas_call(
        kern,
        out_shape=jax.ShapeDtypeStruct((Ho * Wo * N, Cout), jnp.float32),
        cost_estimate=pl.CostEstimate(
            flops=2 * Ho * Wo * N * k * k * Cin * Cout,
            transcendentals=0,
            bytes_accessed=4 * (Hp * Wp * N * Cin + Ho * Wo * N * Cout)),
    )(*phases, w, b)
    return out.reshape(Ho, Wo, N, Cout)


# ---------------------------------------------------------------------------
# MaxPool2d(kernel=3, stride=2, padding=1): running max over 9 in-kernel taps.
# Zero padding is equivalent to -inf here because the input is post-ReLU (>= 0).
# ---------------------------------------------------------------------------
def _maxpool_kernel(y00, y01, y10, y11, o_ref, *, n, ho, wo, phase_w):
    ph = (y00, y01, y10, y11)
    chunk = wo * n
    for i in range(ho):
        cur = None
        for dh in range(3):
            for dw in range(3):
                p, q = (dh - 1) % 2, (dw - 1) % 2
                roff, coff = (dh - 1 - p) // 2, (dw - 1 - q) // 2
                start = ((i + roff + 1) * phase_w + (coff + 1)) * n
                tap = ph[p * 2 + q][start:start + chunk, :]
                cur = tap if cur is None else jnp.maximum(cur, tap)
        o_ref[i * chunk:(i + 1) * chunk, :] = cur


def maxpool3x3_s2_p1(y_hwnc):
    H, W, N, C = y_hwnc.shape
    Ho, Wo = (H + 2 - 3) // 2 + 1, (W + 2 - 3) // 2 + 1
    phases, phase_w = [], None
    for p in range(2):
        for q in range(2):
            ph = jnp.pad(y_hwnc[p::2, q::2], ((1, 1), (1, 1), (0, 0), (0, 0)))
            phase_w = ph.shape[1]
            phases.append(ph.reshape(-1, C))
    kern = functools.partial(_maxpool_kernel, n=N, ho=Ho, wo=Wo, phase_w=phase_w)
    out = pl.pallas_call(
        kern, out_shape=jax.ShapeDtypeStruct((Ho * Wo * N, C), jnp.float32),
    )(*phases)
    return out.reshape(Ho, Wo, N, C)


# ---------------------------------------------------------------------------
# Classifier head: fused AdaptiveAvgPool2d((1,1)) + flatten + Linear
# ---------------------------------------------------------------------------
def _head_kernel(x_ref, w_ref, b_ref, o_ref):
    pooled = jnp.mean(x_ref[...], axis=0)                 # (HW, N, C) -> (N, C)
    o_ref[...] = jnp.dot(pooled.astype(jnp.bfloat16), w_ref[...],
                         preferred_element_type=jnp.float32) + b_ref[...]


def head_forward(x_hwnc, w_lin, b_lin):
    H, W, N, C = x_hwnc.shape
    nc = w_lin.shape[-1]
    return pl.pallas_call(
        _head_kernel,
        out_shape=jax.ShapeDtypeStruct((N, nc), jnp.float32),
    )(x_hwnc.reshape(H * W, N, C), w_lin, b_lin)


# ---------------------------------------------------------------------------
# Parameters (frozen BN folded into the conv; weights pre-laid-out for the MXU in bf16)
# ---------------------------------------------------------------------------
def make_conv_bn(key, cin, cout, k):
    kw_, kg, kb, km, kv = jax.random.split(key, 5)
    w = 0.1 * jax.random.normal(kw_, (cout, cin, k, k), jnp.float32)
    gamma = 1.0 + 0.1 * jax.random.normal(kg, (cout,), jnp.float32)
    beta = 0.1 * jax.random.normal(kb, (cout,), jnp.float32)
    mean = 0.1 * jax.random.normal(km, (cout,), jnp.float32)
    var = 1.0 + jnp.abs(jax.random.normal(kv, (cout,), jnp.float32))
    scale = gamma / jnp.sqrt(var + 1e-5)
    w_fold = w * scale[:, None, None, None]                    # (cout, cin, kh, kw)
    b_fold = (beta - mean * scale).reshape(1, cout)            # f32 bias stays f32
    # tap-major matmul layout (kh*kw, cin, cout); hoisted out of the forward path; bf16.
    w_mat = jnp.transpose(w_fold, (2, 3, 1, 0)).reshape(k * k, cin, cout)
    if k == 1:
        w_mat = w_mat.reshape(cin, cout)
    return w_mat.astype(jnp.bfloat16), b_fold


STAGE_CFG = [
    # name,  cin, cout, bottleneck, stride
    ("res2", 8, 16, 4, 1),
    ("res3", 16, 32, 8, 2),
    ("res4", 32, 64, 16, 2),
    ("res5", 64, 64, 16, 1),
]
NUM_CLASSES = 10


def build_params(key):
    keys = iter(jax.random.split(key, 64))
    params = {"stem": make_conv_bn(next(keys), 4, 8, 7)}
    for name, cin, cout, cb, stride in STAGE_CFG:
        blk = {
            "conv1": make_conv_bn(next(keys), cin, cb, 1),
            "conv2": make_conv_bn(next(keys), cb, cb, 3),
            "conv3": make_conv_bn(next(keys), cb, cout, 1),
        }
        if cin != cout or stride != 1:
            blk["shortcut"] = make_conv_bn(next(keys), cin, cout, 1)
        params[name] = blk
    w_lin = 0.01 * jax.random.normal(next(keys), (NUM_CLASSES, 64), jnp.float32)
    params["linear"] = (jnp.transpose(w_lin).astype(jnp.bfloat16),     # (64, num_classes)
                        jnp.zeros((1, NUM_CLASSES), jnp.float32))
    return params


# ---------------------------------------------------------------------------
# Forward (mirrors DeeplabResNet.forward semantics)
# ---------------------------------------------------------------------------
def deeplab_resnet_forward(x_nchw, params,
                           out_features=("res2", "res5", "linear")):
    assert x_nchw.ndim == 4, "ResNet takes an input of shape (N, C, H, W)"
    outputs = {}

    # stem: conv7x7 s2 p3 + BN + ReLU, maxpool3x3 s2 p1
    w, b = params["stem"]
    x = stem_conv(x_nchw, w, b)                 # HWNC
    x = maxpool3x3_s2_p1(x)
    if "stem" in out_features:
        outputs["stem"] = jnp.transpose(x, (2, 3, 0, 1))      # -> NCHW

    for name, _cin, _cout, _cb, stride in STAGE_CFG:
        x = bottleneck_block(x, params[name], stride=stride)
        if name in out_features:
            outputs[name] = jnp.transpose(x, (2, 3, 0, 1))    # -> NCHW

    # classifier head (num_classes is not None)
    w_lin, b_lin = params["linear"]
    logits = head_forward(x, w_lin, b_lin)
    if "linear" in out_features:
        outputs["linear"] = logits
    return outputs


if __name__ == "__main__":
    key = jax.random.PRNGKey(0)
    kx, kp = jax.random.split(key)
    x = jax.random.normal(kx, (2, 4, 16, 16), jnp.float32)    # NCHW, like PyTorch
    params = build_params(kp)

    fwd = jax.jit(deeplab_resnet_forward)
    outs = jax.block_until_ready(fwd(x, params))

    assert outs["res2"].shape == (2, 16, 4, 4)
    assert outs["res5"].shape == (2, 64, 1, 1)
    assert outs["linear"].shape == (2, NUM_CLASSES)
    assert all(bool(jnp.all(jnp.isfinite(v))) for v in outs.values())
    print("KERNEL_OK")
</pallas_src>

<mosaic_0001>
module attributes {stable_mosaic.version = 11 : i64} {
  func.func @_maxpool_kernel(%arg0: memref<72x8xf32, #tpu.memory_space<vmem>>, %arg1: memref<72x8xf32, #tpu.memory_space<vmem>>, %arg2: memref<72x8xf32, #tpu.memory_space<vmem>>, %arg3: memref<72x8xf32, #tpu.memory_space<vmem>>, %arg4: memref<32x8xf32, #tpu.memory_space<vmem>>) attributes {dimension_semantics = [], scalar_prefetch = 0 : i64, scratch_operands = 0 : i64, tpu.core_type = #tpu.core_type<tc>} {
    %c0 = arith.constant 0 : index
    %c0_0 = arith.constant 0 : index
    %0 = vector.load %arg3[%c0, %c0_0] : memref<72x8xf32, #tpu.memory_space<vmem>>, vector<8x8xf32>
    %c2 = arith.constant 2 : index
    %c0_1 = arith.constant 0 : index
    %1 = vector.load %arg2[%c2, %c0_1] : memref<72x8xf32, #tpu.memory_space<vmem>>, vector<8x8xf32>
    %2 = arith.maximumf %0, %1 : vector<8x8xf32>
    %c2_2 = arith.constant 2 : index
    %c0_3 = arith.constant 0 : index
    %3 = vector.load %arg3[%c2_2, %c0_3] : memref<72x8xf32, #tpu.memory_space<vmem>>, vector<8x8xf32>
    %4 = arith.maximumf %2, %3 : vector<8x8xf32>
    %c12 = arith.constant 12 : index
    %c0_4 = arith.constant 0 : index
    %5 = vector.load %arg1[%c12, %c0_4] : memref<72x8xf32, #tpu.memory_space<vmem>>, vector<8x8xf32>
    %6 = arith.maximumf %4, %5 : vector<8x8xf32>
    %c14 = arith.constant 14 : index
    %c0_5 = arith.constant 0 : index
    %7 = vector.load %arg0[%c14, %c0_5] : memref<72x8xf32, #tpu.memory_space<vmem>>, vector<8x8xf32>
    %8 = arith.maximumf %6, %7 : vector<8x8xf32>
    %c14_6 = arith.constant 14 : index
    %c0_7 = arith.constant 0 : index
    %9 = vector.load %arg1[%c14_6, %c0_7] : memref<72x8xf32, #tpu.memory_space<vmem>>, vector<8x8xf32>
    %10 = arith.maximumf %8, %9 : vector<8x8xf32>
    %c12_8 = arith.constant 12 : index
    %c0_9 = arith.constant 0 : index
    %11 = vector.load %arg3[%c12_8, %c0_9] : memref<72x8xf32, #tpu.memory_space<vmem>>, vector<8x8xf32>
    %12 = arith.maximumf %10, %11 : vector<8x8xf32>
    %c14_10 = arith.constant 14 : index
    %c0_11 = arith.constant 0 : index
    %13 = vector.load %arg2[%c14_10, %c0_11] : memref<72x8xf32, #tpu.memory_space<vmem>>, vector<8x8xf32>
    %14 = arith.maximumf %12, %13 : vector<8x8xf32>
    %c14_12 = arith.constant 14 : index
    %c0_13 = arith.constant 0 : index
    %15 = vector.load %arg3[%c14_12, %c0_13] : memref<72x8xf32, #tpu.memory_space<vmem>>, vector<8x8xf32>
    %16 = arith.maximumf %14, %15 : vector<8x8xf32>
    %c0_14 = arith.constant 0 : index
    %c0_15 = arith.constant 0 : index
    %17 = vector.load %arg4[%c0_14, %c0_15] : memref<32x8xf32, #tpu.memory_space<vmem>>, vector<8x8xf32>
    tpu.vector_store %arg4[%c0_14, %c0_15], %16 {strides = array<i32>} : memref<32x8xf32, #tpu.memory_space<vmem>>, vector<8x8xf32>,
    %c12_16 = arith.constant 12 : index
    %c0_17 = arith.constant 0 : index
    %18 = vector.load %arg3[%c12_16, %c0_17] : memref<72x8xf32, #tpu.memory_space<vmem>>, vector<8x8xf32>
    %c14_18 = arith.constant 14 : index
    %c0_19 = arith.constant 0 : index
    %19 = vector.load %arg2[%c14_18, %c0_19] : memref<72x8xf32, #tpu.memory_space<vmem>>, vector<8x8xf32>
    %20 = arith.maximumf %18, %19 : vector<8x8xf32>
    %c14_20 = arith.constant 14 : index
    %c0_21 = arith.constant 0 : index
    %21 = vector.load %arg3[%c14_20, %c0_21] : memref<72x8xf32, #tpu.memory_space<vmem>>, vector<8x8xf32>
    %22 = arith.maximumf %20, %21 : vector<8x8xf32>
    %c24 = arith.constant 24 : index
    %c0_22 = arith.constant 0 : index
    %23 = vector.load %arg1[%c24, %c0_22] : memref<72x8xf32, #tpu.memory_space<vmem>>, vector<8x8xf32>
    %24 = arith.maximumf %22, %23 : vector<8x8xf32>
    %c26 = arith.constant 26 : index
    %c0_23 = arith.constant 0 : index
    %25 = vector.load %arg0[%c26, %c0_23] : memref<72x8xf32, #tpu.memory_space<vmem>>, vector<8x8xf32>
    %26 = arith.maximumf %24, %25 : vector<8x8xf32>
    %c26_24 = arith.constant 26 : index
    %c0_25 = arith.constant 0 : index
    %27 = vector.load %arg1[%c26_24, %c0_25] : memref<72x8xf32, #tpu.memory_space<vmem>>, vector<8x8xf32>
    %28 = arith.maximumf %26, %27 : vector<8x8xf32>
    %c24_26 = arith.constant 24 : index
    %c0_27 = arith.constant 0 : index
    %29 = vector.load %arg3[%c24_26, %c0_27] : memref<72x8xf32, #tpu.memory_space<vmem>>, vector<8x8xf32>
    %30 = arith.maximumf %28, %29 : vector<8x8xf32>
    %c26_28 = arith.constant 26 : index
    %c0_29 = arith.constant 0 : index
    %31 = vector.load %arg2[%c26_28, %c0_29] : memref<72x8xf32, #tpu.memory_space<vmem>>, vector<8x8xf32>
    %32 = arith.maximumf %30, %31 : vector<8x8xf32>
    %c26_30 = arith.constant 26 : index
    %c0_31 = arith.constant 0 : index
    %33 = vector.load %arg3[%c26_30, %c0_31] : memref<72x8xf32, #tpu.memory_space<vmem>>, vector<8x8xf32>
    %34 = arith.maximumf %32, %33 : vector<8x8xf32>
    %c8 = arith.constant 8 : index
    %c0_32 = arith.constant 0 : index
    %35 = vector.load %arg4[%c8, %c0_32] : memref<32x8xf32, #tpu.memory_space<vmem>>, vector<8x8xf32>
    tpu.vector_store %arg4[%c8, %c0_32], %34 {strides = array<i32>} : memref<32x8xf32, #tpu.memory_space<vmem>>, vector<8x8xf32>,
    %c24_33 = arith.constant 24 : index
    %c0_34 = arith.constant 0 : index
    %36 = vector.load %arg3[%c24_33, %c0_34] : memref<72x8xf32, #tpu.memory_space<vmem>>, vector<8x8xf32>
    %c26_35 = arith.constant 26 : index
    %c0_36 = arith.constant 0 : index
    %37 = vector.load %arg2[%c26_35, %c0_36] : memref<72x8xf32, #tpu.memory_space<vmem>>, vector<8x8xf32>
    %38 = arith.maximumf %36, %37 : vector<8x8xf32>
    %c26_37 = arith.constant 26 : index
    %c0_38 = arith.constant 0 : index
    %39 = vector.load %arg3[%c26_37, %c0_38] : memref<72x8xf32, #tpu.memory_space<vmem>>, vector<8x8xf32>
    %40 = arith.maximumf %38, %39 : vector<8x8xf32>
    %c36 = arith.constant 36 : index
    %c0_39 = arith.constant 0 : index
    %41 = vector.load %arg1[%c36, %c0_39] : memref<72x8xf32, #tpu.memory_space<vmem>>, vector<8x8xf32>
    %42 = arith.maximumf %40, %41 : vector<8x8xf32>
    %c38 = arith.constant 38 : index
    %c0_40 = arith.constant 0 : index
    %43 = vector.load %arg0[%c38, %c0_40] : memref<72x8xf32, #tpu.memory_space<vmem>>, vector<8x8xf32>
    %44 = arith.maximumf %42, %43 : vector<8x8xf32>
    %c38_41 = arith.constant 38 : index
    %c0_42 = arith.constant 0 : index
    %45 = vector.load %arg1[%c38_41, %c0_42] : memref<72x8xf32, #tpu.memory_space<vmem>>, vector<8x8xf32>
    %46 = arith.maximumf %44, %45 : vector<8x8xf32>
    %c36_43 = arith.constant 36 : index
    %c0_44 = arith.constant 0 : index
    %47 = vector.load %arg3[%c36_43, %c0_44] : memref<72x8xf32, #tpu.memory_space<vmem>>, vector<8x8xf32>
    %48 = arith.maximumf %46, %47 : vector<8x8xf32>
    %c38_45 = arith.constant 38 : index
    %c0_46 = arith.constant 0 : index
    %49 = vector.load %arg2[%c38_45, %c0_46] : memref<72x8xf32, #tpu.memory_space<vmem>>, vector<8x8xf32>
    %50 = arith.maximumf %48, %49 : vector<8x8xf32>
    %c38_47 = arith.constant 38 : index
    %c0_48 = arith.constant 0 : index
    %51 = vector.load %arg3[%c38_47, %c0_48] : memref<72x8xf32, #tpu.memory_space<vmem>>, vector<8x8xf32>
    %52 = arith.maximumf %50, %51 : vector<8x8xf32>
    %c16 = arith.constant 16 : index
    %c0_49 = arith.constant 0 : index
    %53 = vector.load %arg4[%c16, %c0_49] : memref<32x8xf32, #tpu.memory_space<vmem>>, vector<8x8xf32>
    tpu.vector_store %arg4[%c16, %c0_49], %52 {strides = array<i32>} : memref<32x8xf32, #tpu.memory_space<vmem>>, vector<8x8xf32>,
    %c36_50 = arith.constant 36 : index
    %c0_51 = arith.constant 0 : index
    %54 = vector.load %arg3[%c36_50, %c0_51] : memref<72x8xf32, #tpu.memory_space<vmem>>, vector<8x8xf32>
    %c38_52 = arith.constant 38 : index
    %c0_53 = arith.constant 0 : index
    %55 = vector.load %arg2[%c38_52, %c0_53] : memref<72x8xf32, #tpu.memory_space<vmem>>, vector<8x8xf32>
    %56 = arith.maximumf %54, %55 : vector<8x8xf32>
    %c38_54 = arith.constant 38 : index
    %c0_55 = arith.constant 0 : index
    %57 = vector.load %arg3[%c38_54, %c0_55] : memref<72x8xf32, #tpu.memory_space<vmem>>, vector<8x8xf32>
    %58 = arith.maximumf %56, %57 : vector<8x8xf32>
    %c48 = arith.constant 48 : index
    %c0_56 = arith.constant 0 : index
    %59 = vector.load %arg1[%c48, %c0_56] : memref<72x8xf32, #tpu.memory_space<vmem>>, vector<8x8xf32>
    %60 = arith.maximumf %58, %59 : vector<8x8xf32>
    %c50 = arith.constant 50 : index
    %c0_57 = arith.constant 0 : index
    %61 = vector.load %arg0[%c50, %c0_57] : memref<72x8xf32, #tpu.memory_space<vmem>>, vector<8x8xf32>
    %62 = arith.maximumf %60, %61 : vector<8x8xf32>
    %c50_58 = arith.constant 50 : index
    %c0_59 = arith.constant 0 : index
    %63 = vector.load %arg1[%c50_58, %c0_59] : memref<72x8xf32, #tpu.memory_space<vmem>>, vector<8x8xf32>
    %64 = arith.maximumf %62, %63 : vector<8x8xf32>
    %c48_60 = arith.constant 48 : index
    %c0_61 = arith.constant 0 : index
    %65 = vector.load %arg3[%c48_60, %c0_61] : memref<72x8xf32, #tpu.memory_space<vmem>>, vector<8x8xf32>
    %66 = arith.maximumf %64, %65 : vector<8x8xf32>
    %c50_62 = arith.constant 50 : index
    %c0_63 = arith.constant 0 : index
    %67 = vector.load %arg2[%c50_62, %c0_63] : memref<72x8xf32, #tpu.memory_space<vmem>>, vector<8x8xf32>
    %68 = arith.maximumf %66, %67 : vector<8x8xf32>
    %c50_64 = arith.constant 50 : index
    %c0_65 = arith.constant 0 : index
    %69 = vector.load %arg3[%c50_64, %c0_65] : memref<72x8xf32, #tpu.memory_space<vmem>>, vector<8x8xf32>
    %70 = arith.maximumf %68, %69 : vector<8x8xf32>
    %c24_66 = arith.constant 24 : index
    %c0_67 = arith.constant 0 : index
    %71 = vector.load %arg4[%c24_66, %c0_67] : memref<32x8xf32, #tpu.memory_space<vmem>>, vector<8x8xf32>
    tpu.vector_store %arg4[%c24_66, %c0_67], %70 {strides = array<i32>} : memref<32x8xf32, #tpu.memory_space<vmem>>, vector<8x8xf32>,
    return
  }
}

module attributes {stable_mosaic.version = 11 : i64} {
  func.func @_stem_kernel(%arg0: memref<242x4xf32, #tpu.memory_space<vmem>>, %arg1: memref<242x4xf32, #tpu.memory_space<vmem>>, %arg2: memref<242x4xf32, #tpu.memory_space<vmem>>, %arg3: memref<242x4xf32, #tpu.memory_space<vmem>>, %arg4: memref<49x4x8xbf16, #tpu.memory_space<vmem>>, %arg5: memref<1x8xf32, #tpu.memory_space<vmem>>, %arg6: memref<128x8xf32, #tpu.memory_space<vmem>>) attributes {dimension_semantics = [], scalar_prefetch = 0 : i64, scratch_operands = 0 : i64, tpu.core_type = #tpu.core_type<tc>} {
    %c0 = arith.constant 0 : index
    %c0_0 = arith.constant 0 : index
    %0 = vector.load %arg5[%c0, %c0_0] : memref<1x8xf32, #tpu.memory_space<vmem>>, vector<1x8xf32>
    %c0_i32 = arith.constant 0 : i32
    %c8_i32 = arith.constant 8 : i32
    %1 = arith.addi %c0_i32, %c8_i32 : i32
    %c1_i32 = arith.constant 1 : i32
    scf.for %arg7 = %c0_i32 to %1 step %c1_i32  : i32 {
      %cst = arith.constant 0.000000e+00 : f32
      %2 = vector.broadcast %cst : f32 to vector<16x8xf32>
      %3 = vector.broadcast %0 : vector<1x8xf32> to vector<16x8xf32>
      %4 = arith.addf %2, %3 : vector<16x8xf32>
      %c0_i32_2 = arith.constant 0 : i32
      %5 = arith.addi %arg7, %c0_i32_2 : i32
      %c11_i32 = arith.constant 11 : i32
      %6 = arith.muli %5, %c11_i32 : i32
      %c0_i32_3 = arith.constant 0 : i32
      %7 = arith.addi %6, %c0_i32_3 : i32
      %c2_i32 = arith.constant 2 : i32
      %8 = arith.muli %7, %c2_i32 : i32
      %9 = arith.index_cast %8 : i32 to index
      %c0_4 = arith.constant 0 : index
      %10 = vector.load %arg0[%9, %c0_4] : memref<242x4xf32, #tpu.memory_space<vmem>>, vector<16x4xf32>
      %11 = arith.truncf %10 : vector<16x4xf32> to vector<16x4xbf16>
      %c0_5 = arith.constant 0 : index
      %c0_6 = arith.constant 0 : index
      %c0_7 = arith.constant 0 : index
      %12 = vector.load %arg4[%c0_5, %c0_6, %c0_7] : memref<49x4x8xbf16, #tpu.memory_space<vmem>>, vector<1x4x8xbf16>
      %13 = vector.shape_cast %12 : vector<1x4x8xbf16> to vector<4x8xbf16>
      %cst_8 = arith.constant dense<0.000000e+00> : vector<16x8xf32>
      %14 = tpu.matmul %11, %13, %cst_8 {dimension_numbers = #tpu.dot_dimension_numbers<[1], [0], [0], [1], [0, 0, 1, 1], [], []>} : vector<16x4xbf16>, vector<4x8xbf16>, vector<16x8xf32> -> vector<16x8xf32>
      %15 = arith.addf %4, %14 : vector<16x8xf32>
      %c0_i32_9 = arith.constant 0 : i32
      %16 = arith.addi %arg7, %c0_i32_9 : i32
      %c11_i32_10 = arith.constant 11 : i32
      %17 = arith.muli %16, %c11_i32_10 : i32
      %c0_i32_11 = arith.constant 0 : i32
      %18 = arith.addi %17, %c0_i32_11 : i32
      %c2_i32_12 = arith.constant 2 : i32
      %19 = arith.muli %18, %c2_i32_12 : i32
      %20 = arith.index_cast %19 : i32 to index
      %c0_13 = arith.constant 0 : index
      %21 = vector.load %arg1[%20, %c0_13] : memref<242x4xf32, #tpu.memory_space<vmem>>, vector<16x4xf32>
      %22 = arith.truncf %21 : vector<16x4xf32> to vector<16x4xbf16>
      %c1 = arith.constant 1 : index
      %c0_14 = arith.constant 0 : index
      %c0_15 = arith.constant 0 : index
      %23 = vector.load %arg4[%c1, %c0_14, %c0_15] : memref<49x4x8xbf16, #tpu.memory_space<vmem>>, vector<1x4x8xbf16>
      %24 = vector.shape_cast %23 : vector<1x4x8xbf16> to vector<4x8xbf16>
      %cst_16 = arith.constant dense<0.000000e+00> : vector<16x8xf32>
      %25 = tpu.matmul %22, %24, %cst_16 {dimension_numbers = #tpu.dot_dimension_numbers<[1], [0], [0], [1], [0, 0, 1, 1], [], []>} : vector<16x4xbf16>, vector<4x8xbf16>, vector<16x8xf32> -> vector<16x8xf32>
      %26 = arith.addf %15, %25 : vector<16x8xf32>
      %c0_i32_17 = arith.constant 0 : i32
      %27 = arith.addi %arg7, %c0_i32_17 : i32
      %c11_i32_18 = arith.constant 11 : i32
      %28 = arith.muli %27, %c11_i32_18 : i32
      %c1_i32_19 = arith.constant 1 : i32
      %29 = arith.addi %28, %c1_i32_19 : i32
      %c2_i32_20 = arith.constant 2 : i32
      %30 = arith.muli %29, %c2_i32_20 : i32
      %31 = arith.index_cast %30 : i32 to index
      %c0_21 = arith.constant 0 : index
      %32 = vector.load %arg0[%31, %c0_21] : memref<242x4xf32, #tpu.memory_space<vmem>>, vector<16x4xf32>
      %33 = arith.truncf %32 : vector<16x4xf32> to vector<16x4xbf16>
      %c2 = arith.constant 2 : index
      %c0_22 = arith.constant 0 : index
      %c0_23 = arith.constant 0 : index
      %34 = vector.load %arg4[%c2, %c0_22, %c0_23] : memref<49x4x8xbf16, #tpu.memory_space<vmem>>, vector<1x4x8xbf16>
      %35 = vector.shape_cast %34 : vector<1x4x8xbf16> to vector<4x8xbf16>
      %cst_24 = arith.constant dense<0.000000e+00> : vector<16x8xf32>
      %36 = tpu.matmul %33, %35, %cst_24 {dimension_numbers = #tpu.dot_dimension_numbers<[1], [0], [0], [1], [0, 0, 1, 1], [], []>} : vector<16x4xbf16>, vector<4x8xbf16>, vector<16x8xf32> -> vector<16x8xf32>
      %37 = arith.addf %26, %36 : vector<16x8xf32>
      %c0_i32_25 = arith.constant 0 : i32
      %38 = arith.addi %arg7, %c0_i32_25 : i32
      %c11_i32_26 = arith.constant 11 : i32
      %39 = arith.muli %38, %c11_i32_26 : i32
      %c1_i32_27 = arith.constant 1 : i32
      %40 = arith.addi %39, %c1_i32_27 : i32
      %c2_i32_28 = arith.constant 2 : i32
      %41 = arith.muli %40, %c2_i32_28 : i32
      %42 = arith.index_cast %41 : i32 to index
      %c0_29 = arith.constant 0 : index
      %43 = vector.load %arg1[%42, %c0_29] : memref<242x4xf32, #tpu.memory_space<vmem>>, vector<16x4xf32>
      %44 = arith.truncf %43 : vector<16x4xf32> to vector<16x4xbf16>
      %c3 = arith.constant 3 : index
      %c0_30 = arith.constant 0 : index
      %c0_31 = arith.constant 0 : index
      %45 = vector.load %arg4[%c3, %c0_30, %c0_31] : memref<49x4x8xbf16, #tpu.memory_space<vmem>>, vector<1x4x8xbf16>
      %46 = vector.shape_cast %45 : vector<1x4x8xbf16> to vector<4x8xbf16>
      %cst_32 = arith.constant dense<0.000000e+00> : vector<16x8xf32>
      %47 = tpu.matmul %44, %46, %cst_32 {dimension_numbers = #tpu.dot_dimension_numbers<[1], [0], [0], [1], [0, 0, 1, 1], [], []>} : vector<16x4xbf16>, vector<4x8xbf16>, vector<16x8xf32> -> vector<16x8xf32>
      %48 = arith.addf %37, %47 : vector<16x8xf32>
      %c0_i32_33 = arith.constant 0 : i32
      %49 = arith.addi %arg7, %c0_i32_33 : i32
      %c11_i32_34 = arith.constant 11 : i32
      %50 = arith.muli %49, %c11_i32_34 : i32
      %c2_i32_35 = arith.constant 2 : i32
      %51 = arith.addi %50, %c2_i32_35 : i32
      %c2_i32_36 = arith.constant 2 : i32
      %52 = arith.muli %51, %c2_i32_36 : i32
      %53 = arith.index_cast %52 : i32 to index
      %c0_37 = arith.constant 0 : index
      %54 = vector.load %arg0[%53, %c0_37] : memref<242x4xf32, #tpu.memory_space<vmem>>, vector<16x4xf32>
      %55 = arith.truncf %54 : vector<16x4xf32> to vector<16x4xbf16>
      %c4 = arith.constant 4 : index
      %c0_38 = arith.constant 0 : index
      %c0_39 = arith.constant 0 : index
      %56 = vector.load %arg4[%c4, %c0_38, %c0_39] : memref<49x4x8xbf16, #tpu.memory_space<vmem>>, vector<1x4x8xbf16>
      %57 = vector.shape_cast %56 : vector<1x4x8xbf16> to vector<4x8xbf16>
      %cst_40 = arith.constant dense<0.000000e+00> : vector<16x8xf32>
      %58 = tpu.matmul %55, %57, %cst_40 {dimension_numbers = #tpu.dot_dimension_numbers<[1], [0], [0], [1], [0, 0, 1, 1], [], []>} : vector<16x4xbf16>, vector<4x8xbf16>, vector<16x8xf32> -> vector<16x8xf32>
      %59 = arith.addf %48, %58 : vector<16x8xf32>
      %c0_i32_41 = arith.constant 0 : i32
      %60 = arith.addi %arg7, %c0_i32_41 : i32
      %c11_i32_42 = arith.constant 11 : i32
      %61 = arith.muli %60, %c11_i32_42 : i32
      %c2_i32_43 = arith.constant 2 : i32
      %62 = arith.addi %61, %c2_i32_43 : i32
      %c2_i32_44 = arith.constant 2 : i32
      %63 = arith.muli %62, %c2_i32_44 : i32
      %64 = arith.index_cast %63 : i32 to index
      %c0_45 = arith.constant 0 : index
      %65 = vector.load %arg1[%64, %c0_45] : memref<242x4xf32, #tpu.memory_space<vmem>>, vector<16x4xf32>
      %66 = arith.truncf %65 : vector<16x4xf32> to vector<16x4xbf16>
      %c5 = arith.constant 5 : index
      %c0_46 = arith.constant 0 : index
      %c0_47 = arith.constant 0 : index
      %67 = vector.load %arg4[%c5, %c0_46, %c0_47] : memref<49x4x8xbf16, #tpu.memory_space<vmem>>, vector<1x4x8xbf16>
      %68 = vector.shape_cast %67 : vector<1x4x8xbf16> to vector<4x8xbf16>
      %cst_48 = arith.constant dense<0.000000e+00> : vector<16x8xf32>
      %69 = tpu.matmul %66, %68, %cst_48 {dimension_numbers = #tpu.dot_dimension_numbers<[1], [0], [0], [1], [0, 0, 1, 1], [], []>} : vector<16x4xbf16>, vector<4x8xbf16>, vector<16x8xf32> -> vector<16x8xf32>
      %70 = arith.addf %59, %69 : vector<16x8xf32>
      %c0_i32_49 = arith.constant 0 : i32
      %71 = arith.addi %arg7, %c0_i32_49 : i32
      %c11_i32_50 = arith.constant 11 : i32
      %72 = arith.muli %71, %c11_i32_50 : i32
      %c3_i32 = arith.constant 3 : i32
      %73 = arith.addi %72, %c3_i32 : i32
      %c2_i32_51 = arith.constant 2 : i32
      %74 = arith.muli %73, %c2_i32_51 : i32
      %75 = arith.index_cast %74 : i32 to index
      %c0_52 = arith.constant 0 : index
      %76 = vector.load %arg0[%75, %c0_52] : memref<242x4xf32, #tpu.memory_space<vmem>>, vector<16x4xf32>
      %77 = arith.truncf %76 : vector<16x4xf32> to vector<16x4xbf16>
      %c6 = arith.constant 6 : index
      %c0_53 = arith.constant 0 : index
      %c0_54 = arith.constant 0 : index
      %78 = vector.load %arg4[%c6, %c0_53, %c0_54] : memref<49x4x8xbf16, #tpu.memory_space<vmem>>, vector<1x4x8xbf16>
      %79 = vector.shape_cast %78 : vector<1x4x8xbf16> to vector<4x8xbf16>
      %cst_55 = arith.constant dense<0.000000e+00> : vector<16x8xf32>
      %80 = tpu.matmul %77, %79, %cst_55 {dimension_numbers = #tpu.dot_dimension_numbers<[1], [0], [0], [1], [0, 0, 1, 1], [], []>} : vector<16x4xbf16>, vector<4x8xbf16>, vector<16x8xf32> -> vector<16x8xf32>
      %81 = arith.addf %70, %80 : vector<16x8xf32>
      %c0_i32_56 = arith.constant 0 : i32
      %82 = arith.addi %arg7, %c0_i32_56 : i32
      %c11_i32_57 = arith.constant 11 : i32
      %83 = arith.muli %82, %c11_i32_57 : i32
      %c0_i32_58 = arith.constant 0 : i32
      %84 = arith.addi %83, %c0_i32_58 : i32
      %c2_i32_59 = arith.constant 2 : i32
      %85 = arith.muli %84, %c2_i32_59 : i32
      %86 = arith.index_cast %85 : i32 to index
      %c0_60 = arith.constant 0 : index
      %87 = vector.load %arg2[%86, %c0_60] : memref<242x4xf32, #tpu.memory_space<vmem>>, vector<16x4xf32>
      %88 = arith.truncf %87 : vector<16x4xf32> to vector<16x4xbf16>
      %c7 = arith.constant 7 : index
      %c0_61 = arith.constant 0 : index
      %c0_62 = arith.constant 0 : index
      %89 = vector.load %arg4[%c7, %c0_61, %c0_62] : memref<49x4x8xbf16, #tpu.memory_space<vmem>>, vector<1x4x8xbf16>
      %90 = vector.shape_cast %89 : vector<1x4x8xbf16> to vector<4x8xbf16>
      %cst_63 = arith.constant dense<0.000000e+00> : vector<16x8xf32>
      %91 = tpu.matmul %88, %90, %cst_63 {dimension_numbers = #tpu.dot_dimension_numbers<[1], [0], [0], [1], [0, 0, 1, 1], [], []>} : vector<16x4xbf16>, vector<4x8xbf16>, vector<16x8xf32> -> vector<16x8xf32>
      %92 = arith.addf %81, %91 : vector<16x8xf32>
      %c0_i32_64 = arith.constant 0 : i32
      %93 = arith.addi %arg7, %c0_i32_64 : i32
      %c11_i32_65 = arith.constant 11 : i32
      %94 = arith.muli %93, %c11_i32_65 : i32
      %c0_i32_66 = arith.constant 0 : i32
      %95 = arith.addi %94, %c0_i32_66 : i32
      %c2_i32_67 = arith.constant 2 : i32
      %96 = arith.muli %95, %c2_i32_67 : i32
      %97 = arith.index_cast %96 : i32 to index
      %c0_68 = arith.constant 0 : index
      %98 = vector.load %arg3[%97, %c0_68] : memref<242x4xf32, #tpu.memory_space<vmem>>, vector<16x4xf32>
      %99 = arith.truncf %98 : vector<16x4xf32> to vector<16x4xbf16>
      %c8 = arith.constant 8 : index
      %c0_69 = arith.constant 0 : index
      %c0_70 = arith.constant 0 : index
      %100 = vector.load %arg4[%c8, %c0_69, %c0_70] : memref<49x4x8xbf16, #tpu.memory_space<vmem>>, vector<1x4x8xbf16>
      %101 = vector.shape_cast %100 : vector<1x4x8xbf16> to vector<4x8xbf16>
      %cst_71 = arith.constant dense<0.000000e+00> : vector<16x8xf32>
      %102 = tpu.matmul %99, %101, %cst_71 {dimension_numbers = #tpu.dot_dimension_numbers<[1], [0], [0], [1], [0, 0, 1, 1], [], []>} : vector<16x4xbf16>, vector<4x8xbf16>, vector<16x8xf32> -> vector<16x8xf32>
      %103 = arith.addf %92, %102 : vector<16x8xf32>
      %c0_i32_72 = arith.constant 0 : i32
      %104 = arith.addi %arg7, %c0_i32_72 : i32
      %c11_i32_73 = arith.constant 11 : i32
      %105 = arith.muli %104, %c11_i32_73 : i32
      %c1_i32_74 = arith.constant 1 : i32
      %106 = arith.addi %105, %c1_i32_74 : i32
      %c2_i32_75 = arith.constant 2 : i32
      %107 = arith.muli %106, %c2_i32_75 : i32
      %108 = arith.index_cast %107 : i32 to index
      %c0_76 = arith.constant 0 : index
      %109 = vector.load %arg2[%108, %c0_76] : memref<242x4xf32, #tpu.memory_space<vmem>>, vector<16x4xf32>
      %110 = arith.truncf %109 : vector<16x4xf32> to vector<16x4xbf16>
      %c9 = arith.constant 9 : index
      %c0_77 = arith.constant 0 : index
      %c0_78 = arith.constant 0 : index
      %111 = vector.load %arg4[%c9, %c0_77, %c0_78] : memref<49x4x8xbf16, #tpu.memory_space<vmem>>, vector<1x4x8xbf16>
      %112 = vector.shape_cast %111 : vector<1x4x8xbf16> to vector<4x8xbf16>
      %cst_79 = arith.constant dense<0.000000e+00> : vector<16x8xf32>
      %113 = tpu.matmul %110, %112, %cst_79 {dimension_numbers = #tpu.dot_dimension_numbers<[1], [0], [0], [1], [0, 0, 1, 1], [], []>} : vector<16x4xbf16>, vector<4x8xbf16>, vector<16x8xf32> -> vector<16x8xf32>
      %114 = arith.addf %103, %113 : vector<16x8xf32>
      %c0_i32_80 = arith.constant 0 : i32
      %115 = arith.addi %arg7, %c0_i32_80 : i32
      %c11_i32_81 = arith.constant 11 : i32
      %116 = arith.muli %115, %c11_i32_81 : i32
      %c1_i32_82 = arith.constant 1 : i32
      %117 = arith.addi %116, %c1_i32_82 : i32
      %c2_i32_83 = arith.constant 2 : i32
      %118 = arith.muli %117, %c2_i32_83 : i32
      %119 = arith.index_cast %118 : i32 to index
      %c0_84 = arith.constant 0 : index
      %120 = vector.load %arg3[%119, %c0_84] : memref<242x4xf32, #tpu.memory_space<vmem>>, vector<16x4xf32>
      %121 = arith.truncf %120 : vector<16x4xf32> to vector<16x4xbf16>
      %c10 = arith.constant 10 : index
      %c0_85 = arith.constant 0 : index
      %c0_86 = arith.constant 0 : index
      %122 = vector.load %arg4[%c10, %c0_85, %c0_86] : memref<49x4x8xbf16, #tpu.memory_space<vmem>>, vector<1x4x8xbf16>
      %123 = vector.shape_cast %122 : vector<1x4x8xbf16> to vector<4x8xbf16>
      %cst_87 = arith.constant dense<0.000000e+00> : vector<16x8xf32>
      %124 = tpu.matmul %121, %123, %cst_87 {dimension_numbers = #tpu.dot_dimension_numbers<[1], [0], [0], [1], [0, 0, 1, 1], [], []>} : vector<16x4xbf16>, vector<4x8xbf16>, vector<16x8xf32> -> vector<16x8xf32>
      %125 = arith.addf %114, %124 : vector<16x8xf32>
      %c0_i32_88 = arith.constant 0 : i32
      %126 = arith.addi %arg7, %c0_i32_88 : i32
      %c11_i32_89 = arith.constant 11 : i32
      %127 = arith.muli %126, %c11_i32_89 : i32
      %c2_i32_90 = arith.constant 2 : i32
      %128 = arith.addi %127, %c2_i32_90 : i32
      %c2_i32_91 = arith.constant 2 : i32
      %129 = arith.muli %128, %c2_i32_91 : i32
      %130 = arith.index_cast %129 : i32 to index
      %c0_92 = arith.constant 0 : index
      %131 = vector.load %arg2[%130, %c0_92] : memref<242x4xf32, #tpu.memory_space<vmem>>, vector<16x4xf32>
      %132 = arith.truncf %131 : vector<16x4xf32> to vector<16x4xbf16>
      %c11 = arith.constant 11 : index
      %c0_93 = arith.constant 0 : index
      %c0_94 = arith.constant 0 : index
      %133 = vector.load %arg4[%c11, %c0_93, %c0_94] : memref<49x4x8xbf16, #tpu.memory_space<vmem>>, vector<1x4x8xbf16>
      %134 = vector.shape_cast %133 : vector<1x4x8xbf16> to vector<4x8xbf16>
      %cst_95 = arith.constant dense<0.000000e+00> : vector<16x8xf32>
      %135 = tpu.matmul %132, %134, %cst_95 {dimension_numbers = #tpu.dot_dimension_numbers<[1], [0], [0], [1], [0, 0, 1, 1], [], []>} : vector<16x4xbf16>, vector<4x8xbf16>, vector<16x8xf32> -> vector<16x8xf32>
      %136 = arith.addf %125, %135 : vector<16x8xf32>
      %c0_i32_96 = arith.constant 0 : i32
      %137 = arith.addi %arg7, %c0_i32_96 : i32
      %c11_i32_97 = arith.constant 11 : i32
      %138 = arith.muli %137, %c11_i32_97 : i32
      %c2_i32_98 = arith.constant 2 : i32
      %139 = arith.addi %138, %c2_i32_98 : i32
      %c2_i32_99 = arith.constant 2 : i32
      %140 = arith.muli %139, %c2_i32_99 : i32
      %141 = arith.index_cast %140 : i32 to index
      %c0_100 = arith.constant 0 : index
      %142 = vector.load %arg3[%141, %c0_100] : memref<242x4xf32, #tpu.memory_space<vmem>>, vector<16x4xf32>
      %143 = arith.truncf %142 : vector<16x4xf32> to vector<16x4xbf16>
      %c12 = arith.constant 12 : index
      %c0_101 = arith.constant 0 : index
      %c0_102 = arith.constant 0 : index
      %144 = vector.load %arg4[%c12, %c0_101, %c0_102] : memref<49x4x8xbf16, #tpu.memory_space<vmem>>, vector<1x4x8xbf16>
      %145 = vector.shape_cast %144 : vector<1x4x8xbf16> to vector<4x8xbf16>
      %cst_103 = arith.constant dense<0.000000e+00> : vector<16x8xf32>
      %146 = tpu.matmul %143, %145, %cst_103 {dimension_numbers = #tpu.dot_dimension_numbers<[1], [0], [0], [1], [0, 0, 1, 1], [], []>} : vector<16x4xbf16>, vector<4x8xbf16>, vector<16x8xf32> -> vector<16x8xf32>
      %147 = arith.addf %136, %146 : vector<16x8xf32>
      %c0_i32_104 = arith.constant 0 : i32
      %148 = arith.addi %arg7, %c0_i32_104 : i32
      %c11_i32_105 = arith.constant 11 : i32
      %149 = arith.muli %148, %c11_i32_105 : i32
      %c3_i32_106 = arith.constant 3 : i32
      %150 = arith.addi %149, %c3_i32_106 : i32
      %c2_i32_107 = arith.constant 2 : i32
      %151 = arith.muli %150, %c2_i32_107 : i32
      %152 = arith.index_cast %151 : i32 to index
      %c0_108 = arith.constant 0 : index
      %153 = vector.load %arg2[%152, %c0_108] : memref<242x4xf32, #tpu.memory_space<vmem>>, vector<16x4xf32>
      %154 = arith.truncf %153 : vector<16x4xf32> to vector<16x4xbf16>
      %c13 = arith.constant 13 : index
      %c0_109 = arith.constant 0 : index
      %c0_110 = arith.constant 0 : index
      %155 = vector.load %arg4[%c13, %c0_109, %c0_110] : memref<49x4x8xbf16, #tpu.memory_space<vmem>>, vector<1x4x8xbf16>
      %156 = vector.shape_cast %155 : vector<1x4x8xbf16> to vector<4x8xbf16>
      %cst_111 = arith.constant dense<0.000000e+00> : vector<16x8xf32>
      %157 = tpu.matmul %154, %156, %cst_111 {dimension_numbers = #tpu.dot_dimension_numbers<[1], [0], [0], [1], [0, 0, 1, 1], [], []>} : vector<16x4xbf16>, vector<4x8xbf16>, vector<16x8xf32> -> vector<16x8xf32>
      %158 = arith.addf %147, %157 : vector<16x8xf32>
      %c1_i32_112 = arith.constant 1 : i32
      %159 = arith.addi %arg7, %c1_i32_112 : i32
      %c11_i32_113 = arith.constant 11 : i32
      %160 = arith.muli %159, %c11_i32_113 : i32
      %c0_i32_114 = arith.constant 0 : i32
      %161 = arith.addi %160, %c0_i32_114 : i32
      %c2_i32_115 = arith.constant 2 : i32
      %162 = arith.muli %161, %c2_i32_115 : i32
      %163 = arith.index_cast %162 : i32 to index
      %c0_116 = arith.constant 0 : index
      %164 = vector.load %arg0[%163, %c0_116] : memref<242x4xf32, #tpu.memory_space<vmem>>, vector<16x4xf32>
      %165 = arith.truncf %164 : vector<16x4xf32> to vector<16x4xbf16>
      %c14 = arith.constant 14 : index
      %c0_117 = arith.constant 0 : index
      %c0_118 = arith.constant 0 : index
      %166 = vector.load %arg4[%c14, %c0_117, %c0_118] : memref<49x4x8xbf16, #tpu.memory_space<vmem>>, vector<1x4x8xbf16>
      %167 = vector.shape_cast %166 : vector<1x4x8xbf16> to vector<4x8xbf16>
      %cst_119 = arith.constant dense<0.000000e+00> : vector<16x8xf32>
      %168 = tpu.matmul %165, %167, %cst_119 {dimension_numbers = #tpu.dot_dimension_numbers<[1], [0], [0], [1], [0, 0, 1, 1], [], []>} : vector<16x4xbf16>, vector<4x8xbf16>, vector<16x8xf32> -> vector<16x8xf32>
      %169 = arith.addf %158, %168 : vector<16x8xf32>
      %c1_i32_120 = arith.constant 1 : i32
      %170 = arith.addi %arg7, %c1_i32_120 : i32
      %c11_i32_121 = arith.constant 11 : i32
      %171 = arith.muli %170, %c11_i32_121 : i32
      %c0_i32_122 = arith.constant 0 : i32
      %172 = arith.addi %171, %c0_i32_122 : i32
      %c2_i32_123 = arith.constant 2 : i32
      %173 = arith.muli %172, %c2_i32_123 : i32
      %174 = arith.index_cast %173 : i32 to index
      %c0_124 = arith.constant 0 : index
      %175 = vector.load %arg1[%174, %c0_124] : memref<242x4xf32, #tpu.memory_space<vmem>>, vector<16x4xf32>
      %176 = arith.truncf %175 : vector<16x4xf32> to vector<16x4xbf16>
      %c15 = arith.constant 15 : index
      %c0_125 = arith.constant 0 : index
      %c0_126 = arith.constant 0 : index
      %177 = vector.load %arg4[%c15, %c0_125, %c0_126] : memref<49x4x8xbf16, #tpu.memory_space<vmem>>, vector<1x4x8xbf16>
      %178 = vector.shape_cast %177 : vector<1x4x8xbf16> to vector<4x8xbf16>
      %cst_127 = arith.constant dense<0.000000e+00> : vector<16x8xf32>
      %179 = tpu.matmul %176, %178, %cst_127 {dimension_numbers = #tpu.dot_dimension_numbers<[1], [0], [0], [1], [0, 0, 1, 1], [], []>} : vector<16x4xbf16>, vector<4x8xbf16>, vector<16x8xf32> -> vector<16x8xf32>
      %180 = arith.addf %169, %179 : vector<16x8xf32>
      %c1_i32_128 = arith.constant 1 : i32
      %181 = arith.addi %arg7, %c1_i32_128 : i32
      %c11_i32_129 = arith.constant 11 : i32
      %182 = arith.muli %181, %c11_i32_129 : i32
      %c1_i32_130 = arith.constant 1 : i32
      %183 = arith.addi %182, %c1_i32_130 : i32
      %c2_i32_131 = arith.constant 2 : i32
      %184 = arith.muli %183, %c2_i32_131 : i32
      %185 = arith.index_cast %184 : i32 to index
      %c0_132 = arith.constant 0 : index
      %186 = vector.load %arg0[%185, %c0_132] : memref<242x4xf32, #tpu.memory_space<vmem>>, vector<16x4xf32>
      %187 = arith.truncf %186 : vector<16x4xf32> to vector<16x4xbf16>
      %c16 = arith.constant 16 : index
      %c0_133 = arith.constant 0 : index
      %c0_134 = arith.constant 0 : index
      %188 = vector.load %arg4[%c16, %c0_133, %c0_134] : memref<49x4x8xbf16, #tpu.memory_space<vmem>>, vector<1x4x8xbf16>
      %189 = vector.shape_cast %188 : vector<1x4x8xbf16> to vector<4x8xbf16>
      %cst_135 = arith.constant dense<0.000000e+00> : vector<16x8xf32>
      %190 = tpu.matmul %187, %189, %cst_135 {dimension_numbers = #tpu.dot_dimension_numbers<[1], [0], [0], [1], [0, 0, 1, 1], [], []>} : vector<16x4xbf16>, vector<4x8xbf16>, vector<16x8xf32> -> vector<16x8xf32>
      %191 = arith.addf %180, %190 : vector<16x8xf32>
      %c1_i32_136 = arith.constant 1 : i32
      %192 = arith.addi %arg7, %c1_i32_136 : i32
      %c11_i32_137 = arith.constant 11 : i32
      %193 = arith.muli %192, %c11_i32_137 : i32
      %c1_i32_138 = arith.constant 1 : i32
      %194 = arith.addi %193, %c1_i32_138 : i32
      %c2_i32_139 = arith.constant 2 : i32
      %195 = arith.muli %194, %c2_i32_139 : i32
      %196 = arith.index_cast %195 : i32 to index
      %c0_140 = arith.constant 0 : index
      %197 = vector.load %arg1[%196, %c0_140] : memref<242x4xf32, #tpu.memory_space<vmem>>, vector<16x4xf32>
      %198 = arith.truncf %197 : vector<16x4xf32> to vector<16x4xbf16>
      %c17 = arith.constant 17 : index
      %c0_141 = arith.constant 0 : index
      %c0_142 = arith.constant 0 : index
      %199 = vector.load %arg4[%c17, %c0_141, %c0_142] : memref<49x4x8xbf16, #tpu.memory_space<vmem>>, vector<1x4x8xbf16>
      %200 = vector.shape_cast %199 : vector<1x4x8xbf16> to vector<4x8xbf16>
      %cst_143 = arith.constant dense<0.000000e+00> : vector<16x8xf32>
      %201 = tpu.matmul %198, %200, %cst_143 {dimension_numbers = #tpu.dot_dimension_numbers<[1], [0], [0], [1], [0, 0, 1, 1], [], []>} : vector<16x4xbf16>, vector<4x8xbf16>, vector<16x8xf32> -> vector<16x8xf32>
      %202 = arith.addf %191, %201 : vector<16x8xf32>
      %c1_i32_144 = arith.constant 1 : i32
      %203 = arith.addi %arg7, %c1_i32_144 : i32
      %c11_i32_145 = arith.constant 11 : i32
      %204 = arith.muli %203, %c11_i32_145 : i32
      %c2_i32_146 = arith.constant 2 : i32
      %205 = arith.addi %204, %c2_i32_146 : i32
      %c2_i32_147 = arith.constant 2 : i32
      %206 = arith.muli %205, %c2_i32_147 : i32
      %207 = arith.index_cast %206 : i32 to index
      %c0_148 = arith.constant 0 : index
      %208 = vector.load %arg0[%207, %c0_148] : memref<242x4xf32, #tpu.memory_space<vmem>>, vector<16x4xf32>
      %209 = arith.truncf %208 : vector<16x4xf32> to vector<16x4xbf16>
      %c18 = arith.constant 18 : index
      %c0_149 = arith.constant 0 : index
      %c0_150 = arith.constant 0 : index
      %210 = vector.load %arg4[%c18, %c0_149, %c0_150] : memref<49x4x8xbf16, #tpu.memory_space<vmem>>, vector<1x4x8xbf16>
      %211 = vector.shape_cast %210 : vector<1x4x8xbf16> to vector<4x8xbf16>
      %cst_151 = arith.constant dense<0.000000e+00> : vector<16x8xf32>
      %212 = tpu.matmul %209, %211, %cst_151 {dimension_numbers = #tpu.dot_dimension_numbers<[1], [0], [0], [1], [0, 0, 1, 1], [], []>} : vector<16x4xbf16>, vector<4x8xbf16>, vector<16x8xf32> -> vector<16x8xf32>
      %213 = arith.addf %202, %212 : vector<16x8xf32>
      %c1_i32_152 = arith.constant 1 : i32
      %214 = arith.addi %arg7, %c1_i32_152 : i32
      %c11_i32_153 = arith.constant 11 : i32
      %215 = arith.muli %214, %c11_i32_153 : i32
      %c2_i32_154 = arith.constant 2 : i32
      %216 = arith.addi %215, %c2_i32_154 : i32
      %c2_i32_155 = arith.constant 2 : i32
      %217 = arith.muli %216, %c2_i32_155 : i32
      %218 = arith.index_cast %217 : i32 to index
      %c0_156 = arith.constant 0 : index
      %219 = vector.load %arg1[%218, %c0_156] : memref<242x4xf32, #tpu.memory_space<vmem>>, vector<16x4xf32>
      %220 = arith.truncf %219 : vector<16x4xf32> to vector<16x4xbf16>
      %c19 = arith.constant 19 : index
      %c0_157 = arith.constant 0 : index
      %c0_158 = arith.constant 0 : index
      %221 = vector.load %arg4[%c19, %c0_157, %c0_158] : memref<49x4x8xbf16, #tpu.memory_space<vmem>>, vector<1x4x8xbf16>
      %222 = vector.shape_cast %221 : vector<1x4x8xbf16> to vector<4x8xbf16>
      %cst_159 = arith.constant dense<0.000000e+00> : vector<16x8xf32>
      %223 = tpu.matmul %220, %222, %cst_159 {dimension_numbers = #tpu.dot_dimension_numbers<[1], [0], [0], [1], [0, 0, 1, 1], [], []>} : vector<16x4xbf16>, vector<4x8xbf16>, vector<16x8xf32> -> vector<16x8xf32>
      %224 = arith.addf %213, %223 : vector<16x8xf32>
      %c1_i32_160 = arith.constant 1 : i32
      %225 = arith.addi %arg7, %c1_i32_160 : i32
      %c11_i32_161 = arith.constant 11 : i32
      %226 = arith.muli %225, %c11_i32_161 : i32
      %c3_i32_162 = arith.constant 3 : i32
      %227 = arith.addi %226, %c3_i32_162 : i32
      %c2_i32_163 = arith.constant 2 : i32
      %228 = arith.muli %227, %c2_i32_163 : i32
      %229 = arith.index_cast %228 : i32 to index
      %c0_164 = arith.constant 0 : index
      %230 = vector.load %arg0[%229, %c0_164] : memref<242x4xf32, #tpu.memory_space<vmem>>, vector<16x4xf32>
      %231 = arith.truncf %230 : vector<16x4xf32> to vector<16x4xbf16>
      %c20 = arith.constant 20 : index
      %c0_165 = arith.constant 0 : index
      %c0_166 = arith.constant 0 : index
      %232 = vector.load %arg4[%c20, %c0_165, %c0_166] : memref<49x4x8xbf16, #tpu.memory_space<vmem>>, vector<1x4x8xbf16>
      %233 = vector.shape_cast %232 : vector<1x4x8xbf16> to vector<4x8xbf16>
      %cst_167 = arith.constant dense<0.000000e+00> : vector<16x8xf32>
      %234 = tpu.matmul %231, %233, %cst_167 {dimension_numbers = #tpu.dot_dimension_numbers<[1], [0], [0], [1], [0, 0, 1, 1], [], []>} : vector<16x4xbf16>, vector<4x8xbf16>, vector<16x8xf32> -> vector<16x8xf32>
      %235 = arith.addf %224, %234 : vector<16x8xf32>
      %c1_i32_168 = arith.constant 1 : i32
      %236 = arith.addi %arg7, %c1_i32_168 : i32
      %c11_i32_169 = arith.constant 11 : i32
      %237 = arith.muli %236, %c11_i32_169 : i32
      %c0_i32_170 = arith.constant 0 : i32
      %238 = arith.addi %237, %c0_i32_170 : i32
      %c2_i32_171 = arith.constant 2 : i32
      %239 = arith.muli %238, %c2_i32_171 : i32
      %240 = arith.index_cast %239 : i32 to index
      %c0_172 = arith.constant 0 : index
      %241 = vector.load %arg2[%240, %c0_172] : memref<242x4xf32, #tpu.memory_space<vmem>>, vector<16x4xf32>
      %242 = arith.truncf %241 : vector<16x4xf32> to vector<16x4xbf16>
      %c21 = arith.constant 21 : index
      %c0_173 = arith.constant 0 : index
      %c0_174 = arith.constant 0 : index
      %243 = vector.load %arg4[%c21, %c0_173, %c0_174] : memref<49x4x8xbf16, #tpu.memory_space<vmem>>, vector<1x4x8xbf16>
      %244 = vector.shape_cast %243 : vector<1x4x8xbf16> to vector<4x8xbf16>
      %cst_175 = arith.constant dense<0.000000e+00> : vector<16x8xf32>
      %245 = tpu.matmul %242, %244, %cst_175 {dimension_numbers = #tpu.dot_dimension_numbers<[1], [0], [0], [1], [0, 0, 1, 1], [], []>} : vector<16x4xbf16>, vector<4x8xbf16>, vector<16x8xf32> -> vector<16x8xf32>
      %246 = arith.addf %235, %245 : vector<16x8xf32>
      %c1_i32_176 = arith.constant 1 : i32
      %247 = arith.addi %arg7, %c1_i32_176 : i32
      %c11_i32_177 = arith.constant 11 : i32
      %248 = arith.muli %247, %c11_i32_177 : i32
      %c0_i32_178 = arith.constant 0 : i32
      %249 = arith.addi %248, %c0_i32_178 : i32
      %c2_i32_179 = arith.constant 2 : i32
      %250 = arith.muli %249, %c2_i32_179 : i32
      %251 = arith.index_cast %250 : i32 to index
      %c0_180 = arith.constant 0 : index
      %252 = vector.load %arg3[%251, %c0_180] : memref<242x4xf32, #tpu.memory_space<vmem>>, vector<16x4xf32>
      %253 = arith.truncf %252 : vector<16x4xf32> to vector<16x4xbf16>
      %c22 = arith.constant 22 : index
      %c0_181 = arith.constant 0 : index
      %c0_182 = arith.constant 0 : index
      %254 = vector.load %arg4[%c22, %c0_181, %c0_182] : memref<49x4x8xbf16, #tpu.memory_space<vmem>>, vector<1x4x8xbf16>
      %255 = vector.shape_cast %254 : vector<1x4x8xbf16> to vector<4x8xbf16>
      %cst_183 = arith.constant dense<0.000000e+00> : vector<16x8xf32>
      %256 = tpu.matmul %253, %255, %cst_183 {dimension_numbers = #tpu.dot_dimension_numbers<[1], [0], [0], [1], [0, 0, 1, 1], [], []>} : vector<16x4xbf16>, vector<4x8xbf16>, vector<16x8xf32> -> vector<16x8xf32>
      %257 = arith.addf %246, %256 : vector<16x8xf32>
      %c1_i32_184 = arith.constant 1 : i32
      %258 = arith.addi %arg7, %c1_i32_184 : i32
      %c11_i32_185 = arith.constant 11 : i32
      %259 = arith.muli %258, %c11_i32_185 : i32
      %c1_i32_186 = arith.constant 1 : i32
      %260 = arith.addi %259, %c1_i32_186 : i32
      %c2_i32_187 = arith.constant 2 : i32
      %261 = arith.muli %260, %c2_i32_187 : i32
      %262 = arith.index_cast %261 : i32 to index
      %c0_188 = arith.constant 0 : index
      %263 = vector.load %arg2[%262, %c0_188] : memref<242x4xf32, #tpu.memory_space<vmem>>, vector<16x4xf32>
      %264 = arith.truncf %263 : vector<16x4xf32> to vector<16x4xbf16>
      %c23 = arith.constant 23 : index
      %c0_189 = arith.constant 0 : index
      %c0_190 = arith.constant 0 : index
      %265 = vector.load %arg4[%c23, %c0_189, %c0_190] : memref<49x4x8xbf16, #tpu.memory_space<vmem>>, vector<1x4x8xbf16>
      %266 = vector.shape_cast %265 : vector<1x4x8xbf16> to vector<4x8xbf16>
      %cst_191 = arith.constant dense<0.000000e+00> : vector<16x8xf32>
      %267 = tpu.matmul %264, %266, %cst_191 {dimension_numbers = #tpu.dot_dimension_numbers<[1], [0], [0], [1], [0, 0, 1, 1], [], []>} : vector<16x4xbf16>, vector<4x8xbf16>, vector<16x8xf32> -> vector<16x8xf32>
      %268 = arith.addf %257, %267 : vector<16x8xf32>
      %c1_i32_192 = arith.constant 1 : i32
      %269 = arith.addi %arg7, %c1_i32_192 : i32
      %c11_i32_193 = arith.constant 11 : i32
      %270 = arith.muli %269, %c11_i32_193 : i32
      %c1_i32_194 = arith.constant 1 : i32
      %271 = arith.addi %270, %c1_i32_194 : i32
      %c2_i32_195 = arith.constant 2 : i32
      %272 = arith.muli %271, %c2_i32_195 : i32
      %273 = arith.index_cast %272 : i32 to index
      %c0_196 = arith.constant 0 : index
      %274 = vector.load %arg3[%273, %c0_196] : memref<242x4xf32, #tpu.memory_space<vmem>>, vector<16x4xf32>
      %275 = arith.truncf %274 : vector<16x4xf32> to vector<16x4xbf16>
      %c24 = arith.constant 24 : index
      %c0_197 = arith.constant 0 : index
      %c0_198 = arith.constant 0 : index
      %276 = vector.load %arg4[%c24, %c0_197, %c0_198] : memref<49x4x8xbf16, #tpu.memory_space<vmem>>, vector<1x4x8xbf16>
      %277 = vector.shape_cast %276 : vector<1x4x8xbf16> to vector<4x8xbf16>
      %cst_199 = arith.constant dense<0.000000e+00> : vector<16x8xf32>
      %278 = tpu.matmul %275, %277, %cst_199 {dimension_numbers = #tpu.dot_dimension_numbers<[1], [0], [0], [1], [0, 0, 1, 1], [], []>} : vector<16x4xbf16>, vector<4x8xbf16>, vector<16x8xf32> -> vector<16x8xf32>
      %279 = arith.addf %268, %278 : vector<16x8xf32>
      %c1_i32_200 = arith.constant 1 : i32
      %280 = arith.addi %arg7, %c1_i32_200 : i32
      %c11_i32_201 = arith.constant 11 : i32
      %281 = arith.muli %280, %c11_i32_201 : i32
      %c2_i32_202 = arith.constant 2 : i32
      %282 = arith.addi %281, %c2_i32_202 : i32
      %c2_i32_203 = arith.constant 2 : i32
      %283 = arith.muli %282, %c2_i32_203 : i32
      %284 = arith.index_cast %283 : i32 to index
      %c0_204 = arith.constant 0 : index
      %285 = vector.load %arg2[%284, %c0_204] : memref<242x4xf32, #tpu.memory_space<vmem>>, vector<16x4xf32>
      %286 = arith.truncf %285 : vector<16x4xf32> to vector<16x4xbf16>
      %c25 = arith.constant 25 : index
      %c0_205 = arith.constant 0 : index
      %c0_206 = arith.constant 0 : index
      %287 = vector.load %arg4[%c25, %c0_205, %c0_206] : memref<49x4x8xbf16, #tpu.memory_space<vmem>>, vector<1x4x8xbf16>
      %288 = vector.shape_cast %287 : vector<1x4x8xbf16> to vector<4x8xbf16>
      %cst_207 = arith.constant dense<0.000000e+00> : vector<16x8xf32>
      %289 = tpu.matmul %286, %288, %cst_207 {dimension_numbers = #tpu.dot_dimension_numbers<[1], [0], [0], [1], [0, 0, 1, 1], [], []>} : vector<16x4xbf16>, vector<4x8xbf16>, vector<16x8xf32> -> vector<16x8xf32>
      %290 = arith.addf %279, %289 : vector<16x8xf32>
      %c1_i32_208 = arith.constant 1 : i32
      %291 = arith.addi %arg7, %c1_i32_208 : i32
      %c11_i32_209 = arith.constant 11 : i32
      %292 = arith.muli %291, %c11_i32_209 : i32
      %c2_i32_210 = arith.constant 2 : i32
      %293 = arith.addi %292, %c2_i32_210 : i32
      %c2_i32_211 = arith.constant 2 : i32
      %294 = arith.muli %293, %c2_i32_211 : i32
      %295 = arith.index_cast %294 : i32 to index
      %c0_212 = arith.constant 0 : index
      %296 = vector.load %arg3[%295, %c0_212] : memref<242x4xf32, #tpu.memory_space<vmem>>, vector<16x4xf32>
      %297 = arith.truncf %296 : vector<16x4xf32> to vector<16x4xbf16>
      %c26 = arith.constant 26 : index
      %c0_213 = arith.constant 0 : index
      %c0_214 = arith.constant 0 : index
      %298 = vector.load %arg4[%c26, %c0_213, %c0_214] : memref<49x4x8xbf16, #tpu.memory_space<vmem>>, vector<1x4x8xbf16>
      %299 = vector.shape_cast %298 : vector<1x4x8xbf16> to vector<4x8xbf16>
      %cst_215 = arith.constant dense<0.000000e+00> : vector<16x8xf32>
      %300 = tpu.matmul %297, %299, %cst_215 {dimension_numbers = #tpu.dot_dimension_numbers<[1], [0], [0], [1], [0, 0, 1, 1], [], []>} : vector<16x4xbf16>, vector<4x8xbf16>, vector<16x8xf32> -> vector<16x8xf32>
      %301 = arith.addf %290, %300 : vector<16x8xf32>
      %c1_i32_216 = arith.constant 1 : i32
      %302 = arith.addi %arg7, %c1_i32_216 : i32
      %c11_i32_217 = arith.constant 11 : i32
      %303 = arith.muli %302, %c11_i32_217 : i32
      %c3_i32_218 = arith.constant 3 : i32
      %304 = arith.addi %303, %c3_i32_218 : i32
      %c2_i32_219 = arith.constant 2 : i32
      %305 = arith.muli %304, %c2_i32_219 : i32
      %306 = arith.index_cast %305 : i32 to index
      %c0_220 = arith.constant 0 : index
      %307 = vector.load %arg2[%306, %c0_220] : memref<242x4xf32, #tpu.memory_space<vmem>>, vector<16x4xf32>
      %308 = arith.truncf %307 : vector<16x4xf32> to vector<16x4xbf16>
      %c27 = arith.constant 27 : index
      %c0_221 = arith.constant 0 : index
      %c0_222 = arith.constant 0 : index
      %309 = vector.load %arg4[%c27, %c0_221, %c0_222] : memref<49x4x8xbf16, #tpu.memory_space<vmem>>, vector<1x4x8xbf16>
      %310 = vector.shape_cast %309 : vector<1x4x8xbf16> to vector<4x8xbf16>
      %cst_223 = arith.constant dense<0.000000e+00> : vector<16x8xf32>
      %311 = tpu.matmul %308, %310, %cst_223 {dimension_numbers = #tpu.dot_dimension_numbers<[1], [0], [0], [1], [0, 0, 1, 1], [], []>} : vector<16x4xbf16>, vector<4x8xbf16>, vector<16x8xf32> -> vector<16x8xf32>
      %312 = arith.addf %301, %311 : vector<16x8xf32>
      %c2_i32_224 = arith.constant 2 : i32
      %313 = arith.addi %arg7, %c2_i32_224 : i32
      %c11_i32_225 = arith.constant 11 : i32
      %314 = arith.muli %313, %c11_i32_225 : i32
      %c0_i32_226 = arith.constant 0 : i32
      %315 = arith.addi %314, %c0_i32_226 : i32
      %c2_i32_227 = arith.constant 2 : i32
      %316 = arith.muli %315, %c2_i32_227 : i32
      %317 = arith.index_cast %316 : i32 to index
      %c0_228 = arith.constant 0 : index
      %318 = vector.load %arg0[%317, %c0_228] : memref<242x4xf32, #tpu.memory_space<vmem>>, vector<16x4xf32>
      %319 = arith.truncf %318 : vector<16x4xf32> to vector<16x4xbf16>
      %c28 = arith.constant 28 : index
      %c0_229 = arith.constant 0 : index
      %c0_230 = arith.constant 0 : index
      %320 = vector.load %arg4[%c28, %c0_229, %c0_230] : memref<49x4x8xbf16, #tpu.memory_space<vmem>>, vector<1x4x8xbf16>
      %321 = vector.shape_cast %320 : vector<1x4x8xbf16> to vector<4x8xbf16>
      %cst_231 = arith.constant dense<0.000000e+00> : vector<16x8xf32>
      %322 = tpu.matmul %319, %321, %cst_231 {dimension_numbers = #tpu.dot_dimension_numbers<[1], [0], [0], [1], [0, 0, 1, 1], [], []>} : vector<16x4xbf16>, vector<4x8xbf16>, vector<16x8xf32> -> vector<16x8xf32>
      %323 = arith.addf %312, %322 : vector<16x8xf32>
      %c2_i32_232 = arith.constant 2 : i32
      %324 = arith.addi %arg7, %c2_i32_232 : i32
      %c11_i32_233 = arith.constant 11 : i32
      %325 = arith.muli %324, %c11_i32_233 : i32
      %c0_i32_234 = arith.constant 0 : i32
      %326 = arith.addi %325, %c0_i32_234 : i32
      %c2_i32_235 = arith.constant 2 : i32
      %327 = arith.muli %326, %c2_i32_235 : i32
      %328 = arith.index_cast %327 : i32 to index
      %c0_236 = arith.constant 0 : index
      %329 = vector.load %arg1[%328, %c0_236] : memref<242x4xf32, #tpu.memory_space<vmem>>, vector<16x4xf32>
      %330 = arith.truncf %329 : vector<16x4xf32> to vector<16x4xbf16>
      %c29 = arith.constant 29 : index
      %c0_237 = arith.constant 0 : index
      %c0_238 = arith.constant 0 : index
      %331 = vector.load %arg4[%c29, %c0_237, %c0_238] : memref<49x4x8xbf16, #tpu.memory_space<vmem>>, vector<1x4x8xbf16>
      %332 = vector.shape_cast %331 : vector<1x4x8xbf16> to vector<4x8xbf16>
      %cst_239 = arith.constant dense<0.000000e+00> : vector<16x8xf32>
      %333 = tpu.matmul %330, %332, %cst_239 {dimension_numbers = #tpu.dot_dimension_numbers<[1], [0], [0], [1], [0, 0, 1, 1], [], []>} : vector<16x4xbf16>, vector<4x8xbf16>, vector<16x8xf32> -> vector<16x8xf32>
      %334 = arith.addf %323, %333 : vector<16x8xf32>
      %c2_i32_240 = arith.constant 2 : i32
      %335 = arith.addi %arg7, %c2_i32_240 : i32
      %c11_i32_241 = arith.constant 11 : i32
      %336 = arith.muli %335, %c11_i32_241 : i32
      %c1_i32_242 = arith.constant 1 : i32
      %337 = arith.addi %336, %c1_i32_242 : i32
      %c2_i32_243 = arith.constant 2 : i32
      %338 = arith.muli %337, %c2_i32_243 : i32
      %339 = arith.index_cast %338 : i32 to index
      %c0_244 = arith.constant 0 : index
      %340 = vector.load %arg0[%339, %c0_244] : memref<242x4xf32, #tpu.memory_space<vmem>>, vector<16x4xf32>
      %341 = arith.truncf %340 : vector<16x4xf32> to vector<16x4xbf16>
      %c30 = arith.constant 30 : index
      %c0_245 = arith.constant 0 : index
      %c0_246 = arith.constant 0 : index
      %342 = vector.load %arg4[%c30, %c0_245, %c0_246] : memref<49x4x8xbf16, #tpu.memory_space<vmem>>, vector<1x4x8xbf16>
      %343 = vector.shape_cast %342 : vector<1x4x8xbf16> to vector<4x8xbf16>
      %cst_247 = arith.constant dense<0.000000e+00> : vector<16x8xf32>
      %344 = tpu.matmul %341, %343, %cst_247 {dimension_numbers = #tpu.dot_dimension_numbers<[1], [0], [0], [1], [0, 0, 1, 1], [], []>} : vector<16x4xbf16>, vector<4x8xbf16>, vector<16x8xf32> -> vector<16x8xf32>
      %345 = arith.addf %334, %344 : vector<16x8xf32>
      %c2_i32_248 = arith.constant 2 : i32
      %346 = arith.addi %arg7, %c2_i32_248 : i32
      %c11_i32_249 = arith.constant 11 : i32
      %347 = arith.muli %346, %c11_i32_249 : i32
      %c1_i32_250 = arith.constant 1 : i32
      %348 = arith.addi %347, %c1_i32_250 : i32
      %c2_i32_251 = arith.constant 2 : i32
      %349 = arith.muli %348, %c2_i32_251 : i32
      %350 = arith.index_cast %349 : i32 to index
      %c0_252 = arith.constant 0 : index
      %351 = vector.load %arg1[%350, %c0_252] : memref<242x4xf32, #tpu.memory_space<vmem>>, vector<16x4xf32>
      %352 = arith.truncf %351 : vector<16x4xf32> to vector<16x4xbf16>
      %c31 = arith.constant 31 : index
      %c0_253 = arith.constant 0 : index
      %c0_254 = arith.constant 0 : index
      %353 = vector.load %arg4[%c31, %c0_253, %c0_254] : memref<49x4x8xbf16, #tpu.memory_space<vmem>>, vector<1x4x8xbf16>
      %354 = vector.shape_cast %353 : vector<1x4x8xbf16> to vector<4x8xbf16>
      %cst_255 = arith.constant dense<0.000000e+00> : vector<16x8xf32>
      %355 = tpu.matmul %352, %354, %cst_255 {dimension_numbers = #tpu.dot_dimension_numbers<[1], [0], [0], [1], [0, 0, 1, 1], [], []>} : vector<16x4xbf16>, vector<4x8xbf16>, vector<16x8xf32> -> vector<16x8xf32>
      %356 = arith.addf %345, %355 : vector<16x8xf32>
      %c2_i32_256 = arith.constant 2 : i32
      %357 = arith.addi %arg7, %c2_i32_256 : i32
      %c11_i32_257 = arith.constant 11 : i32
      %358 = arith.muli %357, %c11_i32_257 : i32
      %c2_i32_258 = arith.constant 2 : i32
      %359 = arith.addi %358, %c2_i32_258 : i32
      %c2_i32_259 = arith.constant 2 : i32
      %360 = arith.muli %359, %c2_i32_259 : i32
      %361 = arith.index_cast %360 : i32 to index
      %c0_260 = arith.constant 0 : index
      %362 = vector.load %arg0[%361, %c0_260] : memref<242x4xf32, #tpu.memory_space<vmem>>, vector<16x4xf32>
      %363 = arith.truncf %362 : vector<16x4xf32> to vector<16x4xbf16>
      %c32 = arith.constant 32 : index
      %c0_261 = arith.constant 0 : index
      %c0_262 = arith.constant 0 : index
      %364 = vector.load %arg4[%c32, %c0_261, %c0_262] : memref<49x4x8xbf16, #tpu.memory_space<vmem>>, vector<1x4x8xbf16>
      %365 = vector.shape_cast %364 : vector<1x4x8xbf16> to vector<4x8xbf16>
      %cst_263 = arith.constant dense<0.000000e+00> : vector<16x8xf32>
      %366 = tpu.matmul %363, %365, %cst_263 {dimension_numbers = #tpu.dot_dimension_numbers<[1], [0], [0], [1], [0, 0, 1, 1], [], []>} : vector<16x4xbf16>, vector<4x8xbf16>, vector<16x8xf32> -> vector<16x8xf32>
      %367 = arith.addf %356, %366 : vector<16x8xf32>
      %c2_i32_264 = arith.constant 2 : i32
      %368 = arith.addi %arg7, %c2_i32_264 : i32
      %c11_i32_265 = arith.constant 11 : i32
      %369 = arith.muli %368, %c11_i32_265 : i32
      %c2_i32_266 = arith.constant 2 : i32
      %370 = arith.addi %369, %c2_i32_266 : i32
      %c2_i32_267 = arith.constant 2 : i32
      %371 = arith.muli %370, %c2_i32_267 : i32
      %372 = arith.index_cast %371 : i32 to index
      %c0_268 = arith.constant 0 : index
      %373 = vector.load %arg1[%372, %c0_268] : memref<242x4xf32, #tpu.memory_space<vmem>>, vector<16x4xf32>
      %374 = arith.truncf %373 : vector<16x4xf32> to vector<16x4xbf16>
      %c33 = arith.constant 33 : index
      %c0_269 = arith.constant 0 : index
      %c0_270 = arith.constant 0 : index
      %375 = vector.load %arg4[%c33, %c0_269, %c0_270] : memref<49x4x8xbf16, #tpu.memory_space<vmem>>, vector<1x4x8xbf16>
      %376 = vector.shape_cast %375 : vector<1x4x8xbf16> to vector<4x8xbf16>
      %cst_271 = arith.constant dense<0.000000e+00> : vector<16x8xf32>
      %377 = tpu.matmul %374, %376, %cst_271 {dimension_numbers = #tpu.dot_dimension_numbers<[1], [0], [0], [1], [0, 0, 1, 1], [], []>} : vector<16x4xbf16>, vector<4x8xbf16>, vector<16x8xf32> -> vector<16x8xf32>
      %378 = arith.addf %367, %377 : vector<16x8xf32>
      %c2_i32_272 = arith.constant 2 : i32
      %379 = arith.addi %arg7, %c2_i32_272 : i32
      %c11_i32_273 = arith.constant 11 : i32
      %380 = arith.muli %379, %c11_i32_273 : i32
      %c3_i32_274 = arith.constant 3 : i32
      %381 = arith.addi %380, %c3_i32_274 : i32
      %c2_i32_275 = arith.constant 2 : i32
      %382 = arith.muli %381, %c2_i32_275 : i32
      %383 = arith.index_cast %382 : i32 to index
      %c0_276 = arith.constant 0 : index
      %384 = vector.load %arg0[%383, %c0_276] : memref<242x4xf32, #tpu.memory_space<vmem>>, vector<16x4xf32>
      %385 = arith.truncf %384 : vector<16x4xf32> to vector<16x4xbf16>
      %c34 = arith.constant 34 : index
      %c0_277 = arith.constant 0 : index
      %c0_278 = arith.constant 0 : index
      %386 = vector.load %arg4[%c34, %c0_277, %c0_278] : memref<49x4x8xbf16, #tpu.memory_space<vmem>>, vector<1x4x8xbf16>
      %387 = vector.shape_cast %386 : vector<1x4x8xbf16> to vector<4x8xbf16>
      %cst_279 = arith.constant dense<0.000000e+00> : vector<16x8xf32>
      %388 = tpu.matmul %385, %387, %cst_279 {dimension_numbers = #tpu.dot_dimension_numbers<[1], [0], [0], [1], [0, 0, 1, 1], [], []>} : vector<16x4xbf16>, vector<4x8xbf16>, vector<16x8xf32> -> vector<16x8xf32>
      %389 = arith.addf %378, %388 : vector<16x8xf32>
      %c2_i32_280 = arith.constant 2 : i32
      %390 = arith.addi %arg7, %c2_i32_280 : i32
      %c11_i32_281 = arith.constant 11 : i32
      %391 = arith.muli %390, %c11_i32_281 : i32
      %c0_i32_282 = arith.constant 0 : i32
      %392 = arith.addi %391, %c0_i32_282 : i32
      %c2_i32_283 = arith.constant 2 : i32
      %393 = arith.muli %392, %c2_i32_283 : i32
      %394 = arith.index_cast %393 : i32 to index
      %c0_284 = arith.constant 0 : index
      %395 = vector.load %arg2[%394, %c0_284] : memref<242x4xf32, #tpu.memory_space<vmem>>, vector<16x4xf32>
      %396 = arith.truncf %395 : vector<16x4xf32> to vector<16x4xbf16>
      %c35 = arith.constant 35 : index
      %c0_285 = arith.constant 0 : index
      %c0_286 = arith.constant 0 : index
      %397 = vector.load %arg4[%c35, %c0_285, %c0_286] : memref<49x4x8xbf16, #tpu.memory_space<vmem>>, vector<1x4x8xbf16>
      %398 = vector.shape_cast %397 : vector<1x4x8xbf16> to vector<4x8xbf16>
      %cst_287 = arith.constant dense<0.000000e+00> : vector<16x8xf32>
      %399 = tpu.matmul %396, %398, %cst_287 {dimension_numbers = #tpu.dot_dimension_numbers<[1], [0], [0], [1], [0, 0, 1, 1], [], []>} : vector<16x4xbf16>, vector<4x8xbf16>, vector<16x8xf32> -> vector<16x8xf32>
      %400 = arith.addf %389, %399 : vector<16x8xf32>
      %c2_i32_288 = arith.constant 2 : i32
      %401 = arith.addi %arg7, %c2_i32_288 : i32
      %c11_i32_289 = arith.constant 11 : i32
      %402 = arith.muli %401, %c11_i32_289 : i32
      %c0_i32_290 = arith.constant 0 : i32
      %403 = arith.addi %402, %c0_i32_290 : i32
      %c2_i32_291 = arith.constant 2 : i32
      %404 = arith.muli %403, %c2_i32_291 : i32
      %405 = arith.index_cast %404 : i32 to index
      %c0_292 = arith.constant 0 : index
      %406 = vector.load %arg3[%405, %c0_292] : memref<242x4xf32, #tpu.memory_space<vmem>>, vector<16x4xf32>
      %407 = arith.truncf %406 : vector<16x4xf32> to vector<16x4xbf16>
      %c36 = arith.constant 36 : index
      %c0_293 = arith.constant 0 : index
      %c0_294 = arith.constant 0 : index
      %408 = vector.load %arg4[%c36, %c0_293, %c0_294] : memref<49x4x8xbf16, #tpu.memory_space<vmem>>, vector<1x4x8xbf16>
      %409 = vector.shape_cast %408 : vector<1x4x8xbf16> to vector<4x8xbf16>
      %cst_295 = arith.constant dense<0.000000e+00> : vector<16x8xf32>
      %410 = tpu.matmul %407, %409, %cst_295 {dimension_numbers = #tpu.dot_dimension_numbers<[1], [0], [0], [1], [0, 0, 1, 1], [], []>} : vector<16x4xbf16>, vector<4x8xbf16>, vector<16x8xf32> -> vector<16x8xf32>
      %411 = arith.addf %400, %410 : vector<16x8xf32>
      %c2_i32_296 = arith.constant 2 : i32
      %412 = arith.addi %arg7, %c2_i32_296 : i32
      %c11_i32_297 = arith.constant 11 : i32
      %413 = arith.muli %412, %c11_i32_297 : i32
      %c1_i32_298 = arith.constant 1 : i32
      %414 = arith.addi %413, %c1_i32_298 : i32
      %c2_i32_299 = arith.constant 2 : i32
      %415 = arith.muli %414, %c2_i32_299 : i32
      %416 = arith.index_cast %415 : i32 to index
      %c0_300 = arith.constant 0 : index
      %417 = vector.load %arg2[%416, %c0_300] : memref<242x4xf32, #tpu.memory_space<vmem>>, vector<16x4xf32>
      %418 = arith.truncf %417 : vector<16x4xf32> to vector<16x4xbf16>
      %c37 = arith.constant 37 : index
      %c0_301 = arith.constant 0 : index
      %c0_302 = arith.constant 0 : index
      %419 = vector.load %arg4[%c37, %c0_301, %c0_302] : memref<49x4x8xbf16, #tpu.memory_space<vmem>>, vector<1x4x8xbf16>
      %420 = vector.shape_cast %419 : vector<1x4x8xbf16> to vector<4x8xbf16>
      %cst_303 = arith.constant dense<0.000000e+00> : vector<16x8xf32>
      %421 = tpu.matmul %418, %420, %cst_303 {dimension_numbers = #tpu.dot_dimension_numbers<[1], [0], [0], [1], [0, 0, 1, 1], [], []>} : vector<16x4xbf16>, vector<4x8xbf16>, vector<16x8xf32> -> vector<16x8xf32>
      %422 = arith.addf %411, %421 : vector<16x8xf32>
      %c2_i32_304 = arith.constant 2 : i32
      %423 = arith.addi %arg7, %c2_i32_304 : i32
      %c11_i32_305 = arith.constant 11 : i32
      %424 = arith.muli %423, %c11_i32_305 : i32
      %c1_i32_306 = arith.constant 1 : i32
      %425 = arith.addi %424, %c1_i32_306 : i32
      %c2_i32_307 = arith.constant 2 : i32
      %426 = arith.muli %425, %c2_i32_307 : i32
      %427 = arith.index_cast %426 : i32 to index
      %c0_308 = arith.constant 0 : index
      %428 = vector.load %arg3[%427, %c0_308] : memref<242x4xf32, #tpu.memory_space<vmem>>, vector<16x4xf32>
      %429 = arith.truncf %428 : vector<16x4xf32> to vector<16x4xbf16>
      %c38 = arith.constant 38 : index
      %c0_309 = arith.constant 0 : index
      %c0_310 = arith.constant 0 : index
      %430 = vector.load %arg4[%c38, %c0_309, %c0_310] : memref<49x4x8xbf16, #tpu.memory_space<vmem>>, vector<1x4x8xbf16>
      %431 = vector.shape_cast %430 : vector<1x4x8xbf16> to vector<4x8xbf16>
      %cst_311 = arith.constant dense<0.000000e+00> : vector<16x8xf32>
      %432 = tpu.matmul %429, %431, %cst_311 {dimension_numbers = #tpu.dot_dimension_numbers<[1], [0], [0], [1], [0, 0, 1, 1], [], []>} : vector<16x4xbf16>, vector<4x8xbf16>, vector<16x8xf32> -> vector<16x8xf32>
      %433 = arith.addf %422, %432 : vector<16x8xf32>
      %c2_i32_312 = arith.constant 2 : i32
      %434 = arith.addi %arg7, %c2_i32_312 : i32
      %c11_i32_313 = arith.constant 11 : i32
      %435 = arith.muli %434, %c11_i32_313 : i32
      %c2_i32_314 = arith.constant 2 : i32
      %436 = arith.addi %435, %c2_i32_314 : i32
      %c2_i32_315 = arith.constant 2 : i32
      %437 = arith.muli %436, %c2_i32_315 : i32
      %438 = arith.index_cast %437 : i32 to index
      %c0_316 = arith.constant 0 : index
      %439 = vector.load %arg2[%438, %c0_316] : memref<242x4xf32, #tpu.memory_space<vmem>>, vector<16x4xf32>
      %440 = arith.truncf %439 : vector<16x4xf32> to vector<16x4xbf16>
      %c39 = arith.constant 39 : index
      %c0_317 = arith.constant 0 : index
      %c0_318 = arith.constant 0 : index
      %441 = vector.load %arg4[%c39, %c0_317, %c0_318] : memref<49x4x8xbf16, #tpu.memory_space<vmem>>, vector<1x4x8xbf16>
      %442 = vector.shape_cast %441 : vector<1x4x8xbf16> to vector<4x8xbf16>
      %cst_319 = arith.constant dense<0.000000e+00> : vector<16x8xf32>
      %443 = tpu.matmul %440, %442, %cst_319 {dimension_numbers = #tpu.dot_dimension_numbers<[1], [0], [0], [1], [0, 0, 1, 1], [], []>} : vector<16x4xbf16>, vector<4x8xbf16>, vector<16x8xf32> -> vector<16x8xf32>
      %444 = arith.addf %433, %443 : vector<16x8xf32>
      %c2_i32_320 = arith.constant 2 : i32
      %445 = arith.addi %arg7, %c2_i32_320 : i32
      %c11_i32_321 = arith.constant 11 : i32
      %446 = arith.muli %445, %c11_i32_321 : i32
      %c2_i32_322 = arith.constant 2 : i32
      %447 = arith.addi %446, %c2_i32_322 : i32
      %c2_i32_323 = arith.constant 2 : i32
      %448 = arith.muli %447, %c2_i32_323 : i32
      %449 = arith.index_cast %448 : i32 to index
      %c0_324 = arith.constant 0 : index
      %450 = vector.load %arg3[%449, %c0_324] : memref<242x4xf32, #tpu.memory_space<vmem>>, vector<16x4xf32>
      %451 = arith.truncf %450 : vector<16x4xf32> to vector<16x4xbf16>
      %c40 = arith.constant 40 : index
      %c0_325 = arith.constant 0 : index
      %c0_326 = arith.constant 0 : index
      %452 = vector.load %arg4[%c40, %c0_325, %c0_326] : memref<49x4x8xbf16, #tpu.memory_space<vmem>>, vector<1x4x8xbf16>
      %453 = vector.shape_cast %452 : vector<1x4x8xbf16> to vector<4x8xbf16>
      %cst_327 = arith.constant dense<0.000000e+00> : vector<16x8xf32>
      %454 = tpu.matmul %451, %453, %cst_327 {dimension_numbers = #tpu.dot_dimension_numbers<[1], [0], [0], [1], [0, 0, 1, 1], [], []>} : vector<16x4xbf16>, vector<4x8xbf16>, vector<16x8xf32> -> vector<16x8xf32>
      %455 = arith.addf %444, %454 : vector<16x8xf32>
      %c2_i32_328 = arith.constant 2 : i32
      %456 = arith.addi %arg7, %c2_i32_328 : i32
      %c11_i32_329 = arith.constant 11 : i32
      %457 = arith.muli %456, %c11_i32_329 : i32
      %c3_i32_330 = arith.constant 3 : i32
      %458 = arith.addi %457, %c3_i32_330 : i32
      %c2_i32_331 = arith.constant 2 : i32
      %459 = arith.muli %458, %c2_i32_331 : i32
      %460 = arith.index_cast %459 : i32 to index
      %c0_332 = arith.constant 0 : index
      %461 = vector.load %arg2[%460, %c0_332] : memref<242x4xf32, #tpu.memory_space<vmem>>, vector<16x4xf32>
      %462 = arith.truncf %461 : vector<16x4xf32> to vector<16x4xbf16>
      %c41 = arith.constant 41 : index
      %c0_333 = arith.constant 0 : index
      %c0_334 = arith.constant 0 : index
      %463 = vector.load %arg4[%c41, %c0_333, %c0_334] : memref<49x4x8xbf16, #tpu.memory_space<vmem>>, vector<1x4x8xbf16>
      %464 = vector.shape_cast %463 : vector<1x4x8xbf16> to vector<4x8xbf16>
      %cst_335 = arith.constant dense<0.000000e+00> : vector<16x8xf32>
      %465 = tpu.matmul %462, %464, %cst_335 {dimension_numbers = #tpu.dot_dimension_numbers<[1], [0], [0], [1], [0, 0, 1, 1], [], []>} : vector<16x4xbf16>, vector<4x8xbf16>, vector<16x8xf32> -> vector<16x8xf32>
      %466 = arith.addf %455, %465 : vector<16x8xf32>
      %c3_i32_336 = arith.constant 3 : i32
      %467 = arith.addi %arg7, %c3_i32_336 : i32
      %c11_i32_337 = arith.constant 11 : i32
      %468 = arith.muli %467, %c11_i32_337 : i32
      %c0_i32_338 = arith.constant 0 : i32
      %469 = arith.addi %468, %c0_i32_338 : i32
      %c2_i32_339 = arith.constant 2 : i32
      %470 = arith.muli %469, %c2_i32_339 : i32
      %471 = arith.index_cast %470 : i32 to index
      %c0_340 = arith.constant 0 : index
      %472 = vector.load %arg0[%471, %c0_340] : memref<242x4xf32, #tpu.memory_space<vmem>>, vector<16x4xf32>
      %473 = arith.truncf %472 : vector<16x4xf32> to vector<16x4xbf16>
      %c42 = arith.constant 42 : index
      %c0_341 = arith.constant 0 : index
      %c0_342 = arith.constant 0 : index
      %474 = vector.load %arg4[%c42, %c0_341, %c0_342] : memref<49x4x8xbf16, #tpu.memory_space<vmem>>, vector<1x4x8xbf16>
      %475 = vector.shape_cast %474 : vector<1x4x8xbf16> to vector<4x8xbf16>
      %cst_343 = arith.constant dense<0.000000e+00> : vector<16x8xf32>
      %476 = tpu.matmul %473, %475, %cst_343 {dimension_numbers = #tpu.dot_dimension_numbers<[1], [0], [0], [1], [0, 0, 1, 1], [], []>} : vector<16x4xbf16>, vector<4x8xbf16>, vector<16x8xf32> -> vector<16x8xf32>
      %477 = arith.addf %466, %476 : vector<16x8xf32>
      %c3_i32_344 = arith.constant 3 : i32
      %478 = arith.addi %arg7, %c3_i32_344 : i32
      %c11_i32_345 = arith.constant 11 : i32
      %479 = arith.muli %478, %c11_i32_345 : i32
      %c0_i32_346 = arith.constant 0 : i32
      %480 = arith.addi %479, %c0_i32_346 : i32
      %c2_i32_347 = arith.constant 2 : i32
      %481 = arith.muli %480, %c2_i32_347 : i32
      %482 = arith.index_cast %481 : i32 to index
      %c0_348 = arith.constant 0 : index
      %483 = vector.load %arg1[%482, %c0_348] : memref<242x4xf32, #tpu.memory_space<vmem>>, vector<16x4xf32>
      %484 = arith.truncf %483 : vector<16x4xf32> to vector<16x4xbf16>
      %c43 = arith.constant 43 : index
      %c0_349 = arith.constant 0 : index
      %c0_350 = arith.constant 0 : index
      %485 = vector.load %arg4[%c43, %c0_349, %c0_350] : memref<49x4x8xbf16, #tpu.memory_space<vmem>>, vector<1x4x8xbf16>
      %486 = vector.shape_cast %485 : vector<1x4x8xbf16> to vector<4x8xbf16>
      %cst_351 = arith.constant dense<0.000000e+00> : vector<16x8xf32>
      %487 = tpu.matmul %484, %486, %cst_351 {dimension_numbers = #tpu.dot_dimension_numbers<[1], [0], [0], [1], [0, 0, 1, 1], [], []>} : vector<16x4xbf16>, vector<4x8xbf16>, vector<16x8xf32> -> vector<16x8xf32>
      %488 = arith.addf %477, %487 : vector<16x8xf32>
      %c3_i32_352 = arith.constant 3 : i32
      %489 = arith.addi %arg7, %c3_i32_352 : i32
      %c11_i32_353 = arith.constant 11 : i32
      %490 = arith.muli %489, %c11_i32_353 : i32
      %c1_i32_354 = arith.constant 1 : i32
      %491 = arith.addi %490, %c1_i32_354 : i32
      %c2_i32_355 = arith.constant 2 : i32
      %492 = arith.muli %491, %c2_i32_355 : i32
      %493 = arith.index_cast %492 : i32 to index
      %c0_356 = arith.constant 0 : index
      %494 = vector.load %arg0[%493, %c0_356] : memref<242x4xf32, #tpu.memory_space<vmem>>, vector<16x4xf32>
      %495 = arith.truncf %494 : vector<16x4xf32> to vector<16x4xbf16>
      %c44 = arith.constant 44 : index
      %c0_357 = arith.constant 0 : index
      %c0_358 = arith.constant 0 : index
      %496 = vector.load %arg4[%c44, %c0_357, %c0_358] : memref<49x4x8xbf16, #tpu.memory_space<vmem>>, vector<1x4x8xbf16>
      %497 = vector.shape_cast %496 : vector<1x4x8xbf16> to vector<4x8xbf16>
      %cst_359 = arith.constant dense<0.000000e+00> : vector<16x8xf32>
      %498 = tpu.matmul %495, %497, %cst_359 {dimension_numbers = #tpu.dot_dimension_numbers<[1], [0], [0], [1], [0, 0, 1, 1], [], []>} : vector<16x4xbf16>, vector<4x8xbf16>, vector<16x8xf32> -> vector<16x8xf32>
      %499 = arith.addf %488, %498 : vector<16x8xf32>
      %c3_i32_360 = arith.constant 3 : i32
      %500 = arith.addi %arg7, %c3_i32_360 : i32
      %c11_i32_361 = arith.constant 11 : i32
      %501 = arith.muli %500, %c11_i32_361 : i32
      %c1_i32_362 = arith.constant 1 : i32
      %502 = arith.addi %501, %c1_i32_362 : i32
      %c2_i32_363 = arith.constant 2 : i32
      %503 = arith.muli %502, %c2_i32_363 : i32
      %504 = arith.index_cast %503 : i32 to index
      %c0_364 = arith.constant 0 : index
      %505 = vector.load %arg1[%504, %c0_364] : memref<242x4xf32, #tpu.memory_space<vmem>>, vector<16x4xf32>
      %506 = arith.truncf %505 : vector<16x4xf32> to vector<16x4xbf16>
      %c45 = arith.constant 45 : index
      %c0_365 = arith.constant 0 : index
      %c0_366 = arith.constant 0 : index
      %507 = vector.load %arg4[%c45, %c0_365, %c0_366] : memref<49x4x8xbf16, #tpu.memory_space<vmem>>, vector<1x4x8xbf16>
      %508 = vector.shape_cast %507 : vector<1x4x8xbf16> to vector<4x8xbf16>
      %cst_367 = arith.constant dense<0.000000e+00> : vector<16x8xf32>
      %509 = tpu.matmul %506, %508, %cst_367 {dimension_numbers = #tpu.dot_dimension_numbers<[1], [0], [0], [1], [0, 0, 1, 1], [], []>} : vector<16x4xbf16>, vector<4x8xbf16>, vector<16x8xf32> -> vector<16x8xf32>
      %510 = arith.addf %499, %509 : vector<16x8xf32>
      %c3_i32_368 = arith.constant 3 : i32
      %511 = arith.addi %arg7, %c3_i32_368 : i32
      %c11_i32_369 = arith.constant 11 : i32
      %512 = arith.muli %511, %c11_i32_369 : i32
      %c2_i32_370 = arith.constant 2 : i32
      %513 = arith.addi %512, %c2_i32_370 : i32
      %c2_i32_371 = arith.constant 2 : i32
      %514 = arith.muli %513, %c2_i32_371 : i32
      %515 = arith.index_cast %514 : i32 to index
      %c0_372 = arith.constant 0 : index
      %516 = vector.load %arg0[%515, %c0_372] : memref<242x4xf32, #tpu.memory_space<vmem>>, vector<16x4xf32>
      %517 = arith.truncf %516 : vector<16x4xf32> to vector<16x4xbf16>
      %c46 = arith.constant 46 : index
      %c0_373 = arith.constant 0 : index
      %c0_374 = arith.constant 0 : index
      %518 = vector.load %arg4[%c46, %c0_373, %c0_374] : memref<49x4x8xbf16, #tpu.memory_space<vmem>>, vector<1x4x8xbf16>
      %519 = vector.shape_cast %518 : vector<1x4x8xbf16> to vector<4x8xbf16>
      %cst_375 = arith.constant dense<0.000000e+00> : vector<16x8xf32>
      %520 = tpu.matmul %517, %519, %cst_375 {dimension_numbers = #tpu.dot_dimension_numbers<[1], [0], [0], [1], [0, 0, 1, 1], [], []>} : vector<16x4xbf16>, vector<4x8xbf16>, vector<16x8xf32> -> vector<16x8xf32>
      %521 = arith.addf %510, %520 : vector<16x8xf32>
      %c3_i32_376 = arith.constant 3 : i32
      %522 = arith.addi %arg7, %c3_i32_376 : i32
      %c11_i32_377 = arith.constant 11 : i32
      %523 = arith.muli %522, %c11_i32_377 : i32
      %c2_i32_378 = arith.constant 2 : i32
      %524 = arith.addi %523, %c2_i32_378 : i32
      %c2_i32_379 = arith.constant 2 : i32
      %525 = arith.muli %524, %c2_i32_379 : i32
      %526 = arith.index_cast %525 : i32 to index
      %c0_380 = arith.constant 0 : index
      %527 = vector.load %arg1[%526, %c0_380] : memref<242x4xf32, #tpu.memory_space<vmem>>, vector<16x4xf32>
      %528 = arith.truncf %527 : vector<16x4xf32> to vector<16x4xbf16>
      %c47 = arith.constant 47 : index
      %c0_381 = arith.constant 0 : index
      %c0_382 = arith.constant 0 : index
      %529 = vector.load %arg4[%c47, %c0_381, %c0_382] : memref<49x4x8xbf16, #tpu.memory_space<vmem>>, vector<1x4x8xbf16>
      %530 = vector.shape_cast %529 : vector<1x4x8xbf16> to vector<4x8xbf16>
      %cst_383 = arith.constant dense<0.000000e+00> : vector<16x8xf32>
      %531 = tpu.matmul %528, %530, %cst_383 {dimension_numbers = #tpu.dot_dimension_numbers<[1], [0], [0], [1], [0, 0, 1, 1], [], []>} : vector<16x4xbf16>, vector<4x8xbf16>, vector<16x8xf32> -> vector<16x8xf32>
      %532 = arith.addf %521, %531 : vector<16x8xf32>
      %c3_i32_384 = arith.constant 3 : i32
      %533 = arith.addi %arg7, %c3_i32_384 : i32
      %c11_i32_385 = arith.constant 11 : i32
      %534 = arith.muli %533, %c11_i32_385 : i32
      %c3_i32_386 = arith.constant 3 : i32
      %535 = arith.addi %534, %c3_i32_386 : i32
      %c2_i32_387 = arith.constant 2 : i32
      %536 = arith.muli %535, %c2_i32_387 : i32
      %537 = arith.index_cast %536 : i32 to index
      %c0_388 = arith.constant 0 : index
      %538 = vector.load %arg0[%537, %c0_388] : memref<242x4xf32, #tpu.memory_space<vmem>>, vector<16x4xf32>
      %539 = arith.truncf %538 : vector<16x4xf32> to vector<16x4xbf16>
      %c48 = arith.constant 48 : index
      %c0_389 = arith.constant 0 : index
      %c0_390 = arith.constant 0 : index
      %540 = vector.load %arg4[%c48, %c0_389, %c0_390] : memref<49x4x8xbf16, #tpu.memory_space<vmem>>, vector<1x4x8xbf16>
      %541 = vector.shape_cast %540 : vector<1x4x8xbf16> to vector<4x8xbf16>
      %cst_391 = arith.constant dense<0.000000e+00> : vector<16x8xf32>
      %542 = tpu.matmul %539, %541, %cst_391 {dimension_numbers = #tpu.dot_dimension_numbers<[1], [0], [0], [1], [0, 0, 1, 1], [], []>} : vector<16x4xbf16>, vector<4x8xbf16>, vector<16x8xf32> -> vector<16x8xf32>
      %543 = arith.addf %532, %542 : vector<16x8xf32>
      %cst_392 = arith.constant 0.000000e+00 : f32
      %544 = vector.broadcast %cst_392 : f32 to vector<16x8xf32>
      %545 = arith.maximumf %543, %544 : vector<16x8xf32>
      %c16_i32 = arith.constant 16 : i32
      %546 = arith.muli %arg7, %c16_i32 : i32
      %547 = arith.index_cast %546 : i32 to index
      %c0_393 = arith.constant 0 : index
      %548 = vector.load %arg6[%547, %c0_393] : memref<128x8xf32, #tpu.memory_space<vmem>>, vector<16x8xf32>
      tpu.vector_store %arg6[%547, %c0_393], %545 {strides = array<i32>} : memref<128x8xf32, #tpu.memory_space<vmem>>, vector<16x8xf32>,
    }
    %c8_i32_1 = arith.constant 8 : i32
    return
  }
}

module attributes {stable_mosaic.version = 11 : i64} {
  func.func @_block_kernel(%arg0: memref<72x8xf32, #tpu.memory_space<vmem>>, %arg1: memref<72x1xf32, #tpu.memory_space<vmem>>, %arg2: memref<8x4xbf16, #tpu.memory_space<vmem>>, %arg3: memref<1x4xf32, #tpu.memory_space<vmem>>, %arg4: memref<9x4x4xbf16, #tpu.memory_space<vmem>>, %arg5: memref<1x4xf32, #tpu.memory_space<vmem>>, %arg6: memref<4x16xbf16, #tpu.memory_space<vmem>>, %arg7: memref<1x16xf32, #tpu.memory_space<vmem>>, %arg8: memref<8x16xbf16, #tpu.memory_space<vmem>>, %arg9: memref<1x16xf32, #tpu.memory_space<vmem>>, %arg10: memref<32x16xf32, #tpu.memory_space<vmem>>, %arg11: memref<72x4xf32, #tpu.memory_space<vmem>>) attributes {dimension_semantics = [], scalar_prefetch = 0 : i64, scratch_operands = 1 : i64, tpu.core_type = #tpu.core_type<tc>} {
    %c0 = arith.constant 0 : index
    %c0_0 = arith.constant 0 : index
    %0 = vector.load %arg1[%c0, %c0_0] : memref<72x1xf32, #tpu.memory_space<vmem>>, vector<72x1xf32>
    %c0_1 = arith.constant 0 : index
    %c0_2 = arith.constant 0 : index
    %1 = vector.load %arg0[%c0_1, %c0_2] : memref<72x8xf32, #tpu.memory_space<vmem>>, vector<72x8xf32>
    %2 = arith.truncf %1 : vector<72x8xf32> to vector<72x8xbf16>
    %c0_3 = arith.constant 0 : index
    %c0_4 = arith.constant 0 : index
    %3 = vector.load %arg2[%c0_3, %c0_4] : memref<8x4xbf16, #tpu.memory_space<vmem>>, vector<8x4xbf16>
    %cst = arith.constant dense<0.000000e+00> : vector<72x4xf32>
    %4 = tpu.matmul %2, %3, %cst {dimension_numbers = #tpu.dot_dimension_numbers<[1], [0], [0], [1], [0, 0, 1, 1], [], []>} : vector<72x8xbf16>, vector<8x4xbf16>, vector<72x4xf32> -> vector<72x4xf32>
    %c0_5 = arith.constant 0 : index
    %c0_6 = arith.constant 0 : index
    %5 = vector.load %arg3[%c0_5, %c0_6] : memref<1x4xf32, #tpu.memory_space<vmem>>, vector<1x4xf32>
    %6 = vector.broadcast %5 : vector<1x4xf32> to vector<72x4xf32>
    %7 = arith.addf %4, %6 : vector<72x4xf32>
    %cst_7 = arith.constant 0.000000e+00 : f32
    %8 = vector.broadcast %cst_7 : f32 to vector<72x4xf32>
    %9 = arith.maximumf %7, %8 : vector<72x4xf32>
    %10 = vector.broadcast %0 : vector<72x1xf32> to vector<72x4xf32>
    %11 = arith.mulf %9, %10 : vector<72x4xf32>
    %c0_8 = arith.constant 0 : index
    %c0_9 = arith.constant 0 : index
    %12 = vector.load %arg11[%c0_8, %c0_9] : memref<72x4xf32, #tpu.memory_space<vmem>>, vector<72x4xf32>
    tpu.vector_store %arg11[%c0_8, %c0_9], %11 {strides = array<i32>} : memref<72x4xf32, #tpu.memory_space<vmem>>, vector<72x4xf32>,
    %cst_10 = arith.constant 0.000000e+00 : f32
    %13 = vector.broadcast %cst_10 : f32 to vector<8x4xf32>
    %c0_11 = arith.constant 0 : index
    %c0_12 = arith.constant 0 : index
    %14 = vector.load %arg5[%c0_11, %c0_12] : memref<1x4xf32, #tpu.memory_space<vmem>>, vector<1x4xf32>
    %15 = vector.broadcast %14 : vector<1x4xf32> to vector<8x4xf32>
    %16 = arith.addf %13, %15 : vector<8x4xf32>
    %c0_13 = arith.constant 0 : index
    %c0_14 = arith.constant 0 : index
    %17 = vector.load %arg11[%c0_13, %c0_14] : memref<72x4xf32, #tpu.memory_space<vmem>>, vector<8x4xf32>
    %18 = arith.truncf %17 : vector<8x4xf32> to vector<8x4xbf16>
    %c0_15 = arith.constant 0 : index
    %c0_16 = arith.constant 0 : index
    %c0_17 = arith.constant 0 : index
    %19 = vector.load %arg4[%c0_15, %c0_16, %c0_17] : memref<9x4x4xbf16, #tpu.memory_space<vmem>>, vector<1x4x4xbf16>
    %20 = vector.shape_cast %19 : vector<1x4x4xbf16> to vector<4x4xbf16>
    %cst_18 = arith.constant dense<0.000000e+00> : vector<8x4xf32>
    %21 = tpu.matmul %18, %20, %cst_18 {dimension_numbers = #tpu.dot_dimension_numbers<[1], [0], [0], [1], [0, 0, 1, 1], [], []>} : vector<8x4xbf16>, vector<4x4xbf16>, vector<8x4xf32> -> vector<8x4xf32>
    %22 = arith.addf %16, %21 : vector<8x4xf32>
    %c2 = arith.constant 2 : index
    %c0_19 = arith.constant 0 : index
    %23 = vector.load %arg11[%c2, %c0_19] : memref<72x4xf32, #tpu.memory_space<vmem>>, vector<8x4xf32>
    %24 = arith.truncf %23 : vector<8x4xf32> to vector<8x4xbf16>
    %c1 = arith.constant 1 : index
    %c0_20 = arith.constant 0 : index
    %c0_21 = arith.constant 0 : index
    %25 = vector.load %arg4[%c1, %c0_20, %c0_21] : memref<9x4x4xbf16, #tpu.memory_space<vmem>>, vector<1x4x4xbf16>
    %26 = vector.shape_cast %25 : vector<1x4x4xbf16> to vector<4x4xbf16>
    %cst_22 = arith.constant dense<0.000000e+00> : vector<8x4xf32>
    %27 = tpu.matmul %24, %26, %cst_22 {dimension_numbers = #tpu.dot_dimension_numbers<[1], [0], [0], [1], [0, 0, 1, 1], [], []>} : vector<8x4xbf16>, vector<4x4xbf16>, vector<8x4xf32> -> vector<8x4xf32>
    %28 = arith.addf %22, %27 : vector<8x4xf32>
    %c4 = arith.constant 4 : index
    %c0_23 = arith.constant 0 : index
    %29 = vector.load %arg11[%c4, %c0_23] : memref<72x4xf32, #tpu.memory_space<vmem>>, vector<8x4xf32>
    %30 = arith.truncf %29 : vector<8x4xf32> to vector<8x4xbf16>
    %c2_24 = arith.constant 2 : index
    %c0_25 = arith.constant 0 : index
    %c0_26 = arith.constant 0 : index
    %31 = vector.load %arg4[%c2_24, %c0_25, %c0_26] : memref<9x4x4xbf16, #tpu.memory_space<vmem>>, vector<1x4x4xbf16>
    %32 = vector.shape_cast %31 : vector<1x4x4xbf16> to vector<4x4xbf16>
    %cst_27 = arith.constant dense<0.000000e+00> : vector<8x4xf32>
    %33 = tpu.matmul %30, %32, %cst_27 {dimension_numbers = #tpu.dot_dimension_numbers<[1], [0], [0], [1], [0, 0, 1, 1], [], []>} : vector<8x4xbf16>, vector<4x4xbf16>, vector<8x4xf32> -> vector<8x4xf32>
    %34 = arith.addf %28, %33 : vector<8x4xf32>
    %c12 = arith.constant 12 : index
    %c0_28 = arith.constant 0 : index
    %35 = vector.load %arg11[%c12, %c0_28] : memref<72x4xf32, #tpu.memory_space<vmem>>, vector<8x4xf32>
    %36 = arith.truncf %35 : vector<8x4xf32> to vector<8x4xbf16>
    %c3 = arith.constant 3 : index
    %c0_29 = arith.constant 0 : index
    %c0_30 = arith.constant 0 : index
    %37 = vector.load %arg4[%c3, %c0_29, %c0_30] : memref<9x4x4xbf16, #tpu.memory_space<vmem>>, vector<1x4x4xbf16>
    %38 = vector.shape_cast %37 : vector<1x4x4xbf16> to vector<4x4xbf16>
    %cst_31 = arith.constant dense<0.000000e+00> : vector<8x4xf32>
    %39 = tpu.matmul %36, %38, %cst_31 {dimension_numbers = #tpu.dot_dimension_numbers<[1], [0], [0], [1], [0, 0, 1, 1], [], []>} : vector<8x4xbf16>, vector<4x4xbf16>, vector<8x4xf32> -> vector<8x4xf32>
    %40 = arith.addf %34, %39 : vector<8x4xf32>
    %c14 = arith.constant 14 : index
    %c0_32 = arith.constant 0 : index
    %41 = vector.load %arg11[%c14, %c0_32] : memref<72x4xf32, #tpu.memory_space<vmem>>, vector<8x4xf32>
    %42 = arith.truncf %41 : vector<8x4xf32> to vector<8x4xbf16>
    %c4_33 = arith.constant 4 : index
    %c0_34 = arith.constant 0 : index
    %c0_35 = arith.constant 0 : index
    %43 = vector.load %arg4[%c4_33, %c0_34, %c0_35] : memref<9x4x4xbf16, #tpu.memory_space<vmem>>, vector<1x4x4xbf16>
    %44 = vector.shape_cast %43 : vector<1x4x4xbf16> to vector<4x4xbf16>
    %cst_36 = arith.constant dense<0.000000e+00> : vector<8x4xf32>
    %45 = tpu.matmul %42, %44, %cst_36 {dimension_numbers = #tpu.dot_dimension_numbers<[1], [0], [0], [1], [0, 0, 1, 1], [], []>} : vector<8x4xbf16>, vector<4x4xbf16>, vector<8x4xf32> -> vector<8x4xf32>
    %46 = arith.addf %40, %45 : vector<8x4xf32>
    %c16 = arith.constant 16 : index
    %c0_37 = arith.constant 0 : index
    %47 = vector.load %arg11[%c16, %c0_37] : memref<72x4xf32, #tpu.memory_space<vmem>>, vector<8x4xf32>
    %48 = arith.truncf %47 : vector<8x4xf32> to vector<8x4xbf16>
    %c5 = arith.constant 5 : index
    %c0_38 = arith.constant 0 : index
    %c0_39 = arith.constant 0 : index
    %49 = vector.load %arg4[%c5, %c0_38, %c0_39] : memref<9x4x4xbf16, #tpu.memory_space<vmem>>, vector<1x4x4xbf16>
    %50 = vector.shape_cast %49 : vector<1x4x4xbf16> to vector<4x4xbf16>
    %cst_40 = arith.constant dense<0.000000e+00> : vector<8x4xf32>
    %51 = tpu.matmul %48, %50, %cst_40 {dimension_numbers = #tpu.dot_dimension_numbers<[1], [0], [0], [1], [0, 0, 1, 1], [], []>} : vector<8x4xbf16>, vector<4x4xbf16>, vector<8x4xf32> -> vector<8x4xf32>
    %52 = arith.addf %46, %51 : vector<8x4xf32>
    %c24 = arith.constant 24 : index
    %c0_41 = arith.constant 0 : index
    %53 = vector.load %arg11[%c24, %c0_41] : memref<72x4xf32, #tpu.memory_space<vmem>>, vector<8x4xf32>
    %54 = arith.truncf %53 : vector<8x4xf32> to vector<8x4xbf16>
    %c6 = arith.constant 6 : index
    %c0_42 = arith.constant 0 : index
    %c0_43 = arith.constant 0 : index
    %55 = vector.load %arg4[%c6, %c0_42, %c0_43] : memref<9x4x4xbf16, #tpu.memory_space<vmem>>, vector<1x4x4xbf16>
    %56 = vector.shape_cast %55 : vector<1x4x4xbf16> to vector<4x4xbf16>
    %cst_44 = arith.constant dense<0.000000e+00> : vector<8x4xf32>
    %57 = tpu.matmul %54, %56, %cst_44 {dimension_numbers = #tpu.dot_dimension_numbers<[1], [0], [0], [1], [0, 0, 1, 1], [], []>} : vector<8x4xbf16>, vector<4x4xbf16>, vector<8x4xf32> -> vector<8x4xf32>
    %58 = arith.addf %52, %57 : vector<8x4xf32>
    %c26 = arith.constant 26 : index
    %c0_45 = arith.constant 0 : index
    %59 = vector.load %arg11[%c26, %c0_45] : memref<72x4xf32, #tpu.memory_space<vmem>>, vector<8x4xf32>
    %60 = arith.truncf %59 : vector<8x4xf32> to vector<8x4xbf16>
    %c7 = arith.constant 7 : index
    %c0_46 = arith.constant 0 : index
    %c0_47 = arith.constant 0 : index
    %61 = vector.load %arg4[%c7, %c0_46, %c0_47] : memref<9x4x4xbf16, #tpu.memory_space<vmem>>, vector<1x4x4xbf16>
    %62 = vector.shape_cast %61 : vector<1x4x4xbf16> to vector<4x4xbf16>
    %cst_48 = arith.constant dense<0.000000e+00> : vector<8x4xf32>
    %63 = tpu.matmul %60, %62, %cst_48 {dimension_numbers = #tpu.dot_dimension_numbers<[1], [0], [0], [1], [0, 0, 1, 1], [], []>} : vector<8x4xbf16>, vector<4x4xbf16>, vector<8x4xf32> -> vector<8x4xf32>
    %64 = arith.addf %58, %63 : vector<8x4xf32>
    %c28 = arith.constant 28 : index
    %c0_49 = arith.constant 0 : index
    %65 = vector.load %arg11[%c28, %c0_49] : memref<72x4xf32, #tpu.memory_space<vmem>>, vector<8x4xf32>
    %66 = arith.truncf %65 : vector<8x4xf32> to vector<8x4xbf16>
    %c8 = arith.constant 8 : index
    %c0_50 = arith.constant 0 : index
    %c0_51 = arith.constant 0 : index
    %67 = vector.load %arg4[%c8, %c0_50, %c0_51] : memref<9x4x4xbf16, #tpu.memory_space<vmem>>, vector<1x4x4xbf16>
    %68 = vector.shape_cast %67 : vector<1x4x4xbf16> to vector<4x4xbf16>
    %cst_52 = arith.constant dense<0.000000e+00> : vector<8x4xf32>
    %69 = tpu.matmul %66, %68, %cst_52 {dimension_numbers = #tpu.dot_dimension_numbers<[1], [0], [0], [1], [0, 0, 1, 1], [], []>} : vector<8x4xbf16>, vector<4x4xbf16>, vector<8x4xf32> -> vector<8x4xf32>
    %70 = arith.addf %64, %69 : vector<8x4xf32>
    %cst_53 = arith.constant 0.000000e+00 : f32
    %71 = vector.broadcast %cst_53 : f32 to vector<8x4xf32>
    %72 = arith.maximumf %70, %71 : vector<8x4xf32>
    %73 = arith.truncf %72 : vector<8x4xf32> to vector<8x4xbf16>
    %c0_54 = arith.constant 0 : index
    %c0_55 = arith.constant 0 : index
    %74 = vector.load %arg6[%c0_54, %c0_55] : memref<4x16xbf16, #tpu.memory_space<vmem>>, vector<4x16xbf16>
    %cst_56 = arith.constant dense<0.000000e+00> : vector<8x16xf32>
    %75 = tpu.matmul %73, %74, %cst_56 {dimension_numbers = #tpu.dot_dimension_numbers<[1], [0], [0], [1], [0, 0, 1, 1], [], []>} : vector<8x4xbf16>, vector<4x16xbf16>, vector<8x16xf32> -> vector<8x16xf32>
    %c0_57 = arith.constant 0 : index
    %c0_58 = arith.constant 0 : index
    %76 = vector.load %arg7[%c0_57, %c0_58] : memref<1x16xf32, #tpu.memory_space<vmem>>, vector<1x16xf32>
    %77 = vector.broadcast %76 : vector<1x16xf32> to vector<8x16xf32>
    %78 = arith.addf %75, %77 : vector<8x16xf32>
    %c14_59 = arith.constant 14 : index
    %c0_60 = arith.constant 0 : index
    %79 = vector.load %arg0[%c14_59, %c0_60] : memref<72x8xf32, #tpu.memory_space<vmem>>, vector<8x8xf32>
    %80 = arith.truncf %79 : vector<8x8xf32> to vector<8x8xbf16>
    %c0_61 = arith.constant 0 : index
    %c0_62 = arith.constant 0 : index
    %81 = vector.load %arg8[%c0_61, %c0_62] : memref<8x16xbf16, #tpu.memory_space<vmem>>, vector<8x16xbf16>
    %cst_63 = arith.constant dense<0.000000e+00> : vector<8x16xf32>
    %82 = tpu.matmul %80, %81, %cst_63 {dimension_numbers = #tpu.dot_dimension_numbers<[1], [0], [0], [1], [0, 0, 1, 1], [], []>} : vector<8x8xbf16>, vector<8x16xbf16>, vector<8x16xf32> -> vector<8x16xf32>
    %c0_64 = arith.constant 0 : index
    %c0_65 = arith.constant 0 : index
    %83 = vector.load %arg9[%c0_64, %c0_65] : memref<1x16xf32, #tpu.memory_space<vmem>>, vector<1x16xf32>
    %84 = vector.broadcast %83 : vector<1x16xf32> to vector<8x16xf32>
    %85 = arith.addf %82, %84 : vector<8x16xf32>
    %86 = arith.addf %78, %85 : vector<8x16xf32>
    %cst_66 = arith.constant 0.000000e+00 : f32
    %87 = vector.broadcast %cst_66 : f32 to vector<8x16xf32>
    %88 = arith.maximumf %86, %87 : vector<8x16xf32>
    %c0_67 = arith.constant 0 : index
    %c0_68 = arith.constant 0 : index
    %89 = vector.load %arg10[%c0_67, %c0_68] : memref<32x16xf32, #tpu.memory_space<vmem>>, vector<8x16xf32>
    tpu.vector_store %arg10[%c0_67, %c0_68], %88 {strides = array<i32>} : memref<32x16xf32, #tpu.memory_space<vmem>>, vector<8x16xf32>,
    %cst_69 = arith.constant 0.000000e+00 : f32
    %90 = vector.broadcast %cst_69 : f32 to vector<8x4xf32>
    %c0_70 = arith.constant 0 : index
    %c0_71 = arith.constant 0 : index
    %91 = vector.load %arg5[%c0_70, %c0_71] : memref<1x4xf32, #tpu.memory_space<vmem>>, vector<1x4xf32>
    %92 = vector.broadcast %91 : vector<1x4xf32> to vector<8x4xf32>
    %93 = arith.addf %90, %92 : vector<8x4xf32>
    %c12_72 = arith.constant 12 : index
    %c0_73 = arith.constant 0 : index
    %94 = vector.load %arg11[%c12_72, %c0_73] : memref<72x4xf32, #tpu.memory_space<vmem>>, vector<8x4xf32>
    %95 = arith.truncf %94 : vector<8x4xf32> to vector<8x4xbf16>
    %c0_74 = arith.constant 0 : index
    %c0_75 = arith.constant 0 : index
    %c0_76 = arith.constant 0 : index
    %96 = vector.load %arg4[%c0_74, %c0_75, %c0_76] : memref<9x4x4xbf16, #tpu.memory_space<vmem>>, vector<1x4x4xbf16>
    %97 = vector.shape_cast %96 : vector<1x4x4xbf16> to vector<4x4xbf16>
    %cst_77 = arith.constant dense<0.000000e+00> : vector<8x4xf32>
    %98 = tpu.matmul %95, %97, %cst_77 {dimension_numbers = #tpu.dot_dimension_numbers<[1], [0], [0], [1], [0, 0, 1, 1], [], []>} : vector<8x4xbf16>, vector<4x4xbf16>, vector<8x4xf32> -> vector<8x4xf32>
    %99 = arith.addf %93, %98 : vector<8x4xf32>
    %c14_78 = arith.constant 14 : index
    %c0_79 = arith.constant 0 : index
    %100 = vector.load %arg11[%c14_78, %c0_79] : memref<72x4xf32, #tpu.memory_space<vmem>>, vector<8x4xf32>
    %101 = arith.truncf %100 : vector<8x4xf32> to vector<8x4xbf16>
    %c1_80 = arith.constant 1 : index
    %c0_81 = arith.constant 0 : index
    %c0_82 = arith.constant 0 : index
    %102 = vector.load %arg4[%c1_80, %c0_81, %c0_82] : memref<9x4x4xbf16, #tpu.memory_space<vmem>>, vector<1x4x4xbf16>
    %103 = vector.shape_cast %102 : vector<1x4x4xbf16> to vector<4x4xbf16>
    %cst_83 = arith.constant dense<0.000000e+00> : vector<8x4xf32>
    %104 = tpu.matmul %101, %103, %cst_83 {dimension_numbers = #tpu.dot_dimension_numbers<[1], [0], [0], [1], [0, 0, 1, 1], [], []>} : vector<8x4xbf16>, vector<4x4xbf16>, vector<8x4xf32> -> vector<8x4xf32>
    %105 = arith.addf %99, %104 : vector<8x4xf32>
    %c16_84 = arith.constant 16 : index
    %c0_85 = arith.constant 0 : index
    %106 = vector.load %arg11[%c16_84, %c0_85] : memref<72x4xf32, #tpu.memory_space<vmem>>, vector<8x4xf32>
    %107 = arith.truncf %106 : vector<8x4xf32> to vector<8x4xbf16>
    %c2_86 = arith.constant 2 : index
    %c0_87 = arith.constant 0 : index
    %c0_88 = arith.constant 0 : index
    %108 = vector.load %arg4[%c2_86, %c0_87, %c0_88] : memref<9x4x4xbf16, #tpu.memory_space<vmem>>, vector<1x4x4xbf16>
    %109 = vector.shape_cast %108 : vector<1x4x4xbf16> to vector<4x4xbf16>
    %cst_89 = arith.constant dense<0.000000e+00> : vector<8x4xf32>
    %110 = tpu.matmul %107, %109, %cst_89 {dimension_numbers = #tpu.dot_dimension_numbers<[1], [0], [0], [1], [0, 0, 1, 1], [], []>} : vector<8x4xbf16>, vector<4x4xbf16>, vector<8x4xf32> -> vector<8x4xf32>
    %111 = arith.addf %105, %110 : vector<8x4xf32>
    %c24_90 = arith.constant 24 : index
    %c0_91 = arith.constant 0 : index
    %112 = vector.load %arg11[%c24_90, %c0_91] : memref<72x4xf32, #tpu.memory_space<vmem>>, vector<8x4xf32>
    %113 = arith.truncf %112 : vector<8x4xf32> to vector<8x4xbf16>
    %c3_92 = arith.constant 3 : index
    %c0_93 = arith.constant 0 : index
    %c0_94 = arith.constant 0 : index
    %114 = vector.load %arg4[%c3_92, %c0_93, %c0_94] : memref<9x4x4xbf16, #tpu.memory_space<vmem>>, vector<1x4x4xbf16>
    %115 = vector.shape_cast %114 : vector<1x4x4xbf16> to vector<4x4xbf16>
    %cst_95 = arith.constant dense<0.000000e+00> : vector<8x4xf32>
    %116 = tpu.matmul %113, %115, %cst_95 {dimension_numbers = #tpu.dot_dimension_numbers<[1], [0], [0], [1], [0, 0, 1, 1], [], []>} : vector<8x4xbf16>, vector<4x4xbf16>, vector<8x4xf32> -> vector<8x4xf32>
    %117 = arith.addf %111, %116 : vector<8x4xf32>
    %c26_96 = arith.constant 26 : index
    %c0_97 = arith.constant 0 : index
    %118 = vector.load %arg11[%c26_96, %c0_97] : memref<72x4xf32, #tpu.memory_space<vmem>>, vector<8x4xf32>
    %119 = arith.truncf %118 : vector<8x4xf32> to vector<8x4xbf16>
    %c4_98 = arith.constant 4 : index
    %c0_99 = arith.constant 0 : index
    %c0_100 = arith.constant 0 : index
    %120 = vector.load %arg4[%c4_98, %c0_99, %c0_100] : memref<9x4x4xbf16, #tpu.memory_space<vmem>>, vector<1x4x4xbf16>
    %121 = vector.shape_cast %120 : vector<1x4x4xbf16> to vector<4x4xbf16>
    %cst_101 = arith.constant dense<0.000000e+00> : vector<8x4xf32>
    %122 = tpu.matmul %119, %121, %cst_101 {dimension_numbers = #tpu.dot_dimension_numbers<[1], [0], [0], [1], [0, 0, 1, 1], [], []>} : vector<8x4xbf16>, vector<4x4xbf16>, vector<8x4xf32> -> vector<8x4xf32>
    %123 = arith.addf %117, %122 : vector<8x4xf32>
    %c28_102 = arith.constant 28 : index
    %c0_103 = arith.constant 0 : index
    %124 = vector.load %arg11[%c28_102, %c0_103] : memref<72x4xf32, #tpu.memory_space<vmem>>, vector<8x4xf32>
    %125 = arith.truncf %124 : vector<8x4xf32> to vector<8x4xbf16>
    %c5_104 = arith.constant 5 : index
    %c0_105 = arith.constant 0 : index
    %c0_106 = arith.constant 0 : index
    %126 = vector.load %arg4[%c5_104, %c0_105, %c0_106] : memref<9x4x4xbf16, #tpu.memory_space<vmem>>, vector<1x4x4xbf16>
    %127 = vector.shape_cast %126 : vector<1x4x4xbf16> to vector<4x4xbf16>
    %cst_107 = arith.constant dense<0.000000e+00> : vector<8x4xf32>
    %128 = tpu.matmul %125, %127, %cst_107 {dimension_numbers = #tpu.dot_dimension_numbers<[1], [0], [0], [1], [0, 0, 1, 1], [], []>} : vector<8x4xbf16>, vector<4x4xbf16>, vector<8x4xf32> -> vector<8x4xf32>
    %129 = arith.addf %123, %128 : vector<8x4xf32>
    %c36 = arith.constant 36 : index
    %c0_108 = arith.constant 0 : index
    %130 = vector.load %arg11[%c36, %c0_108] : memref<72x4xf32, #tpu.memory_space<vmem>>, vector<8x4xf32>
    %131 = arith.truncf %130 : vector<8x4xf32> to vector<8x4xbf16>
    %c6_109 = arith.constant 6 : index
    %c0_110 = arith.constant 0 : index
    %c0_111 = arith.constant 0 : index
    %132 = vector.load %arg4[%c6_109, %c0_110, %c0_111] : memref<9x4x4xbf16, #tpu.memory_space<vmem>>, vector<1x4x4xbf16>
    %133 = vector.shape_cast %132 : vector<1x4x4xbf16> to vector<4x4xbf16>
    %cst_112 = arith.constant dense<0.000000e+00> : vector<8x4xf32>
    %134 = tpu.matmul %131, %133, %cst_112 {dimension_numbers = #tpu.dot_dimension_numbers<[1], [0], [0], [1], [0, 0, 1, 1], [], []>} : vector<8x4xbf16>, vector<4x4xbf16>, vector<8x4xf32> -> vector<8x4xf32>
    %135 = arith.addf %129, %134 : vector<8x4xf32>
    %c38 = arith.constant 38 : index
    %c0_113 = arith.constant 0 : index
    %136 = vector.load %arg11[%c38, %c0_113] : memref<72x4xf32, #tpu.memory_space<vmem>>, vector<8x4xf32>
    %137 = arith.truncf %136 : vector<8x4xf32> to vector<8x4xbf16>
    %c7_114 = arith.constant 7 : index
    %c0_115 = arith.constant 0 : index
    %c0_116 = arith.constant 0 : index
    %138 = vector.load %arg4[%c7_114, %c0_115, %c0_116] : memref<9x4x4xbf16, #tpu.memory_space<vmem>>, vector<1x4x4xbf16>
    %139 = vector.shape_cast %138 : vector<1x4x4xbf16> to vector<4x4xbf16>
    %cst_117 = arith.constant dense<0.000000e+00> : vector<8x4xf32>
    %140 = tpu.matmul %137, %139, %cst_117 {dimension_numbers = #tpu.dot_dimension_numbers<[1], [0], [0], [1], [0, 0, 1, 1], [], []>} : vector<8x4xbf16>, vector<4x4xbf16>, vector<8x4xf32> -> vector<8x4xf32>
    %141 = arith.addf %135, %140 : vector<8x4xf32>
    %c40 = arith.constant 40 : index
    %c0_118 = arith.constant 0 : index
    %142 = vector.load %arg11[%c40, %c0_118] : memref<72x4xf32, #tpu.memory_space<vmem>>, vector<8x4xf32>
    %143 = arith.truncf %142 : vector<8x4xf32> to vector<8x4xbf16>
    %c8_119 = arith.constant 8 : index
    %c0_120 = arith.constant 0 : index
    %c0_121 = arith.constant 0 : index
    %144 = vector.load %arg4[%c8_119, %c0_120, %c0_121] : memref<9x4x4xbf16, #tpu.memory_space<vmem>>, vector<1x4x4xbf16>
    %145 = vector.shape_cast %144 : vector<1x4x4xbf16> to vector<4x4xbf16>
    %cst_122 = arith.constant dense<0.000000e+00> : vector<8x4xf32>
    %146 = tpu.matmul %143, %145, %cst_122 {dimension_numbers = #tpu.dot_dimension_numbers<[1], [0], [0], [1], [0, 0, 1, 1], [], []>} : vector<8x4xbf16>, vector<4x4xbf16>, vector<8x4xf32> -> vector<8x4xf32>
    %147 = arith.addf %141, %146 : vector<8x4xf32>
    %cst_123 = arith.constant 0.000000e+00 : f32
    %148 = vector.broadcast %cst_123 : f32 to vector<8x4xf32>
    %149 = arith.maximumf %147, %148 : vector<8x4xf32>
    %150 = arith.truncf %149 : vector<8x4xf32> to vector<8x4xbf16>
    %c0_124 = arith.constant 0 : index
    %c0_125 = arith.constant 0 : index
    %151 = vector.load %arg6[%c0_124, %c0_125] : memref<4x16xbf16, #tpu.memory_space<vmem>>, vector<4x16xbf16>
    %cst_126 = arith.constant dense<0.000000e+00> : vector<8x16xf32>
    %152 = tpu.matmul %150, %151, %cst_126 {dimension_numbers = #tpu.dot_dimension_numbers<[1], [0], [0], [1], [0, 0, 1, 1], [], []>} : vector<8x4xbf16>, vector<4x16xbf16>, vector<8x16xf32> -> vector<8x16xf32>
    %c0_127 = arith.constant 0 : index
    %c0_128 = arith.constant 0 : index
    %153 = vector.load %arg7[%c0_127, %c0_128] : memref<1x16xf32, #tpu.memory_space<vmem>>, vector<1x16xf32>
    %154 = vector.broadcast %153 : vector<1x16xf32> to vector<8x16xf32>
    %155 = arith.addf %152, %154 : vector<8x16xf32>
    %c26_129 = arith.constant 26 : index
    %c0_130 = arith.constant 0 : index
    %156 = vector.load %arg0[%c26_129, %c0_130] : memref<72x8xf32, #tpu.memory_space<vmem>>, vector<8x8xf32>
    %157 = arith.truncf %156 : vector<8x8xf32> to vector<8x8xbf16>
    %c0_131 = arith.constant 0 : index
    %c0_132 = arith.constant 0 : index
    %158 = vector.load %arg8[%c0_131, %c0_132] : memref<8x16xbf16, #tpu.memory_space<vmem>>, vector<8x16xbf16>
    %cst_133 = arith.constant dense<0.000000e+00> : vector<8x16xf32>
    %159 = tpu.matmul %157, %158, %cst_133 {dimension_numbers = #tpu.dot_dimension_numbers<[1], [0], [0], [1], [0, 0, 1, 1], [], []>} : vector<8x8xbf16>, vector<8x16xbf16>, vector<8x16xf32> -> vector<8x16xf32>
    %c0_134 = arith.constant 0 : index
    %c0_135 = arith.constant 0 : index
    %160 = vector.load %arg9[%c0_134, %c0_135] : memref<1x16xf32, #tpu.memory_space<vmem>>, vector<1x16xf32>
    %161 = vector.broadcast %160 : vector<1x16xf32> to vector<8x16xf32>
    %162 = arith.addf %159, %161 : vector<8x16xf32>
    %163 = arith.addf %155, %162 : vector<8x16xf32>
    %cst_136 = arith.constant 0.000000e+00 : f32
    %164 = vector.broadcast %cst_136 : f32 to vector<8x16xf32>
    %165 = arith.maximumf %163, %164 : vector<8x16xf32>
    %c8_137 = arith.constant 8 : index
    %c0_138 = arith.constant 0 : index
    %166 = vector.load %arg10[%c8_137, %c0_138] : memref<32x16xf32, #tpu.memory_space<vmem>>, vector<8x16xf32>
    tpu.vector_store %arg10[%c8_137, %c0_138], %165 {strides = array<i32>} : memref<32x16xf32, #tpu.memory_space<vmem>>, vector<8x16xf32>,
    %cst_139 = arith.constant 0.000000e+00 : f32
    %167 = vector.broadcast %cst_139 : f32 to vector<8x4xf32>
    %c0_140 = arith.constant 0 : index
    %c0_141 = arith.constant 0 : index
    %168 = vector.load %arg5[%c0_140, %c0_141] : memref<1x4xf32, #tpu.memory_space<vmem>>, vector<1x4xf32>
    %169 = vector.broadcast %168 : vector<1x4xf32> to vector<8x4xf32>
    %170 = arith.addf %167, %169 : vector<8x4xf32>
    %c24_142 = arith.constant 24 : index
    %c0_143 = arith.constant 0 : index
    %171 = vector.load %arg11[%c24_142, %c0_143] : memref<72x4xf32, #tpu.memory_space<vmem>>, vector<8x4xf32>
    %172 = arith.truncf %171 : vector<8x4xf32> to vector<8x4xbf16>
    %c0_144 = arith.constant 0 : index
    %c0_145 = arith.constant 0 : index
    %c0_146 = arith.constant 0 : index
    %173 = vector.load %arg4[%c0_144, %c0_145, %c0_146] : memref<9x4x4xbf16, #tpu.memory_space<vmem>>, vector<1x4x4xbf16>
    %174 = vector.shape_cast %173 : vector<1x4x4xbf16> to vector<4x4xbf16>
    %cst_147 = arith.constant dense<0.000000e+00> : vector<8x4xf32>
    %175 = tpu.matmul %172, %174, %cst_147 {dimension_numbers = #tpu.dot_dimension_numbers<[1], [0], [0], [1], [0, 0, 1, 1], [], []>} : vector<8x4xbf16>, vector<4x4xbf16>, vector<8x4xf32> -> vector<8x4xf32>
    %176 = arith.addf %170, %175 : vector<8x4xf32>
    %c26_148 = arith.constant 26 : index
    %c0_149 = arith.constant 0 : index
    %177 = vector.load %arg11[%c26_148, %c0_149] : memref<72x4xf32, #tpu.memory_space<vmem>>, vector<8x4xf32>
    %178 = arith.truncf %177 : vector<8x4xf32> to vector<8x4xbf16>
    %c1_150 = arith.constant 1 : index
    %c0_151 = arith.constant 0 : index
    %c0_152 = arith.constant 0 : index
    %179 = vector.load %arg4[%c1_150, %c0_151, %c0_152] : memref<9x4x4xbf16, #tpu.memory_space<vmem>>, vector<1x4x4xbf16>
    %180 = vector.shape_cast %179 : vector<1x4x4xbf16> to vector<4x4xbf16>
    %cst_153 = arith.constant dense<0.000000e+00> : vector<8x4xf32>
    %181 = tpu.matmul %178, %180, %cst_153 {dimension_numbers = #tpu.dot_dimension_numbers<[1], [0], [0], [1], [0, 0, 1, 1], [], []>} : vector<8x4xbf16>, vector<4x4xbf16>, vector<8x4xf32> -> vector<8x4xf32>
    %182 = arith.addf %176, %181 : vector<8x4xf32>
    %c28_154 = arith.constant 28 : index
    %c0_155 = arith.constant 0 : index
    %183 = vector.load %arg11[%c28_154, %c0_155] : memref<72x4xf32, #tpu.memory_space<vmem>>, vector<8x4xf32>
    %184 = arith.truncf %183 : vector<8x4xf32> to vector<8x4xbf16>
    %c2_156 = arith.constant 2 : index
    %c0_157 = arith.constant 0 : index
    %c0_158 = arith.constant 0 : index
    %185 = vector.load %arg4[%c2_156, %c0_157, %c0_158] : memref<9x4x4xbf16, #tpu.memory_space<vmem>>, vector<1x4x4xbf16>
    %186 = vector.shape_cast %185 : vector<1x4x4xbf16> to vector<4x4xbf16>
    %cst_159 = arith.constant dense<0.000000e+00> : vector<8x4xf32>
    %187 = tpu.matmul %184, %186, %cst_159 {dimension_numbers = #tpu.dot_dimension_numbers<[1], [0], [0], [1], [0, 0, 1, 1], [], []>} : vector<8x4xbf16>, vector<4x4xbf16>, vector<8x4xf32> -> vector<8x4xf32>
    %188 = arith.addf %182, %187 : vector<8x4xf32>
    %c36_160 = arith.constant 36 : index
    %c0_161 = arith.constant 0 : index
    %189 = vector.load %arg11[%c36_160, %c0_161] : memref<72x4xf32, #tpu.memory_space<vmem>>, vector<8x4xf32>
    %190 = arith.truncf %189 : vector<8x4xf32> to vector<8x4xbf16>
    %c3_162 = arith.constant 3 : index
    %c0_163 = arith.constant 0 : index
    %c0_164 = arith.constant 0 : index
    %191 = vector.load %arg4[%c3_162, %c0_163, %c0_164] : memref<9x4x4xbf16, #tpu.memory_space<vmem>>, vector<1x4x4xbf16>
    %192 = vector.shape_cast %191 : vector<1x4x4xbf16> to vector<4x4xbf16>
    %cst_165 = arith.constant dense<0.000000e+00> : vector<8x4xf32>
    %193 = tpu.matmul %190, %192, %cst_165 {dimension_numbers = #tpu.dot_dimension_numbers<[1], [0], [0], [1], [0, 0, 1, 1], [], []>} : vector<8x4xbf16>, vector<4x4xbf16>, vector<8x4xf32> -> vector<8x4xf32>
    %194 = arith.addf %188, %193 : vector<8x4xf32>
    %c38_166 = arith.constant 38 : index
    %c0_167 = arith.constant 0 : index
    %195 = vector.load %arg11[%c38_166, %c0_167] : memref<72x4xf32, #tpu.memory_space<vmem>>, vector<8x4xf32>
    %196 = arith.truncf %195 : vector<8x4xf32> to vector<8x4xbf16>
    %c4_168 = arith.constant 4 : index
    %c0_169 = arith.constant 0 : index
    %c0_170 = arith.constant 0 : index
    %197 = vector.load %arg4[%c4_168, %c0_169, %c0_170] : memref<9x4x4xbf16, #tpu.memory_space<vmem>>, vector<1x4x4xbf16>
    %198 = vector.shape_cast %197 : vector<1x4x4xbf16> to vector<4x4xbf16>
    %cst_171 = arith.constant dense<0.000000e+00> : vector<8x4xf32>
    %199 = tpu.matmul %196, %198, %cst_171 {dimension_numbers = #tpu.dot_dimension_numbers<[1], [0], [0], [1], [0, 0, 1, 1], [], []>} : vector<8x4xbf16>, vector<4x4xbf16>, vector<8x4xf32> -> vector<8x4xf32>
    %200 = arith.addf %194, %199 : vector<8x4xf32>
    %c40_172 = arith.constant 40 : index
    %c0_173 = arith.constant 0 : index
    %201 = vector.load %arg11[%c40_172, %c0_173] : memref<72x4xf32, #tpu.memory_space<vmem>>, vector<8x4xf32>
    %202 = arith.truncf %201 : vector<8x4xf32> to vector<8x4xbf16>
    %c5_174 = arith.constant 5 : index
    %c0_175 = arith.constant 0 : index
    %c0_176 = arith.constant 0 : index
    %203 = vector.load %arg4[%c5_174, %c0_175, %c0_176] : memref<9x4x4xbf16, #tpu.memory_space<vmem>>, vector<1x4x4xbf16>
    %204 = vector.shape_cast %203 : vector<1x4x4xbf16> to vector<4x4xbf16>
    %cst_177 = arith.constant dense<0.000000e+00> : vector<8x4xf32>
    %205 = tpu.matmul %202, %204, %cst_177 {dimension_numbers = #tpu.dot_dimension_numbers<[1], [0], [0], [1], [0, 0, 1, 1], [], []>} : vector<8x4xbf16>, vector<4x4xbf16>, vector<8x4xf32> -> vector<8x4xf32>
    %206 = arith.addf %200, %205 : vector<8x4xf32>
    %c48 = arith.constant 48 : index
    %c0_178 = arith.constant 0 : index
    %207 = vector.load %arg11[%c48, %c0_178] : memref<72x4xf32, #tpu.memory_space<vmem>>, vector<8x4xf32>
    %208 = arith.truncf %207 : vector<8x4xf32> to vector<8x4xbf16>
    %c6_179 = arith.constant 6 : index
    %c0_180 = arith.constant 0 : index
    %c0_181 = arith.constant 0 : index
    %209 = vector.load %arg4[%c6_179, %c0_180, %c0_181] : memref<9x4x4xbf16, #tpu.memory_space<vmem>>, vector<1x4x4xbf16>
    %210 = vector.shape_cast %209 : vector<1x4x4xbf16> to vector<4x4xbf16>
    %cst_182 = arith.constant dense<0.000000e+00> : vector<8x4xf32>
    %211 = tpu.matmul %208, %210, %cst_182 {dimension_numbers = #tpu.dot_dimension_numbers<[1], [0], [0], [1], [0, 0, 1, 1], [], []>} : vector<8x4xbf16>, vector<4x4xbf16>, vector<8x4xf32> -> vector<8x4xf32>
    %212 = arith.addf %206, %211 : vector<8x4xf32>
    %c50 = arith.constant 50 : index
    %c0_183 = arith.constant 0 : index
    %213 = vector.load %arg11[%c50, %c0_183] : memref<72x4xf32, #tpu.memory_space<vmem>>, vector<8x4xf32>
    %214 = arith.truncf %213 : vector<8x4xf32> to vector<8x4xbf16>
    %c7_184 = arith.constant 7 : index
    %c0_185 = arith.constant 0 : index
    %c0_186 = arith.constant 0 : index
    %215 = vector.load %arg4[%c7_184, %c0_185, %c0_186] : memref<9x4x4xbf16, #tpu.memory_space<vmem>>, vector<1x4x4xbf16>
    %216 = vector.shape_cast %215 : vector<1x4x4xbf16> to vector<4x4xbf16>
    %cst_187 = arith.constant dense<0.000000e+00> : vector<8x4xf32>
    %217 = tpu.matmul %214, %216, %cst_187 {dimension_numbers = #tpu.dot_dimension_numbers<[1], [0], [0], [1], [0, 0, 1, 1], [], []>} : vector<8x4xbf16>, vector<4x4xbf16>, vector<8x4xf32> -> vector<8x4xf32>
    %218 = arith.addf %212, %217 : vector<8x4xf32>
    %c52 = arith.constant 52 : index
    %c0_188 = arith.constant 0 : index
    %219 = vector.load %arg11[%c52, %c0_188] : memref<72x4xf32, #tpu.memory_space<vmem>>, vector<8x4xf32>
    %220 = arith.truncf %219 : vector<8x4xf32> to vector<8x4xbf16>
    %c8_189 = arith.constant 8 : index
    %c0_190 = arith.constant 0 : index
    %c0_191 = arith.constant 0 : index
    %221 = vector.load %arg4[%c8_189, %c0_190, %c0_191] : memref<9x4x4xbf16, #tpu.memory_space<vmem>>, vector<1x4x4xbf16>
    %222 = vector.shape_cast %221 : vector<1x4x4xbf16> to vector<4x4xbf16>
    %cst_192 = arith.constant dense<0.000000e+00> : vector<8x4xf32>
    %223 = tpu.matmul %220, %222, %cst_192 {dimension_numbers = #tpu.dot_dimension_numbers<[1], [0], [0], [1], [0, 0, 1, 1], [], []>} : vector<8x4xbf16>, vector<4x4xbf16>, vector<8x4xf32> -> vector<8x4xf32>
    %224 = arith.addf %218, %223 : vector<8x4xf32>
    %cst_193 = arith.constant 0.000000e+00 : f32
    %225 = vector.broadcast %cst_193 : f32 to vector<8x4xf32>
    %226 = arith.maximumf %224, %225 : vector<8x4xf32>
    %227 = arith.truncf %226 : vector<8x4xf32> to vector<8x4xbf16>
    %c0_194 = arith.constant 0 : index
    %c0_195 = arith.constant 0 : index
    %228 = vector.load %arg6[%c0_194, %c0_195] : memref<4x16xbf16, #tpu.memory_space<vmem>>, vector<4x16xbf16>
    %cst_196 = arith.constant dense<0.000000e+00> : vector<8x16xf32>
    %229 = tpu.matmul %227, %228, %cst_196 {dimension_numbers = #tpu.dot_dimension_numbers<[1], [0], [0], [1], [0, 0, 1, 1], [], []>} : vector<8x4xbf16>, vector<4x16xbf16>, vector<8x16xf32> -> vector<8x16xf32>
    %c0_197 = arith.constant 0 : index
    %c0_198 = arith.constant 0 : index
    %230 = vector.load %arg7[%c0_197, %c0_198] : memref<1x16xf32, #tpu.memory_space<vmem>>, vector<1x16xf32>
    %231 = vector.broadcast %230 : vector<1x16xf32> to vector<8x16xf32>
    %232 = arith.addf %229, %231 : vector<8x16xf32>
    %c38_199 = arith.constant 38 : index
    %c0_200 = arith.constant 0 : index
    %233 = vector.load %arg0[%c38_199, %c0_200] : memref<72x8xf32, #tpu.memory_space<vmem>>, vector<8x8xf32>
    %234 = arith.truncf %233 : vector<8x8xf32> to vector<8x8xbf16>
    %c0_201 = arith.constant 0 : index
    %c0_202 = arith.constant 0 : index
    %235 = vector.load %arg8[%c0_201, %c0_202] : memref<8x16xbf16, #tpu.memory_space<vmem>>, vector<8x16xbf16>
    %cst_203 = arith.constant dense<0.000000e+00> : vector<8x16xf32>
    %236 = tpu.matmul %234, %235, %cst_203 {dimension_numbers = #tpu.dot_dimension_numbers<[1], [0], [0], [1], [0, 0, 1, 1], [], []>} : vector<8x8xbf16>, vector<8x16xbf16>, vector<8x16xf32> -> vector<8x16xf32>
    %c0_204 = arith.constant 0 : index
    %c0_205 = arith.constant 0 : index
    %237 = vector.load %arg9[%c0_204, %c0_205] : memref<1x16xf32, #tpu.memory_space<vmem>>, vector<1x16xf32>
    %238 = vector.broadcast %237 : vector<1x16xf32> to vector<8x16xf32>
    %239 = arith.addf %236, %238 : vector<8x16xf32>
    %240 = arith.addf %232, %239 : vector<8x16xf32>
    %cst_206 = arith.constant 0.000000e+00 : f32
    %241 = vector.broadcast %cst_206 : f32 to vector<8x16xf32>
    %242 = arith.maximumf %240, %241 : vector<8x16xf32>
    %c16_207 = arith.constant 16 : index
    %c0_208 = arith.constant 0 : index
    %243 = vector.load %arg10[%c16_207, %c0_208] : memref<32x16xf32, #tpu.memory_space<vmem>>, vector<8x16xf32>
    tpu.vector_store %arg10[%c16_207, %c0_208], %242 {strides = array<i32>} : memref<32x16xf32, #tpu.memory_space<vmem>>, vector<8x16xf32>,
    %cst_209 = arith.constant 0.000000e+00 : f32
    %244 = vector.broadcast %cst_209 : f32 to vector<8x4xf32>
    %c0_210 = arith.constant 0 : index
    %c0_211 = arith.constant 0 : index
    %245 = vector.load %arg5[%c0_210, %c0_211] : memref<1x4xf32, #tpu.memory_space<vmem>>, vector<1x4xf32>
    %246 = vector.broadcast %245 : vector<1x4xf32> to vector<8x4xf32>
    %247 = arith.addf %244, %246 : vector<8x4xf32>
    %c36_212 = arith.constant 36 : index
    %c0_213 = arith.constant 0 : index
    %248 = vector.load %arg11[%c36_212, %c0_213] : memref<72x4xf32, #tpu.memory_space<vmem>>, vector<8x4xf32>
    %249 = arith.truncf %248 : vector<8x4xf32> to vector<8x4xbf16>
    %c0_214 = arith.constant 0 : index
    %c0_215 = arith.constant 0 : index
    %c0_216 = arith.constant 0 : index
    %250 = vector.load %arg4[%c0_214, %c0_215, %c0_216] : memref<9x4x4xbf16, #tpu.memory_space<vmem>>, vector<1x4x4xbf16>
    %251 = vector.shape_cast %250 : vector<1x4x4xbf16> to vector<4x4xbf16>
    %cst_217 = arith.constant dense<0.000000e+00> : vector<8x4xf32>
    %252 = tpu.matmul %249, %251, %cst_217 {dimension_numbers = #tpu.dot_dimension_numbers<[1], [0], [0], [1], [0, 0, 1, 1], [], []>} : vector<8x4xbf16>, vector<4x4xbf16>, vector<8x4xf32> -> vector<8x4xf32>
    %253 = arith.addf %247, %252 : vector<8x4xf32>
    %c38_218 = arith.constant 38 : index
    %c0_219 = arith.constant 0 : index
    %254 = vector.load %arg11[%c38_218, %c0_219] : memref<72x4xf32, #tpu.memory_space<vmem>>, vector<8x4xf32>
    %255 = arith.truncf %254 : vector<8x4xf32> to vector<8x4xbf16>
    %c1_220 = arith.constant 1 : index
    %c0_221 = arith.constant 0 : index
    %c0_222 = arith.constant 0 : index
    %256 = vector.load %arg4[%c1_220, %c0_221, %c0_222] : memref<9x4x4xbf16, #tpu.memory_space<vmem>>, vector<1x4x4xbf16>
    %257 = vector.shape_cast %256 : vector<1x4x4xbf16> to vector<4x4xbf16>
    %cst_223 = arith.constant dense<0.000000e+00> : vector<8x4xf32>
    %258 = tpu.matmul %255, %257, %cst_223 {dimension_numbers = #tpu.dot_dimension_numbers<[1], [0], [0], [1], [0, 0, 1, 1], [], []>} : vector<8x4xbf16>, vector<4x4xbf16>, vector<8x4xf32> -> vector<8x4xf32>
    %259 = arith.addf %253, %258 : vector<8x4xf32>
    %c40_224 = arith.constant 40 : index
    %c0_225 = arith.constant 0 : index
    %260 = vector.load %arg11[%c40_224, %c0_225] : memref<72x4xf32, #tpu.memory_space<vmem>>, vector<8x4xf32>
    %261 = arith.truncf %260 : vector<8x4xf32> to vector<8x4xbf16>
    %c2_226 = arith.constant 2 : index
    %c0_227 = arith.constant 0 : index
    %c0_228 = arith.constant 0 : index
    %262 = vector.load %arg4[%c2_226, %c0_227, %c0_228] : memref<9x4x4xbf16, #tpu.memory_space<vmem>>, vector<1x4x4xbf16>
    %263 = vector.shape_cast %262 : vector<1x4x4xbf16> to vector<4x4xbf16>
    %cst_229 = arith.constant dense<0.000000e+00> : vector<8x4xf32>
    %264 = tpu.matmul %261, %263, %cst_229 {dimension_numbers = #tpu.dot_dimension_numbers<[1], [0], [0], [1], [0, 0, 1, 1], [], []>} : vector<8x4xbf16>, vector<4x4xbf16>, vector<8x4xf32> -> vector<8x4xf32>
    %265 = arith.addf %259, %264 : vector<8x4xf32>
    %c48_230 = arith.constant 48 : index
    %c0_231 = arith.constant 0 : index
    %266 = vector.load %arg11[%c48_230, %c0_231] : memref<72x4xf32, #tpu.memory_space<vmem>>, vector<8x4xf32>
    %267 = arith.truncf %266 : vector<8x4xf32> to vector<8x4xbf16>
    %c3_232 = arith.constant 3 : index
    %c0_233 = arith.constant 0 : index
    %c0_234 = arith.constant 0 : index
    %268 = vector.load %arg4[%c3_232, %c0_233, %c0_234] : memref<9x4x4xbf16, #tpu.memory_space<vmem>>, vector<1x4x4xbf16>
    %269 = vector.shape_cast %268 : vector<1x4x4xbf16> to vector<4x4xbf16>
    %cst_235 = arith.constant dense<0.000000e+00> : vector<8x4xf32>
    %270 = tpu.matmul %267, %269, %cst_235 {dimension_numbers = #tpu.dot_dimension_numbers<[1], [0], [0], [1], [0, 0, 1, 1], [], []>} : vector<8x4xbf16>, vector<4x4xbf16>, vector<8x4xf32> -> vector<8x4xf32>
    %271 = arith.addf %265, %270 : vector<8x4xf32>
    %c50_236 = arith.constant 50 : index
    %c0_237 = arith.constant 0 : index
    %272 = vector.load %arg11[%c50_236, %c0_237] : memref<72x4xf32, #tpu.memory_space<vmem>>, vector<8x4xf32>
    %273 = arith.truncf %272 : vector<8x4xf32> to vector<8x4xbf16>
    %c4_238 = arith.constant 4 : index
    %c0_239 = arith.constant 0 : index
    %c0_240 = arith.constant 0 : index
    %274 = vector.load %arg4[%c4_238, %c0_239, %c0_240] : memref<9x4x4xbf16, #tpu.memory_space<vmem>>, vector<1x4x4xbf16>
    %275 = vector.shape_cast %274 : vector<1x4x4xbf16> to vector<4x4xbf16>
    %cst_241 = arith.constant dense<0.000000e+00> : vector<8x4xf32>
    %276 = tpu.matmul %273, %275, %cst_241 {dimension_numbers = #tpu.dot_dimension_numbers<[1], [0], [0], [1], [0, 0, 1, 1], [], []>} : vector<8x4xbf16>, vector<4x4xbf16>, vector<8x4xf32> -> vector<8x4xf32>
    %277 = arith.addf %271, %276 : vector<8x4xf32>
    %c52_242 = arith.constant 52 : index
    %c0_243 = arith.constant 0 : index
    %278 = vector.load %arg11[%c52_242, %c0_243] : memref<72x4xf32, #tpu.memory_space<vmem>>, vector<8x4xf32>
    %279 = arith.truncf %278 : vector<8x4xf32> to vector<8x4xbf16>
    %c5_244 = arith.constant 5 : index
    %c0_245 = arith.constant 0 : index
    %c0_246 = arith.constant 0 : index
    %280 = vector.load %arg4[%c5_244, %c0_245, %c0_246] : memref<9x4x4xbf16, #tpu.memory_space<vmem>>, vector<1x4x4xbf16>
    %281 = vector.shape_cast %280 : vector<1x4x4xbf16> to vector<4x4xbf16>
    %cst_247 = arith.constant dense<0.000000e+00> : vector<8x4xf32>
    %282 = tpu.matmul %279, %281, %cst_247 {dimension_numbers = #tpu.dot_dimension_numbers<[1], [0], [0], [1], [0, 0, 1, 1], [], []>} : vector<8x4xbf16>, vector<4x4xbf16>, vector<8x4xf32> -> vector<8x4xf32>
    %283 = arith.addf %277, %282 : vector<8x4xf32>
    %c60 = arith.constant 60 : index
    %c0_248 = arith.constant 0 : index
    %284 = vector.load %arg11[%c60, %c0_248] : memref<72x4xf32, #tpu.memory_space<vmem>>, vector<8x4xf32>
    %285 = arith.truncf %284 : vector<8x4xf32> to vector<8x4xbf16>
    %c6_249 = arith.constant 6 : index
    %c0_250 = arith.constant 0 : index
    %c0_251 = arith.constant 0 : index
    %286 = vector.load %arg4[%c6_249, %c0_250, %c0_251] : memref<9x4x4xbf16, #tpu.memory_space<vmem>>, vector<1x4x4xbf16>
    %287 = vector.shape_cast %286 : vector<1x4x4xbf16> to vector<4x4xbf16>
    %cst_252 = arith.constant dense<0.000000e+00> : vector<8x4xf32>
    %288 = tpu.matmul %285, %287, %cst_252 {dimension_numbers = #tpu.dot_dimension_numbers<[1], [0], [0], [1], [0, 0, 1, 1], [], []>} : vector<8x4xbf16>, vector<4x4xbf16>, vector<8x4xf32> -> vector<8x4xf32>
    %289 = arith.addf %283, %288 : vector<8x4xf32>
    %c62 = arith.constant 62 : index
    %c0_253 = arith.constant 0 : index
    %290 = vector.load %arg11[%c62, %c0_253] : memref<72x4xf32, #tpu.memory_space<vmem>>, vector<8x4xf32>
    %291 = arith.truncf %290 : vector<8x4xf32> to vector<8x4xbf16>
    %c7_254 = arith.constant 7 : index
    %c0_255 = arith.constant 0 : index
    %c0_256 = arith.constant 0 : index
    %292 = vector.load %arg4[%c7_254, %c0_255, %c0_256] : memref<9x4x4xbf16, #tpu.memory_space<vmem>>, vector<1x4x4xbf16>
    %293 = vector.shape_cast %292 : vector<1x4x4xbf16> to vector<4x4xbf16>
    %cst_257 = arith.constant dense<0.000000e+00> : vector<8x4xf32>
    %294 = tpu.matmul %291, %293, %cst_257 {dimension_numbers = #tpu.dot_dimension_numbers<[1], [0], [0], [1], [0, 0, 1, 1], [], []>} : vector<8x4xbf16>, vector<4x4xbf16>, vector<8x4xf32> -> vector<8x4xf32>
    %295 = arith.addf %289, %294 : vector<8x4xf32>
    %c64 = arith.constant 64 : index
    %c0_258 = arith.constant 0 : index
    %296 = vector.load %arg11[%c64, %c0_258] : memref<72x4xf32, #tpu.memory_space<vmem>>, vector<8x4xf32>
    %297 = arith.truncf %296 : vector<8x4xf32> to vector<8x4xbf16>
    %c8_259 = arith.constant 8 : index
    %c0_260 = arith.constant 0 : index
    %c0_261 = arith.constant 0 : index
    %298 = vector.load %arg4[%c8_259, %c0_260, %c0_261] : memref<9x4x4xbf16, #tpu.memory_space<vmem>>, vector<1x4x4xbf16>
    %299 = vector.shape_cast %298 : vector<1x4x4xbf16> to vector<4x4xbf16>
    %cst_262 = arith.constant dense<0.000000e+00> : vector<8x4xf32>
    %300 = tpu.matmul %297, %299, %cst_262 {dimension_numbers = #tpu.dot_dimension_numbers<[1], [0], [0], [1], [0, 0, 1, 1], [], []>} : vector<8x4xbf16>, vector<4x4xbf16>, vector<8x4xf32> -> vector<8x4xf32>
    %301 = arith.addf %295, %300 : vector<8x4xf32>
    %cst_263 = arith.constant 0.000000e+00 : f32
    %302 = vector.broadcast %cst_263 : f32 to vector<8x4xf32>
    %303 = arith.maximumf %301, %302 : vector<8x4xf32>
    %304 = arith.truncf %303 : vector<8x4xf32> to vector<8x4xbf16>
    %c0_264 = arith.constant 0 : index
    %c0_265 = arith.constant 0 : index
    %305 = vector.load %arg6[%c0_264, %c0_265] : memref<4x16xbf16, #tpu.memory_space<vmem>>, vector<4x16xbf16>
    %cst_266 = arith.constant dense<0.000000e+00> : vector<8x16xf32>
    %306 = tpu.matmul %304, %305, %cst_266 {dimension_numbers = #tpu.dot_dimension_numbers<[1], [0], [0], [1], [0, 0, 1, 1], [], []>} : vector<8x4xbf16>, vector<4x16xbf16>, vector<8x16xf32> -> vector<8x16xf32>
    %c0_267 = arith.constant 0 : index
    %c0_268 = arith.constant 0 : index
    %307 = vector.load %arg7[%c0_267, %c0_268] : memref<1x16xf32, #tpu.memory_space<vmem>>, vector<1x16xf32>
    %308 = vector.broadcast %307 : vector<1x16xf32> to vector<8x16xf32>
    %309 = arith.addf %306, %308 : vector<8x16xf32>
    %c50_269 = arith.constant 50 : index
    %c0_270 = arith.constant 0 : index
    %310 = vector.load %arg0[%c50_269, %c0_270] : memref<72x8xf32, #tpu.memory_space<vmem>>, vector<8x8xf32>
    %311 = arith.truncf %310 : vector<8x8xf32> to vector<8x8xbf16>
    %c0_271 = arith.constant 0 : index
    %c0_272 = arith.constant 0 : index
    %312 = vector.load %arg8[%c0_271, %c0_272] : memref<8x16xbf16, #tpu.memory_space<vmem>>, vector<8x16xbf16>
    %cst_273 = arith.constant dense<0.000000e+00> : vector<8x16xf32>
    %313 = tpu.matmul %311, %312, %cst_273 {dimension_numbers = #tpu.dot_dimension_numbers<[1], [0], [0], [1], [0, 0, 1, 1], [], []>} : vector<8x8xbf16>, vector<8x16xbf16>, vector<8x16xf32> -> vector<8x16xf32>
    %c0_274 = arith.constant 0 : index
    %c0_275 = arith.constant 0 : index
    %314 = vector.load %arg9[%c0_274, %c0_275] : memref<1x16xf32, #tpu.memory_space<vmem>>, vector<1x16xf32>
    %315 = vector.broadcast %314 : vector<1x16xf32> to vector<8x16xf32>
    %316 = arith.addf %313, %315 : vector<8x16xf32>
    %317 = arith.addf %309, %316 : vector<8x16xf32>
    %cst_276 = arith.constant 0.000000e+00 : f32
    %318 = vector.broadcast %cst_276 : f32 to vector<8x16xf32>
    %319 = arith.maximumf %317, %318 : vector<8x16xf32>
    %c24_277 = arith.constant 24 : index
    %c0_278 = arith.constant 0 : index
    %320 = vector.load %arg10[%c24_277, %c0_278] : memref<32x16xf32, #tpu.memory_space<vmem>>, vector<8x16xf32>
    tpu.vector_store %arg10[%c24_277, %c0_278], %319 {strides = array<i32>} : memref<32x16xf32, #tpu.memory_space<vmem>>, vector<8x16xf32>,
    return
  }
}

module attributes {stable_mosaic.version = 11 : i64} {
  func.func @_block_kernel(%arg0: memref<32x16xf32, #tpu.memory_space<vmem>>, %arg1: memref<32x16xf32, #tpu.memory_space<vmem>>, %arg2: memref<32x16xf32, #tpu.memory_space<vmem>>, %arg3: memref<32x16xf32, #tpu.memory_space<vmem>>, %arg4: memref<32x1xf32, #tpu.memory_space<vmem>>, %arg5: memref<16x8xbf16, #tpu.memory_space<vmem>>, %arg6: memref<1x8xf32, #tpu.memory_space<vmem>>, %arg7: memref<9x8x8xbf16, #tpu.memory_space<vmem>>, %arg8: memref<1x8xf32, #tpu.memory_space<vmem>>, %arg9: memref<8x32xbf16, #tpu.memory_space<vmem>>, %arg10: memref<1x32xf32, #tpu.memory_space<vmem>>, %arg11: memref<16x32xbf16, #tpu.memory_space<vmem>>, %arg12: memref<1x32xf32, #tpu.memory_space<vmem>>, %arg13: memref<8x32xf32, #tpu.memory_space<vmem>>, %arg14: memref<32x8xf32, #tpu.memory_space<vmem>>, %arg15: memref<32x8xf32, #tpu.memory_space<vmem>>, %arg16: memref<32x8xf32, #tpu.memory_space<vmem>>, %arg17: memref<32x8xf32, #tpu.memory_space<vmem>>) attributes {dimension_semantics = [], scalar_prefetch = 0 : i64, scratch_operands = 4 : i64, tpu.core_type = #tpu.core_type<tc>} {
    %c0 = arith.constant 0 : index
    %c0_0 = arith.constant 0 : index
    %0 = vector.load %arg4[%c0, %c0_0] : memref<32x1xf32, #tpu.memory_space<vmem>>, vector<32x1xf32>
    %c0_1 = arith.constant 0 : index
    %c0_2 = arith.constant 0 : index
    %1 = vector.load %arg0[%c0_1, %c0_2] : memref<32x16xf32, #tpu.memory_space<vmem>>, vector<32x16xf32>
    %2 = arith.truncf %1 : vector<32x16xf32> to vector<32x16xbf16>
    %c0_3 = arith.constant 0 : index
    %c0_4 = arith.constant 0 : index
    %3 = vector.load %arg5[%c0_3, %c0_4] : memref<16x8xbf16, #tpu.memory_space<vmem>>, vector<16x8xbf16>
    %cst = arith.constant dense<0.000000e+00> : vector<32x8xf32>
    %4 = tpu.matmul %2, %3, %cst {dimension_numbers = #tpu.dot_dimension_numbers<[1], [0], [0], [1], [0, 0, 1, 1], [], []>} : vector<32x16xbf16>, vector<16x8xbf16>, vector<32x8xf32> -> vector<32x8xf32>
    %c0_5 = arith.constant 0 : index
    %c0_6 = arith.constant 0 : index
    %5 = vector.load %arg6[%c0_5, %c0_6] : memref<1x8xf32, #tpu.memory_space<vmem>>, vector<1x8xf32>
    %6 = vector.broadcast %5 : vector<1x8xf32> to vector<32x8xf32>
    %7 = arith.addf %4, %6 : vector<32x8xf32>
    %cst_7 = arith.constant 0.000000e+00 : f32
    %8 = vector.broadcast %cst_7 : f32 to vector<32x8xf32>
    %9 = arith.maximumf %7, %8 : vector<32x8xf32>
    %10 = vector.broadcast %0 : vector<32x1xf32> to vector<32x8xf32>
    %11 = arith.mulf %9, %10 : vector<32x8xf32>
    %c0_8 = arith.constant 0 : index
    %c0_9 = arith.constant 0 : index
    %12 = vector.load %arg14[%c0_8, %c0_9] : memref<32x8xf32, #tpu.memory_space<vmem>>, vector<32x8xf32>
    tpu.vector_store %arg14[%c0_8, %c0_9], %11 {strides = array<i32>} : memref<32x8xf32, #tpu.memory_space<vmem>>, vector<32x8xf32>,
    %c0_10 = arith.constant 0 : index
    %c0_11 = arith.constant 0 : index
    %13 = vector.load %arg1[%c0_10, %c0_11] : memref<32x16xf32, #tpu.memory_space<vmem>>, vector<32x16xf32>
    %14 = arith.truncf %13 : vector<32x16xf32> to vector<32x16xbf16>
    %c0_12 = arith.constant 0 : index
    %c0_13 = arith.constant 0 : index
    %15 = vector.load %arg5[%c0_12, %c0_13] : memref<16x8xbf16, #tpu.memory_space<vmem>>, vector<16x8xbf16>
    %cst_14 = arith.constant dense<0.000000e+00> : vector<32x8xf32>
    %16 = tpu.matmul %14, %15, %cst_14 {dimension_numbers = #tpu.dot_dimension_numbers<[1], [0], [0], [1], [0, 0, 1, 1], [], []>} : vector<32x16xbf16>, vector<16x8xbf16>, vector<32x8xf32> -> vector<32x8xf32>
    %c0_15 = arith.constant 0 : index
    %c0_16 = arith.constant 0 : index
    %17 = vector.load %arg6[%c0_15, %c0_16] : memref<1x8xf32, #tpu.memory_space<vmem>>, vector<1x8xf32>
    %18 = vector.broadcast %17 : vector<1x8xf32> to vector<32x8xf32>
    %19 = arith.addf %16, %18 : vector<32x8xf32>
    %cst_17 = arith.constant 0.000000e+00 : f32
    %20 = vector.broadcast %cst_17 : f32 to vector<32x8xf32>
    %21 = arith.maximumf %19, %20 : vector<32x8xf32>
    %22 = vector.broadcast %0 : vector<32x1xf32> to vector<32x8xf32>
    %23 = arith.mulf %21, %22 : vector<32x8xf32>
    %c0_18 = arith.constant 0 : index
    %c0_19 = arith.constant 0 : index
    %24 = vector.load %arg15[%c0_18, %c0_19] : memref<32x8xf32, #tpu.memory_space<vmem>>, vector<32x8xf32>
    tpu.vector_store %arg15[%c0_18, %c0_19], %23 {strides = array<i32>} : memref<32x8xf32, #tpu.memory_space<vmem>>, vector<32x8xf32>,
    %c0_20 = arith.constant 0 : index
    %c0_21 = arith.constant 0 : index
    %25 = vector.load %arg2[%c0_20, %c0_21] : memref<32x16xf32, #tpu.memory_space<vmem>>, vector<32x16xf32>
    %26 = arith.truncf %25 : vector<32x16xf32> to vector<32x16xbf16>
    %c0_22 = arith.constant 0 : index
    %c0_23 = arith.constant 0 : index
    %27 = vector.load %arg5[%c0_22, %c0_23] : memref<16x8xbf16, #tpu.memory_space<vmem>>, vector<16x8xbf16>
    %cst_24 = arith.constant dense<0.000000e+00> : vector<32x8xf32>
    %28 = tpu.matmul %26, %27, %cst_24 {dimension_numbers = #tpu.dot_dimension_numbers<[1], [0], [0], [1], [0, 0, 1, 1], [], []>} : vector<32x16xbf16>, vector<16x8xbf16>, vector<32x8xf32> -> vector<32x8xf32>
    %c0_25 = arith.constant 0 : index
    %c0_26 = arith.constant 0 : index
    %29 = vector.load %arg6[%c0_25, %c0_26] : memref<1x8xf32, #tpu.memory_space<vmem>>, vector<1x8xf32>
    %30 = vector.broadcast %29 : vector<1x8xf32> to vector<32x8xf32>
    %31 = arith.addf %28, %30 : vector<32x8xf32>
    %cst_27 = arith.constant 0.000000e+00 : f32
    %32 = vector.broadcast %cst_27 : f32 to vector<32x8xf32>
    %33 = arith.maximumf %31, %32 : vector<32x8xf32>
    %34 = vector.broadcast %0 : vector<32x1xf32> to vector<32x8xf32>
    %35 = arith.mulf %33, %34 : vector<32x8xf32>
    %c0_28 = arith.constant 0 : index
    %c0_29 = arith.constant 0 : index
    %36 = vector.load %arg16[%c0_28, %c0_29] : memref<32x8xf32, #tpu.memory_space<vmem>>, vector<32x8xf32>
    tpu.vector_store %arg16[%c0_28, %c0_29], %35 {strides = array<i32>} : memref<32x8xf32, #tpu.memory_space<vmem>>, vector<32x8xf32>,
    %c0_30 = arith.constant 0 : index
    %c0_31 = arith.constant 0 : index
    %37 = vector.load %arg3[%c0_30, %c0_31] : memref<32x16xf32, #tpu.memory_space<vmem>>, vector<32x16xf32>
    %38 = arith.truncf %37 : vector<32x16xf32> to vector<32x16xbf16>
    %c0_32 = arith.constant 0 : index
    %c0_33 = arith.constant 0 : index
    %39 = vector.load %arg5[%c0_32, %c0_33] : memref<16x8xbf16, #tpu.memory_space<vmem>>, vector<16x8xbf16>
    %cst_34 = arith.constant dense<0.000000e+00> : vector<32x8xf32>
    %40 = tpu.matmul %38, %39, %cst_34 {dimension_numbers = #tpu.dot_dimension_numbers<[1], [0], [0], [1], [0, 0, 1, 1], [], []>} : vector<32x16xbf16>, vector<16x8xbf16>, vector<32x8xf32> -> vector<32x8xf32>
    %c0_35 = arith.constant 0 : index
    %c0_36 = arith.constant 0 : index
    %41 = vector.load %arg6[%c0_35, %c0_36] : memref<1x8xf32, #tpu.memory_space<vmem>>, vector<1x8xf32>
    %42 = vector.broadcast %41 : vector<1x8xf32> to vector<32x8xf32>
    %43 = arith.addf %40, %42 : vector<32x8xf32>
    %cst_37 = arith.constant 0.000000e+00 : f32
    %44 = vector.broadcast %cst_37 : f32 to vector<32x8xf32>
    %45 = arith.maximumf %43, %44 : vector<32x8xf32>
    %46 = vector.broadcast %0 : vector<32x1xf32> to vector<32x8xf32>
    %47 = arith.mulf %45, %46 : vector<32x8xf32>
    %c0_38 = arith.constant 0 : index
    %c0_39 = arith.constant 0 : index
    %48 = vector.load %arg17[%c0_38, %c0_39] : memref<32x8xf32, #tpu.memory_space<vmem>>, vector<32x8xf32>
    tpu.vector_store %arg17[%c0_38, %c0_39], %47 {strides = array<i32>} : memref<32x8xf32, #tpu.memory_space<vmem>>, vector<32x8xf32>,
    %cst_40 = arith.constant 0.000000e+00 : f32
    %49 = vector.broadcast %cst_40 : f32 to vector<4x8xf32>
    %c0_41 = arith.constant 0 : index
    %c0_42 = arith.constant 0 : index
    %50 = vector.load %arg8[%c0_41, %c0_42] : memref<1x8xf32, #tpu.memory_space<vmem>>, vector<1x8xf32>
    %51 = vector.broadcast %50 : vector<1x8xf32> to vector<4x8xf32>
    %52 = arith.addf %49, %51 : vector<4x8xf32>
    %c0_43 = arith.constant 0 : index
    %c0_44 = arith.constant 0 : index
    %53 = vector.load %arg17[%c0_43, %c0_44] : memref<32x8xf32, #tpu.memory_space<vmem>>, vector<4x8xf32>
    %54 = arith.truncf %53 : vector<4x8xf32> to vector<4x8xbf16>
    %c0_45 = arith.constant 0 : index
    %c0_46 = arith.constant 0 : index
    %c0_47 = arith.constant 0 : index
    %55 = vector.load %arg7[%c0_45, %c0_46, %c0_47] : memref<9x8x8xbf16, #tpu.memory_space<vmem>>, vector<1x8x8xbf16>
    %56 = vector.shape_cast %55 : vector<1x8x8xbf16> to vector<8x8xbf16>
    %cst_48 = arith.constant dense<0.000000e+00> : vector<4x8xf32>
    %57 = tpu.matmul %54, %56, %cst_48 {dimension_numbers = #tpu.dot_dimension_numbers<[1], [0], [0], [1], [0, 0, 1, 1], [], []>} : vector<4x8xbf16>, vector<8x8xbf16>, vector<4x8xf32> -> vector<4x8xf32>
    %58 = arith.addf %52, %57 : vector<4x8xf32>
    %c2 = arith.constant 2 : index
    %c0_49 = arith.constant 0 : index
    %59 = vector.load %arg16[%c2, %c0_49] : memref<32x8xf32, #tpu.memory_space<vmem>>, vector<4x8xf32>
    %60 = arith.truncf %59 : vector<4x8xf32> to vector<4x8xbf16>
    %c1 = arith.constant 1 : index
    %c0_50 = arith.constant 0 : index
    %c0_51 = arith.constant 0 : index
    %61 = vector.load %arg7[%c1, %c0_50, %c0_51] : memref<9x8x8xbf16, #tpu.memory_space<vmem>>, vector<1x8x8xbf16>
    %62 = vector.shape_cast %61 : vector<1x8x8xbf16> to vector<8x8xbf16>
    %cst_52 = arith.constant dense<0.000000e+00> : vector<4x8xf32>
    %63 = tpu.matmul %60, %62, %cst_52 {dimension_numbers = #tpu.dot_dimension_numbers<[1], [0], [0], [1], [0, 0, 1, 1], [], []>} : vector<4x8xbf16>, vector<8x8xbf16>, vector<4x8xf32> -> vector<4x8xf32>
    %64 = arith.addf %58, %63 : vector<4x8xf32>
    %c2_53 = arith.constant 2 : index
    %c0_54 = arith.constant 0 : index
    %65 = vector.load %arg17[%c2_53, %c0_54] : memref<32x8xf32, #tpu.memory_space<vmem>>, vector<4x8xf32>
    %66 = arith.truncf %65 : vector<4x8xf32> to vector<4x8xbf16>
    %c2_55 = arith.constant 2 : index
    %c0_56 = arith.constant 0 : index
    %c0_57 = arith.constant 0 : index
    %67 = vector.load %arg7[%c2_55, %c0_56, %c0_57] : memref<9x8x8xbf16, #tpu.memory_space<vmem>>, vector<1x8x8xbf16>
    %68 = vector.shape_cast %67 : vector<1x8x8xbf16> to vector<8x8xbf16>
    %cst_58 = arith.constant dense<0.000000e+00> : vector<4x8xf32>
    %69 = tpu.matmul %66, %68, %cst_58 {dimension_numbers = #tpu.dot_dimension_numbers<[1], [0], [0], [1], [0, 0, 1, 1], [], []>} : vector<4x8xbf16>, vector<8x8xbf16>, vector<4x8xf32> -> vector<4x8xf32>
    %70 = arith.addf %64, %69 : vector<4x8xf32>
    %c8 = arith.constant 8 : index
    %c0_59 = arith.constant 0 : index
    %71 = vector.load %arg15[%c8, %c0_59] : memref<32x8xf32, #tpu.memory_space<vmem>>, vector<4x8xf32>
    %72 = arith.truncf %71 : vector<4x8xf32> to vector<4x8xbf16>
    %c3 = arith.constant 3 : index
    %c0_60 = arith.constant 0 : index
    %c0_61 = arith.constant 0 : index
    %73 = vector.load %arg7[%c3, %c0_60, %c0_61] : memref<9x8x8xbf16, #tpu.memory_space<vmem>>, vector<1x8x8xbf16>
    %74 = vector.shape_cast %73 : vector<1x8x8xbf16> to vector<8x8xbf16>
    %cst_62 = arith.constant dense<0.000000e+00> : vector<4x8xf32>
    %75 = tpu.matmul %72, %74, %cst_62 {dimension_numbers = #tpu.dot_dimension_numbers<[1], [0], [0], [1], [0, 0, 1, 1], [], []>} : vector<4x8xbf16>, vector<8x8xbf16>, vector<4x8xf32> -> vector<4x8xf32>
    %76 = arith.addf %70, %75 : vector<4x8xf32>
    %c10 = arith.constant 10 : index
    %c0_63 = arith.constant 0 : index
    %77 = vector.load %arg14[%c10, %c0_63] : memref<32x8xf32, #tpu.memory_space<vmem>>, vector<4x8xf32>
    %78 = arith.truncf %77 : vector<4x8xf32> to vector<4x8xbf16>
    %c4 = arith.constant 4 : index
    %c0_64 = arith.constant 0 : index
    %c0_65 = arith.constant 0 : index
    %79 = vector.load %arg7[%c4, %c0_64, %c0_65] : memref<9x8x8xbf16, #tpu.memory_space<vmem>>, vector<1x8x8xbf16>
    %80 = vector.shape_cast %79 : vector<1x8x8xbf16> to vector<8x8xbf16>
    %cst_66 = arith.constant dense<0.000000e+00> : vector<4x8xf32>
    %81 = tpu.matmul %78, %80, %cst_66 {dimension_numbers = #tpu.dot_dimension_numbers<[1], [0], [0], [1], [0, 0, 1, 1], [], []>} : vector<4x8xbf16>, vector<8x8xbf16>, vector<4x8xf32> -> vector<4x8xf32>
    %82 = arith.addf %76, %81 : vector<4x8xf32>
    %c10_67 = arith.constant 10 : index
    %c0_68 = arith.constant 0 : index
    %83 = vector.load %arg15[%c10_67, %c0_68] : memref<32x8xf32, #tpu.memory_space<vmem>>, vector<4x8xf32>
    %84 = arith.truncf %83 : vector<4x8xf32> to vector<4x8xbf16>
    %c5 = arith.constant 5 : index
    %c0_69 = arith.constant 0 : index
    %c0_70 = arith.constant 0 : index
    %85 = vector.load %arg7[%c5, %c0_69, %c0_70] : memref<9x8x8xbf16, #tpu.memory_space<vmem>>, vector<1x8x8xbf16>
    %86 = vector.shape_cast %85 : vector<1x8x8xbf16> to vector<8x8xbf16>
    %cst_71 = arith.constant dense<0.000000e+00> : vector<4x8xf32>
    %87 = tpu.matmul %84, %86, %cst_71 {dimension_numbers = #tpu.dot_dimension_numbers<[1], [0], [0], [1], [0, 0, 1, 1], [], []>} : vector<4x8xbf16>, vector<8x8xbf16>, vector<4x8xf32> -> vector<4x8xf32>
    %88 = arith.addf %82, %87 : vector<4x8xf32>
    %c8_72 = arith.constant 8 : index
    %c0_73 = arith.constant 0 : index
    %89 = vector.load %arg17[%c8_72, %c0_73] : memref<32x8xf32, #tpu.memory_space<vmem>>, vector<4x8xf32>
    %90 = arith.truncf %89 : vector<4x8xf32> to vector<4x8xbf16>
    %c6 = arith.constant 6 : index
    %c0_74 = arith.constant 0 : index
    %c0_75 = arith.constant 0 : index
    %91 = vector.load %arg7[%c6, %c0_74, %c0_75] : memref<9x8x8xbf16, #tpu.memory_space<vmem>>, vector<1x8x8xbf16>
    %92 = vector.shape_cast %91 : vector<1x8x8xbf16> to vector<8x8xbf16>
    %cst_76 = arith.constant dense<0.000000e+00> : vector<4x8xf32>
    %93 = tpu.matmul %90, %92, %cst_76 {dimension_numbers = #tpu.dot_dimension_numbers<[1], [0], [0], [1], [0, 0, 1, 1], [], []>} : vector<4x8xbf16>, vector<8x8xbf16>, vector<4x8xf32> -> vector<4x8xf32>
    %94 = arith.addf %88, %93 : vector<4x8xf32>
    %c10_77 = arith.constant 10 : index
    %c0_78 = arith.constant 0 : index
    %95 = vector.load %arg16[%c10_77, %c0_78] : memref<32x8xf32, #tpu.memory_space<vmem>>, vector<4x8xf32>
    %96 = arith.truncf %95 : vector<4x8xf32> to vector<4x8xbf16>
    %c7 = arith.constant 7 : index
    %c0_79 = arith.constant 0 : index
    %c0_80 = arith.constant 0 : index
    %97 = vector.load %arg7[%c7, %c0_79, %c0_80] : memref<9x8x8xbf16, #tpu.memory_space<vmem>>, vector<1x8x8xbf16>
    %98 = vector.shape_cast %97 : vector<1x8x8xbf16> to vector<8x8xbf16>
    %cst_81 = arith.constant dense<0.000000e+00> : vector<4x8xf32>
    %99 = tpu.matmul %96, %98, %cst_81 {dimension_numbers = #tpu.dot_dimension_numbers<[1], [0], [0], [1], [0, 0, 1, 1], [], []>} : vector<4x8xbf16>, vector<8x8xbf16>, vector<4x8xf32> -> vector<4x8xf32>
    %100 = arith.addf %94, %99 : vector<4x8xf32>
    %c10_82 = arith.constant 10 : index
    %c0_83 = arith.constant 0 : index
    %101 = vector.load %arg17[%c10_82, %c0_83] : memref<32x8xf32, #tpu.memory_space<vmem>>, vector<4x8xf32>
    %102 = arith.truncf %101 : vector<4x8xf32> to vector<4x8xbf16>
    %c8_84 = arith.constant 8 : index
    %c0_85 = arith.constant 0 : index
    %c0_86 = arith.constant 0 : index
    %103 = vector.load %arg7[%c8_84, %c0_85, %c0_86] : memref<9x8x8xbf16, #tpu.memory_space<vmem>>, vector<1x8x8xbf16>
    %104 = vector.shape_cast %103 : vector<1x8x8xbf16> to vector<8x8xbf16>
    %cst_87 = arith.constant dense<0.000000e+00> : vector<4x8xf32>
    %105 = tpu.matmul %102, %104, %cst_87 {dimension_numbers = #tpu.dot_dimension_numbers<[1], [0], [0], [1], [0, 0, 1, 1], [], []>} : vector<4x8xbf16>, vector<8x8xbf16>, vector<4x8xf32> -> vector<4x8xf32>
    %106 = arith.addf %100, %105 : vector<4x8xf32>
    %cst_88 = arith.constant 0.000000e+00 : f32
    %107 = vector.broadcast %cst_88 : f32 to vector<4x8xf32>
    %108 = arith.maximumf %106, %107 : vector<4x8xf32>
    %109 = arith.truncf %108 : vector<4x8xf32> to vector<4x8xbf16>
    %c0_89 = arith.constant 0 : index
    %c0_90 = arith.constant 0 : index
    %110 = vector.load %arg9[%c0_89, %c0_90] : memref<8x32xbf16, #tpu.memory_space<vmem>>, vector<8x32xbf16>
    %cst_91 = arith.constant dense<0.000000e+00> : vector<4x32xf32>
    %111 = tpu.matmul %109, %110, %cst_91 {dimension_numbers = #tpu.dot_dimension_numbers<[1], [0], [0], [1], [0, 0, 1, 1], [], []>} : vector<4x8xbf16>, vector<8x32xbf16>, vector<4x32xf32> -> vector<4x32xf32>
    %c0_92 = arith.constant 0 : index
    %c0_93 = arith.constant 0 : index
    %112 = vector.load %arg10[%c0_92, %c0_93] : memref<1x32xf32, #tpu.memory_space<vmem>>, vector<1x32xf32>
    %113 = vector.broadcast %112 : vector<1x32xf32> to vector<4x32xf32>
    %114 = arith.addf %111, %113 : vector<4x32xf32>
    %c10_94 = arith.constant 10 : index
    %c0_95 = arith.constant 0 : index
    %115 = vector.load %arg0[%c10_94, %c0_95] : memref<32x16xf32, #tpu.memory_space<vmem>>, vector<4x16xf32>
    %116 = arith.truncf %115 : vector<4x16xf32> to vector<4x16xbf16>
    %c0_96 = arith.constant 0 : index
    %c0_97 = arith.constant 0 : index
    %117 = vector.load %arg11[%c0_96, %c0_97] : memref<16x32xbf16, #tpu.memory_space<vmem>>, vector<16x32xbf16>
    %cst_98 = arith.constant dense<0.000000e+00> : vector<4x32xf32>
    %118 = tpu.matmul %116, %117, %cst_98 {dimension_numbers = #tpu.dot_dimension_numbers<[1], [0], [0], [1], [0, 0, 1, 1], [], []>} : vector<4x16xbf16>, vector<16x32xbf16>, vector<4x32xf32> -> vector<4x32xf32>
    %c0_99 = arith.constant 0 : index
    %c0_100 = arith.constant 0 : index
    %119 = vector.load %arg12[%c0_99, %c0_100] : memref<1x32xf32, #tpu.memory_space<vmem>>, vector<1x32xf32>
    %120 = vector.broadcast %119 : vector<1x32xf32> to vector<4x32xf32>
    %121 = arith.addf %118, %120 : vector<4x32xf32>
    %122 = arith.addf %114, %121 : vector<4x32xf32>
    %cst_101 = arith.constant 0.000000e+00 : f32
    %123 = vector.broadcast %cst_101 : f32 to vector<4x32xf32>
    %124 = arith.maximumf %122, %123 : vector<4x32xf32>
    %c0_102 = arith.constant 0 : index
    %c0_103 = arith.constant 0 : index
    %125 = vector.load %arg13[%c0_102, %c0_103] : memref<8x32xf32, #tpu.memory_space<vmem>>, vector<4x32xf32>
    tpu.vector_store %arg13[%c0_102, %c0_103], %124 {strides = array<i32>} : memref<8x32xf32, #tpu.memory_space<vmem>>, vector<4x32xf32>,
    %cst_104 = arith.constant 0.000000e+00 : f32
    %126 = vector.broadcast %cst_104 : f32 to vector<4x8xf32>
    %c0_105 = arith.constant 0 : index
    %c0_106 = arith.constant 0 : index
    %127 = vector.load %arg8[%c0_105, %c0_106] : memref<1x8xf32, #tpu.memory_space<vmem>>, vector<1x8xf32>
    %128 = vector.broadcast %127 : vector<1x8xf32> to vector<4x8xf32>
    %129 = arith.addf %126, %128 : vector<4x8xf32>
    %c8_107 = arith.constant 8 : index
    %c0_108 = arith.constant 0 : index
    %130 = vector.load %arg17[%c8_107, %c0_108] : memref<32x8xf32, #tpu.memory_space<vmem>>, vector<4x8xf32>
    %131 = arith.truncf %130 : vector<4x8xf32> to vector<4x8xbf16>
    %c0_109 = arith.constant 0 : index
    %c0_110 = arith.constant 0 : index
    %c0_111 = arith.constant 0 : index
    %132 = vector.load %arg7[%c0_109, %c0_110, %c0_111] : memref<9x8x8xbf16, #tpu.memory_space<vmem>>, vector<1x8x8xbf16>
    %133 = vector.shape_cast %132 : vector<1x8x8xbf16> to vector<8x8xbf16>
    %cst_112 = arith.constant dense<0.000000e+00> : vector<4x8xf32>
    %134 = tpu.matmul %131, %133, %cst_112 {dimension_numbers = #tpu.dot_dimension_numbers<[1], [0], [0], [1], [0, 0, 1, 1], [], []>} : vector<4x8xbf16>, vector<8x8xbf16>, vector<4x8xf32> -> vector<4x8xf32>
    %135 = arith.addf %129, %134 : vector<4x8xf32>
    %c10_113 = arith.constant 10 : index
    %c0_114 = arith.constant 0 : index
    %136 = vector.load %arg16[%c10_113, %c0_114] : memref<32x8xf32, #tpu.memory_space<vmem>>, vector<4x8xf32>
    %137 = arith.truncf %136 : vector<4x8xf32> to vector<4x8xbf16>
    %c1_115 = arith.constant 1 : index
    %c0_116 = arith.constant 0 : index
    %c0_117 = arith.constant 0 : index
    %138 = vector.load %arg7[%c1_115, %c0_116, %c0_117] : memref<9x8x8xbf16, #tpu.memory_space<vmem>>, vector<1x8x8xbf16>
    %139 = vector.shape_cast %138 : vector<1x8x8xbf16> to vector<8x8xbf16>
    %cst_118 = arith.constant dense<0.000000e+00> : vector<4x8xf32>
    %140 = tpu.matmul %137, %139, %cst_118 {dimension_numbers = #tpu.dot_dimension_numbers<[1], [0], [0], [1], [0, 0, 1, 1], [], []>} : vector<4x8xbf16>, vector<8x8xbf16>, vector<4x8xf32> -> vector<4x8xf32>
    %141 = arith.addf %135, %140 : vector<4x8xf32>
    %c10_119 = arith.constant 10 : index
    %c0_120 = arith.constant 0 : index
    %142 = vector.load %arg17[%c10_119, %c0_120] : memref<32x8xf32, #tpu.memory_space<vmem>>, vector<4x8xf32>
    %143 = arith.truncf %142 : vector<4x8xf32> to vector<4x8xbf16>
    %c2_121 = arith.constant 2 : index
    %c0_122 = arith.constant 0 : index
    %c0_123 = arith.constant 0 : index
    %144 = vector.load %arg7[%c2_121, %c0_122, %c0_123] : memref<9x8x8xbf16, #tpu.memory_space<vmem>>, vector<1x8x8xbf16>
    %145 = vector.shape_cast %144 : vector<1x8x8xbf16> to vector<8x8xbf16>
    %cst_124 = arith.constant dense<0.000000e+00> : vector<4x8xf32>
    %146 = tpu.matmul %143, %145, %cst_124 {dimension_numbers = #tpu.dot_dimension_numbers<[1], [0], [0], [1], [0, 0, 1, 1], [], []>} : vector<4x8xbf16>, vector<8x8xbf16>, vector<4x8xf32> -> vector<4x8xf32>
    %147 = arith.addf %141, %146 : vector<4x8xf32>
    %c16 = arith.constant 16 : index
    %c0_125 = arith.constant 0 : index
    %148 = vector.load %arg15[%c16, %c0_125] : memref<32x8xf32, #tpu.memory_space<vmem>>, vector<4x8xf32>
    %149 = arith.truncf %148 : vector<4x8xf32> to vector<4x8xbf16>
    %c3_126 = arith.constant 3 : index
    %c0_127 = arith.constant 0 : index
    %c0_128 = arith.constant 0 : index
    %150 = vector.load %arg7[%c3_126, %c0_127, %c0_128] : memref<9x8x8xbf16, #tpu.memory_space<vmem>>, vector<1x8x8xbf16>
    %151 = vector.shape_cast %150 : vector<1x8x8xbf16> to vector<8x8xbf16>
    %cst_129 = arith.constant dense<0.000000e+00> : vector<4x8xf32>
    %152 = tpu.matmul %149, %151, %cst_129 {dimension_numbers = #tpu.dot_dimension_numbers<[1], [0], [0], [1], [0, 0, 1, 1], [], []>} : vector<4x8xbf16>, vector<8x8xbf16>, vector<4x8xf32> -> vector<4x8xf32>
    %153 = arith.addf %147, %152 : vector<4x8xf32>
    %c18 = arith.constant 18 : index
    %c0_130 = arith.constant 0 : index
    %154 = vector.load %arg14[%c18, %c0_130] : memref<32x8xf32, #tpu.memory_space<vmem>>, vector<4x8xf32>
    %155 = arith.truncf %154 : vector<4x8xf32> to vector<4x8xbf16>
    %c4_131 = arith.constant 4 : index
    %c0_132 = arith.constant 0 : index
    %c0_133 = arith.constant 0 : index
    %156 = vector.load %arg7[%c4_131, %c0_132, %c0_133] : memref<9x8x8xbf16, #tpu.memory_space<vmem>>, vector<1x8x8xbf16>
    %157 = vector.shape_cast %156 : vector<1x8x8xbf16> to vector<8x8xbf16>
    %cst_134 = arith.constant dense<0.000000e+00> : vector<4x8xf32>
    %158 = tpu.matmul %155, %157, %cst_134 {dimension_numbers = #tpu.dot_dimension_numbers<[1], [0], [0], [1], [0, 0, 1, 1], [], []>} : vector<4x8xbf16>, vector<8x8xbf16>, vector<4x8xf32> -> vector<4x8xf32>
    %159 = arith.addf %153, %158 : vector<4x8xf32>
    %c18_135 = arith.constant 18 : index
    %c0_136 = arith.constant 0 : index
    %160 = vector.load %arg15[%c18_135, %c0_136] : memref<32x8xf32, #tpu.memory_space<vmem>>, vector<4x8xf32>
    %161 = arith.truncf %160 : vector<4x8xf32> to vector<4x8xbf16>
    %c5_137 = arith.constant 5 : index
    %c0_138 = arith.constant 0 : index
    %c0_139 = arith.constant 0 : index
    %162 = vector.load %arg7[%c5_137, %c0_138, %c0_139] : memref<9x8x8xbf16, #tpu.memory_space<vmem>>, vector<1x8x8xbf16>
    %163 = vector.shape_cast %162 : vector<1x8x8xbf16> to vector<8x8xbf16>
    %cst_140 = arith.constant dense<0.000000e+00> : vector<4x8xf32>
    %164 = tpu.matmul %161, %163, %cst_140 {dimension_numbers = #tpu.dot_dimension_numbers<[1], [0], [0], [1], [0, 0, 1, 1], [], []>} : vector<4x8xbf16>, vector<8x8xbf16>, vector<4x8xf32> -> vector<4x8xf32>
    %165 = arith.addf %159, %164 : vector<4x8xf32>
    %c16_141 = arith.constant 16 : index
    %c0_142 = arith.constant 0 : index
    %166 = vector.load %arg17[%c16_141, %c0_142] : memref<32x8xf32, #tpu.memory_space<vmem>>, vector<4x8xf32>
    %167 = arith.truncf %166 : vector<4x8xf32> to vector<4x8xbf16>
    %c6_143 = arith.constant 6 : index
    %c0_144 = arith.constant 0 : index
    %c0_145 = arith.constant 0 : index
    %168 = vector.load %arg7[%c6_143, %c0_144, %c0_145] : memref<9x8x8xbf16, #tpu.memory_space<vmem>>, vector<1x8x8xbf16>
    %169 = vector.shape_cast %168 : vector<1x8x8xbf16> to vector<8x8xbf16>
    %cst_146 = arith.constant dense<0.000000e+00> : vector<4x8xf32>
    %170 = tpu.matmul %167, %169, %cst_146 {dimension_numbers = #tpu.dot_dimension_numbers<[1], [0], [0], [1], [0, 0, 1, 1], [], []>} : vector<4x8xbf16>, vector<8x8xbf16>, vector<4x8xf32> -> vector<4x8xf32>
    %171 = arith.addf %165, %170 : vector<4x8xf32>
    %c18_147 = arith.constant 18 : index
    %c0_148 = arith.constant 0 : index
    %172 = vector.load %arg16[%c18_147, %c0_148] : memref<32x8xf32, #tpu.memory_space<vmem>>, vector<4x8xf32>
    %173 = arith.truncf %172 : vector<4x8xf32> to vector<4x8xbf16>
    %c7_149 = arith.constant 7 : index
    %c0_150 = arith.constant 0 : index
    %c0_151 = arith.constant 0 : index
    %174 = vector.load %arg7[%c7_149, %c0_150, %c0_151] : memref<9x8x8xbf16, #tpu.memory_space<vmem>>, vector<1x8x8xbf16>
    %175 = vector.shape_cast %174 : vector<1x8x8xbf16> to vector<8x8xbf16>
    %cst_152 = arith.constant dense<0.000000e+00> : vector<4x8xf32>
    %176 = tpu.matmul %173, %175, %cst_152 {dimension_numbers = #tpu.dot_dimension_numbers<[1], [0], [0], [1], [0, 0, 1, 1], [], []>} : vector<4x8xbf16>, vector<8x8xbf16>, vector<4x8xf32> -> vector<4x8xf32>
    %177 = arith.addf %171, %176 : vector<4x8xf32>
    %c18_153 = arith.constant 18 : index
    %c0_154 = arith.constant 0 : index
    %178 = vector.load %arg17[%c18_153, %c0_154] : memref<32x8xf32, #tpu.memory_space<vmem>>, vector<4x8xf32>
    %179 = arith.truncf %178 : vector<4x8xf32> to vector<4x8xbf16>
    %c8_155 = arith.constant 8 : index
    %c0_156 = arith.constant 0 : index
    %c0_157 = arith.constant 0 : index
    %180 = vector.load %arg7[%c8_155, %c0_156, %c0_157] : memref<9x8x8xbf16, #tpu.memory_space<vmem>>, vector<1x8x8xbf16>
    %181 = vector.shape_cast %180 : vector<1x8x8xbf16> to vector<8x8xbf16>
    %cst_158 = arith.constant dense<0.000000e+00> : vector<4x8xf32>
    %182 = tpu.matmul %179, %181, %cst_158 {dimension_numbers = #tpu.dot_dimension_numbers<[1], [0], [0], [1], [0, 0, 1, 1], [], []>} : vector<4x8xbf16>, vector<8x8xbf16>, vector<4x8xf32> -> vector<4x8xf32>
    %183 = arith.addf %177, %182 : vector<4x8xf32>
    %cst_159 = arith.constant 0.000000e+00 : f32
    %184 = vector.broadcast %cst_159 : f32 to vector<4x8xf32>
    %185 = arith.maximumf %183, %184 : vector<4x8xf32>
    %186 = arith.truncf %185 : vector<4x8xf32> to vector<4x8xbf16>
    %c0_160 = arith.constant 0 : index
    %c0_161 = arith.constant 0 : index
    %187 = vector.load %arg9[%c0_160, %c0_161] : memref<8x32xbf16, #tpu.memory_space<vmem>>, vector<8x32xbf16>
    %cst_162 = arith.constant dense<0.000000e+00> : vector<4x32xf32>
    %188 = tpu.matmul %186, %187, %cst_162 {dimension_numbers = #tpu.dot_dimension_numbers<[1], [0], [0], [1], [0, 0, 1, 1], [], []>} : vector<4x8xbf16>, vector<8x32xbf16>, vector<4x32xf32> -> vector<4x32xf32>
    %c0_163 = arith.constant 0 : index
    %c0_164 = arith.constant 0 : index
    %189 = vector.load %arg10[%c0_163, %c0_164] : memref<1x32xf32, #tpu.memory_space<vmem>>, vector<1x32xf32>
    %190 = vector.broadcast %189 : vector<1x32xf32> to vector<4x32xf32>
    %191 = arith.addf %188, %190 : vector<4x32xf32>
    %c18_165 = arith.constant 18 : index
    %c0_166 = arith.constant 0 : index
    %192 = vector.load %arg0[%c18_165, %c0_166] : memref<32x16xf32, #tpu.memory_space<vmem>>, vector<4x16xf32>
    %193 = arith.truncf %192 : vector<4x16xf32> to vector<4x16xbf16>
    %c0_167 = arith.constant 0 : index
    %c0_168 = arith.constant 0 : index
    %194 = vector.load %arg11[%c0_167, %c0_168] : memref<16x32xbf16, #tpu.memory_space<vmem>>, vector<16x32xbf16>
    %cst_169 = arith.constant dense<0.000000e+00> : vector<4x32xf32>
    %195 = tpu.matmul %193, %194, %cst_169 {dimension_numbers = #tpu.dot_dimension_numbers<[1], [0], [0], [1], [0, 0, 1, 1], [], []>} : vector<4x16xbf16>, vector<16x32xbf16>, vector<4x32xf32> -> vector<4x32xf32>
    %c0_170 = arith.constant 0 : index
    %c0_171 = arith.constant 0 : index
    %196 = vector.load %arg12[%c0_170, %c0_171] : memref<1x32xf32, #tpu.memory_space<vmem>>, vector<1x32xf32>
    %197 = vector.broadcast %196 : vector<1x32xf32> to vector<4x32xf32>
    %198 = arith.addf %195, %197 : vector<4x32xf32>
    %199 = arith.addf %191, %198 : vector<4x32xf32>
    %cst_172 = arith.constant 0.000000e+00 : f32
    %200 = vector.broadcast %cst_172 : f32 to vector<4x32xf32>
    %201 = arith.maximumf %199, %200 : vector<4x32xf32>
    %c4_173 = arith.constant 4 : index
    %c0_174 = arith.constant 0 : index
    %202 = vector.load %arg13[%c4_173, %c0_174] : memref<8x32xf32, #tpu.memory_space<vmem>>, vector<4x32xf32>
    tpu.vector_store %arg13[%c4_173, %c0_174], %201 {strides = array<i32>} : memref<8x32xf32, #tpu.memory_space<vmem>>, vector<4x32xf32>,
    return
  }
}

module attributes {stable_mosaic.version = 11 : i64} {
  func.func @_block_kernel(%arg0: memref<18x32xf32, #tpu.memory_space<vmem>>, %arg1: memref<18x32xf32, #tpu.memory_space<vmem>>, %arg2: memref<18x32xf32, #tpu.memory_space<vmem>>, %arg3: memref<18x32xf32, #tpu.memory_space<vmem>>, %arg4: memref<18x1xf32, #tpu.memory_space<vmem>>, %arg5: memref<32x16xbf16, #tpu.memory_space<vmem>>, %arg6: memref<1x16xf32, #tpu.memory_space<vmem>>, %arg7: memref<9x16x16xbf16, #tpu.memory_space<vmem>>, %arg8: memref<1x16xf32, #tpu.memory_space<vmem>>, %arg9: memref<16x64xbf16, #tpu.memory_space<vmem>>, %arg10: memref<1x64xf32, #tpu.memory_space<vmem>>, %arg11: memref<32x64xbf16, #tpu.memory_space<vmem>>, %arg12: memref<1x64xf32, #tpu.memory_space<vmem>>, %arg13: memref<2x64xf32, #tpu.memory_space<vmem>>, %arg14: memref<18x16xf32, #tpu.memory_space<vmem>>, %arg15: memref<18x16xf32, #tpu.memory_space<vmem>>, %arg16: memref<18x16xf32, #tpu.memory_space<vmem>>, %arg17: memref<18x16xf32, #tpu.memory_space<vmem>>) attributes {dimension_semantics = [], scalar_prefetch = 0 : i64, scratch_operands = 4 : i64, tpu.core_type = #tpu.core_type<tc>} {
    %c0 = arith.constant 0 : index
    %c0_0 = arith.constant 0 : index
    %0 = vector.load %arg4[%c0, %c0_0] : memref<18x1xf32, #tpu.memory_space<vmem>>, vector<18x1xf32>
    %c0_1 = arith.constant 0 : index
    %c0_2 = arith.constant 0 : index
    %1 = vector.load %arg0[%c0_1, %c0_2] : memref<18x32xf32, #tpu.memory_space<vmem>>, vector<18x32xf32>
    %2 = arith.truncf %1 : vector<18x32xf32> to vector<18x32xbf16>
    %c0_3 = arith.constant 0 : index
    %c0_4 = arith.constant 0 : index
    %3 = vector.load %arg5[%c0_3, %c0_4] : memref<32x16xbf16, #tpu.memory_space<vmem>>, vector<32x16xbf16>
    %cst = arith.constant dense<0.000000e+00> : vector<18x16xf32>
    %4 = tpu.matmul %2, %3, %cst {dimension_numbers = #tpu.dot_dimension_numbers<[1], [0], [0], [1], [0, 0, 1, 1], [], []>} : vector<18x32xbf16>, vector<32x16xbf16>, vector<18x16xf32> -> vector<18x16xf32>
    %c0_5 = arith.constant 0 : index
    %c0_6 = arith.constant 0 : index
    %5 = vector.load %arg6[%c0_5, %c0_6] : memref<1x16xf32, #tpu.memory_space<vmem>>, vector<1x16xf32>
    %6 = vector.broadcast %5 : vector<1x16xf32> to vector<18x16xf32>
    %7 = arith.addf %4, %6 : vector<18x16xf32>
    %cst_7 = arith.constant 0.000000e+00 : f32
    %8 = vector.broadcast %cst_7 : f32 to vector<18x16xf32>
    %9 = arith.maximumf %7, %8 : vector<18x16xf32>
    %10 = vector.broadcast %0 : vector<18x1xf32> to vector<18x16xf32>
    %11 = arith.mulf %9, %10 : vector<18x16xf32>
    %c0_8 = arith.constant 0 : index
    %c0_9 = arith.constant 0 : index
    %12 = vector.load %arg14[%c0_8, %c0_9] : memref<18x16xf32, #tpu.memory_space<vmem>>, vector<18x16xf32>
    tpu.vector_store %arg14[%c0_8, %c0_9], %11 {strides = array<i32>} : memref<18x16xf32, #tpu.memory_space<vmem>>, vector<18x16xf32>,
    %c0_10 = arith.constant 0 : index
    %c0_11 = arith.constant 0 : index
    %13 = vector.load %arg1[%c0_10, %c0_11] : memref<18x32xf32, #tpu.memory_space<vmem>>, vector<18x32xf32>
    %14 = arith.truncf %13 : vector<18x32xf32> to vector<18x32xbf16>
    %c0_12 = arith.constant 0 : index
    %c0_13 = arith.constant 0 : index
    %15 = vector.load %arg5[%c0_12, %c0_13] : memref<32x16xbf16, #tpu.memory_space<vmem>>, vector<32x16xbf16>
    %cst_14 = arith.constant dense<0.000000e+00> : vector<18x16xf32>
    %16 = tpu.matmul %14, %15, %cst_14 {dimension_numbers = #tpu.dot_dimension_numbers<[1], [0], [0], [1], [0, 0, 1, 1], [], []>} : vector<18x32xbf16>, vector<32x16xbf16>, vector<18x16xf32> -> vector<18x16xf32>
    %c0_15 = arith.constant 0 : index
    %c0_16 = arith.constant 0 : index
    %17 = vector.load %arg6[%c0_15, %c0_16] : memref<1x16xf32, #tpu.memory_space<vmem>>, vector<1x16xf32>
    %18 = vector.broadcast %17 : vector<1x16xf32> to vector<18x16xf32>
    %19 = arith.addf %16, %18 : vector<18x16xf32>
    %cst_17 = arith.constant 0.000000e+00 : f32
    %20 = vector.broadcast %cst_17 : f32 to vector<18x16xf32>
    %21 = arith.maximumf %19, %20 : vector<18x16xf32>
    %22 = vector.broadcast %0 : vector<18x1xf32> to vector<18x16xf32>
    %23 = arith.mulf %21, %22 : vector<18x16xf32>
    %c0_18 = arith.constant 0 : index
    %c0_19 = arith.constant 0 : index
    %24 = vector.load %arg15[%c0_18, %c0_19] : memref<18x16xf32, #tpu.memory_space<vmem>>, vector<18x16xf32>
    tpu.vector_store %arg15[%c0_18, %c0_19], %23 {strides = array<i32>} : memref<18x16xf32, #tpu.memory_space<vmem>>, vector<18x16xf32>,
    %c0_20 = arith.constant 0 : index
    %c0_21 = arith.constant 0 : index
    %25 = vector.load %arg2[%c0_20, %c0_21] : memref<18x32xf32, #tpu.memory_space<vmem>>, vector<18x32xf32>
    %26 = arith.truncf %25 : vector<18x32xf32> to vector<18x32xbf16>
    %c0_22 = arith.constant 0 : index
    %c0_23 = arith.constant 0 : index
    %27 = vector.load %arg5[%c0_22, %c0_23] : memref<32x16xbf16, #tpu.memory_space<vmem>>, vector<32x16xbf16>
    %cst_24 = arith.constant dense<0.000000e+00> : vector<18x16xf32>
    %28 = tpu.matmul %26, %27, %cst_24 {dimension_numbers = #tpu.dot_dimension_numbers<[1], [0], [0], [1], [0, 0, 1, 1], [], []>} : vector<18x32xbf16>, vector<32x16xbf16>, vector<18x16xf32> -> vector<18x16xf32>
    %c0_25 = arith.constant 0 : index
    %c0_26 = arith.constant 0 : index
    %29 = vector.load %arg6[%c0_25, %c0_26] : memref<1x16xf32, #tpu.memory_space<vmem>>, vector<1x16xf32>
    %30 = vector.broadcast %29 : vector<1x16xf32> to vector<18x16xf32>
    %31 = arith.addf %28, %30 : vector<18x16xf32>
    %cst_27 = arith.constant 0.000000e+00 : f32
    %32 = vector.broadcast %cst_27 : f32 to vector<18x16xf32>
    %33 = arith.maximumf %31, %32 : vector<18x16xf32>
    %34 = vector.broadcast %0 : vector<18x1xf32> to vector<18x16xf32>
    %35 = arith.mulf %33, %34 : vector<18x16xf32>
    %c0_28 = arith.constant 0 : index
    %c0_29 = arith.constant 0 : index
    %36 = vector.load %arg16[%c0_28, %c0_29] : memref<18x16xf32, #tpu.memory_space<vmem>>, vector<18x16xf32>
    tpu.vector_store %arg16[%c0_28, %c0_29], %35 {strides = array<i32>} : memref<18x16xf32, #tpu.memory_space<vmem>>, vector<18x16xf32>,
    %c0_30 = arith.constant 0 : index
    %c0_31 = arith.constant 0 : index
    %37 = vector.load %arg3[%c0_30, %c0_31] : memref<18x32xf32, #tpu.memory_space<vmem>>, vector<18x32xf32>
    %38 = arith.truncf %37 : vector<18x32xf32> to vector<18x32xbf16>
    %c0_32 = arith.constant 0 : index
    %c0_33 = arith.constant 0 : index
    %39 = vector.load %arg5[%c0_32, %c0_33] : memref<32x16xbf16, #tpu.memory_space<vmem>>, vector<32x16xbf16>
    %cst_34 = arith.constant dense<0.000000e+00> : vector<18x16xf32>
    %40 = tpu.matmul %38, %39, %cst_34 {dimension_numbers = #tpu.dot_dimension_numbers<[1], [0], [0], [1], [0, 0, 1, 1], [], []>} : vector<18x32xbf16>, vector<32x16xbf16>, vector<18x16xf32> -> vector<18x16xf32>
    %c0_35 = arith.constant 0 : index
    %c0_36 = arith.constant 0 : index
    %41 = vector.load %arg6[%c0_35, %c0_36] : memref<1x16xf32, #tpu.memory_space<vmem>>, vector<1x16xf32>
    %42 = vector.broadcast %41 : vector<1x16xf32> to vector<18x16xf32>
    %43 = arith.addf %40, %42 : vector<18x16xf32>
    %cst_37 = arith.constant 0.000000e+00 : f32
    %44 = vector.broadcast %cst_37 : f32 to vector<18x16xf32>
    %45 = arith.maximumf %43, %44 : vector<18x16xf32>
    %46 = vector.broadcast %0 : vector<18x1xf32> to vector<18x16xf32>
    %47 = arith.mulf %45, %46 : vector<18x16xf32>
    %c0_38 = arith.constant 0 : index
    %c0_39 = arith.constant 0 : index
    %48 = vector.load %arg17[%c0_38, %c0_39] : memref<18x16xf32, #tpu.memory_space<vmem>>, vector<18x16xf32>
    tpu.vector_store %arg17[%c0_38, %c0_39], %47 {strides = array<i32>} : memref<18x16xf32, #tpu.memory_space<vmem>>, vector<18x16xf32>,
    %cst_40 = arith.constant 0.000000e+00 : f32
    %49 = vector.broadcast %cst_40 : f32 to vector<2x16xf32>
    %c0_41 = arith.constant 0 : index
    %c0_42 = arith.constant 0 : index
    %50 = vector.load %arg8[%c0_41, %c0_42] : memref<1x16xf32, #tpu.memory_space<vmem>>, vector<1x16xf32>
    %51 = vector.broadcast %50 : vector<1x16xf32> to vector<2x16xf32>
    %52 = arith.addf %49, %51 : vector<2x16xf32>
    %c0_43 = arith.constant 0 : index
    %c0_44 = arith.constant 0 : index
    %53 = vector.load %arg17[%c0_43, %c0_44] : memref<18x16xf32, #tpu.memory_space<vmem>>, vector<2x16xf32>
    %54 = arith.truncf %53 : vector<2x16xf32> to vector<2x16xbf16>
    %c0_45 = arith.constant 0 : index
    %c0_46 = arith.constant 0 : index
    %c0_47 = arith.constant 0 : index
    %55 = vector.load %arg7[%c0_45, %c0_46, %c0_47] : memref<9x16x16xbf16, #tpu.memory_space<vmem>>, vector<1x16x16xbf16>
    %56 = vector.shape_cast %55 : vector<1x16x16xbf16> to vector<16x16xbf16>
    %cst_48 = arith.constant dense<0.000000e+00> : vector<2x16xf32>
    %57 = tpu.matmul %54, %56, %cst_48 {dimension_numbers = #tpu.dot_dimension_numbers<[1], [0], [0], [1], [0, 0, 1, 1], [], []>} : vector<2x16xbf16>, vector<16x16xbf16>, vector<2x16xf32> -> vector<2x16xf32>
    %58 = arith.addf %52, %57 : vector<2x16xf32>
    %c2 = arith.constant 2 : index
    %c0_49 = arith.constant 0 : index
    %59 = vector.load %arg16[%c2, %c0_49] : memref<18x16xf32, #tpu.memory_space<vmem>>, vector<2x16xf32>
    %60 = arith.truncf %59 : vector<2x16xf32> to vector<2x16xbf16>
    %c1 = arith.constant 1 : index
    %c0_50 = arith.constant 0 : index
    %c0_51 = arith.constant 0 : index
    %61 = vector.load %arg7[%c1, %c0_50, %c0_51] : memref<9x16x16xbf16, #tpu.memory_space<vmem>>, vector<1x16x16xbf16>
    %62 = vector.shape_cast %61 : vector<1x16x16xbf16> to vector<16x16xbf16>
    %cst_52 = arith.constant dense<0.000000e+00> : vector<2x16xf32>
    %63 = tpu.matmul %60, %62, %cst_52 {dimension_numbers = #tpu.dot_dimension_numbers<[1], [0], [0], [1], [0, 0, 1, 1], [], []>} : vector<2x16xbf16>, vector<16x16xbf16>, vector<2x16xf32> -> vector<2x16xf32>
    %64 = arith.addf %58, %63 : vector<2x16xf32>
    %c2_53 = arith.constant 2 : index
    %c0_54 = arith.constant 0 : index
    %65 = vector.load %arg17[%c2_53, %c0_54] : memref<18x16xf32, #tpu.memory_space<vmem>>, vector<2x16xf32>
    %66 = arith.truncf %65 : vector<2x16xf32> to vector<2x16xbf16>
    %c2_55 = arith.constant 2 : index
    %c0_56 = arith.constant 0 : index
    %c0_57 = arith.constant 0 : index
    %67 = vector.load %arg7[%c2_55, %c0_56, %c0_57] : memref<9x16x16xbf16, #tpu.memory_space<vmem>>, vector<1x16x16xbf16>
    %68 = vector.shape_cast %67 : vector<1x16x16xbf16> to vector<16x16xbf16>
    %cst_58 = arith.constant dense<0.000000e+00> : vector<2x16xf32>
    %69 = tpu.matmul %66, %68, %cst_58 {dimension_numbers = #tpu.dot_dimension_numbers<[1], [0], [0], [1], [0, 0, 1, 1], [], []>} : vector<2x16xbf16>, vector<16x16xbf16>, vector<2x16xf32> -> vector<2x16xf32>
    %70 = arith.addf %64, %69 : vector<2x16xf32>
    %c6 = arith.constant 6 : index
    %c0_59 = arith.constant 0 : index
    %71 = vector.load %arg15[%c6, %c0_59] : memref<18x16xf32, #tpu.memory_space<vmem>>, vector<2x16xf32>
    %72 = arith.truncf %71 : vector<2x16xf32> to vector<2x16xbf16>
    %c3 = arith.constant 3 : index
    %c0_60 = arith.constant 0 : index
    %c0_61 = arith.constant 0 : index
    %73 = vector.load %arg7[%c3, %c0_60, %c0_61] : memref<9x16x16xbf16, #tpu.memory_space<vmem>>, vector<1x16x16xbf16>
    %74 = vector.shape_cast %73 : vector<1x16x16xbf16> to vector<16x16xbf16>
    %cst_62 = arith.constant dense<0.000000e+00> : vector<2x16xf32>
    %75 = tpu.matmul %72, %74, %cst_62 {dimension_numbers = #tpu.dot_dimension_numbers<[1], [0], [0], [1], [0, 0, 1, 1], [], []>} : vector<2x16xbf16>, vector<16x16xbf16>, vector<2x16xf32> -> vector<2x16xf32>
    %76 = arith.addf %70, %75 : vector<2x16xf32>
    %c8 = arith.constant 8 : index
    %c0_63 = arith.constant 0 : index
    %77 = vector.load %arg14[%c8, %c0_63] : memref<18x16xf32, #tpu.memory_space<vmem>>, vector<2x16xf32>
    %78 = arith.truncf %77 : vector<2x16xf32> to vector<2x16xbf16>
    %c4 = arith.constant 4 : index
    %c0_64 = arith.constant 0 : index
    %c0_65 = arith.constant 0 : index
    %79 = vector.load %arg7[%c4, %c0_64, %c0_65] : memref<9x16x16xbf16, #tpu.memory_space<vmem>>, vector<1x16x16xbf16>
    %80 = vector.shape_cast %79 : vector<1x16x16xbf16> to vector<16x16xbf16>
    %cst_66 = arith.constant dense<0.000000e+00> : vector<2x16xf32>
    %81 = tpu.matmul %78, %80, %cst_66 {dimension_numbers = #tpu.dot_dimension_numbers<[1], [0], [0], [1], [0, 0, 1, 1], [], []>} : vector<2x16xbf16>, vector<16x16xbf16>, vector<2x16xf32> -> vector<2x16xf32>
    %82 = arith.addf %76, %81 : vector<2x16xf32>
    %c8_67 = arith.constant 8 : index
    %c0_68 = arith.constant 0 : index
    %83 = vector.load %arg15[%c8_67, %c0_68] : memref<18x16xf32, #tpu.memory_space<vmem>>, vector<2x16xf32>
    %84 = arith.truncf %83 : vector<2x16xf32> to vector<2x16xbf16>
    %c5 = arith.constant 5 : index
    %c0_69 = arith.constant 0 : index
    %c0_70 = arith.constant 0 : index
    %85 = vector.load %arg7[%c5, %c0_69, %c0_70] : memref<9x16x16xbf16, #tpu.memory_space<vmem>>, vector<1x16x16xbf16>
    %86 = vector.shape_cast %85 : vector<1x16x16xbf16> to vector<16x16xbf16>
    %cst_71 = arith.constant dense<0.000000e+00> : vector<2x16xf32>
    %87 = tpu.matmul %84, %86, %cst_71 {dimension_numbers = #tpu.dot_dimension_numbers<[1], [0], [0], [1], [0, 0, 1, 1], [], []>} : vector<2x16xbf16>, vector<16x16xbf16>, vector<2x16xf32> -> vector<2x16xf32>
    %88 = arith.addf %82, %87 : vector<2x16xf32>
    %c6_72 = arith.constant 6 : index
    %c0_73 = arith.constant 0 : index
    %89 = vector.load %arg17[%c6_72, %c0_73] : memref<18x16xf32, #tpu.memory_space<vmem>>, vector<2x16xf32>
    %90 = arith.truncf %89 : vector<2x16xf32> to vector<2x16xbf16>
    %c6_74 = arith.constant 6 : index
    %c0_75 = arith.constant 0 : index
    %c0_76 = arith.constant 0 : index
    %91 = vector.load %arg7[%c6_74, %c0_75, %c0_76] : memref<9x16x16xbf16, #tpu.memory_space<vmem>>, vector<1x16x16xbf16>
    %92 = vector.shape_cast %91 : vector<1x16x16xbf16> to vector<16x16xbf16>
    %cst_77 = arith.constant dense<0.000000e+00> : vector<2x16xf32>
    %93 = tpu.matmul %90, %92, %cst_77 {dimension_numbers = #tpu.dot_dimension_numbers<[1], [0], [0], [1], [0, 0, 1, 1], [], []>} : vector<2x16xbf16>, vector<16x16xbf16>, vector<2x16xf32> -> vector<2x16xf32>
    %94 = arith.addf %88, %93 : vector<2x16xf32>
    %c8_78 = arith.constant 8 : index
    %c0_79 = arith.constant 0 : index
    %95 = vector.load %arg16[%c8_78, %c0_79] : memref<18x16xf32, #tpu.memory_space<vmem>>, vector<2x16xf32>
    %96 = arith.truncf %95 : vector<2x16xf32> to vector<2x16xbf16>
    %c7 = arith.constant 7 : index
    %c0_80 = arith.constant 0 : index
    %c0_81 = arith.constant 0 : index
    %97 = vector.load %arg7[%c7, %c0_80, %c0_81] : memref<9x16x16xbf16, #tpu.memory_space<vmem>>, vector<1x16x16xbf16>
    %98 = vector.shape_cast %97 : vector<1x16x16xbf16> to vector<16x16xbf16>
    %cst_82 = arith.constant dense<0.000000e+00> : vector<2x16xf32>
    %99 = tpu.matmul %96, %98, %cst_82 {dimension_numbers = #tpu.dot_dimension_numbers<[1], [0], [0], [1], [0, 0, 1, 1], [], []>} : vector<2x16xbf16>, vector<16x16xbf16>, vector<2x16xf32> -> vector<2x16xf32>
    %100 = arith.addf %94, %99 : vector<2x16xf32>
    %c8_83 = arith.constant 8 : index
    %c0_84 = arith.constant 0 : index
    %101 = vector.load %arg17[%c8_83, %c0_84] : memref<18x16xf32, #tpu.memory_space<vmem>>, vector<2x16xf32>
    %102 = arith.truncf %101 : vector<2x16xf32> to vector<2x16xbf16>
    %c8_85 = arith.constant 8 : index
    %c0_86 = arith.constant 0 : index
    %c0_87 = arith.constant 0 : index
    %103 = vector.load %arg7[%c8_85, %c0_86, %c0_87] : memref<9x16x16xbf16, #tpu.memory_space<vmem>>, vector<1x16x16xbf16>
    %104 = vector.shape_cast %103 : vector<1x16x16xbf16> to vector<16x16xbf16>
    %cst_88 = arith.constant dense<0.000000e+00> : vector<2x16xf32>
    %105 = tpu.matmul %102, %104, %cst_88 {dimension_numbers = #tpu.dot_dimension_numbers<[1], [0], [0], [1], [0, 0, 1, 1], [], []>} : vector<2x16xbf16>, vector<16x16xbf16>, vector<2x16xf32> -> vector<2x16xf32>
    %106 = arith.addf %100, %105 : vector<2x16xf32>
    %cst_89 = arith.constant 0.000000e+00 : f32
    %107 = vector.broadcast %cst_89 : f32 to vector<2x16xf32>
    %108 = arith.maximumf %106, %107 : vector<2x16xf32>
    %109 = arith.truncf %108 : vector<2x16xf32> to vector<2x16xbf16>
    %c0_90 = arith.constant 0 : index
    %c0_91 = arith.constant 0 : index
    %110 = vector.load %arg9[%c0_90, %c0_91] : memref<16x64xbf16, #tpu.memory_space<vmem>>, vector<16x64xbf16>
    %cst_92 = arith.constant dense<0.000000e+00> : vector<2x64xf32>
    %111 = tpu.matmul %109, %110, %cst_92 {dimension_numbers = #tpu.dot_dimension_numbers<[1], [0], [0], [1], [0, 0, 1, 1], [], []>} : vector<2x16xbf16>, vector<16x64xbf16>, vector<2x64xf32> -> vector<2x64xf32>
    %c0_93 = arith.constant 0 : index
    %c0_94 = arith.constant 0 : index
    %112 = vector.load %arg10[%c0_93, %c0_94] : memref<1x64xf32, #tpu.memory_space<vmem>>, vector<1x64xf32>
    %113 = vector.broadcast %112 : vector<1x64xf32> to vector<2x64xf32>
    %114 = arith.addf %111, %113 : vector<2x64xf32>
    %c8_95 = arith.constant 8 : index
    %c0_96 = arith.constant 0 : index
    %115 = vector.load %arg0[%c8_95, %c0_96] : memref<18x32xf32, #tpu.memory_space<vmem>>, vector<2x32xf32>
    %116 = arith.truncf %115 : vector<2x32xf32> to vector<2x32xbf16>
    %c0_97 = arith.constant 0 : index
    %c0_98 = arith.constant 0 : index
    %117 = vector.load %arg11[%c0_97, %c0_98] : memref<32x64xbf16, #tpu.memory_space<vmem>>, vector<32x64xbf16>
    %cst_99 = arith.constant dense<0.000000e+00> : vector<2x64xf32>
    %118 = tpu.matmul %116, %117, %cst_99 {dimension_numbers = #tpu.dot_dimension_numbers<[1], [0], [0], [1], [0, 0, 1, 1], [], []>} : vector<2x32xbf16>, vector<32x64xbf16>, vector<2x64xf32> -> vector<2x64xf32>
    %c0_100 = arith.constant 0 : index
    %c0_101 = arith.constant 0 : index
    %119 = vector.load %arg12[%c0_100, %c0_101] : memref<1x64xf32, #tpu.memory_space<vmem>>, vector<1x64xf32>
    %120 = vector.broadcast %119 : vector<1x64xf32> to vector<2x64xf32>
    %121 = arith.addf %118, %120 : vector<2x64xf32>
    %122 = arith.addf %114, %121 : vector<2x64xf32>
    %cst_102 = arith.constant 0.000000e+00 : f32
    %123 = vector.broadcast %cst_102 : f32 to vector<2x64xf32>
    %124 = arith.maximumf %122, %123 : vector<2x64xf32>
    %c0_103 = arith.constant 0 : index
    %c0_104 = arith.constant 0 : index
    %125 = vector.load %arg13[%c0_103, %c0_104] : memref<2x64xf32, #tpu.memory_space<vmem>>, vector<2x64xf32>
    tpu.vector_store %arg13[%c0_103, %c0_104], %124 {strides = array<i32>} : memref<2x64xf32, #tpu.memory_space<vmem>>, vector<2x64xf32>,
    return
  }
}

module attributes {stable_mosaic.version = 11 : i64} {
  func.func @_block_kernel(%arg0: memref<18x64xf32, #tpu.memory_space<vmem>>, %arg1: memref<18x1xf32, #tpu.memory_space<vmem>>, %arg2: memref<64x16xbf16, #tpu.memory_space<vmem>>, %arg3: memref<1x16xf32, #tpu.memory_space<vmem>>, %arg4: memref<9x16x16xbf16, #tpu.memory_space<vmem>>, %arg5: memref<1x16xf32, #tpu.memory_space<vmem>>, %arg6: memref<16x64xbf16, #tpu.memory_space<vmem>>, %arg7: memref<1x64xf32, #tpu.memory_space<vmem>>, %arg8: memref<2x64xf32, #tpu.memory_space<vmem>>, %arg9: memref<18x16xf32, #tpu.memory_space<vmem>>) attributes {dimension_semantics = [], scalar_prefetch = 0 : i64, scratch_operands = 1 : i64, tpu.core_type = #tpu.core_type<tc>} {
    %c0 = arith.constant 0 : index
    %c0_0 = arith.constant 0 : index
    %0 = vector.load %arg1[%c0, %c0_0] : memref<18x1xf32, #tpu.memory_space<vmem>>, vector<18x1xf32>
    %c0_1 = arith.constant 0 : index
    %c0_2 = arith.constant 0 : index
    %1 = vector.load %arg0[%c0_1, %c0_2] : memref<18x64xf32, #tpu.memory_space<vmem>>, vector<18x64xf32>
    %2 = arith.truncf %1 : vector<18x64xf32> to vector<18x64xbf16>
    %c0_3 = arith.constant 0 : index
    %c0_4 = arith.constant 0 : index
    %3 = vector.load %arg2[%c0_3, %c0_4] : memref<64x16xbf16, #tpu.memory_space<vmem>>, vector<64x16xbf16>
    %cst = arith.constant dense<0.000000e+00> : vector<18x16xf32>
    %4 = tpu.matmul %2, %3, %cst {dimension_numbers = #tpu.dot_dimension_numbers<[1], [0], [0], [1], [0, 0, 1, 1], [], []>} : vector<18x64xbf16>, vector<64x16xbf16>, vector<18x16xf32> -> vector<18x16xf32>
    %c0_5 = arith.constant 0 : index
    %c0_6 = arith.constant 0 : index
    %5 = vector.load %arg3[%c0_5, %c0_6] : memref<1x16xf32, #tpu.memory_space<vmem>>, vector<1x16xf32>
    %6 = vector.broadcast %5 : vector<1x16xf32> to vector<18x16xf32>
    %7 = arith.addf %4, %6 : vector<18x16xf32>
    %cst_7 = arith.constant 0.000000e+00 : f32
    %8 = vector.broadcast %cst_7 : f32 to vector<18x16xf32>
    %9 = arith.maximumf %7, %8 : vector<18x16xf32>
    %10 = vector.broadcast %0 : vector<18x1xf32> to vector<18x16xf32>
    %11 = arith.mulf %9, %10 : vector<18x16xf32>
    %c0_8 = arith.constant 0 : index
    %c0_9 = arith.constant 0 : index
    %12 = vector.load %arg9[%c0_8, %c0_9] : memref<18x16xf32, #tpu.memory_space<vmem>>, vector<18x16xf32>
    tpu.vector_store %arg9[%c0_8, %c0_9], %11 {strides = array<i32>} : memref<18x16xf32, #tpu.memory_space<vmem>>, vector<18x16xf32>,
    %cst_10 = arith.constant 0.000000e+00 : f32
    %13 = vector.broadcast %cst_10 : f32 to vector<2x16xf32>
    %c0_11 = arith.constant 0 : index
    %c0_12 = arith.constant 0 : index
    %14 = vector.load %arg5[%c0_11, %c0_12] : memref<1x16xf32, #tpu.memory_space<vmem>>, vector<1x16xf32>
    %15 = vector.broadcast %14 : vector<1x16xf32> to vector<2x16xf32>
    %16 = arith.addf %13, %15 : vector<2x16xf32>
    %c0_13 = arith.constant 0 : index
    %c0_14 = arith.constant 0 : index
    %17 = vector.load %arg9[%c0_13, %c0_14] : memref<18x16xf32, #tpu.memory_space<vmem>>, vector<2x16xf32>
    %18 = arith.truncf %17 : vector<2x16xf32> to vector<2x16xbf16>
    %c0_15 = arith.constant 0 : index
    %c0_16 = arith.constant 0 : index
    %c0_17 = arith.constant 0 : index
    %19 = vector.load %arg4[%c0_15, %c0_16, %c0_17] : memref<9x16x16xbf16, #tpu.memory_space<vmem>>, vector<1x16x16xbf16>
    %20 = vector.shape_cast %19 : vector<1x16x16xbf16> to vector<16x16xbf16>
    %cst_18 = arith.constant dense<0.000000e+00> : vector<2x16xf32>
    %21 = tpu.matmul %18, %20, %cst_18 {dimension_numbers = #tpu.dot_dimension_numbers<[1], [0], [0], [1], [0, 0, 1, 1], [], []>} : vector<2x16xbf16>, vector<16x16xbf16>, vector<2x16xf32> -> vector<2x16xf32>
    %22 = arith.addf %16, %21 : vector<2x16xf32>
    %c2 = arith.constant 2 : index
    %c0_19 = arith.constant 0 : index
    %23 = vector.load %arg9[%c2, %c0_19] : memref<18x16xf32, #tpu.memory_space<vmem>>, vector<2x16xf32>
    %24 = arith.truncf %23 : vector<2x16xf32> to vector<2x16xbf16>
    %c1 = arith.constant 1 : index
    %c0_20 = arith.constant 0 : index
    %c0_21 = arith.constant 0 : index
    %25 = vector.load %arg4[%c1, %c0_20, %c0_21] : memref<9x16x16xbf16, #tpu.memory_space<vmem>>, vector<1x16x16xbf16>
    %26 = vector.shape_cast %25 : vector<1x16x16xbf16> to vector<16x16xbf16>
    %cst_22 = arith.constant dense<0.000000e+00> : vector<2x16xf32>
    %27 = tpu.matmul %24, %26, %cst_22 {dimension_numbers = #tpu.dot_dimension_numbers<[1], [0], [0], [1], [0, 0, 1, 1], [], []>} : vector<2x16xbf16>, vector<16x16xbf16>, vector<2x16xf32> -> vector<2x16xf32>
    %28 = arith.addf %22, %27 : vector<2x16xf32>
    %c4 = arith.constant 4 : index
    %c0_23 = arith.constant 0 : index
    %29 = vector.load %arg9[%c4, %c0_23] : memref<18x16xf32, #tpu.memory_space<vmem>>, vector<2x16xf32>
    %30 = arith.truncf %29 : vector<2x16xf32> to vector<2x16xbf16>
    %c2_24 = arith.constant 2 : index
    %c0_25 = arith.constant 0 : index
    %c0_26 = arith.constant 0 : index
    %31 = vector.load %arg4[%c2_24, %c0_25, %c0_26] : memref<9x16x16xbf16, #tpu.memory_space<vmem>>, vector<1x16x16xbf16>
    %32 = vector.shape_cast %31 : vector<1x16x16xbf16> to vector<16x16xbf16>
    %cst_27 = arith.constant dense<0.000000e+00> : vector<2x16xf32>
    %33 = tpu.matmul %30, %32, %cst_27 {dimension_numbers = #tpu.dot_dimension_numbers<[1], [0], [0], [1], [0, 0, 1, 1], [], []>} : vector<2x16xbf16>, vector<16x16xbf16>, vector<2x16xf32> -> vector<2x16xf32>
    %34 = arith.addf %28, %33 : vector<2x16xf32>
    %c6 = arith.constant 6 : index
    %c0_28 = arith.constant 0 : index
    %35 = vector.load %arg9[%c6, %c0_28] : memref<18x16xf32, #tpu.memory_space<vmem>>, vector<2x16xf32>
    %36 = arith.truncf %35 : vector<2x16xf32> to vector<2x16xbf16>
    %c3 = arith.constant 3 : index
    %c0_29 = arith.constant 0 : index
    %c0_30 = arith.constant 0 : index
    %37 = vector.load %arg4[%c3, %c0_29, %c0_30] : memref<9x16x16xbf16, #tpu.memory_space<vmem>>, vector<1x16x16xbf16>
    %38 = vector.shape_cast %37 : vector<1x16x16xbf16> to vector<16x16xbf16>
    %cst_31 = arith.constant dense<0.000000e+00> : vector<2x16xf32>
    %39 = tpu.matmul %36, %38, %cst_31 {dimension_numbers = #tpu.dot_dimension_numbers<[1], [0], [0], [1], [0, 0, 1, 1], [], []>} : vector<2x16xbf16>, vector<16x16xbf16>, vector<2x16xf32> -> vector<2x16xf32>
    %40 = arith.addf %34, %39 : vector<2x16xf32>
    %c8 = arith.constant 8 : index
    %c0_32 = arith.constant 0 : index
    %41 = vector.load %arg9[%c8, %c0_32] : memref<18x16xf32, #tpu.memory_space<vmem>>, vector<2x16xf32>
    %42 = arith.truncf %41 : vector<2x16xf32> to vector<2x16xbf16>
    %c4_33 = arith.constant 4 : index
    %c0_34 = arith.constant 0 : index
    %c0_35 = arith.constant 0 : index
    %43 = vector.load %arg4[%c4_33, %c0_34, %c0_35] : memref<9x16x16xbf16, #tpu.memory_space<vmem>>, vector<1x16x16xbf16>
    %44 = vector.shape_cast %43 : vector<1x16x16xbf16> to vector<16x16xbf16>
    %cst_36 = arith.constant dense<0.000000e+00> : vector<2x16xf32>
    %45 = tpu.matmul %42, %44, %cst_36 {dimension_numbers = #tpu.dot_dimension_numbers<[1], [0], [0], [1], [0, 0, 1, 1], [], []>} : vector<2x16xbf16>, vector<16x16xbf16>, vector<2x16xf32> -> vector<2x16xf32>
    %46 = arith.addf %40, %45 : vector<2x16xf32>
    %c10 = arith.constant 10 : index
    %c0_37 = arith.constant 0 : index
    %47 = vector.load %arg9[%c10, %c0_37] : memref<18x16xf32, #tpu.memory_space<vmem>>, vector<2x16xf32>
    %48 = arith.truncf %47 : vector<2x16xf32> to vector<2x16xbf16>
    %c5 = arith.constant 5 : index
    %c0_38 = arith.constant 0 : index
    %c0_39 = arith.constant 0 : index
    %49 = vector.load %arg4[%c5, %c0_38, %c0_39] : memref<9x16x16xbf16, #tpu.memory_space<vmem>>, vector<1x16x16xbf16>
    %50 = vector.shape_cast %49 : vector<1x16x16xbf16> to vector<16x16xbf16>
    %cst_40 = arith.constant dense<0.000000e+00> : vector<2x16xf32>
    %51 = tpu.matmul %48, %50, %cst_40 {dimension_numbers = #tpu.dot_dimension_numbers<[1], [0], [0], [1], [0, 0, 1, 1], [], []>} : vector<2x16xbf16>, vector<16x16xbf16>, vector<2x16xf32> -> vector<2x16xf32>
    %52 = arith.addf %46, %51 : vector<2x16xf32>
    %c12 = arith.constant 12 : index
    %c0_41 = arith.constant 0 : index
    %53 = vector.load %arg9[%c12, %c0_41] : memref<18x16xf32, #tpu.memory_space<vmem>>, vector<2x16xf32>
    %54 = arith.truncf %53 : vector<2x16xf32> to vector<2x16xbf16>
    %c6_42 = arith.constant 6 : index
    %c0_43 = arith.constant 0 : index
    %c0_44 = arith.constant 0 : index
    %55 = vector.load %arg4[%c6_42, %c0_43, %c0_44] : memref<9x16x16xbf16, #tpu.memory_space<vmem>>, vector<1x16x16xbf16>
    %56 = vector.shape_cast %55 : vector<1x16x16xbf16> to vector<16x16xbf16>
    %cst_45 = arith.constant dense<0.000000e+00> : vector<2x16xf32>
    %57 = tpu.matmul %54, %56, %cst_45 {dimension_numbers = #tpu.dot_dimension_numbers<[1], [0], [0], [1], [0, 0, 1, 1], [], []>} : vector<2x16xbf16>, vector<16x16xbf16>, vector<2x16xf32> -> vector<2x16xf32>
    %58 = arith.addf %52, %57 : vector<2x16xf32>
    %c14 = arith.constant 14 : index
    %c0_46 = arith.constant 0 : index
    %59 = vector.load %arg9[%c14, %c0_46] : memref<18x16xf32, #tpu.memory_space<vmem>>, vector<2x16xf32>
    %60 = arith.truncf %59 : vector<2x16xf32> to vector<2x16xbf16>
    %c7 = arith.constant 7 : index
    %c0_47 = arith.constant 0 : index
    %c0_48 = arith.constant 0 : index
    %61 = vector.load %arg4[%c7, %c0_47, %c0_48] : memref<9x16x16xbf16, #tpu.memory_space<vmem>>, vector<1x16x16xbf16>
    %62 = vector.shape_cast %61 : vector<1x16x16xbf16> to vector<16x16xbf16>
    %cst_49 = arith.constant dense<0.000000e+00> : vector<2x16xf32>
    %63 = tpu.matmul %60, %62, %cst_49 {dimension_numbers = #tpu.dot_dimension_numbers<[1], [0], [0], [1], [0, 0, 1, 1], [], []>} : vector<2x16xbf16>, vector<16x16xbf16>, vector<2x16xf32> -> vector<2x16xf32>
    %64 = arith.addf %58, %63 : vector<2x16xf32>
    %c16 = arith.constant 16 : index
    %c0_50 = arith.constant 0 : index
    %65 = vector.load %arg9[%c16, %c0_50] : memref<18x16xf32, #tpu.memory_space<vmem>>, vector<2x16xf32>
    %66 = arith.truncf %65 : vector<2x16xf32> to vector<2x16xbf16>
    %c8_51 = arith.constant 8 : index
    %c0_52 = arith.constant 0 : index
    %c0_53 = arith.constant 0 : index
    %67 = vector.load %arg4[%c8_51, %c0_52, %c0_53] : memref<9x16x16xbf16, #tpu.memory_space<vmem>>, vector<1x16x16xbf16>
    %68 = vector.shape_cast %67 : vector<1x16x16xbf16> to vector<16x16xbf16>
    %cst_54 = arith.constant dense<0.000000e+00> : vector<2x16xf32>
    %69 = tpu.matmul %66, %68, %cst_54 {dimension_numbers = #tpu.dot_dimension_numbers<[1], [0], [0], [1], [0, 0, 1, 1], [], []>} : vector<2x16xbf16>, vector<16x16xbf16>, vector<2x16xf32> -> vector<2x16xf32>
    %70 = arith.addf %64, %69 : vector<2x16xf32>
    %cst_55 = arith.constant 0.000000e+00 : f32
    %71 = vector.broadcast %cst_55 : f32 to vector<2x16xf32>
    %72 = arith.maximumf %70, %71 : vector<2x16xf32>
    %73 = arith.truncf %72 : vector<2x16xf32> to vector<2x16xbf16>
    %c0_56 = arith.constant 0 : index
    %c0_57 = arith.constant 0 : index
    %74 = vector.load %arg6[%c0_56, %c0_57] : memref<16x64xbf16, #tpu.memory_space<vmem>>, vector<16x64xbf16>
    %cst_58 = arith.constant dense<0.000000e+00> : vector<2x64xf32>
    %75 = tpu.matmul %73, %74, %cst_58 {dimension_numbers = #tpu.dot_dimension_numbers<[1], [0], [0], [1], [0, 0, 1, 1], [], []>} : vector<2x16xbf16>, vector<16x64xbf16>, vector<2x64xf32> -> vector<2x64xf32>
    %c0_59 = arith.constant 0 : index
    %c0_60 = arith.constant 0 : index
    %76 = vector.load %arg7[%c0_59, %c0_60] : memref<1x64xf32, #tpu.memory_space<vmem>>, vector<1x64xf32>
    %77 = vector.broadcast %76 : vector<1x64xf32> to vector<2x64xf32>
    %78 = arith.addf %75, %77 : vector<2x64xf32>
    %c8_61 = arith.constant 8 : index
    %c0_62 = arith.constant 0 : index
    %79 = vector.load %arg0[%c8_61, %c0_62] : memref<18x64xf32, #tpu.memory_space<vmem>>, vector<2x64xf32>
    %80 = arith.addf %78, %79 : vector<2x64xf32>
    %cst_63 = arith.constant 0.000000e+00 : f32
    %81 = vector.broadcast %cst_63 : f32 to vector<2x64xf32>
    %82 = arith.maximumf %80, %81 : vector<2x64xf32>
    %c0_64 = arith.constant 0 : index
    %c0_65 = arith.constant 0 : index
    %83 = vector.load %arg8[%c0_64, %c0_65] : memref<2x64xf32, #tpu.memory_space<vmem>>, vector<2x64xf32>
    tpu.vector_store %arg8[%c0_64, %c0_65], %82 {strides = array<i32>} : memref<2x64xf32, #tpu.memory_space<vmem>>, vector<2x64xf32>,
    return
  }
}

module attributes {stable_mosaic.version = 11 : i64} {
  func.func @_head_kernel(%arg0: memref<1x2x64xf32, #tpu.memory_space<vmem>>, %arg1: memref<64x10xbf16, #tpu.memory_space<vmem>>, %arg2: memref<1x10xf32, #tpu.memory_space<vmem>>, %arg3: memref<2x10xf32, #tpu.memory_space<vmem>>) attributes {dimension_semantics = [], scalar_prefetch = 0 : i64, scratch_operands = 0 : i64, tpu.core_type = #tpu.core_type<tc>} {
    %c0 = arith.constant 0 : index
    %c0_0 = arith.constant 0 : index
    %c0_1 = arith.constant 0 : index
    %0 = vector.load %arg0[%c0, %c0_0, %c0_1] : memref<1x2x64xf32, #tpu.memory_space<vmem>>, vector<1x2x64xf32>
    %cst = arith.constant dense<0.000000e+00> : vector<2x64xf32>
    %1 = vector.multi_reduction <add>, %0, %cst [0] : vector<1x2x64xf32> to vector<2x64xf32>
    %cst_2 = arith.constant 1.000000e+00 : f32
    %2 = vector.broadcast %cst_2 : f32 to vector<2x64xf32>
    %3 = arith.divf %1, %2 : vector<2x64xf32>
    %4 = arith.truncf %3 : vector<2x64xf32> to vector<2x64xbf16>
    %c0_3 = arith.constant 0 : index
    %c0_4 = arith.constant 0 : index
    %5 = vector.load %arg1[%c0_3, %c0_4] : memref<64x10xbf16, #tpu.memory_space<vmem>>, vector<64x10xbf16>
    %cst_5 = arith.constant dense<0.000000e+00> : vector<2x10xf32>
    %6 = tpu.matmul %4, %5, %cst_5 {dimension_numbers = #tpu.dot_dimension_numbers<[1], [0], [0], [1], [0, 0, 1, 1], [], []>} : vector<2x64xbf16>, vector<64x10xbf16>, vector<2x10xf32> -> vector<2x10xf32>
    %c0_6 = arith.constant 0 : index
    %c0_7 = arith.constant 0 : index
    %7 = vector.load %arg2[%c0_6, %c0_7] : memref<1x10xf32, #tpu.memory_space<vmem>>, vector<1x10xf32>
    %8 = vector.broadcast %7 : vector<1x10xf32> to vector<2x10xf32>
    %9 = arith.addf %6, %8 : vector<2x10xf32>
    %c0_8 = arith.constant 0 : index
    %c0_9 = arith.constant 0 : index
    %10 = vector.load %arg3[%c0_8, %c0_9] : memref<2x10xf32, #tpu.memory_space<vmem>>, vector<2x10xf32>
    tpu.vector_store %arg3[%c0_8, %c0_9], %9 {strides = array<i32>} : memref<2x10xf32, #tpu.memory_space<vmem>>, vector<2x10xf32>,
    return
  }
}

</mosaic_0001>

<bundles_post_ra>
// kernel: deeplab_resnet_forward.8
= control target key start
LH: loop header
LB: loop body
LE: loop exit
PB: predicated region body
PF: predicated region fallthrough
CT: control target
= control target key end

     0   :  { %vm34_vm0 = vcmask 64512   ;;  %s216_s1 = inlined_call_operand.vmem [shape: f32[72,8], index: 1, kind: input, shape index: {}]   ;;  %s217_s2 = inlined_call_operand.vmem [shape: f32[72,8], index: 2, kind: input, shape index: {}]   ;;  %s218_s3 = inlined_call_operand.vmem [shape: f32[72,8], index: 3, kind: input, shape index: {}]   ;;  %s219_s0 = inlined_call_operand.vmem [shape: f32[72,8], index: 0, kind: input, shape index: {}]   ;;  %s220_s4 = inlined_call_operand.vmem [shape: f32[32,8], index: 4, kind: output, shape index: {}]  }
   0x1   :  { %v17_v0 = vld [vmem:[%s218_s3] sm:$0xff]  ;;  %v22_v4 = vld [vmem:[%s216_s1 + $0xc] sm:$0xff]  ;;  %v41_v11 = vld [vmem:[%s216_s1 + $0x18] sm:$0xff] }
   0x2   :  { %v18_v1 = vld [vmem:[%s217_s2 + $0x2] sm:$0xff]  ;;  %v28_v5 = vld [vmem:[%s218_s3 + $0xc] sm:$0xff]  ;;  %v47_v12 = vld [vmem:[%s218_s3 + $0x18] sm:$0xff] }
   0x3   :  { %v20_v2 = vld [vmem:[%s218_s3 + $0x2] sm:$0xff]  ;;  %v19_v3 = vmax.f32 %v17_v0, %v18_v1  ;;  %v30_v6 = vld [vmem:[%s217_s2 + $0xe] sm:$0xff]  ;;  %v49_v13 = vld [vmem:[%s217_s2 + $0x1a] sm:$0xff] }
   0x4   :  { %v32_v7 = vld [vmem:[%s218_s3 + $0xe] sm:$0xff]  ;;  %v38_v10 = vmax.f32 %v28_v5, %v30_v6  ;;  %v51_v14 = vld [vmem:[%s218_s3 + $0x1a] sm:$0xff]  ;;  %v56_v19 = vmax.f32 %v47_v12, %v49_v13  ;;  %v59_v20 = vld [vmem:[%s216_s1 + $0x24] sm:$0xff] }
   0x5   :  { %v21_v8 = vmax.f32 %v19_v3, %v20_v2  ;;  %v24_v9 = vld [vmem:[%s219_s0 + $0xe] sm:$0xff]  ;;  %v43_v18 = vld [vmem:[%s219_s0 + $0x1a] sm:$0xff]  ;;  %v65_v21 = vld [vmem:[%s218_s3 + $0x24] sm:$0xff] }
   0x6   :  { %v26_v16 = vld [vmem:[%s216_s1 + $0xe] sm:$0xff]  ;;  %v40_v17 = vmax.f32 %v38_v10, %v32_v7  ;;  %v67_v22 = vld [vmem:[%s217_s2 + $0x26] sm:$0xff]  ;;  %v58_v26 = vmax.f32 %v56_v19, %v51_v14  ;;  %v45_v28 = vld [vmem:[%s216_s1 + $0x1a] sm:$0xff] }
   0x7   :  { %v23_v15 = vmax.f32 %v21_v8, %v22_v4  ;;  %v69_v23 = vld [vmem:[%s218_s3 + $0x26] sm:$0xff]  ;;  %v74_v27 = vmax.f32 %v65_v21, %v67_v22  ;;  %v77_v30 = vld [vmem:[%s216_s1 + $0x30] sm:$0xff] }
   0x8   :  { %v42_v25 = vmax.f32 %v40_v17, %v41_v11  ;;  %v61_v29 = vld [vmem:[%s219_s0 + $0x26] sm:$0xff]  ;;  %v60_v33 = vmax.f32 %v58_v26, %v59_v20  ;;  %v79_v36 = vld [vmem:[%s219_s0 + $0x32] sm:$0xff] }
   0x9   :  { %v25_v24 = vmax.f32 %v23_v15, %v24_v9  ;;  %v76_v34 = vmax.f32 %v74_v27, %v69_v23  ;;  %v63_v35 = vld [vmem:[%s216_s1 + $0x26] sm:$0xff]  ;;  %v81_v41 = vld [vmem:[%s216_s1 + $0x32] sm:$0xff] }
   0xa   :  { %v44_v32 = vmax.f32 %v42_v25, %v43_v18  ;;  %v62_v39 = vmax.f32 %v60_v33, %v61_v29  ;;  %v83_v46 = vld [vmem:[%s218_s3 + $0x30] sm:$0xff] }
   0xb   :  { %v27_v31 = vmax.f32 %v25_v24, %v26_v16  ;;  %v78_v40 = vmax.f32 %v76_v34, %v77_v30  ;;  %v85_v51 = vld [vmem:[%s217_s2 + $0x32] sm:$0xff] }
   0xc   :  { %v46_v38 = vmax.f32 %v44_v32, %v45_v28  ;;  %v64_v44 = vmax.f32 %v62_v39, %v63_v35  ;;  %v87_v55 = vld [vmem:[%s218_s3 + $0x32] sm:$0xff] }
   0xd   :  { %v29_v37 = vmax.f32 %v27_v31, %v28_v5  ;;  %v80_v45 = vmax.f32 %v78_v40, %v79_v36 }
   0xe   :  { %v48_v43 = vmax.f32 %v46_v38, %v47_v12  ;;  %v66_v49 = vmax.f32 %v64_v44, %v65_v21 }
   0xf   :  { %v31_v42 = vmax.f32 %v29_v37, %v30_v6  ;;  %v82_v50 = vmax.f32 %v80_v45, %v81_v41 }
  0x10   :  { %v50_v48 = vmax.f32 %v48_v43, %v49_v13  ;;  %v68_v53 = vmax.f32 %v66_v49, %v67_v22 }
  0x11   :  { %v33_v47 = vmax.f32 %v31_v42, %v32_v7  ;;  %v84_v54 = vmax.f32 %v82_v50, %v83_v46 }
  0x12   :  { %v52_v52 = vmax.f32 %v50_v48, %v51_v14  ;;  %v70_v56 = vmax.f32 %v68_v53, %v69_v23 }
  0x13   :  { %35 = vst.msk [vmem:[%s220_s4] sm:$0xff] %vm34_vm0, %v33_v47  ;;  %v86_v57 = vmax.f32 %v84_v54, %v85_v51 }
  0x14   :  { %53 = vst.msk [vmem:[%s220_s4 + $0x8] sm:$0xff] %vm34_vm0, %v52_v52  ;;  %71 = vst.msk [vmem:[%s220_s4 + $0x10] sm:$0xff] %vm34_vm0, %v70_v56 }
  0x15   :  { %v88_v58 = vmax.f32 %v86_v57, %v87_v55 }
  0x17   :  { %89 = vst.msk [vmem:[%s220_s4 + $0x18] sm:$0xff] %vm34_vm0, %v88_v58 }

// kernel: deeplab_resnet_forward.10
= control target key start
LH: loop header
LB: loop body
LE: loop exit
PB: predicated region body
PF: predicated region fallthrough
CT: control target
= control target key end

     0   :  { %v1954_v1 = vmov 0   ;;  %vm70_vm0 = vcmask 130048   ;;  %vm437_vm1 = vcmask 1043456   ;;  %v1955_v33 = vmov 0.0   ;;  %s2321_s5 = inlined_call_operand.vmem [shape: bf16[16,8], index: 5, kind: input, shape index: {}]   ;;  %s2322_s0 = inlined_call_operand.vmem [shape: f32[32,16], index: 0, kind: input, shape index: {}]   ;;  %s2323_s1 = inlined_call_operand.vmem [shape: f32[32,16], index: 1, kind: input, shape index: {}]   ;;  %s2324_s2 = inlined_call_operand.vmem [shape: f32[32,16], index: 2, kind: input, shape index: {}]   ;;  %s2325_s3 = inlined_call_operand.vmem [shape: f32[32,16], index: 3, kind: input, shape index: {}]   ;;  %s2326_s4 = inlined_call_operand.vmem [shape: f32[32,1], index: 4, kind: input, shape index: {}]   ;;  %s2327_s7 = inlined_call_operand.vmem [shape: bf16[9,8,8], index: 7, kind: input, shape index: {}]   ;;  %s2328_s6 = inlined_call_operand.vmem [shape: f32[1,8], index: 6, kind: input, shape index: {}]   ;;  %s2329_s9 = inlined_call_operand.vmem [shape: bf16[8,32], index: 9, kind: input, shape index: {}]   ;;  %s2330_s11 = inlined_call_operand.vmem [shape: bf16[16,32], index: 11, kind: input, shape index: {}]   ;;  %s2331_s8 = inlined_call_operand.vmem [shape: f32[1,8], index: 8, kind: input, shape index: {}]   ;;  %s2332_s10 = inlined_call_operand.vmem [shape: f32[1,32], index: 10, kind: input, shape index: {}]   ;;  %s2333_s12 = inlined_call_operand.vmem [shape: f32[1,32], index: 12, kind: input, shape index: {}]   ;;  %s2334_s13 = inlined_call_operand.vmem [shape: f32[8,32], index: 13, kind: output, shape index: {}]  }
   0x1   :  { %v1948_v0 = vld [vmem:[%s2321_s5] sm:$0xff]   ;;  %1947 = vset.pattern.permute.xlu1 %v1954_v1  ;;  %1946 = vset.pattern.permute.xlu0 %v1954_v1  ;;  %v50_v4 = vld [vmem:[%s2322_s0 + $0x8] sm:$0xff]  ;;  %v51_v8 = vld [vmem:[%s2322_s0 + $0x10] sm:$0xff]  ;;  %vm1956_vm2 = vmmov 0   ;;  %vm154_vm3 = vcmask 64512   ;;  %vm1008_vm4 = vcmask 257024  }
   0x2   :  { %v1949_v2 = vld [vmem:[%s2321_s5] sm:$0xff]   ;;  %1709 = vmatprep.subr.bf16.mxu0 %v1948_v0  ;;  %v160_v7 = vld [vmem:[%s2323_s1 + $0x8] sm:$0xff]  ;;  %v52_v9 = vld [vmem:[%s2322_s0 + $0x18] sm:$0xff] }
   0x3   :  { %v49_v3 = vld [vmem:[%s2322_s0] sm:$0xff]  ;;  %1715 = vmatprep.subr.bf16.mxu1 %v1949_v2  ;;  %1710 = vmatpush3.bf16.msra.mxu0 %v1948_v0  ;;  %v54_v11 = vpack.c.bf16 %v52_v9, %v51_v8  ;;  %v161_v12 = vld [vmem:[%s2323_s1 + $0x10] sm:$0xff]  ;;  %v162_v13 = vld [vmem:[%s2323_s1 + $0x18] sm:$0xff] }
   0x4   :  { %v159_v5 = vld [vmem:[%s2323_s1] sm:$0xff]  ;;  %v53_v6 = vpack.c.bf16 %v50_v4, %v49_v3  ;;  %1716 = vmatpush3.bf16.msra.mxu1 %v1949_v2  ;;  %v164_v14 = vpack.c.bf16 %v162_v13, %v161_v12  ;;  %v248_v18 = vld [vmem:[%s2324_s2 + $0x8] sm:$0xff]  ;;  %v249_v23 = vld [vmem:[%s2324_s2 + $0x10] sm:$0xff] }
   0x5   :  { %v163_v10 = vpack.c.bf16 %v160_v7, %v159_v5  ;;  %v1950_v15 = vld [vmem:[%s2321_s5] sm:$0xff]   ;;  %v336_v20 = vld [vmem:[%s2325_s3 + $0x8] sm:$0xff]  ;;  %v250_v24 = vld [vmem:[%s2324_s2 + $0x18] sm:$0xff] }
   0x6   :  { %1711 = vmatprep.mubr.msk.bf16.mxu0 %vm70_vm0, %v53_v6  ;;  %v1951_v16 = vld [vmem:[%s2321_s5] sm:$0xff]   ;;  %1727 = vmatprep.subr.bf16.mxu1 %v1950_v15  ;;  %v337_v25 = vld [vmem:[%s2325_s3 + $0x10] sm:$0xff]  ;;  %v338_v26 = vld [vmem:[%s2325_s3 + $0x18] sm:$0xff]  ;;  %v252_v29 = vpack.c.bf16 %v250_v24, %v249_v23 }
   0x7   :  { %1717 = vmatprep.mubr.msk.bf16.mxu1 %vm70_vm0, %v163_v10  ;;  %1712 = vmatmul.mubr.msk.bf16.vlgmr.msra.gmra.mrb[0].mxu0 %vm70_vm0, %v54_v11  ;;  %v247_v17 = vld [vmem:[%s2324_s2] sm:$0xff]  ;;  %v47_v27 = vld [vmem:[%s2326_s4 + $0x10] sm:$0xff]  ;;  %v340_v30 = vpack.c.bf16 %v338_v26, %v337_v25  ;;  %v48_v31 = vld [vmem:[%s2326_s4 + $0x18] sm:$0xff] }
   0x8   :  { %1718 = vmatmul.mubr.msk.bf16.vlgmr.msra.gmra.mrb[0].mxu1 %vm70_vm0, %v164_v14  ;;  %v335_v19 = vld [vmem:[%s2325_s3] sm:$0xff]  ;;  %1721 = vmatprep.subr.bf16.mxu0 %v1951_v16  ;;  %v251_v21 = vpack.c.bf16 %v248_v18, %v247_v17  ;;  %v46_v32 = vld [vmem:[%s2326_s4 + $0x8] sm:$0xff] }
   0x9   :  { %1728 = vmatpush3.bf16.msra.mxu1 %v1950_v15  ;;  %v339_v22 = vpack.c.bf16 %v336_v20, %v335_v19  ;;  %1722 = vmatpush3.bf16.msra.mxu0 %v1951_v16  ;;  %v45_v28 = vld [vmem:[%s2326_s4] sm:$0xff] }
   0xa   :  { %1723 = vmatprep.mubr.msk.bf16.mxu0 %vm70_vm0, %v251_v21  ;;  %142 = vperm.xlu1 %1947, %v47_v27   ;;  %v433_v34 = vld [vmem:[%s2327_s7] sm:$0xf]  ;;  %v1609_v23 = vld [vmem:[%s2327_s7 + $0x4] sm:$0xf] }
   0xb   :  { %1729 = vmatprep.mubr.msk.bf16.mxu1 %vm70_vm0, %v339_v22  ;;  %132 = vperm.xlu0 %1946, %v45_v28   ;;  %v439_v35 = vsel %vm437_vm1, %v433_v34, 0  ;;  %v1595_v36 = vld [vmem:[%s2328_s6] ss:$0 sm:$0xff]  ;;  %v490_v26 = vsel %vm437_vm1, %v1609_v23, 0  ;;  %v1611_v28 = vld [vmem:[%s2327_s7 + $0x8] sm:$0xf] }
   0xc   :  { %1733 = vmatprep.subr.bf16.mxu0 %v1955_v33  ;;  %1787 = vmatprep.subr.bf16.mxu1 %v1955_v33 }
   0xe   :  { %147 = vperm.xlu1 %1947, %v48_v31  }
   0xf   :  { %1724 = vmatmul.mubr.msk.bf16.vlgmr.msra.gmra.mrb[4].mxu0 %vm70_vm0, %v252_v29  ;;  %137 = vperm.xlu0 %1946, %v46_v32   ;;  %v1613_v32 = vld [vmem:[%s2327_s7 + $0xc] sm:$0xf] }
  0x10   :  { %1730 = vmatmul.mubr.msk.bf16.vlgmr.msra.gmra.mrb[4].mxu1 %vm70_vm0, %v340_v30  ;;  %1735 = vmatprep.mubr.msk.bf16.mxu0 %vm1956_vm2, %v1955_v33  ;;  %v541_v30 = vsel %vm437_vm1, %v1611_v28, 0 }
  0x11   :  { %1789 = vmatprep.mubr.msk.bf16.mxu1 %vm1956_vm2, %v1955_v33  ;;  %1734 = vmatpush3.bf16.msra.mxu0 %v439_v35  ;;  %v592_v35 = vsel %vm437_vm1, %v1613_v32, 0 }
  0x12   :  { %1739 = vmatprep.subr.bf16.mxu0 %v1955_v33 }
  0x89   :  { %v143_v37 = vpop.permute.xlu1 %142 }
  0x8a   :  { %v133_v38 = vpop.permute.xlu0 %132 }
  0x8d   :  { %v148_v54 = vpop.permute.xlu1 %147 }
  0x8e   :  { %v138_v56 = vpop.permute.xlu0 %137 }
  0xda   :  { %v1713_v39 = vpop.f32.mrb[0].mxu0 }
  0xdb   :  { %v1719_v40 = vpop.f32.mrb[0].mxu1  ;;  %v120_v41 = vadd.f32 %v1713_v39, %v1595_v36  ;;  %v111_v42 = vpop.f32.mrb[1].mxu0 }
  0xdc   :  { %v229_v43 = vadd.f32 %v1719_v40, %v1595_v36  ;;  %v220_v44 = vpop.f32.mrb[1].mxu1  ;;  %v1714_v45 = vpop.f32.mrb[2].mxu0 }
  0xdd   :  { %v1720_v46 = vpop.f32.mrb[2].mxu1  ;;  %v128_v47 = vmax.f32 %v120_v41, 0.0  ;;  %v114_v48 = vpop.f32.mrb[3].mxu0  ;;  %v1617_v41 = vld [vmem:[%s2327_s7 + $0x14] sm:$0xf] }
  0xde   :  { %v237_v49 = vmax.f32 %v229_v43, 0.0  ;;  %v223_v50 = vpop.f32.mrb[3].mxu1  ;;  %v115_v51 = vadd.f32 %v1595_v36, %v114_v48  ;;  %v694_v43 = vsel %vm437_vm1, %v1617_v41, 0  ;;  %v1619_v45 = vld [vmem:[%s2327_s7 + $0x18] sm:$0xf] }
  0xdf   :  { %v224_v52 = vadd.f32 %v1595_v36, %v223_v50  ;;  %v152_v53 = vmul.f32 %v143_v37, %v128_v47  ;;  %v745_v47 = vsel %vm437_vm1, %v1619_v45, 0 }
  0xe0   :  { %v241_v55 = vmul.f32 %v237_v49, %v143_v37  ;;  %v127_v57 = vmax.f32 %v115_v51, 0.0  ;;  %v1621_v49 = vld [vmem:[%s2327_s7 + $0x1c] sm:$0xf] }
  0xe1   :  { %v236_v58 = vmax.f32 %v224_v52, 0.0  ;;  %157 = vst.msk [vmem:[#allocation2 + $0x10] sm:$0xff] %vm154_vm3, %v152_v53  ;;  %v796_v51 = vsel %vm437_vm1, %v1621_v49, 0  ;;  %v1623_v53 = vld [vmem:[%s2327_s7 + $0x20] sm:$0xf] }
  0xe2   :  { %245 = vst.msk [vmem:[#allocation3 + $0x10] sm:$0xff] %vm154_vm3, %v241_v55  ;;  %v151_v59 = vmul.f32 %v138_v56, %v127_v57  ;;  %v1725_v60 = vpop.f32.mrb[4].mxu0  ;;  %v847_v55 = vsel %vm437_vm1, %v1623_v53, 0 }
  0xe3   :  { %v240_v61 = vmul.f32 %v236_v58, %v138_v56  ;;  %v317_v62 = vadd.f32 %v1725_v60, %v1595_v36  ;;  %v1731_v63 = vpop.f32.mrb[4].mxu1  ;;  %v308_v0 = vpop.f32.mrb[5].mxu0  ;;  %v892_v58 = vld [vmem:[%s2329_s9] sm:$0xf] }
  0xe4   :  { %156 = vst.msk [vmem:[#allocation2 + $0x8] sm:$0xff] %vm154_vm3, %v151_v59  ;;  %v405_v1 = vadd.f32 %v1731_v63, %v1595_v36  ;;  %v309_v2 = vadd.f32 %v1595_v36, %v308_v0  ;;  %v396_v3 = vpop.f32.mrb[5].mxu1  ;;  %v1726_v4 = vpop.f32.mrb[6].mxu0  ;;  %v904_v59 = vsel %vm437_vm1, %v892_v58, 0  ;;  %v2206_v60 = vld [vmem:[%s2331_s8] ss:$0 sm:$0xff] }
  0xe5   :  { %244 = vst.msk [vmem:[#allocation3 + $0x8] sm:$0xff] %vm154_vm3, %v240_v61  ;;  %v325_v5 = vmax.f32 %v317_v62, 0.0  ;;  %v397_v6 = vadd.f32 %v1595_v36, %v396_v3  ;;  %v1732_v7 = vpop.f32.mrb[6].mxu1  ;;  %v311_v8 = vpop.f32.mrb[7].mxu0  ;;  %1788 = vmatpush3.bf16.msra.mxu1 %v904_v59  ;;  %v1952_v3 = vld [vmem:[%s2330_s11] sm:$0xff]  }
  0xe6   :  { %v413_v9 = vmax.f32 %v405_v1, 0.0  ;;  %v323_v10 = vmax.f32 %v309_v2, 0.0  ;;  %v312_v11 = vadd.f32 %v1595_v36, %v311_v8  ;;  %v399_v12 = vpop.f32.mrb[7].mxu1  ;;  %1793 = vmatprep.subr.bf16.mxu1 %v1955_v33 }
  0xe7   :  { %v329_v13 = vmul.f32 %v325_v5, %v143_v37  ;;  %v411_v14 = vmax.f32 %v397_v6, 0.0  ;;  %v400_v15 = vadd.f32 %v1595_v36, %v399_v12  ;;  %v946_v5 = vld [vmem:[%s2322_s0 + $0xa] sm:$0xf]  ;;  %v1020_v6 = vld [vmem:[%s2327_s7] sm:$0xf] }
  0xe8   :  { %v417_v16 = vmul.f32 %v413_v9, %v143_v37  ;;  %v327_v17 = vmul.f32 %v323_v10, %v133_v38  ;;  %v324_v18 = vmax.f32 %v312_v11, 0.0  ;;  %v1615_v37 = vld [vmem:[%s2327_s7 + $0x10] sm:$0xf]  ;;  %v947_v7 = vpack.c.bf16 %v946_v5, %v946_v5  ;;  %v1632_v10 = vld [vmem:[%s2327_s7 + $0x4] sm:$0xf] }
  0xe9   :  { %333 = vst.msk [vmem:[#allocation4 + $0x10] sm:$0xff] %vm154_vm3, %v329_v13  ;;  %v415_v19 = vmul.f32 %v411_v14, %v133_v38  ;;  %v412_v20 = vmax.f32 %v400_v15, 0.0  ;;  %v643_v39 = vsel %vm437_vm1, %v1615_v37, 0  ;;  %v1025_v8 = vsel %vm437_vm1, %v1020_v6, 0  ;;  %v1634_v14 = vld [vmem:[%s2327_s7 + $0x8] sm:$0xf] }
  0xea   :  { %421 = vst.msk [vmem:[#allocation5 + $0x10] sm:$0xff] %vm154_vm3, %v417_v16  ;;  %331 = vst.msk [vmem:[#allocation4] sm:$0xff] %vm154_vm3, %v327_v17  ;;  %v328_v21 = vmul.f32 %v324_v18, %v138_v56  ;;  %v1075_v12 = vsel %vm437_vm1, %v1632_v10, 0  ;;  %v1125_v16 = vsel %vm437_vm1, %v1634_v14, 0  ;;  %v1636_v18 = vld [vmem:[%s2327_s7 + $0xc] sm:$0xf] }
  0xeb   :  { %419 = vst.msk [vmem:[#allocation5] sm:$0xff] %vm154_vm3, %v415_v19  ;;  %v416_v22 = vmul.f32 %v412_v20, %v138_v56  ;;  %v635_v40 = vld [vmem:[#allocation2 + $0xa] sm:$0xf]  ;;  %v1175_v20 = vsel %vm437_vm1, %v1636_v18, 0 }
  0xec   :  { %332 = vst.msk [vmem:[#allocation4 + $0x8] sm:$0xff] %vm154_vm3, %v328_v21  ;;  %v584_v36 = vld [vmem:[#allocation3 + $0x8] sm:$0xf]  ;;  %v636_v42 = vpack.c.bf16 %v635_v40, %v635_v40  ;;  %v1168_v21 = vld [vmem:[#allocation3 + $0x10] sm:$0xf] }
  0xed   :  { %420 = vst.msk [vmem:[#allocation5 + $0x8] sm:$0xff] %vm154_vm3, %v416_v22  ;;  %v585_v38 = vpack.c.bf16 %v584_v36, %v584_v36  ;;  %v686_v44 = vld [vmem:[#allocation3 + $0xa] sm:$0xf]  ;;  %v1638_v22 = vld [vmem:[%s2327_s7 + $0x10] sm:$0xf]  ;;  %v1169_v23 = vpack.c.bf16 %v1168_v21, %v1168_v21 }
  0xee   :  { %v687_v46 = vpack.c.bf16 %v686_v44, %v686_v44  ;;  %v1470_v44 = vld [vmem:[%s2329_s9] sm:$0xf] }
  0xef   :  { %v1482_v45 = vsel %vm437_vm1, %v1470_v44, 0 }
  0xf1   :  { %v482_v27 = vld [vmem:[#allocation4 + $0x2] sm:$0xf] }
  0xf2   :  { %v431_v24 = vld [vmem:[#allocation5] sm:$0xf]  ;;  %v483_v29 = vpack.c.bf16 %v482_v27, %v482_v27 }
  0xf3   :  { %v432_v25 = vpack.c.bf16 %v431_v24, %v431_v24  ;;  %v533_v31 = vld [vmem:[#allocation5 + $0x2] sm:$0xf]  ;;  %v788_v52 = vld [vmem:[#allocation4 + $0xa] sm:$0xf]  ;;  %v1225_v24 = vsel %vm437_vm1, %v1638_v22, 0 }
  0xf4   :  { %v534_v34 = vpack.c.bf16 %v533_v31, %v533_v31  ;;  %v737_v48 = vld [vmem:[#allocation5 + $0x8] sm:$0xf]  ;;  %v789_v54 = vpack.c.bf16 %v788_v52, %v788_v52 }
  0xf5   :  { %1736 = vmatmul.mubr.msk.bf16.vlgmr.msra.gmra.mrb[8].mxu0 %vm154_vm3, %v432_v25  ;;  %v738_v50 = vpack.c.bf16 %v737_v48, %v737_v48  ;;  %v839_v56 = vld [vmem:[#allocation5 + $0xa] sm:$0xf]  ;;  %v1218_v25 = vld [vmem:[#allocation2 + $0x12] sm:$0xf] }
  0xf6   :  { %1740 = vmatpush3.bf16.msra.mxu0 %v490_v26  ;;  %1741 = vmatprep.mubr.msk.bf16.mxu0 %vm1956_vm2, %v1955_v33  ;;  %v840_v57 = vpack.c.bf16 %v839_v56, %v839_v56  ;;  %v1018_v9 = vld [vmem:[#allocation5 + $0x8] sm:$0xf]  ;;  %v1640_v26 = vld [vmem:[%s2327_s7 + $0x14] sm:$0xf]  ;;  %v1219_v27 = vpack.c.bf16 %v1218_v25, %v1218_v25 }
  0xf7   :  { %1745 = vmatprep.subr.bf16.mxu0 %v1955_v33  ;;  %v1019_v11 = vpack.c.bf16 %v1018_v9, %v1018_v9  ;;  %v1068_v13 = vld [vmem:[#allocation4 + $0xa] sm:$0xf]  ;;  %v1275_v28 = vsel %vm437_vm1, %v1640_v26, 0 }
  0xf8   :  { %v1069_v15 = vpack.c.bf16 %v1068_v13, %v1068_v13  ;;  %v1118_v17 = vld [vmem:[#allocation5 + $0xa] sm:$0xf] }
  0xf9   :  { %v1119_v19 = vpack.c.bf16 %v1118_v17, %v1118_v17 }
 0x101   :  { %1742 = vmatmul.mubr.msk.bf16.vlgmr.msra.gmra.mrb[8].mxu0 %vm154_vm3, %v483_v29  ;;  %v1268_v29 = vld [vmem:[#allocation3 + $0x12] sm:$0xf] }
 0x102   :  { %1746 = vmatpush3.bf16.msra.mxu0 %v541_v30  ;;  %1747 = vmatprep.mubr.msk.bf16.mxu0 %vm1956_vm2, %v1955_v33  ;;  %v1642_v30 = vld [vmem:[%s2327_s7 + $0x18] sm:$0xf]  ;;  %v1269_v31 = vpack.c.bf16 %v1268_v29, %v1268_v29 }
 0x103   :  { %1751 = vmatprep.subr.bf16.mxu0 %v1955_v33  ;;  %v1325_v32 = vsel %vm437_vm1, %v1642_v30, 0 }
 0x10d   :  { %1748 = vmatmul.mubr.msk.bf16.vlgmr.msra.gmra.mrb[8].mxu0 %vm154_vm3, %v534_v34  ;;  %v1318_v34 = vld [vmem:[#allocation5 + $0x10] sm:$0xf] }
 0x10e   :  { %1752 = vmatpush3.bf16.msra.mxu0 %v592_v35  ;;  %1753 = vmatprep.mubr.msk.bf16.mxu0 %vm1956_vm2, %v1955_v33  ;;  %v1644_v35 = vld [vmem:[%s2327_s7 + $0x1c] sm:$0xf]  ;;  %v1319_v36 = vpack.c.bf16 %v1318_v34, %v1318_v34 }
 0x10f   :  { %1757 = vmatprep.subr.bf16.mxu0 %v1955_v33  ;;  %v1375_v37 = vsel %vm437_vm1, %v1644_v35, 0 }
 0x119   :  { %1754 = vmatmul.mubr.msk.bf16.vlgmr.msra.gmra.mrb[8].mxu0 %vm154_vm3, %v585_v38  ;;  %v1368_v38 = vld [vmem:[#allocation4 + $0x12] sm:$0xf] }
 0x11a   :  { %1758 = vmatpush3.bf16.msra.mxu0 %v643_v39  ;;  %1759 = vmatprep.mubr.msk.bf16.mxu0 %vm1956_vm2, %v1955_v33  ;;  %v1646_v39 = vld [vmem:[%s2327_s7 + $0x20] sm:$0xf]  ;;  %v1369_v40 = vpack.c.bf16 %v1368_v38, %v1368_v38 }
 0x11b   :  { %1763 = vmatprep.subr.bf16.mxu0 %v1955_v33  ;;  %v1425_v41 = vsel %vm437_vm1, %v1646_v39, 0 }
 0x125   :  { %1760 = vmatmul.mubr.msk.bf16.vlgmr.msra.gmra.mrb[8].mxu0 %vm154_vm3, %v636_v42  ;;  %v1418_v42 = vld [vmem:[#allocation5 + $0x12] sm:$0xf] }
 0x126   :  { %1764 = vmatpush3.bf16.msra.mxu0 %v694_v43  ;;  %1765 = vmatprep.mubr.msk.bf16.mxu0 %vm1956_vm2, %v1955_v33  ;;  %v1419_v43 = vpack.c.bf16 %v1418_v42, %v1418_v42 }
 0x127   :  { %1769 = vmatprep.subr.bf16.mxu0 %v1955_v33 }
 0x131   :  { %1766 = vmatmul.mubr.msk.bf16.vlgmr.msra.gmra.mrb[8].mxu0 %vm154_vm3, %v687_v46  ;;  %v1625_v46 = vld [vmem:[%s2332_s10] ss:$0 sm:$0xff] }
 0x132   :  { %1770 = vmatpush3.bf16.msra.mxu0 %v745_v47  ;;  %1771 = vmatprep.mubr.msk.bf16.mxu0 %vm1956_vm2, %v1955_v33  ;;  %v1627_v47 = vld [vmem:[%s2333_s12] ss:$0 sm:$0xff] }
 0x133   :  { %1775 = vmatprep.subr.bf16.mxu0 %v1955_v33  ;;  %v1866_v48 = vadd.f32 %v1627_v47, %v1625_v46 }
 0x13d   :  { %1772 = vmatmul.mubr.msk.bf16.vlgmr.msra.gmra.mrb[8].mxu0 %vm154_vm3, %v738_v50 }
 0x13e   :  { %1776 = vmatpush3.bf16.msra.mxu0 %v796_v51  ;;  %1777 = vmatprep.mubr.msk.bf16.mxu0 %vm1956_vm2, %v1955_v33 }
 0x13f   :  { %1781 = vmatprep.subr.bf16.mxu0 %v1955_v33 }
 0x149   :  { %1778 = vmatmul.mubr.msk.bf16.vlgmr.msra.gmra.mrb[8].mxu0 %vm154_vm3, %v789_v54 }
 0x14a   :  { %1782 = vmatpush3.bf16.msra.mxu0 %v847_v55  ;;  %1783 = vmatprep.mubr.msk.bf16.mxu0 %vm1956_vm2, %v1955_v33 }
 0x14b   :  { %1853 = vmatprep.subr.bf16.mxu0 %v1955_v33 }
 0x155   :  { %1784 = vmatmul.mubr.msk.bf16.vlgmr.msra.gmra.mrb[8].mxu0 %vm154_vm3, %v840_v57 }
 0x156   :  { %1855 = vmatprep.mubr.msk.bf16.mxu0 %vm1956_vm2, %v1955_v33  ;;  %1854 = vmatpush3.bf16.msra.mxu0 %v1482_v45 }
 0x157   :  { %1859 = vmatprep.subr.bf16.mxu0 %v1955_v33 }
 0x228   :  { %v883_v61 = vpop.f32.mrb[8].mxu0 }
 0x229   :  { %v1865_v62 = vadd.f32 %v2206_v60, %v883_v61  ;;  %v1785_v63 = vpop.f32.mrb[9].mxu0 }
 0x22a   :  { %v886_v0 = vpop.f32.mrb[10].mxu0 }
 0x22b   :  { %v890_v1 = vmax.f32 %v1865_v62, 0.0  ;;  %v1786_v2 = vpop.f32.mrb[11].mxu0  ;;  %v1953_v62 = vld [vmem:[%s2330_s11] sm:$0xff]   ;;  %v1524_v0 = vld [vmem:[%s2322_s0 + $0x12] sm:$0xf] }
 0x22d   :  { %v891_v4 = vpack.c.bf16 %v890_v1, %v890_v1 }
 0x22f   :  { %1790 = vmatmul.mubr.msk.bf16.vlgmr.msra.gmra.mrb[8].mxu1 %vm154_vm3, %v891_v4 }
 0x230   :  { %1794 = vmatpush3.bf16.msra.mxu1 %v1952_v3  ;;  %1795 = vmatprep.mubr.msk.bf16.mxu1 %vm1956_vm2, %v1955_v33 }
 0x231   :  { %1799 = vmatprep.subr.bf16.mxu1 %v1955_v33 }
 0x23b   :  { %1796 = vmatmul.mubr.msk.bf16.vlgmr.msra.gmra.mrb[8].mxu1 %vm70_vm0, %v947_v7 }
 0x23c   :  { %1800 = vmatpush3.bf16.msra.mxu1 %v1025_v8  ;;  %1801 = vmatprep.mubr.msk.bf16.mxu1 %vm1956_vm2, %v1955_v33 }
 0x23d   :  { %1805 = vmatprep.subr.bf16.mxu1 %v1955_v33 }
 0x243   :  { %1802 = vmatmul.mubr.msk.bf16.vlgmr.msra.gmra.mrb[12].mxu1 %vm154_vm3, %v1019_v11 }
 0x244   :  { %1806 = vmatpush3.bf16.msra.mxu1 %v1075_v12  ;;  %1807 = vmatprep.mubr.msk.bf16.mxu1 %vm1956_vm2, %v1955_v33 }
 0x245   :  { %1811 = vmatprep.subr.bf16.mxu1 %v1955_v33 }
 0x24f   :  { %1808 = vmatmul.mubr.msk.bf16.vlgmr.msra.gmra.mrb[12].mxu1 %vm154_vm3, %v1069_v15 }
 0x250   :  { %1812 = vmatpush3.bf16.msra.mxu1 %v1125_v16  ;;  %1813 = vmatprep.mubr.msk.bf16.mxu1 %vm1956_vm2, %v1955_v33 }
 0x251   :  { %1817 = vmatprep.subr.bf16.mxu1 %v1955_v33 }
 0x25b   :  { %1814 = vmatmul.mubr.msk.bf16.vlgmr.msra.gmra.mrb[12].mxu1 %vm154_vm3, %v1119_v19 }
 0x25c   :  { %1818 = vmatpush3.bf16.msra.mxu1 %v1175_v20  ;;  %1819 = vmatprep.mubr.msk.bf16.mxu1 %vm1956_vm2, %v1955_v33 }
 0x25d   :  { %1823 = vmatprep.subr.bf16.mxu1 %v1955_v33 }
 0x267   :  { %1820 = vmatmul.mubr.msk.bf16.vlgmr.msra.gmra.mrb[12].mxu1 %vm154_vm3, %v1169_v23 }
 0x268   :  { %1824 = vmatpush3.bf16.msra.mxu1 %v1225_v24  ;;  %1825 = vmatprep.mubr.msk.bf16.mxu1 %vm1956_vm2, %v1955_v33 }
 0x269   :  { %1829 = vmatprep.subr.bf16.mxu1 %v1955_v33 }
 0x273   :  { %1826 = vmatmul.mubr.msk.bf16.vlgmr.msra.gmra.mrb[12].mxu1 %vm154_vm3, %v1219_v27 }
 0x274   :  { %1830 = vmatpush3.bf16.msra.mxu1 %v1275_v28  ;;  %1831 = vmatprep.mubr.msk.bf16.mxu1 %vm1956_vm2, %v1955_v33 }
 0x275   :  { %1835 = vmatprep.subr.bf16.mxu1 %v1955_v33 }
 0x27f   :  { %1832 = vmatmul.mubr.msk.bf16.vlgmr.msra.gmra.mrb[12].mxu1 %vm154_vm3, %v1269_v31 }
 0x280   :  { %1836 = vmatpush3.bf16.msra.mxu1 %v1325_v32  ;;  %1837 = vmatprep.mubr.msk.bf16.mxu1 %vm1956_vm2, %v1955_v33 }
 0x281   :  { %1841 = vmatprep.subr.bf16.mxu1 %v1955_v33 }
 0x28b   :  { %1838 = vmatmul.mubr.msk.bf16.vlgmr.msra.gmra.mrb[12].mxu1 %vm154_vm3, %v1319_v36 }
 0x28c   :  { %1842 = vmatpush3.bf16.msra.mxu1 %v1375_v37  ;;  %1843 = vmatprep.mubr.msk.bf16.mxu1 %vm1956_vm2, %v1955_v33 }
 0x28d   :  { %1847 = vmatprep.subr.bf16.mxu1 %v1955_v33 }
 0x297   :  { %1844 = vmatmul.mubr.msk.bf16.vlgmr.msra.gmra.mrb[12].mxu1 %vm154_vm3, %v1369_v40 }
 0x298   :  { %1848 = vmatpush3.bf16.msra.mxu1 %v1425_v41  ;;  %1849 = vmatprep.mubr.msk.bf16.mxu1 %vm1956_vm2, %v1955_v33 }
 0x2a3   :  { %1850 = vmatmul.mubr.msk.bf16.vlgmr.msra.gmra.mrb[12].mxu1 %vm154_vm3, %v1419_v43 }
 0x30e   :  { %v1000_v49 = vpop.f32.mrb[8].mxu1 }
 0x30f   :  { %v1867_v50 = vadd.f32 %v1866_v48, %v1000_v49  ;;  %v1797_v51 = vpop.f32.mrb[9].mxu1 }
 0x310   :  { %v1003_v52 = vpop.f32.mrb[10].mxu1 }
 0x311   :  { %v1007_v53 = vmax.f32 %v1867_v50, 0.0  ;;  %v1798_v54 = vpop.f32.mrb[11].mxu1 }
 0x313   :  { %1009 = vst.msk [vmem:[%s2334_s13] sm:$0xf] %vm1008_vm4, %v1007_v53 }
 0x376   :  { %v1461_v55 = vpop.f32.mrb[12].mxu1 }
 0x377   :  { %v1868_v56 = vadd.f32 %v2206_v60, %v1461_v55  ;;  %v1851_v57 = vpop.f32.mrb[13].mxu1  ;;  %v1525_v60 = vpack.c.bf16 %v1524_v0, %v1524_v0 }
 0x378   :  { %v1464_v58 = vpop.f32.mrb[14].mxu1 }
 0x379   :  { %v1468_v59 = vmax.f32 %v1868_v56, 0.0  ;;  %v1852_v61 = vpop.f32.mrb[15].mxu1 }
 0x37b   :  { %v1469_v63 = vpack.c.bf16 %v1468_v59, %v1468_v59 }
 0x37d   :  { %1856 = vmatmul.mubr.msk.bf16.vlgmr.msra.gmra.mrb[12].mxu0 %vm154_vm3, %v1469_v63 }
 0x37e   :  { %1860 = vmatpush3.bf16.msra.mxu0 %v1953_v62  ;;  %1861 = vmatprep.mubr.msk.bf16.mxu0 %vm1956_vm2, %v1955_v33 }
 0x389   :  { %1862 = vmatmul.mubr.msk.bf16.vlgmr.msra.gmra.mrb[12].mxu0 %vm70_vm0, %v1525_v60 }
 0x45c   :  { %v1578_v1 = vpop.f32.mrb[12].mxu0 }
 0x45d   :  { %v1870_v2 = vadd.f32 %v1866_v48, %v1578_v1  ;;  %v1863_v3 = vpop.f32.mrb[13].mxu0 }
 0x45e   :  { %v1581_v4 = vpop.f32.mrb[14].mxu0 }
 0x45f   :  { %v1585_v5 = vmax.f32 %v1870_v2, 0.0  ;;  %v1864_v6 = vpop.f32.mrb[15].mxu0 }
 0x461   :  { %1586 = vst.msk [vmem:[%s2334_s13 + $0x4] sm:$0xf] %vm1008_vm4, %v1585_v5 }

// kernel: deeplab_resnet_forward.7
= control target key start
LH: loop header
LB: loop body
LE: loop exit
PB: predicated region body
PF: predicated region fallthrough
CT: control target
= control target key end

     0   :  { %s3833_s23 = smov 0   ;;  %s4358_s0 = inlined_call_operand.vmem [shape: f32[242,4], index: 0, kind: input, shape index: {}]   ;;  %s4359_s1 = inlined_call_operand.vmem [shape: f32[242,4], index: 1, kind: input, shape index: {}]   ;;  %s4360_s2 = inlined_call_operand.vmem [shape: f32[242,4], index: 2, kind: input, shape index: {}]   ;;  %s4361_s3 = inlined_call_operand.vmem [shape: f32[242,4], index: 3, kind: input, shape index: {}]   ;;  %s4362_s4 = inlined_call_operand.vmem [shape: bf16[49,4,8], index: 4, kind: input, shape index: {}]   ;;  %s4363_s5 = inlined_call_operand.vmem [shape: f32[1,8], index: 5, kind: input, shape index: {}]   ;;  %s4364_s6 = inlined_call_operand.vmem [shape: f32[128,8], index: 6, kind: output, shape index: {}]  }
   0x1   :  { %v3831_v0 = vld [vmem:[%s4363_s5] ss:$0 sm:$0xff] }
   0x2 LB: > { %vm48_vm0 = vcmask 1041408   ;;  %v3072_v1 = vld [vmem:[%s4362_s4 + $0x30] sm:$0x3]  ;;  %v43_v2 = vld [vmem:[%s4362_s4] sm:$0x3]  ;;  %v3791_v3 = vmov 0.0   ;;  %s3789_s23 = sphi %s3833_s23, %s30_s23  }
   0x3   : > { %3431 = vmatprep.subr.bf16.mxu0 %v3791_v3  ;;  %3287 = vmatprep.subr.bf16.mxu1 %v3791_v3  ;;  %v1386_v4 = vsel %vm48_vm0, %v3072_v1, 0  ;;  %v50_v5 = vsel %vm48_vm0, %v43_v2, 0  ;;  %s38_s5 = smul.u32 22, %s3789_s23  ;;  %vm3792_vm1 = vmmov 0   ;;  %v2967_v6 = vld [vmem:[%s4362_s4 + $0x2] sm:$0x3] }
   0x4   : > { %3432 = vmatpush3.bf16.msra.mxu0 %v1386_v4  ;;  %3288 = vmatpush3.bf16.msra.mxu1 %v50_v5  ;;  %v3077_v7 = vld [vmem:[%s4362_s4 + $0x32] sm:$0x3]  ;;  %vm44_vm2 = vcmask 31744   ;;  %v105_v13 = vsel %vm48_vm0, %v2967_v6, 0  ;;  %v2972_v20 = vld [vmem:[%s4362_s4 + $0x4] sm:$0x3] }
   0x5   : > { %3289 = vmatprep.mubr.msk.bf16.mxu1 %vm3792_vm1, %v3791_v3  ;;  %3433 = vmatprep.mubr.msk.bf16.mxu0 %vm3792_vm1, %v3791_v3  ;;  %s3860_s8 = scalar_lea.vmem %s4358_s0, %s38_s5  ;;  %s3865_s11 = scalar_lea.vmem %s4361_s3, %s38_s5  ;;  %v1441_v15 = vsel %vm48_vm0, %v3077_v7, 0  ;;  %v3082_v22 = vld [vmem:[%s4362_s4 + $0x34] sm:$0x3]  ;;  %v163_v24 = vsel %vm48_vm0, %v2972_v20, 0  ;;  %v2977_v30 = vld [vmem:[%s4362_s4 + $0x6] sm:$0x3] }
   0x6   : > { %3437 = vmatprep.subr.bf16.mxu0 %v3791_v3  ;;  %3293 = vmatprep.subr.bf16.mxu1 %v3791_v3  ;;  %v40_v8 = vld [vmem:[%s3860_s8] sm:$0xff]  ;;  %v41_v9 = vld [vmem:[%s3860_s8 + $0x8] sm:$0xff]  ;;  %v3070_v10 = vld [vmem:[%s3865_s11 + $0x18] sm:$0xff]  ;;  %s3884_s16 = scalar_lea.vmem %s4359_s1, %s38_s5  ;;  %s3892_s19 = scalar_lea.vmem %s4360_s2, %s38_s5  ;;  %v1496_v25 = vsel %vm48_vm0, %v3082_v22, 0  ;;  %v218_v34 = vsel %vm48_vm0, %v2977_v30, 0  ;;  %vm2773_vm3 = vcmask 64512  }
   0x7   : > { %v42_v11 = vpack.c.bf16 %v41_v9, %v40_v8  ;;  %v3071_v12 = vld [vmem:[%s3865_s11 + $0x20] sm:$0xff]  ;;  %v97_v17 = vld [vmem:[%s3884_s16 + $0x8] sm:$0xff]  ;;  %v3087_v32 = vld [vmem:[%s4362_s4 + $0x36] sm:$0x3] }
   0x8   : > { %v1379_v14 = vpack.c.bf16 %v3071_v12, %v3070_v10  ;;  %v96_v16 = vld [vmem:[%s3884_s16] sm:$0xff]  ;;  %v2971_v27 = vld [vmem:[%s3860_s8 + $0xa] sm:$0xff]  ;;  %v1551_v35 = vsel %vm48_vm0, %v3087_v32, 0  ;;  %v2982_v40 = vld [vmem:[%s4362_s4 + $0x8] sm:$0x3] }
   0x9   : > { %3290 = vmatmul.mubr.msk.bf16.vlgmr.msra.gmra.mrb[0].mxu1 %vm44_vm2, %v42_v11  ;;  %v3075_v18 = vld [vmem:[%s3892_s19 + $0x1a] sm:$0xff]  ;;  %v3076_v19 = vld [vmem:[%s3892_s19 + $0x22] sm:$0xff]  ;;  %v98_v21 = vpack.c.bf16 %v97_v17, %v96_v16  ;;  %v2976_v37 = vld [vmem:[%s3884_s16 + $0xa] sm:$0xff]  ;;  %v275_v44 = vsel %vm48_vm0, %v2982_v40, 0 }
   0xa   : > { %3434 = vmatmul.mubr.msk.bf16.vlgmr.msra.gmra.mrb[0].mxu0 %vm44_vm2, %v1379_v14  ;;  %3294 = vmatpush3.bf16.msra.mxu1 %v105_v13  ;;  %v1434_v23 = vpack.c.bf16 %v3076_v19, %v3075_v18  ;;  %v2970_v26 = vld [vmem:[%s3860_s8 + $0x2] sm:$0xff]  ;;  %v3080_v28 = vld [vmem:[%s3865_s11 + $0x1a] sm:$0xff]  ;;  %v3091_v42 = vld [vmem:[%s4362_s4 + $0x38] sm:$0x3] }
   0xb   : > { %3438 = vmatpush3.bf16.msra.mxu0 %v1441_v15  ;;  %3295 = vmatprep.mubr.msk.bf16.mxu1 %vm3792_vm1, %v3791_v3  ;;  %v3081_v29 = vld [vmem:[%s3865_s11 + $0x22] sm:$0xff]  ;;  %v156_v31 = vpack.c.bf16 %v2971_v27, %v2970_v26  ;;  %v1608_v45 = vsel %vm48_vm0, %v3091_v42, 0  ;;  %v2981_v47 = vld [vmem:[%s3860_s8 + $0xc] sm:$0xff]  ;;  %v3090_v49 = vld [vmem:[%s3860_s8 + $0x34] sm:$0xff] }
   0xc   : > { %3439 = vmatprep.mubr.msk.bf16.mxu0 %vm3792_vm1, %v3791_v3  ;;  %3443 = vmatprep.subr.bf16.mxu0 %v3791_v3  ;;  %v1489_v33 = vpack.c.bf16 %v3081_v29, %v3080_v28  ;;  %v2975_v36 = vld [vmem:[%s3884_s16 + $0x2] sm:$0xff]  ;;  %v3089_v48 = vld [vmem:[%s3860_s8 + $0x2c] sm:$0xff]  ;;  %v2987_v50 = vld [vmem:[%s4362_s4 + $0xa] sm:$0x3] }
   0xd   : > { %3299 = vmatprep.subr.bf16.mxu1 %v3791_v3  ;;  %v3085_v38 = vld [vmem:[%s3892_s19 + $0x1c] sm:$0xff]  ;;  %v3086_v39 = vld [vmem:[%s3892_s19 + $0x24] sm:$0xff]  ;;  %v211_v41 = vpack.c.bf16 %v2976_v37, %v2975_v36  ;;  %v3095_v52 = vld [vmem:[%s4362_s4 + $0x3a] sm:$0x3]  ;;  %v1601_v53 = vpack.c.bf16 %v3090_v49, %v3089_v48  ;;  %v330_v54 = vsel %vm48_vm0, %v2987_v50, 0 }
   0xe   : > { %v1544_v43 = vpack.c.bf16 %v3086_v39, %v3085_v38  ;;  %v2980_v46 = vld [vmem:[%s3860_s8 + $0x4] sm:$0xff]  ;;  %v1663_v55 = vsel %vm48_vm0, %v3095_v52, 0  ;;  %v2986_v57 = vld [vmem:[%s3884_s16 + $0xc] sm:$0xff]  ;;  %v3094_v59 = vld [vmem:[%s3884_s16 + $0x34] sm:$0xff] }
   0xf   : > { %v268_v51 = vpack.c.bf16 %v2981_v47, %v2980_v46  ;;  %v2985_v56 = vld [vmem:[%s3884_s16 + $0x4] sm:$0xff]  ;;  %v3093_v58 = vld [vmem:[%s3884_s16 + $0x2c] sm:$0xff]  ;;  %v3100_v62 = vld [vmem:[%s4362_s4 + $0x3c] sm:$0x3] }
  0x10   : > { %v2992_v60 = vld [vmem:[%s4362_s4 + $0xc] sm:$0x3]  ;;  %v323_v61 = vpack.c.bf16 %v2986_v57, %v2985_v56  ;;  %v1656_v63 = vpack.c.bf16 %v3094_v59, %v3093_v58  ;;  %v1721_v2 = vsel %vm48_vm0, %v3100_v62, 0  ;;  %v2991_v5 = vld [vmem:[%s3860_s8 + $0xe] sm:$0xff]  ;;  %v3099_v7 = vld [vmem:[%s3860_s8 + $0x36] sm:$0xff] }
  0x11   : > { %v387_v1 = vsel %vm48_vm0, %v2992_v60, 0  ;;  %v2990_v4 = vld [vmem:[%s3860_s8 + $0x6] sm:$0xff]  ;;  %v3098_v6 = vld [vmem:[%s3860_s8 + $0x2e] sm:$0xff]  ;;  %v3105_v10 = vld [vmem:[%s4362_s4 + $0x3e] sm:$0x3] }
  0x12   : > { %v2994_v8 = vld [vmem:[%s4362_s4 + $0xe] sm:$0x3]  ;;  %v380_v9 = vpack.c.bf16 %v2991_v5, %v2990_v4  ;;  %v1714_v11 = vpack.c.bf16 %v3099_v7, %v3098_v6  ;;  %v1776_v13 = vsel %vm48_vm0, %v3105_v10, 0  ;;  %v433_v14 = vld [vmem:[%s3892_s19] sm:$0xff]  ;;  %v3104_v17 = vld [vmem:[%s3884_s16 + $0x36] sm:$0xff] }
  0x13   : > { %v442_v12 = vsel %vm48_vm0, %v2994_v8, 0  ;;  %v434_v15 = vld [vmem:[%s3892_s19 + $0x8] sm:$0xff]  ;;  %v2996_v18 = vld [vmem:[%s4362_s4 + $0x10] sm:$0x3]  ;;  %v3110_v20 = vld [vmem:[%s4362_s4 + $0x40] sm:$0x3] }
  0x14   : > { %v3103_v16 = vld [vmem:[%s3884_s16 + $0x2e] sm:$0xff]  ;;  %v435_v19 = vpack.c.bf16 %v434_v15, %v433_v14  ;;  %v497_v22 = vsel %vm48_vm0, %v2996_v18, 0  ;;  %v3109_v27 = vld [vmem:[%s3860_s8 + $0x38] sm:$0xff]  ;;  %v3115_v30 = vld [vmem:[%s4362_s4 + $0x42] sm:$0x3] }
  0x15   : > { %3296 = vmatmul.mubr.msk.bf16.vlgmr.msra.gmra.mrb[0].mxu1 %vm44_vm2, %v98_v21  ;;  %v1769_v21 = vpack.c.bf16 %v3104_v17, %v3103_v16  ;;  %v3108_v26 = vld [vmem:[%s3860_s8 + $0x30] sm:$0xff]  ;;  %v3114_v37 = vld [vmem:[%s3884_s16 + $0x38] sm:$0xff]  ;;  %v3120_v40 = vld [vmem:[%s4362_s4 + $0x44] sm:$0x3] }
  0x16   : > { %3440 = vmatmul.mubr.msk.bf16.vlgmr.msra.gmra.mrb[0].mxu0 %vm44_vm2, %v1434_v23  ;;  %3300 = vmatpush3.bf16.msra.mxu1 %v163_v24  ;;  %v1833_v23 = vsel %vm48_vm0, %v3110_v20, 0  ;;  %v488_v24 = vld [vmem:[%s3865_s11] sm:$0xff]  ;;  %v3001_v28 = vld [vmem:[%s4362_s4 + $0x12] sm:$0x3]  ;;  %v3006_v38 = vld [vmem:[%s4362_s4 + $0x14] sm:$0x3] }
  0x17   : > { %3444 = vmatpush3.bf16.msra.mxu0 %v1496_v25  ;;  %3301 = vmatprep.mubr.msk.bf16.mxu1 %vm3792_vm1, %v3791_v3  ;;  %v489_v25 = vld [vmem:[%s3865_s11 + $0x8] sm:$0xff]  ;;  %v552_v32 = vsel %vm48_vm0, %v3001_v28, 0  ;;  %v3113_v36 = vld [vmem:[%s3884_s16 + $0x30] sm:$0xff]  ;;  %v607_v42 = vsel %vm48_vm0, %v3006_v38, 0  ;;  %v3119_v47 = vld [vmem:[%s3860_s8 + $0x3a] sm:$0xff] }
  0x18   : > { %3445 = vmatprep.mubr.msk.bf16.mxu0 %vm3792_vm1, %v3791_v3  ;;  %3449 = vmatprep.subr.bf16.mxu0 %v3791_v3  ;;  %v490_v29 = vpack.c.bf16 %v489_v25, %v488_v24  ;;  %v3118_v46 = vld [vmem:[%s3860_s8 + $0x32] sm:$0xff]  ;;  %v3124_v50 = vld [vmem:[%s4362_s4 + $0x46] sm:$0x3]  ;;  %v3128_v60 = vld [vmem:[%s4362_s4 + $0x48] sm:$0x3] }
  0x19   : > { %3305 = vmatprep.subr.bf16.mxu1 %v3791_v3  ;;  %v3011_v48 = vld [vmem:[%s4362_s4 + $0x16] sm:$0x3]  ;;  %v3122_v56 = vld [vmem:[%s3892_s19 + $0x2c] sm:$0xff]  ;;  %v3016_v58 = vld [vmem:[%s4362_s4 + $0x18] sm:$0x3] }
  0x1a   : > { %v662_v52 = vsel %vm48_vm0, %v3011_v48, 0  ;;  %v3123_v57 = vld [vmem:[%s3892_s19 + $0x34] sm:$0xff]  ;;  %v717_v62 = vsel %vm48_vm0, %v3016_v58, 0  ;;  %v3126_v4 = vld [vmem:[%s3865_s11 + $0x2c] sm:$0xff]  ;;  %v3133_v8 = vld [vmem:[%s4362_s4 + $0x4a] sm:$0x3] }
  0x1b   : > { %v3127_v5 = vld [vmem:[%s3865_s11 + $0x34] sm:$0xff]  ;;  %v3025_v16 = vld [vmem:[%s4362_s4 + $0x1c] sm:$0x3]  ;;  %v3138_v18 = vld [vmem:[%s4362_s4 + $0x4c] sm:$0x3] }
  0x1c   : > { %v3021_v6 = vld [vmem:[%s4362_s4 + $0x1a] sm:$0x3]  ;;  %v3131_v14 = vld [vmem:[%s3892_s19 + $0x2e] sm:$0xff]  ;;  %v829_v20 = vsel %vm48_vm0, %v3025_v16, 0  ;;  %v3166_v16 = vld [vmem:[%s4362_s4 + $0x58] sm:$0x3] }
  0x1d   : > { %v772_v10 = vsel %vm48_vm0, %v3021_v6, 0  ;;  %v3132_v15 = vld [vmem:[%s3892_s19 + $0x36] sm:$0xff]  ;;  %v3136_v24 = vld [vmem:[%s3865_s11 + $0x2e] sm:$0xff] }
  0x1e   : > { %v3137_v25 = vld [vmem:[%s3865_s11 + $0x36] sm:$0xff]  ;;  %v3143_v28 = vld [vmem:[%s4362_s4 + $0x4e] sm:$0x3]  ;;  %v3148_v38 = vld [vmem:[%s4362_s4 + $0x50] sm:$0x3] }
  0x1f   : > { %v3153_v48 = vld [vmem:[%s4362_s4 + $0x52] sm:$0x3]  ;;  %v3157_v58 = vld [vmem:[%s4362_s4 + $0x54] sm:$0x3]  ;;  %v3161_v6 = vld [vmem:[%s4362_s4 + $0x56] sm:$0x3] }
  0x21   : > { %3302 = vmatmul.mubr.msk.bf16.vlgmr.msra.gmra.mrb[0].mxu1 %vm44_vm2, %v156_v31  ;;  %v1826_v31 = vpack.c.bf16 %v3109_v27, %v3108_v26  ;;  %v3029_v26 = vld [vmem:[%s4362_s4 + $0x1e] sm:$0x3] }
  0x22   : > { %3446 = vmatmul.mubr.msk.bf16.vlgmr.msra.gmra.mrb[0].mxu0 %vm44_vm2, %v1489_v33  ;;  %3306 = vmatpush3.bf16.msra.mxu1 %v218_v34  ;;  %v1888_v33 = vsel %vm48_vm0, %v3115_v30, 0  ;;  %v2999_v34 = vld [vmem:[%s3892_s19 + $0x2] sm:$0xff]  ;;  %v884_v30 = vsel %vm48_vm0, %v3029_v26, 0  ;;  %v3171_v26 = vld [vmem:[%s4362_s4 + $0x5a] sm:$0x3] }
  0x23   : > { %3450 = vmatpush3.bf16.msra.mxu0 %v1551_v35  ;;  %3307 = vmatprep.mubr.msk.bf16.mxu1 %vm3792_vm1, %v3791_v3  ;;  %v3000_v35 = vld [vmem:[%s3892_s19 + $0xa] sm:$0xff] }
  0x24   : > { %3451 = vmatprep.mubr.msk.bf16.mxu0 %vm3792_vm1, %v3791_v3  ;;  %3455 = vmatprep.subr.bf16.mxu0 %v3791_v3  ;;  %v545_v39 = vpack.c.bf16 %v3000_v35, %v2999_v34  ;;  %v3141_v34 = vld [vmem:[%s3892_s19 + $0x30] sm:$0xff]  ;;  %v3142_v35 = vld [vmem:[%s3892_s19 + $0x38] sm:$0xff] }
  0x25   : > { %3311 = vmatprep.subr.bf16.mxu1 %v3791_v3 }
  0x2d   : > { %3308 = vmatmul.mubr.msk.bf16.vlgmr.msra.gmra.mrb[0].mxu1 %vm44_vm2, %v211_v41  ;;  %v1881_v41 = vpack.c.bf16 %v3114_v37, %v3113_v36  ;;  %v3034_v36 = vld [vmem:[%s4362_s4 + $0x20] sm:$0x3] }
  0x2e   : > { %3452 = vmatmul.mubr.msk.bf16.vlgmr.msra.gmra.mrb[0].mxu0 %vm44_vm2, %v1544_v43  ;;  %3312 = vmatpush3.bf16.msra.mxu1 %v275_v44  ;;  %v1945_v43 = vsel %vm48_vm0, %v3120_v40, 0  ;;  %v3004_v44 = vld [vmem:[%s3865_s11 + $0x2] sm:$0xff]  ;;  %v942_v40 = vsel %vm48_vm0, %v3034_v36, 0  ;;  %v3176_v36 = vld [vmem:[%s4362_s4 + $0x5c] sm:$0x3] }
  0x2f   : > { %3456 = vmatpush3.bf16.msra.mxu0 %v1608_v45  ;;  %3313 = vmatprep.mubr.msk.bf16.mxu1 %vm3792_vm1, %v3791_v3  ;;  %v3005_v45 = vld [vmem:[%s3865_s11 + $0xa] sm:$0xff] }
  0x30   : > { %3457 = vmatprep.mubr.msk.bf16.mxu0 %vm3792_vm1, %v3791_v3  ;;  %3461 = vmatprep.subr.bf16.mxu0 %v3791_v3  ;;  %v600_v49 = vpack.c.bf16 %v3005_v45, %v3004_v44  ;;  %v3146_v44 = vld [vmem:[%s3865_s11 + $0x30] sm:$0xff]  ;;  %v3147_v45 = vld [vmem:[%s3865_s11 + $0x38] sm:$0xff] }
  0x31   : > { %3317 = vmatprep.subr.bf16.mxu1 %v3791_v3 }
  0x39   : > { %3314 = vmatmul.mubr.msk.bf16.vlgmr.msra.gmra.mrb[0].mxu1 %vm44_vm2, %v268_v51  ;;  %v1938_v51 = vpack.c.bf16 %v3119_v47, %v3118_v46  ;;  %v3039_v46 = vld [vmem:[%s4362_s4 + $0x22] sm:$0x3] }
  0x3a   : > { %3458 = vmatmul.mubr.msk.bf16.vlgmr.msra.gmra.mrb[0].mxu0 %vm44_vm2, %v1601_v53  ;;  %3318 = vmatpush3.bf16.msra.mxu1 %v330_v54  ;;  %v2000_v53 = vsel %vm48_vm0, %v3124_v50, 0  ;;  %v3009_v54 = vld [vmem:[%s3892_s19 + $0x4] sm:$0xff]  ;;  %v997_v50 = vsel %vm48_vm0, %v3039_v46, 0  ;;  %v3181_v46 = vld [vmem:[%s4362_s4 + $0x5e] sm:$0x3] }
  0x3b   : > { %3462 = vmatpush3.bf16.msra.mxu0 %v1663_v55  ;;  %3319 = vmatprep.mubr.msk.bf16.mxu1 %vm3792_vm1, %v3791_v3  ;;  %v3010_v55 = vld [vmem:[%s3892_s19 + $0xc] sm:$0xff] }
  0x3c   : > { %3463 = vmatprep.mubr.msk.bf16.mxu0 %vm3792_vm1, %v3791_v3  ;;  %3467 = vmatprep.subr.bf16.mxu0 %v3791_v3  ;;  %v655_v59 = vpack.c.bf16 %v3010_v55, %v3009_v54  ;;  %v3151_v54 = vld [vmem:[%s3892_s19 + $0x32] sm:$0xff]  ;;  %v3152_v55 = vld [vmem:[%s3892_s19 + $0x3a] sm:$0xff] }
  0x3d   : > { %3323 = vmatprep.subr.bf16.mxu1 %v3791_v3 }
  0x45   : > { %3320 = vmatmul.mubr.msk.bf16.vlgmr.msra.gmra.mrb[0].mxu1 %vm44_vm2, %v323_v61  ;;  %v1993_v61 = vpack.c.bf16 %v3123_v57, %v3122_v56  ;;  %v3044_v56 = vld [vmem:[%s4362_s4 + $0x24] sm:$0x3] }
  0x46   : > { %3464 = vmatmul.mubr.msk.bf16.vlgmr.msra.gmra.mrb[0].mxu0 %vm44_vm2, %v1656_v63  ;;  %3324 = vmatpush3.bf16.msra.mxu1 %v387_v1  ;;  %v2055_v63 = vsel %vm48_vm0, %v3128_v60, 0  ;;  %v3014_v1 = vld [vmem:[%s3865_s11 + $0x4] sm:$0xff]  ;;  %v1054_v60 = vsel %vm48_vm0, %v3044_v56, 0 }
  0x47   : > { %3468 = vmatpush3.bf16.msra.mxu0 %v1721_v2  ;;  %3325 = vmatprep.mubr.msk.bf16.mxu1 %vm3792_vm1, %v3791_v3  ;;  %v3015_v2 = vld [vmem:[%s3865_s11 + $0xc] sm:$0xff] }
  0x48   : > { %3469 = vmatprep.mubr.msk.bf16.mxu0 %vm3792_vm1, %v3791_v3  ;;  %3473 = vmatprep.subr.bf16.mxu0 %v3791_v3  ;;  %v710_v7 = vpack.c.bf16 %v3015_v2, %v3014_v1  ;;  %v3155_v1 = vld [vmem:[%s3860_s8 + $0x42] sm:$0xff]  ;;  %v3156_v2 = vld [vmem:[%s3860_s8 + $0x4a] sm:$0xff] }
  0x49   : > { %3329 = vmatprep.subr.bf16.mxu1 %v3791_v3 }
  0x51   : > { %3326 = vmatmul.mubr.msk.bf16.vlgmr.msra.gmra.mrb[0].mxu1 %vm44_vm2, %v380_v9  ;;  %v2048_v9 = vpack.c.bf16 %v3127_v5, %v3126_v4  ;;  %v3049_v4 = vld [vmem:[%s4362_s4 + $0x26] sm:$0x3] }
  0x52   : > { %3470 = vmatmul.mubr.msk.bf16.vlgmr.msra.gmra.mrb[0].mxu0 %vm44_vm2, %v1714_v11  ;;  %3330 = vmatpush3.bf16.msra.mxu1 %v442_v12  ;;  %v2110_v11 = vsel %vm48_vm0, %v3133_v8, 0  ;;  %v3019_v12 = vld [vmem:[%s3892_s19 + $0x6] sm:$0xff]  ;;  %v1109_v8 = vsel %vm48_vm0, %v3049_v4, 0 }
  0x53   : > { %3474 = vmatpush3.bf16.msra.mxu0 %v1776_v13  ;;  %3331 = vmatprep.mubr.msk.bf16.mxu1 %vm3792_vm1, %v3791_v3  ;;  %v3020_v13 = vld [vmem:[%s3892_s19 + $0xe] sm:$0xff] }
  0x54   : > { %3475 = vmatprep.mubr.msk.bf16.mxu0 %vm3792_vm1, %v3791_v3  ;;  %3479 = vmatprep.subr.bf16.mxu0 %v3791_v3  ;;  %v765_v17 = vpack.c.bf16 %v3020_v13, %v3019_v12  ;;  %v3159_v12 = vld [vmem:[%s3884_s16 + $0x42] sm:$0xff]  ;;  %v3160_v13 = vld [vmem:[%s3884_s16 + $0x4a] sm:$0xff] }
  0x55   : > { %3335 = vmatprep.subr.bf16.mxu1 %v3791_v3 }
  0x5d   : > { %3332 = vmatmul.mubr.msk.bf16.vlgmr.msra.gmra.mrb[0].mxu1 %vm44_vm2, %v435_v19  ;;  %v2103_v19 = vpack.c.bf16 %v3132_v15, %v3131_v14  ;;  %v3054_v14 = vld [vmem:[%s4362_s4 + $0x28] sm:$0x3] }
  0x5e   : > { %3476 = vmatmul.mubr.msk.bf16.vlgmr.msra.gmra.mrb[0].mxu0 %vm44_vm2, %v1769_v21  ;;  %3336 = vmatpush3.bf16.msra.mxu1 %v497_v22  ;;  %v2165_v21 = vsel %vm48_vm0, %v3138_v18, 0  ;;  %v3023_v22 = vld [vmem:[%s3860_s8 + $0x16] sm:$0xff]  ;;  %v1166_v18 = vsel %vm48_vm0, %v3054_v14, 0 }
  0x5f   : > { %3480 = vmatpush3.bf16.msra.mxu0 %v1833_v23  ;;  %3337 = vmatprep.mubr.msk.bf16.mxu1 %vm3792_vm1, %v3791_v3  ;;  %v3024_v23 = vld [vmem:[%s3860_s8 + $0x1e] sm:$0xff] }
  0x60   : > { %3481 = vmatprep.mubr.msk.bf16.mxu0 %vm3792_vm1, %v3791_v3  ;;  %3485 = vmatprep.subr.bf16.mxu0 %v3791_v3  ;;  %v822_v27 = vpack.c.bf16 %v3024_v23, %v3023_v22  ;;  %v3164_v22 = vld [vmem:[%s3860_s8 + $0x44] sm:$0xff]  ;;  %v3165_v23 = vld [vmem:[%s3860_s8 + $0x4c] sm:$0xff] }
  0x61   : > { %3341 = vmatprep.subr.bf16.mxu1 %v3791_v3 }
  0x69   : > { %3338 = vmatmul.mubr.msk.bf16.vlgmr.msra.gmra.mrb[0].mxu1 %vm44_vm2, %v490_v29  ;;  %v2158_v29 = vpack.c.bf16 %v3137_v25, %v3136_v24  ;;  %v3058_v24 = vld [vmem:[%s4362_s4 + $0x2a] sm:$0x3] }
  0x6a   : > { %3482 = vmatmul.mubr.msk.bf16.vlgmr.msra.gmra.mrb[0].mxu0 %vm44_vm2, %v1826_v31  ;;  %3342 = vmatpush3.bf16.msra.mxu1 %v552_v32  ;;  %v2220_v31 = vsel %vm48_vm0, %v3143_v28, 0  ;;  %v3027_v32 = vld [vmem:[%s3884_s16 + $0x16] sm:$0xff]  ;;  %v1221_v28 = vsel %vm48_vm0, %v3058_v24, 0 }
  0x6b   : > { %3486 = vmatpush3.bf16.msra.mxu0 %v1888_v33  ;;  %3343 = vmatprep.mubr.msk.bf16.mxu1 %vm3792_vm1, %v3791_v3  ;;  %v3028_v33 = vld [vmem:[%s3884_s16 + $0x1e] sm:$0xff] }
  0x6c   : > { %3487 = vmatprep.mubr.msk.bf16.mxu0 %vm3792_vm1, %v3791_v3  ;;  %3491 = vmatprep.subr.bf16.mxu0 %v3791_v3  ;;  %v877_v37 = vpack.c.bf16 %v3028_v33, %v3027_v32  ;;  %v3169_v32 = vld [vmem:[%s3884_s16 + $0x44] sm:$0xff]  ;;  %v3170_v33 = vld [vmem:[%s3884_s16 + $0x4c] sm:$0xff] }
  0x6d   : > { %3347 = vmatprep.subr.bf16.mxu1 %v3791_v3 }
  0x75   : > { %3344 = vmatmul.mubr.msk.bf16.vlgmr.msra.gmra.mrb[0].mxu1 %vm44_vm2, %v545_v39  ;;  %v2213_v39 = vpack.c.bf16 %v3142_v35, %v3141_v34  ;;  %v3062_v34 = vld [vmem:[%s4362_s4 + $0x2c] sm:$0x3] }
  0x76   : > { %3488 = vmatmul.mubr.msk.bf16.vlgmr.msra.gmra.mrb[0].mxu0 %vm44_vm2, %v1881_v41  ;;  %3348 = vmatpush3.bf16.msra.mxu1 %v607_v42  ;;  %v2275_v41 = vsel %vm48_vm0, %v3148_v38, 0  ;;  %v3032_v42 = vld [vmem:[%s3860_s8 + $0x18] sm:$0xff]  ;;  %v1276_v38 = vsel %vm48_vm0, %v3062_v34, 0 }
  0x77   : > { %3492 = vmatpush3.bf16.msra.mxu0 %v1945_v43  ;;  %3349 = vmatprep.mubr.msk.bf16.mxu1 %vm3792_vm1, %v3791_v3  ;;  %v3033_v43 = vld [vmem:[%s3860_s8 + $0x20] sm:$0xff] }
  0x78   : > { %3493 = vmatprep.mubr.msk.bf16.mxu0 %vm3792_vm1, %v3791_v3  ;;  %3497 = vmatprep.subr.bf16.mxu0 %v3791_v3  ;;  %v935_v47 = vpack.c.bf16 %v3033_v43, %v3032_v42  ;;  %v3174_v42 = vld [vmem:[%s3860_s8 + $0x46] sm:$0xff]  ;;  %v3175_v43 = vld [vmem:[%s3860_s8 + $0x4e] sm:$0xff] }
  0x79   : > { %3353 = vmatprep.subr.bf16.mxu1 %v3791_v3 }
  0x81   : > { %3350 = vmatmul.mubr.msk.bf16.vlgmr.msra.gmra.mrb[0].mxu1 %vm44_vm2, %v600_v49  ;;  %v2268_v49 = vpack.c.bf16 %v3147_v45, %v3146_v44  ;;  %v3067_v44 = vld [vmem:[%s4362_s4 + $0x2e] sm:$0x3] }
  0x82   : > { %3494 = vmatmul.mubr.msk.bf16.vlgmr.msra.gmra.mrb[0].mxu0 %vm44_vm2, %v1938_v51  ;;  %3354 = vmatpush3.bf16.msra.mxu1 %v662_v52  ;;  %v2330_v51 = vsel %vm48_vm0, %v3153_v48, 0  ;;  %v3037_v52 = vld [vmem:[%s3884_s16 + $0x18] sm:$0xff]  ;;  %v1331_v48 = vsel %vm48_vm0, %v3067_v44, 0 }
  0x83   : > { %3498 = vmatpush3.bf16.msra.mxu0 %v2000_v53  ;;  %3355 = vmatprep.mubr.msk.bf16.mxu1 %vm3792_vm1, %v3791_v3  ;;  %v3038_v53 = vld [vmem:[%s3884_s16 + $0x20] sm:$0xff] }
  0x84   : > { %3499 = vmatprep.mubr.msk.bf16.mxu0 %vm3792_vm1, %v3791_v3  ;;  %3503 = vmatprep.subr.bf16.mxu0 %v3791_v3  ;;  %v990_v57 = vpack.c.bf16 %v3038_v53, %v3037_v52  ;;  %v3179_v52 = vld [vmem:[%s3884_s16 + $0x46] sm:$0xff]  ;;  %v3180_v53 = vld [vmem:[%s3884_s16 + $0x4e] sm:$0xff] }
  0x85   : > { %3359 = vmatprep.subr.bf16.mxu1 %v3791_v3  ;;  %v2660_v56 = vpack.c.bf16 %v3180_v53, %v3179_v52 }
  0x8d   : > { %3356 = vmatmul.mubr.msk.bf16.vlgmr.msra.gmra.mrb[0].mxu1 %vm44_vm2, %v655_v59  ;;  %v2323_v59 = vpack.c.bf16 %v3152_v55, %v3151_v54  ;;  %v3186_v55 = vld [vmem:[%s4362_s4 + $0x60] sm:$0x3] }
  0x8e   : > { %3500 = vmatmul.mubr.msk.bf16.vlgmr.msra.gmra.mrb[0].mxu0 %vm44_vm2, %v1993_v61  ;;  %3360 = vmatpush3.bf16.msra.mxu1 %v717_v62  ;;  %v2387_v61 = vsel %vm48_vm0, %v3157_v58, 0  ;;  %v3042_v62 = vld [vmem:[%s3860_s8 + $0x1a] sm:$0xff]  ;;  %v3184_v58 = vld [vmem:[%s3860_s8 + $0x48] sm:$0xff] }
  0x8f   : > { %3504 = vmatpush3.bf16.msra.mxu0 %v2055_v63  ;;  %3361 = vmatprep.mubr.msk.bf16.mxu1 %vm3792_vm1, %v3791_v3  ;;  %v3043_v63 = vld [vmem:[%s3860_s8 + $0x22] sm:$0xff] }
  0x90   : > { %3505 = vmatprep.mubr.msk.bf16.mxu0 %vm3792_vm1, %v3791_v3  ;;  %3509 = vmatprep.subr.bf16.mxu0 %v3791_v3  ;;  %v1047_v5 = vpack.c.bf16 %v3043_v63, %v3042_v62 }
  0x91   : > { %3365 = vmatprep.subr.bf16.mxu1 %v3791_v3 }
  0x99   : > { %3362 = vmatmul.mubr.msk.bf16.vlgmr.msra.gmra.mrb[0].mxu1 %vm44_vm2, %v710_v7  ;;  %v2380_v7 = vpack.c.bf16 %v3156_v2, %v3155_v1 }
  0x9a   : > { %3506 = vmatmul.mubr.msk.bf16.vlgmr.msra.gmra.mrb[0].mxu0 %vm44_vm2, %v2048_v9  ;;  %3366 = vmatpush3.bf16.msra.mxu1 %v772_v10  ;;  %v2442_v9 = vsel %vm48_vm0, %v3161_v6, 0  ;;  %v3047_v10 = vld [vmem:[%s3884_s16 + $0x1a] sm:$0xff] }
  0x9b   : > { %3510 = vmatpush3.bf16.msra.mxu0 %v2110_v11  ;;  %3367 = vmatprep.mubr.msk.bf16.mxu1 %vm3792_vm1, %v3791_v3  ;;  %v3048_v11 = vld [vmem:[%s3884_s16 + $0x22] sm:$0xff]  ;;  %s3188_s16 = sshll.u32 %s3789_s23, 4  ;;  %s30_s23 = sadd.s32 1, %s3789_s23  }
  0x9c   : > { %3511 = vmatprep.mubr.msk.bf16.mxu0 %vm3792_vm1, %v3791_v3  ;;  %3515 = vmatprep.subr.bf16.mxu0 %v3791_v3  ;;  %v1102_v15 = vpack.c.bf16 %v3048_v11, %v3047_v10  ;;  %s2772_s30 = scalar_lea.vmem %s4364_s6, %s3188_s16  ;;  %p27_p0 = scmp.ge.s32.totalorder %s30_s23, 8  }
  0x9d   : > { %3371 = vmatprep.subr.bf16.mxu1 %v3791_v3 }
  0xa5   : > { %3368 = vmatmul.mubr.msk.bf16.vlgmr.msra.gmra.mrb[0].mxu1 %vm44_vm2, %v765_v17  ;;  %v2435_v17 = vpack.c.bf16 %v3160_v13, %v3159_v12 }
  0xa6   : > { %3512 = vmatmul.mubr.msk.bf16.vlgmr.msra.gmra.mrb[0].mxu0 %vm44_vm2, %v2103_v19  ;;  %3372 = vmatpush3.bf16.msra.mxu1 %v829_v20  ;;  %v2500_v19 = vsel %vm48_vm0, %v3166_v16, 0  ;;  %v3052_v20 = vld [vmem:[%s3860_s8 + $0x1c] sm:$0xff] }
  0xa7   : > { %3516 = vmatpush3.bf16.msra.mxu0 %v2165_v21  ;;  %3373 = vmatprep.mubr.msk.bf16.mxu1 %vm3792_vm1, %v3791_v3  ;;  %v3053_v21 = vld [vmem:[%s3860_s8 + $0x24] sm:$0xff] }
  0xa8   : > { %3517 = vmatprep.mubr.msk.bf16.mxu0 %vm3792_vm1, %v3791_v3  ;;  %3521 = vmatprep.subr.bf16.mxu0 %v3791_v3  ;;  %v1159_v25 = vpack.c.bf16 %v3053_v21, %v3052_v20 }
  0xa9   : > { %3377 = vmatprep.subr.bf16.mxu1 %v3791_v3 }
  0xb1   : > { %3374 = vmatmul.mubr.msk.bf16.vlgmr.msra.gmra.mrb[0].mxu1 %vm44_vm2, %v822_v27  ;;  %v2493_v27 = vpack.c.bf16 %v3165_v23, %v3164_v22 }
  0xb2   : > { %3518 = vmatmul.mubr.msk.bf16.vlgmr.msra.gmra.mrb[0].mxu0 %vm44_vm2, %v2158_v29  ;;  %3378 = vmatpush3.bf16.msra.mxu1 %v884_v30  ;;  %v2555_v29 = vsel %vm48_vm0, %v3171_v26, 0  ;;  %v3056_v30 = vld [vmem:[%s3892_s19 + $0x16] sm:$0xff] }
  0xb3   : > { %3522 = vmatpush3.bf16.msra.mxu0 %v2220_v31  ;;  %3379 = vmatprep.mubr.msk.bf16.mxu1 %vm3792_vm1, %v3791_v3  ;;  %v3057_v31 = vld [vmem:[%s3892_s19 + $0x1e] sm:$0xff] }
  0xb4   : > { %3523 = vmatprep.mubr.msk.bf16.mxu0 %vm3792_vm1, %v3791_v3  ;;  %3527 = vmatprep.subr.bf16.mxu0 %v3791_v3  ;;  %v1214_v35 = vpack.c.bf16 %v3057_v31, %v3056_v30 }
  0xb5   : > { %3383 = vmatprep.subr.bf16.mxu1 %v3791_v3 }
  0xbd   : > { %3380 = vmatmul.mubr.msk.bf16.vlgmr.msra.gmra.mrb[0].mxu1 %vm44_vm2, %v877_v37  ;;  %v2548_v37 = vpack.c.bf16 %v3170_v33, %v3169_v32 }
  0xbe   : > { %3524 = vmatmul.mubr.msk.bf16.vlgmr.msra.gmra.mrb[0].mxu0 %vm44_vm2, %v2213_v39  ;;  %3384 = vmatpush3.bf16.msra.mxu1 %v942_v40  ;;  %v2612_v39 = vsel %vm48_vm0, %v3176_v36, 0  ;;  %v3060_v40 = vld [vmem:[%s3865_s11 + $0x16] sm:$0xff] }
  0xbf   : > { %3528 = vmatpush3.bf16.msra.mxu0 %v2275_v41  ;;  %3385 = vmatprep.mubr.msk.bf16.mxu1 %vm3792_vm1, %v3791_v3  ;;  %v3061_v41 = vld [vmem:[%s3865_s11 + $0x1e] sm:$0xff] }
  0xc0   : > { %3529 = vmatprep.mubr.msk.bf16.mxu0 %vm3792_vm1, %v3791_v3  ;;  %3533 = vmatprep.subr.bf16.mxu0 %v3791_v3  ;;  %v1269_v45 = vpack.c.bf16 %v3061_v41, %v3060_v40 }
  0xc1   : > { %3389 = vmatprep.subr.bf16.mxu1 %v3791_v3 }
  0xc9   : > { %3386 = vmatmul.mubr.msk.bf16.vlgmr.msra.gmra.mrb[0].mxu1 %vm44_vm2, %v935_v47  ;;  %v2605_v47 = vpack.c.bf16 %v3175_v43, %v3174_v42 }
  0xca   : > { %3530 = vmatmul.mubr.msk.bf16.vlgmr.msra.gmra.mrb[0].mxu0 %vm44_vm2, %v2268_v49  ;;  %3390 = vmatpush3.bf16.msra.mxu1 %v997_v50  ;;  %v2667_v49 = vsel %vm48_vm0, %v3181_v46, 0  ;;  %v3065_v50 = vld [vmem:[%s3892_s19 + $0x18] sm:$0xff] }
  0xcb   : > { %3534 = vmatpush3.bf16.msra.mxu0 %v2330_v51  ;;  %3391 = vmatprep.mubr.msk.bf16.mxu1 %vm3792_vm1, %v3791_v3  ;;  %v3066_v51 = vld [vmem:[%s3892_s19 + $0x20] sm:$0xff] }
  0xcc   : > { %3535 = vmatprep.mubr.msk.bf16.mxu0 %vm3792_vm1, %v3791_v3  ;;  %3539 = vmatprep.subr.bf16.mxu0 %v3791_v3  ;;  %v1324_v54 = vpack.c.bf16 %v3066_v51, %v3065_v50 }
  0xcd   : > { %3395 = vmatprep.subr.bf16.mxu1 %v3791_v3 }
  0xd5   : > { %3392 = vmatmul.mubr.msk.bf16.vlgmr.msra.gmra.mrb[0].mxu1 %vm44_vm2, %v990_v57  ;;  %v2724_v57 = vsel %vm48_vm0, %v3186_v55, 0 }
  0xd6   : > { %3536 = vmatmul.mubr.msk.bf16.vlgmr.msra.gmra.mrb[0].mxu0 %vm44_vm2, %v2323_v59  ;;  %3396 = vmatpush3.bf16.msra.mxu1 %v1054_v60  ;;  %v3185_v59 = vld [vmem:[%s3860_s8 + $0x50] sm:$0xff] }
  0xd7   : > { %3540 = vmatpush3.bf16.msra.mxu0 %v2387_v61  ;;  %3397 = vmatprep.mubr.msk.bf16.mxu1 %vm3792_vm1, %v3791_v3  ;;  %v2717_v60 = vpack.c.bf16 %v3185_v59, %v3184_v58 }
  0xd8   : > { %3541 = vmatprep.mubr.msk.bf16.mxu0 %vm3792_vm1, %v3791_v3  ;;  %3545 = vmatprep.subr.bf16.mxu0 %v3791_v3 }
  0xd9   : > { %3401 = vmatprep.subr.bf16.mxu1 %v3791_v3 }
  0xe1   : > { %3398 = vmatmul.mubr.msk.bf16.vlgmr.msra.gmra.mrb[0].mxu1 %vm44_vm2, %v1047_v5 }
  0xe2   : > { %3542 = vmatmul.mubr.msk.bf16.vlgmr.msra.gmra.mrb[0].mxu0 %vm44_vm2, %v2380_v7  ;;  %3402 = vmatpush3.bf16.msra.mxu1 %v1109_v8 }
  0xe3   : > { %3546 = vmatpush3.bf16.msra.mxu0 %v2442_v9  ;;  %3403 = vmatprep.mubr.msk.bf16.mxu1 %vm3792_vm1, %v3791_v3 }
  0xe4   : > { %3547 = vmatprep.mubr.msk.bf16.mxu0 %vm3792_vm1, %v3791_v3  ;;  %3551 = vmatprep.subr.bf16.mxu0 %v3791_v3 }
  0xe5   : > { %3407 = vmatprep.subr.bf16.mxu1 %v3791_v3 }
  0xed   : > { %3404 = vmatmul.mubr.msk.bf16.vlgmr.msra.gmra.mrb[0].mxu1 %vm44_vm2, %v1102_v15 }
  0xee   : > { %3548 = vmatmul.mubr.msk.bf16.vlgmr.msra.gmra.mrb[0].mxu0 %vm44_vm2, %v2435_v17  ;;  %3408 = vmatpush3.bf16.msra.mxu1 %v1166_v18 }
  0xef   : > { %3552 = vmatpush3.bf16.msra.mxu0 %v2500_v19  ;;  %3409 = vmatprep.mubr.msk.bf16.mxu1 %vm3792_vm1, %v3791_v3 }
  0xf0   : > { %3553 = vmatprep.mubr.msk.bf16.mxu0 %vm3792_vm1, %v3791_v3  ;;  %3557 = vmatprep.subr.bf16.mxu0 %v3791_v3 }
  0xf1   : > { %3413 = vmatprep.subr.bf16.mxu1 %v3791_v3 }
  0xf9   : > { %3410 = vmatmul.mubr.msk.bf16.vlgmr.msra.gmra.mrb[0].mxu1 %vm44_vm2, %v1159_v25 }
  0xfa   : > { %3554 = vmatmul.mubr.msk.bf16.vlgmr.msra.gmra.mrb[0].mxu0 %vm44_vm2, %v2493_v27  ;;  %3414 = vmatpush3.bf16.msra.mxu1 %v1221_v28 }
  0xfb   : > { %3558 = vmatpush3.bf16.msra.mxu0 %v2555_v29  ;;  %3415 = vmatprep.mubr.msk.bf16.mxu1 %vm3792_vm1, %v3791_v3 }
  0xfc   : > { %3559 = vmatprep.mubr.msk.bf16.mxu0 %vm3792_vm1, %v3791_v3  ;;  %3563 = vmatprep.subr.bf16.mxu0 %v3791_v3 }
  0xfd   : > { %3419 = vmatprep.subr.bf16.mxu1 %v3791_v3 }
 0x105   : > { %3416 = vmatmul.mubr.msk.bf16.vlgmr.msra.gmra.mrb[0].mxu1 %vm44_vm2, %v1214_v35 }
 0x106   : > { %3560 = vmatmul.mubr.msk.bf16.vlgmr.msra.gmra.mrb[0].mxu0 %vm44_vm2, %v2548_v37  ;;  %3420 = vmatpush3.bf16.msra.mxu1 %v1276_v38 }
 0x107   : > { %3564 = vmatpush3.bf16.msra.mxu0 %v2612_v39  ;;  %3421 = vmatprep.mubr.msk.bf16.mxu1 %vm3792_vm1, %v3791_v3 }
 0x108   : > { %3565 = vmatprep.mubr.msk.bf16.mxu0 %vm3792_vm1, %v3791_v3  ;;  %3569 = vmatprep.subr.bf16.mxu0 %v3791_v3 }
 0x109   : > { %3425 = vmatprep.subr.bf16.mxu1 %v3791_v3 }
 0x111   : > { %3422 = vmatmul.mubr.msk.bf16.vlgmr.msra.gmra.mrb[0].mxu1 %vm44_vm2, %v1269_v45 }
 0x112   : > { %3566 = vmatmul.mubr.msk.bf16.vlgmr.msra.gmra.mrb[0].mxu0 %vm44_vm2, %v2605_v47  ;;  %3426 = vmatpush3.bf16.msra.mxu1 %v1331_v48 }
 0x113   : > { %3570 = vmatpush3.bf16.msra.mxu0 %v2667_v49  ;;  %3427 = vmatprep.mubr.msk.bf16.mxu1 %vm3792_vm1, %v3791_v3 }
 0x114   : > { %3571 = vmatprep.mubr.msk.bf16.mxu0 %vm3792_vm1, %v3791_v3  ;;  %3575 = vmatprep.subr.bf16.mxu0 %v3791_v3 }
 0x11d   : > { %3428 = vmatmul.mubr.msk.bf16.vlgmr.msra.gmra.mrb[0].mxu1 %vm44_vm2, %v1324_v54 }
 0x11e   : > { %3572 = vmatmul.mubr.msk.bf16.vlgmr.msra.gmra.mrb[0].mxu0 %vm44_vm2, %v2660_v56 }
 0x11f   : > { %3576 = vmatpush3.bf16.msra.mxu0 %v2724_v57  ;;  %3577 = vmatprep.mubr.msk.bf16.mxu0 %vm3792_vm1, %v3791_v3 }
 0x12a   : > { %3578 = vmatmul.mubr.msk.bf16.vlgmr.msra.gmra.mrb[0].mxu0 %vm44_vm2, %v2717_v60 }
 0x1f0   : > { %v1367_v61 = vpop.f32.mrb[0].mxu1 }
 0x1f1   : > { %v3429_v62 = vpop.f32.mrb[1].mxu1  ;;  %v3581_v2 = vadd.f32 %v3831_v0, %v1367_v61 }
 0x1f2   : > { %v1370_v63 = vpop.f32.mrb[2].mxu1 }
 0x1f3   : > { %v3430_v1 = vpop.f32.mrb[3].mxu1  ;;  %v3583_v5 = vadd.f32 %v3831_v0, %v1370_v63 }
 0x1fd   : > { %v2760_v4 = vpop.f32.mrb[0].mxu0 }
 0x1fe   : > { %v3582_v6 = vadd.f32 %v3581_v2, %v2760_v4  ;;  %v3579_v7 = vpop.f32.mrb[1].mxu0  ;;  %29 = sbr.rel (!%p27_p0) target bundleno = 2 (0x2), region = 149 }
 0x1ff   : > { %v2763_v3 = vpop.f32.mrb[2].mxu0 }
 0x200   : > { %v2769_v8 = vmax.f32 %v3582_v6, 0.0  ;;  %v3584_v9 = vadd.f32 %v3583_v5, %v2763_v3  ;;  %v3580_v10 = vpop.f32.mrb[3].mxu0 }
 0x202   : > { %2774 = vst.msk [vmem:[%s2772_s30] sm:$0xff] %vm2773_vm3, %v2769_v8  ;;  %v2770_v11 = vmax.f32 %v3584_v9, 0.0 }
 0x204   : > { %2775 = vst.msk [vmem:[%s2772_s30 + $0x8] sm:$0xff] %vm2773_vm3, %v2770_v11 }

// kernel: deeplab_resnet_forward.9
= control target key start
LH: loop header
LB: loop body
LE: loop exit
PB: predicated region body
PF: predicated region fallthrough
CT: control target
= control target key end

     0   :  { %vm83_vm0 = vcmask 1043456   ;;  %v3175_v0 = vmov 0.0   ;;  %vm3176_vm1 = vmmov 0   ;;  %vm67_vm2 = vcmask 64512   ;;  %s3781_s2 = inlined_call_operand.vmem [shape: bf16[8,4], index: 2, kind: input, shape index: {}]   ;;  %s3782_s0 = inlined_call_operand.vmem [shape: f32[72,8], index: 0, kind: input, shape index: {}]   ;;  %s3783_s1 = inlined_call_operand.vmem [shape: f32[72,1], index: 1, kind: input, shape index: {}]   ;;  %s3784_s4 = inlined_call_operand.vmem [shape: bf16[9,4,4], index: 4, kind: input, shape index: {}]   ;;  %s3785_s6 = inlined_call_operand.vmem [shape: bf16[4,16], index: 6, kind: input, shape index: {}]   ;;  %s3786_s3 = inlined_call_operand.vmem [shape: f32[1,4], index: 3, kind: input, shape index: {}]   ;;  %s3787_s5 = inlined_call_operand.vmem [shape: f32[1,4], index: 5, kind: input, shape index: {}]   ;;  %s3788_s8 = inlined_call_operand.vmem [shape: bf16[8,16], index: 8, kind: input, shape index: {}]   ;;  %s3789_s7 = inlined_call_operand.vmem [shape: f32[1,16], index: 7, kind: input, shape index: {}]   ;;  %s3790_s9 = inlined_call_operand.vmem [shape: f32[1,16], index: 9, kind: input, shape index: {}]   ;;  %s3791_s10 = inlined_call_operand.vmem [shape: f32[32,16], index: 10, kind: output, shape index: {}]  }
   0x1   :  { %2726 = vmatprep.subr.bf16.mxu0 %v3175_v0  ;;  %3012 = vmatprep.subr.bf16.mxu1 %v3175_v0  ;;  %v59_v1 = vld [vmem:[%s3781_s2] sm:$0xf]  ;;  %v46_v3 = vld [vmem:[%s3782_s0 + $0x8] sm:$0xff]  ;;  %v51_v6 = vld [vmem:[%s3782_s0 + $0x30] sm:$0xff]  ;;  %v3177_v9 = vmov 0   ;;  %vm246_vm3 = vcmask 1041408  }
   0x2   :  { %v45_v2 = vld [vmem:[%s3782_s0] sm:$0xff]  ;;  %v85_v4 = vsel %vm83_vm0, %v59_v1, 0  ;;  %2728 = vmatprep.mubr.msk.bf16.mxu0 %vm3176_vm1, %v3175_v0  ;;  %2740 = vmatprep.mubr.msk.bf16.mxu1 %vm3176_vm1, %v3175_v0  ;;  %v52_v7 = vld [vmem:[%s3782_s0 + $0x38] sm:$0xff]  ;;  %v38_v11 = vld [vmem:[%s3783_s1 + $0x10] sm:$0xff]  ;;  %vm222_vm4 = vcmask 31744   ;;  %vm813_vm5 = vcmask 130048  }
   0x3   :  { %v54_v5 = vpack.c.bf16 %v46_v3, %v45_v2  ;;  %2727 = vmatpush3.bf16.msra.mxu0 %v85_v4  ;;  %3013 = vmatpush3.bf16.msra.mxu1 %v85_v4  ;;  %v57_v8 = vpack.c.bf16 %v52_v7, %v51_v6  ;;  %v36_v10 = vld [vmem:[%s3783_s1] sm:$0xff]  ;;  %v37_v12 = vld [vmem:[%s3783_s1 + $0x8] sm:$0xff]  ;;  %v47_v13 = vld [vmem:[%s3782_s0 + $0x10] sm:$0xff] }
   0x4   :  { %3173 = vset.pattern.permute.xlu0 %v3177_v9  ;;  %3174 = vset.pattern.permute.xlu1 %v3177_v9  ;;  %v48_v14 = vld [vmem:[%s3782_s0 + $0x18] sm:$0xff]  ;;  %v53_v15 = vld [vmem:[%s3782_s0 + $0x40] sm:$0xff]  ;;  %v41_v20 = vld [vmem:[%s3783_s1 + $0x28] sm:$0xff] }
   0x5   :  { %170 = vperm.xlu0 %3173, %v36_v10   ;;  %2748 = vmatprep.subr.bf16.mxu1 %v3175_v0  ;;  %v39_v16 = vld [vmem:[%s3783_s1 + $0x18] sm:$0xff]  ;;  %v55_v17 = vpack.c.bf16 %v48_v14, %v47_v13  ;;  %v58_v18 = vpack.c.bf16 %v53_v15, %v53_v15  ;;  %v40_v19 = vld [vmem:[%s3783_s1 + $0x20] sm:$0xff]  ;;  %v42_v21 = vld [vmem:[%s3783_s1 + $0x30] sm:$0xff] }
   0x6   :  { %2729 = vmatmul.mubr.msk.bf16.vlgmr.msra.gmra.mrb[0].mxu0 %vm67_vm2, %v54_v5  ;;  %2741 = vmatmul.mubr.msk.bf16.vlgmr.msra.gmra.mrb[0].mxu1 %vm67_vm2, %v57_v8  ;;  %v49_v22 = vld [vmem:[%s3782_s0 + $0x20] sm:$0xff]  ;;  %v50_v23 = vld [vmem:[%s3782_s0 + $0x28] sm:$0xff]  ;;  %v43_v24 = vld [vmem:[%s3783_s1 + $0x38] sm:$0xff] }
   0x7   :  { %2732 = vmatprep.mubr.msk.bf16.mxu0 %vm3176_vm1, %v3175_v0  ;;  %2744 = vmatprep.mubr.msk.bf16.mxu1 %vm3176_vm1, %v3175_v0  ;;  %v56_v25 = vpack.c.bf16 %v50_v23, %v49_v22  ;;  %v44_v26 = vld [vmem:[%s3783_s1 + $0x40] sm:$0xff] }
   0x8   :  { %180 = vperm.xlu1 %3174, %v38_v11   ;;  %2802 = vmatprep.subr.bf16.mxu0 %v3175_v0  ;;  %v242_v27 = vld [vmem:[%s3784_s4] sm:$0x3]  ;;  %v2546_v11 = vld [vmem:[%s3784_s4 + $0x2] sm:$0x3] }
   0x9   :  { %175 = vperm.xlu0 %3173, %v37_v12   ;;  %v248_v28 = vsel %vm246_vm3, %v242_v27, 0  ;;  %v701_v31 = vld [vmem:[%s3785_s6] sm:$0x3] }
   0xa   :  { %2749 = vmatpush3.bf16.msra.mxu1 %v248_v28  ;;  %v713_v32 = vsel %vm246_vm3, %v701_v31, 0  ;;  %v2538_v36 = vld [vmem:[%s3786_s3] ss:$0 sm:$0xff] }
   0xb   :  { %2754 = vmatprep.subr.bf16.mxu1 %v3175_v0  ;;  %2803 = vmatpush3.bf16.msra.mxu0 %v713_v32 }
   0xc   :  { %185 = vperm.xlu1 %3174, %v39_v16   ;;  %2808 = vmatprep.subr.bf16.mxu0 %v3175_v0 }
   0xd   :  { %190 = vperm.xlu0 %3173, %v40_v19  }
   0xe   :  { %2733 = vmatmul.mubr.msk.bf16.gmra.mrb[4].mxu0 %vm67_vm2, %v55_v17  ;;  %2745 = vmatmul.mubr.msk.bf16.gmra.mrb[4].mxu1 %vm67_vm2, %v58_v18  ;;  %v299_v18 = vsel %vm246_vm3, %v2546_v11, 0 }
   0xf   :  { %2736 = vmatprep.mubr.msk.bf16.mxu0 %vm3176_vm1, %v3175_v0  ;;  %2750 = vmatprep.mubr.msk.bf16.mxu1 %vm3176_vm1, %v3175_v0 }
  0x10   :  { %195 = vperm.xlu1 %3174, %v41_v20  }
  0x11   :  { %200 = vperm.xlu0 %3173, %v42_v21  }
  0x14   :  { %205 = vperm.xlu1 %3174, %v43_v24  }
  0x15   :  { %210 = vperm.xlu0 %3173, %v44_v26  }
  0x16   :  { %2737 = vmatmul.mubr.msk.bf16.gmra.mrb[8].mxu0 %vm67_vm2, %v56_v25 }
  0x17   :  { %2804 = vmatprep.mubr.msk.bf16.mxu0 %vm3176_vm1, %v3175_v0 }
  0x84   :  { %v171_v29 = vpop.permute.xlu0 %170 }
  0x87   :  { %v181_v30 = vpop.permute.xlu1 %180 }
  0x88   :  { %v176_v33 = vpop.permute.xlu0 %175 }
  0x8b   :  { %v186_v34 = vpop.permute.xlu1 %185 }
  0x8c   :  { %v3324_v35 = vpop.permute.xlu0 %190 }
  0x8f   :  { %v3329_v37 = vpop.permute.xlu1 %195 }
  0x90   :  { %v201_v52 = vpop.permute.xlu0 %200 }
  0x93   :  { %v206_v53 = vpop.permute.xlu1 %205 }
  0x94   :  { %v211_v10 = vpop.permute.xlu0 %210 }
  0xd9   :  { %v121_v38 = vpop.f32.mrb[0].mxu0  ;;  %v145_v39 = vpop.f32.mrb[0].mxu1 }
  0xda   :  { %v122_v40 = vadd.f32 %v2538_v36, %v121_v38  ;;  %v146_v41 = vadd.f32 %v2538_v36, %v145_v39  ;;  %v2730_v42 = vpop.f32.mrb[1].mxu0  ;;  %v2742_v43 = vpop.f32.mrb[1].mxu1  ;;  %v2552_v38 = vld [vmem:[%s3784_s4 + $0x8] sm:$0x3] }
  0xdb   :  { %v124_v44 = vpop.f32.mrb[2].mxu0  ;;  %v148_v45 = vpop.f32.mrb[2].mxu1  ;;  %v2554_v42 = vld [vmem:[%s3784_s4 + $0xa] sm:$0x3] }
  0xdc   :  { %v159_v46 = vmax.f32 %v122_v40, 0.0  ;;  %v165_v47 = vmax.f32 %v146_v41, 0.0  ;;  %v125_v48 = vadd.f32 %v2538_v36, %v124_v44  ;;  %v149_v49 = vadd.f32 %v2538_v36, %v148_v45  ;;  %v2731_v50 = vpop.f32.mrb[3].mxu0  ;;  %v2743_v51 = vpop.f32.mrb[3].mxu1 }
  0xdd   :  { %v452_v40 = vsel %vm246_vm3, %v2552_v38, 0  ;;  %v503_v44 = vsel %vm246_vm3, %v2554_v42, 0  ;;  %v2558_v50 = vld [vmem:[%s3784_s4 + $0xe] sm:$0x3] }
  0xde   :  { %v213_v54 = vmul.f32 %v171_v29, %v159_v46  ;;  %v219_v55 = vmul.f32 %v201_v52, %v165_v47  ;;  %v160_v56 = vmax.f32 %v125_v48, 0.0  ;;  %v166_v57 = vmax.f32 %v149_v49, 0.0  ;;  %v2556_v46 = vld [vmem:[%s3784_s4 + $0xc] sm:$0x3] }
  0xdf   :  { %v554_v48 = vsel %vm246_vm3, %v2556_v46, 0  ;;  %v605_v52 = vsel %vm246_vm3, %v2558_v50, 0 }
  0xe0   :  { %223 = vst.msk [vmem:[#allocation2] sm:$0xff] %vm222_vm4, %v213_v54  ;;  %229 = vst.msk [vmem:[#allocation2 + $0x30] sm:$0xff] %vm222_vm4, %v219_v55  ;;  %v214_v58 = vmul.f32 %v176_v33, %v160_v56  ;;  %v220_v59 = vmul.f32 %v206_v53, %v166_v57  ;;  %v2560_v54 = vld [vmem:[%s3784_s4 + $0x10] sm:$0x3] }
  0xe1   :  { %v129_v60 = vpop.f32.mrb[4].mxu0  ;;  %v153_v61 = vpop.f32.mrb[4].mxu1  ;;  %v656_v56 = vsel %vm246_vm3, %v2560_v54, 0  ;;  %v1398_v54 = vld [vmem:[%s3784_s4] sm:$0x3] }
  0xe2   :  { %224 = vst.msk [vmem:[#allocation2 + $0x8] sm:$0xff] %vm222_vm4, %v214_v58  ;;  %230 = vst.msk [vmem:[#allocation2 + $0x38] sm:$0xff] %vm222_vm4, %v220_v59  ;;  %v130_v62 = vadd.f32 %v2538_v36, %v129_v60  ;;  %v154_v63 = vadd.f32 %v2538_v36, %v153_v61  ;;  %v2734_v1 = vpop.f32.mrb[5].mxu0  ;;  %v2746_v2 = vpop.f32.mrb[5].mxu1  ;;  %v3430_v59 = vld [vmem:[%s3787_s5] ss:$0 sm:$0xff] }
  0xe3   :  { %v132_v3 = vpop.f32.mrb[6].mxu0  ;;  %v156_v4 = vpop.f32.mrb[6].mxu1  ;;  %v757_v1 = vld [vmem:[%s3788_s8] sm:$0xf] }
  0xe4   :  { %v161_v5 = vmax.f32 %v130_v62, 0.0  ;;  %v167_v6 = vmax.f32 %v154_v63, 0.0  ;;  %v133_v7 = vadd.f32 %v2538_v36, %v132_v3  ;;  %v2735_v8 = vpop.f32.mrb[7].mxu0  ;;  %v2747_v9 = vpop.f32.mrb[7].mxu1 }
  0xe6   :  { %v215_v12 = vmul.f32 %v181_v30, %v161_v5  ;;  %v221_v13 = vmul.f32 %v211_v10, %v167_v6  ;;  %v162_v14 = vmax.f32 %v133_v7, 0.0  ;;  %v2548_v30 = vld [vmem:[%s3784_s4 + $0x4] sm:$0x3]  ;;  %v769_v5 = vsel %vm83_vm0, %v757_v1, 0  ;;  %v755_v6 = vld [vmem:[%s3782_s0 + $0xe] sm:$0xff] }
  0xe7   :  { %v240_v15 = vld [vmem:[#allocation2] sm:$0xff]  ;;  %v350_v32 = vsel %vm246_vm3, %v2548_v30, 0  ;;  %v756_v8 = vpack.c.bf16 %v755_v6, %v755_v6  ;;  %v1696_v6 = vld [vmem:[#allocation2 + $0x30] sm:$0xff] }
  0xe8   :  { %225 = vst.msk [vmem:[#allocation2 + $0x10] sm:$0xff] %vm222_vm4, %v215_v12  ;;  %231 = vst.msk [vmem:[#allocation2 + $0x40] sm:$0xff] %vm222_vm4, %v221_v13  ;;  %v216_v16 = vmul.f32 %v186_v34, %v162_v14  ;;  %v241_v17 = vpack.c.bf16 %v240_v15, %v240_v15  ;;  %v2550_v34 = vld [vmem:[%s3784_s4 + $0x6] sm:$0x3]  ;;  %v825_v7 = vld [vmem:[%s3784_s4] sm:$0x3] }
  0xe9   :  { %v137_v19 = vpop.f32.mrb[8].mxu0  ;;  %v291_v29 = vld [vmem:[#allocation2 + $0x2] sm:$0xff]  ;;  %v830_v9 = vsel %vm246_vm3, %v825_v7, 0  ;;  %v2602_v7 = vld [vmem:[%s3784_s4 + $0xe] sm:$0x3] }
  0xea   :  { %226 = vst.msk [vmem:[#allocation2 + $0x18] sm:$0xff] %vm222_vm4, %v216_v16  ;;  %v138_v20 = vadd.f32 %v2538_v36, %v137_v19  ;;  %v2738_v21 = vpop.f32.mrb[9].mxu0  ;;  %2751 = vmatmul.mubr.msk.bf16.vlgmr.msra.gmra.mrb[8].mxu1 %vm222_vm4, %v241_v17  ;;  %v292_v31 = vpack.c.bf16 %v291_v29, %v291_v29  ;;  %v342_v33 = vld [vmem:[#allocation2 + $0x4] sm:$0xff]  ;;  %v2568_v10 = vld [vmem:[%s3784_s4 + $0x2] sm:$0x3] }
  0xeb   :  { %2755 = vmatpush3.bf16.msra.mxu1 %v299_v18  ;;  %v140_v22 = vpop.f32.mrb[10].mxu0  ;;  %2756 = vmatprep.mubr.msk.bf16.mxu1 %vm3176_vm1, %v3175_v0  ;;  %v880_v11 = vsel %vm246_vm3, %v2568_v10, 0  ;;  %v2570_v12 = vld [vmem:[%s3784_s4 + $0x4] sm:$0x3]  ;;  %v2572_v14 = vld [vmem:[%s3784_s4 + $0x6] sm:$0x3] }
  0xec   :  { %v163_v23 = vmax.f32 %v138_v20, 0.0  ;;  %v141_v24 = vadd.f32 %v2538_v36, %v140_v22  ;;  %2760 = vmatprep.subr.bf16.mxu1 %v3175_v0  ;;  %v2739_v25 = vpop.f32.mrb[11].mxu0  ;;  %v401_v36 = vsel %vm246_vm3, %v2550_v34, 0  ;;  %v930_v13 = vsel %vm246_vm3, %v2570_v12, 0  ;;  %v2574_v16 = vld [vmem:[%s3784_s4 + $0x8] sm:$0x3] }
  0xed   :  { %v980_v15 = vsel %vm246_vm3, %v2572_v14, 0  ;;  %v1030_v17 = vsel %vm246_vm3, %v2574_v16, 0  ;;  %v2576_v18 = vld [vmem:[%s3784_s4 + $0xa] sm:$0x3]  ;;  %v2578_v20 = vld [vmem:[%s3784_s4 + $0xc] sm:$0x3] }
  0xee   :  { %v217_v26 = vmul.f32 %v3324_v35, %v163_v23  ;;  %v164_v27 = vmax.f32 %v141_v24, 0.0  ;;  %v343_v35 = vpack.c.bf16 %v342_v33, %v342_v33  ;;  %v1080_v19 = vsel %vm246_vm3, %v2576_v18, 0  ;;  %v2580_v23 = vld [vmem:[%s3784_s4 + $0xe] sm:$0x3]  ;;  %v2562_v34 = vld [vmem:[%s3789_s7] ss:$0 sm:$0xff] }
  0xef   :  { %v444_v41 = vld [vmem:[#allocation2 + $0xe] sm:$0xff]  ;;  %v1130_v21 = vsel %vm246_vm3, %v2578_v20, 0  ;;  %v1180_v25 = vsel %vm246_vm3, %v2580_v23, 0  ;;  %v1848_v12 = vld [vmem:[%s3785_s6] sm:$0x3] }
  0xf0   :  { %227 = vst.msk [vmem:[#allocation2 + $0x20] sm:$0xff] %vm222_vm4, %v217_v26  ;;  %v218_v28 = vmul.f32 %v3329_v37, %v164_v27  ;;  %v393_v37 = vld [vmem:[#allocation2 + $0xc] sm:$0xff]  ;;  %v3380_v43 = vpack.c.bf16 %v444_v41, %v444_v41  ;;  %v1796_v16 = vld [vmem:[#allocation2 + $0x34] sm:$0xff] }
  0xf1   :  { %v3369_v39 = vpack.c.bf16 %v393_v37, %v393_v37  ;;  %v495_v45 = vld [vmem:[#allocation2 + $0x10] sm:$0xff]  ;;  %v546_v49 = vld [vmem:[#allocation2 + $0x18] sm:$0xff] }
  0xf2   :  { %228 = vst.msk [vmem:[#allocation2 + $0x28] sm:$0xff] %vm222_vm4, %v218_v28  ;;  %v3391_v47 = vpack.c.bf16 %v495_v45, %v495_v45  ;;  %v3402_v51 = vpack.c.bf16 %v546_v49, %v546_v49  ;;  %v2582_v27 = vld [vmem:[%s3784_s4 + $0x10] sm:$0x3]  ;;  %v1275_v28 = vld [vmem:[%s3785_s6] sm:$0x3]  ;;  %v1746_v10 = vld [vmem:[#allocation2 + $0x32] sm:$0xff] }
  0xf3   :  { %v1287_v29 = vsel %vm246_vm3, %v1275_v28, 0  ;;  %v3644_v14 = vpack.c.bf16 %v1746_v10, %v1746_v10  ;;  %v2477_v10 = vld [vmem:[%s3788_s8] sm:$0xf] }
  0xf6   :  { %2757 = vmatmul.mubr.msk.bf16.vlgmr.msra.gmra.mrb[8].mxu1 %vm222_vm4, %v292_v31  ;;  %v1230_v31 = vsel %vm246_vm3, %v2582_v27, 0 }
  0xf7   :  { %2761 = vmatpush3.bf16.msra.mxu1 %v350_v32  ;;  %2762 = vmatprep.mubr.msk.bf16.mxu1 %vm3176_vm1, %v3175_v0  ;;  %v597_v53 = vld [vmem:[#allocation2 + $0x1a] sm:$0xff] }
  0xf8   :  { %2766 = vmatprep.subr.bf16.mxu1 %v3175_v0  ;;  %v3413_v55 = vpack.c.bf16 %v597_v53, %v597_v53  ;;  %v648_v57 = vld [vmem:[#allocation2 + $0x1c] sm:$0xff] }
  0xf9   :  { %v3421_v58 = vpack.c.bf16 %v648_v57, %v648_v57  ;;  %v1123_v22 = vld [vmem:[#allocation2 + $0x24] sm:$0xff]  ;;  %v1329_v53 = vld [vmem:[%s3782_s0 + $0x1a] sm:$0xff]  ;;  %v1403_v57 = vsel %vm246_vm3, %v1398_v54, 0 }
  0xfa   :  { %v3509_v24 = vpack.c.bf16 %v1123_v22, %v1123_v22  ;;  %v1173_v26 = vld [vmem:[#allocation2 + $0x26] sm:$0xff] }
  0xfb   :  { %v3524_v30 = vpack.c.bf16 %v1173_v26, %v1173_v26  ;;  %v1223_v32 = vld [vmem:[#allocation2 + $0x28] sm:$0xff] }
  0xfc   :  { %v3533_v33 = vpack.c.bf16 %v1223_v32, %v1223_v32 }
 0x102   :  { %2763 = vmatmul.mubr.msk.bf16.vlgmr.msra.gmra.mrb[8].mxu1 %vm222_vm4, %v343_v35  ;;  %v2564_v35 = vld [vmem:[%s3790_s9] ss:$0 sm:$0xff] }
 0x103   :  { %2767 = vmatpush3.bf16.msra.mxu1 %v401_v36  ;;  %2768 = vmatprep.mubr.msk.bf16.mxu1 %vm3176_vm1, %v3175_v0  ;;  %v3545_v36 = vadd.f32 %v2564_v35, %v2562_v34 }
 0x104   :  { %2772 = vmatprep.subr.bf16.mxu1 %v3175_v0 }
 0x10e   :  { %2769 = vmatmul.mubr.msk.bf16.vlgmr.msra.gmra.mrb[8].mxu1 %vm222_vm4, %v3369_v39 }
 0x10f   :  { %2773 = vmatpush3.bf16.msra.mxu1 %v452_v40  ;;  %2774 = vmatprep.mubr.msk.bf16.mxu1 %vm3176_vm1, %v3175_v0 }
 0x110   :  { %2778 = vmatprep.subr.bf16.mxu1 %v3175_v0 }
 0x11a   :  { %2775 = vmatmul.mubr.msk.bf16.vlgmr.msra.gmra.mrb[8].mxu1 %vm222_vm4, %v3380_v43 }
 0x11b   :  { %2779 = vmatpush3.bf16.msra.mxu1 %v503_v44  ;;  %2780 = vmatprep.mubr.msk.bf16.mxu1 %vm3176_vm1, %v3175_v0 }
 0x11c   :  { %2784 = vmatprep.subr.bf16.mxu1 %v3175_v0 }
 0x126   :  { %2781 = vmatmul.mubr.msk.bf16.vlgmr.msra.gmra.mrb[8].mxu1 %vm222_vm4, %v3391_v47 }
 0x127   :  { %2785 = vmatpush3.bf16.msra.mxu1 %v554_v48  ;;  %2786 = vmatprep.mubr.msk.bf16.mxu1 %vm3176_vm1, %v3175_v0 }
 0x128   :  { %2790 = vmatprep.subr.bf16.mxu1 %v3175_v0 }
 0x132   :  { %2787 = vmatmul.mubr.msk.bf16.vlgmr.msra.gmra.mrb[8].mxu1 %vm222_vm4, %v3402_v51 }
 0x133   :  { %2791 = vmatpush3.bf16.msra.mxu1 %v605_v52  ;;  %2792 = vmatprep.mubr.msk.bf16.mxu1 %vm3176_vm1, %v3175_v0 }
 0x134   :  { %2796 = vmatprep.subr.bf16.mxu1 %v3175_v0 }
 0x13e   :  { %2793 = vmatmul.mubr.msk.bf16.vlgmr.msra.gmra.mrb[8].mxu1 %vm222_vm4, %v3413_v55 }
 0x13f   :  { %2797 = vmatpush3.bf16.msra.mxu1 %v656_v56  ;;  %2798 = vmatprep.mubr.msk.bf16.mxu1 %vm3176_vm1, %v3175_v0  ;;  %v1330_v56 = vpack.c.bf16 %v1329_v53, %v1329_v53 }
 0x140   :  { %2868 = vmatprep.subr.bf16.mxu1 %v3175_v0 }
 0x14a   :  { %2799 = vmatmul.mubr.msk.bf16.vlgmr.msra.gmra.mrb[8].mxu1 %vm222_vm4, %v3421_v58 }
 0x14b   :  { %2870 = vmatprep.mubr.msk.bf16.mxu1 %vm3176_vm1, %v3175_v0  ;;  %2869 = vmatpush3.bf16.msra.mxu1 %v1287_v29  ;;  %v1904_v29 = vld [vmem:[%s3788_s8] sm:$0xf] }
 0x14c   :  { %2874 = vmatprep.subr.bf16.mxu1 %v3175_v0  ;;  %v1916_v35 = vsel %vm83_vm0, %v1904_v29, 0 }
 0x21d   :  { %v692_v60 = vpop.f32.mrb[8].mxu1 }
 0x21e   :  { %v3014_v61 = vadd.f32 %v3430_v59, %v692_v60  ;;  %v2800_v62 = vpop.f32.mrb[9].mxu1  ;;  %v2590_v60 = vld [vmem:[%s3784_s4 + $0x2] sm:$0x3] }
 0x21f   :  { %v695_v63 = vpop.f32.mrb[10].mxu1  ;;  %v2592_v62 = vld [vmem:[%s3784_s4 + $0x4] sm:$0x3] }
 0x220   :  { %v699_v2 = vmax.f32 %v3014_v61, 0.0  ;;  %v2801_v3 = vpop.f32.mrb[11].mxu1  ;;  %v1453_v61 = vsel %vm246_vm3, %v2590_v60, 0  ;;  %v1503_v63 = vsel %vm246_vm3, %v2592_v62, 0  ;;  %v2421_v60 = vld [vmem:[%s3785_s6] sm:$0x3] }
 0x222   :  { %v700_v4 = vpack.c.bf16 %v699_v2, %v699_v2 }
 0x224   :  { %2805 = vmatmul.mubr.msk.bf16.vlgmr.msra.gmra.mrb[12].mxu0 %vm222_vm4, %v700_v4  ;;  %v2600_v4 = vld [vmem:[%s3784_s4 + $0xc] sm:$0x3] }
 0x225   :  { %2809 = vmatpush3.bf16.msra.mxu0 %v769_v5  ;;  %2810 = vmatprep.mubr.msk.bf16.mxu0 %vm3176_vm1, %v3175_v0  ;;  %v1703_v5 = vsel %vm246_vm3, %v2600_v4, 0 }
 0x226   :  { %2814 = vmatprep.subr.bf16.mxu0 %v3175_v0 }
 0x230   :  { %2811 = vmatmul.mubr.msk.bf16.vlgmr.msra.gmra.mrb[12].mxu0 %vm67_vm2, %v756_v8  ;;  %v3629_v8 = vpack.c.bf16 %v1696_v6, %v1696_v6 }
 0x231   :  { %2815 = vmatpush3.bf16.msra.mxu0 %v830_v9  ;;  %2816 = vmatprep.mubr.msk.bf16.mxu0 %vm3176_vm1, %v3175_v0  ;;  %v1753_v9 = vsel %vm246_vm3, %v2602_v7, 0 }
 0x232   :  { %2820 = vmatprep.subr.bf16.mxu0 %v3175_v0 }
 0x238   :  { %2817 = vmatmul.mubr.msk.bf16.vlgmr.msra.gmra.mrb[16].mxu0 %vm222_vm4, %v3369_v39 }
 0x239   :  { %2821 = vmatpush3.bf16.msra.mxu0 %v880_v11  ;;  %2822 = vmatprep.mubr.msk.bf16.mxu0 %vm3176_vm1, %v3175_v0  ;;  %v2604_v11 = vld [vmem:[%s3784_s4 + $0x10] sm:$0x3] }
 0x23a   :  { %2826 = vmatprep.subr.bf16.mxu0 %v3175_v0 }
 0x244   :  { %2823 = vmatmul.mubr.msk.bf16.vlgmr.msra.gmra.mrb[16].mxu0 %vm222_vm4, %v3380_v43 }
 0x245   :  { %2827 = vmatpush3.bf16.msra.mxu0 %v930_v13  ;;  %2828 = vmatprep.mubr.msk.bf16.mxu0 %vm3176_vm1, %v3175_v0  ;;  %v1860_v13 = vsel %vm246_vm3, %v1848_v12, 0 }
 0x246   :  { %2832 = vmatprep.subr.bf16.mxu0 %v3175_v0 }
 0x250   :  { %2829 = vmatmul.mubr.msk.bf16.vlgmr.msra.gmra.mrb[16].mxu0 %vm222_vm4, %v3391_v47  ;;  %v1331_v47 = vld [vmem:[%s3788_s8] sm:$0xf] }
 0x251   :  { %2833 = vmatpush3.bf16.msra.mxu0 %v980_v15  ;;  %2834 = vmatprep.mubr.msk.bf16.mxu0 %vm3176_vm1, %v3175_v0  ;;  %v1343_v52 = vsel %vm83_vm0, %v1331_v47, 0  ;;  %v1803_v15 = vsel %vm246_vm3, %v2604_v11, 0 }
 0x252   :  { %2838 = vmatprep.subr.bf16.mxu0 %v3175_v0 }
 0x25c   :  { %2835 = vmatmul.mubr.msk.bf16.vlgmr.msra.gmra.mrb[16].mxu0 %vm222_vm4, %v3402_v51 }
 0x25d   :  { %2839 = vmatpush3.bf16.msra.mxu0 %v1030_v17  ;;  %2840 = vmatprep.mubr.msk.bf16.mxu0 %vm3176_vm1, %v3175_v0  ;;  %v3653_v17 = vpack.c.bf16 %v1796_v16, %v1796_v16 }
 0x25e   :  { %2844 = vmatprep.subr.bf16.mxu0 %v3175_v0 }
 0x268   :  { %2841 = vmatmul.mubr.msk.bf16.vlgmr.msra.gmra.mrb[16].mxu0 %vm222_vm4, %v3413_v55 }
 0x269   :  { %2845 = vmatpush3.bf16.msra.mxu0 %v1080_v19  ;;  %2846 = vmatprep.mubr.msk.bf16.mxu0 %vm3176_vm1, %v3175_v0 }
 0x26a   :  { %2850 = vmatprep.subr.bf16.mxu0 %v3175_v0 }
 0x274   :  { %2847 = vmatmul.mubr.msk.bf16.vlgmr.msra.gmra.mrb[16].mxu0 %vm222_vm4, %v3421_v58 }
 0x275   :  { %2851 = vmatpush3.bf16.msra.mxu0 %v1130_v21  ;;  %2852 = vmatprep.mubr.msk.bf16.mxu0 %vm3176_vm1, %v3175_v0 }
 0x276   :  { %2856 = vmatprep.subr.bf16.mxu0 %v3175_v0 }
 0x280   :  { %2853 = vmatmul.mubr.msk.bf16.vlgmr.msra.gmra.mrb[16].mxu0 %vm222_vm4, %v3509_v24 }
 0x281   :  { %2857 = vmatpush3.bf16.msra.mxu0 %v1180_v25  ;;  %2858 = vmatprep.mubr.msk.bf16.mxu0 %vm3176_vm1, %v3175_v0 }
 0x282   :  { %2862 = vmatprep.subr.bf16.mxu0 %v3175_v0 }
 0x28c   :  { %2859 = vmatmul.mubr.msk.bf16.vlgmr.msra.gmra.mrb[16].mxu0 %vm222_vm4, %v3524_v30 }
 0x28d   :  { %2863 = vmatpush3.bf16.msra.mxu0 %v1230_v31  ;;  %2864 = vmatprep.mubr.msk.bf16.mxu0 %vm3176_vm1, %v3175_v0 }
 0x28e   :  { %2934 = vmatprep.subr.bf16.mxu0 %v3175_v0 }
 0x298   :  { %2865 = vmatmul.mubr.msk.bf16.vlgmr.msra.gmra.mrb[16].mxu0 %vm222_vm4, %v3533_v33 }
 0x299   :  { %2936 = vmatprep.mubr.msk.bf16.mxu0 %vm3176_vm1, %v3175_v0  ;;  %2935 = vmatpush3.bf16.msra.mxu0 %v1860_v13 }
 0x29a   :  { %2940 = vmatprep.subr.bf16.mxu0 %v3175_v0 }
 0x303   :  { %v805_v37 = vpop.f32.mrb[12].mxu0 }
 0x304   :  { %v3016_v38 = vadd.f32 %v3545_v36, %v805_v37  ;;  %v2812_v39 = vpop.f32.mrb[13].mxu0  ;;  %v1902_v37 = vld [vmem:[%s3782_s0 + $0x26] sm:$0xff] }
 0x305   :  { %v808_v40 = vpop.f32.mrb[14].mxu0  ;;  %v1903_v39 = vpack.c.bf16 %v1902_v37, %v1902_v37 }
 0x306   :  { %v812_v41 = vmax.f32 %v3016_v38, 0.0  ;;  %v2813_v42 = vpop.f32.mrb[15].mxu0  ;;  %v1971_v38 = vld [vmem:[%s3784_s4] sm:$0x3] }
 0x307   :  { %v1976_v40 = vsel %vm246_vm3, %v1971_v38, 0 }
 0x308   :  { %814 = vst.msk [vmem:[%s3791_s10] sm:$0xff] %vm813_vm5, %v812_v41  ;;  %v2612_v41 = vld [vmem:[%s3784_s4 + $0x2] sm:$0x3] }
 0x309   :  { %v2026_v42 = vsel %vm246_vm3, %v2612_v41, 0 }
 0x36b   :  { %v1266_v43 = vpop.f32.mrb[16].mxu0 }
 0x36c   :  { %v3017_v44 = vadd.f32 %v3430_v59, %v1266_v43  ;;  %v2866_v45 = vpop.f32.mrb[17].mxu0  ;;  %v2614_v43 = vld [vmem:[%s3784_s4 + $0x4] sm:$0x3] }
 0x36d   :  { %v1269_v46 = vpop.f32.mrb[18].mxu0 }
 0x36e   :  { %v1273_v48 = vmax.f32 %v3017_v44, 0.0  ;;  %v2867_v49 = vpop.f32.mrb[19].mxu0  ;;  %v2076_v44 = vsel %vm246_vm3, %v2614_v43, 0 }
 0x370   :  { %v1274_v50 = vpack.c.bf16 %v1273_v48, %v1273_v48  ;;  %v2622_v48 = vld [vmem:[%s3784_s4 + $0xc] sm:$0x3] }
 0x371   :  { %v2276_v49 = vsel %vm246_vm3, %v2622_v48, 0 }
 0x372   :  { %2871 = vmatmul.mubr.msk.bf16.vlgmr.msra.gmra.mrb[12].mxu1 %vm222_vm4, %v1274_v50  ;;  %v2269_v50 = vld [vmem:[#allocation2 + $0x3c] sm:$0xff] }
 0x373   :  { %2875 = vmatpush3.bf16.msra.mxu1 %v1343_v52  ;;  %2876 = vmatprep.mubr.msk.bf16.mxu1 %vm3176_vm1, %v3175_v0  ;;  %v2624_v52 = vld [vmem:[%s3784_s4 + $0xe] sm:$0x3]  ;;  %v2270_v53 = vpack.c.bf16 %v2269_v50, %v2269_v50 }
 0x374   :  { %2880 = vmatprep.subr.bf16.mxu1 %v3175_v0  ;;  %v2326_v54 = vsel %vm246_vm3, %v2624_v52, 0 }
 0x37e   :  { %2877 = vmatmul.mubr.msk.bf16.vlgmr.msra.gmra.mrb[12].mxu1 %vm67_vm2, %v1330_v56  ;;  %v2319_v56 = vld [vmem:[#allocation2 + $0x3e] sm:$0xff] }
 0x37f   :  { %2881 = vmatpush3.bf16.msra.mxu1 %v1403_v57  ;;  %2882 = vmatprep.mubr.msk.bf16.mxu1 %vm3176_vm1, %v3175_v0  ;;  %v2626_v57 = vld [vmem:[%s3784_s4 + $0x10] sm:$0x3]  ;;  %v2320_v62 = vpack.c.bf16 %v2319_v56, %v2319_v56 }
 0x380   :  { %2886 = vmatprep.subr.bf16.mxu1 %v3175_v0 }
 0x386   :  { %2883 = vmatmul.mubr.msk.bf16.vlgmr.msra.gmra.mrb[16].mxu1 %vm222_vm4, %v3402_v51  ;;  %v2594_v51 = vld [vmem:[%s3784_s4 + $0x6] sm:$0x3] }
 0x387   :  { %2887 = vmatpush3.bf16.msra.mxu1 %v1453_v61  ;;  %2888 = vmatprep.mubr.msk.bf16.mxu1 %vm3176_vm1, %v3175_v0  ;;  %v1553_v1 = vsel %vm246_vm3, %v2594_v51, 0  ;;  %v2433_v61 = vsel %vm246_vm3, %v2421_v60, 0  ;;  %v2369_v51 = vld [vmem:[#allocation2 + $0x40] sm:$0xff] }
 0x388   :  { %2892 = vmatprep.subr.bf16.mxu1 %v3175_v0 }
 0x392   :  { %2889 = vmatmul.mubr.msk.bf16.vlgmr.msra.gmra.mrb[16].mxu1 %vm222_vm4, %v3413_v55  ;;  %v2596_v55 = vld [vmem:[%s3784_s4 + $0x8] sm:$0x3] }
 0x393   :  { %2893 = vmatpush3.bf16.msra.mxu1 %v1503_v63  ;;  %2894 = vmatprep.mubr.msk.bf16.mxu1 %vm3176_vm1, %v3175_v0  ;;  %v1603_v2 = vsel %vm246_vm3, %v2596_v55, 0  ;;  %v2376_v63 = vsel %vm246_vm3, %v2626_v57, 0 }
 0x394   :  { %2898 = vmatprep.subr.bf16.mxu1 %v3175_v0 }
 0x39e   :  { %2895 = vmatmul.mubr.msk.bf16.vlgmr.msra.gmra.mrb[16].mxu1 %vm222_vm4, %v3421_v58  ;;  %v2598_v58 = vld [vmem:[%s3784_s4 + $0xa] sm:$0x3] }
 0x39f   :  { %2899 = vmatpush3.bf16.msra.mxu1 %v1553_v1  ;;  %2900 = vmatprep.mubr.msk.bf16.mxu1 %vm3176_vm1, %v3175_v0  ;;  %v1653_v3 = vsel %vm246_vm3, %v2598_v58, 0  ;;  %v2370_v1 = vpack.c.bf16 %v2369_v51, %v2369_v51 }
 0x3a0   :  { %2904 = vmatprep.subr.bf16.mxu1 %v3175_v0 }
 0x3aa   :  { %2901 = vmatmul.mubr.msk.bf16.vlgmr.msra.gmra.mrb[16].mxu1 %vm222_vm4, %v3509_v24 }
 0x3ab   :  { %2905 = vmatpush3.bf16.msra.mxu1 %v1603_v2  ;;  %2906 = vmatprep.mubr.msk.bf16.mxu1 %vm3176_vm1, %v3175_v0 }
 0x3ac   :  { %2910 = vmatprep.subr.bf16.mxu1 %v3175_v0 }
 0x3b6   :  { %2907 = vmatmul.mubr.msk.bf16.vlgmr.msra.gmra.mrb[16].mxu1 %vm222_vm4, %v3524_v30 }
 0x3b7   :  { %2911 = vmatpush3.bf16.msra.mxu1 %v1653_v3  ;;  %2912 = vmatprep.mubr.msk.bf16.mxu1 %vm3176_vm1, %v3175_v0 }
 0x3b8   :  { %2916 = vmatprep.subr.bf16.mxu1 %v3175_v0 }
 0x3c2   :  { %2913 = vmatmul.mubr.msk.bf16.vlgmr.msra.gmra.mrb[16].mxu1 %vm222_vm4, %v3533_v33 }
 0x3c3   :  { %2917 = vmatpush3.bf16.msra.mxu1 %v1703_v5  ;;  %2918 = vmatprep.mubr.msk.bf16.mxu1 %vm3176_vm1, %v3175_v0 }
 0x3c4   :  { %2922 = vmatprep.subr.bf16.mxu1 %v3175_v0 }
 0x3ce   :  { %2919 = vmatmul.mubr.msk.bf16.vlgmr.msra.gmra.mrb[16].mxu1 %vm222_vm4, %v3629_v8 }
 0x3cf   :  { %2923 = vmatpush3.bf16.msra.mxu1 %v1753_v9  ;;  %2924 = vmatprep.mubr.msk.bf16.mxu1 %vm3176_vm1, %v3175_v0 }
 0x3d0   :  { %2928 = vmatprep.subr.bf16.mxu1 %v3175_v0 }
 0x3da   :  { %2925 = vmatmul.mubr.msk.bf16.vlgmr.msra.gmra.mrb[16].mxu1 %vm222_vm4, %v3644_v14 }
 0x3db   :  { %2929 = vmatpush3.bf16.msra.mxu1 %v1803_v15  ;;  %2930 = vmatprep.mubr.msk.bf16.mxu1 %vm3176_vm1, %v3175_v0 }
 0x3dc   :  { %3000 = vmatprep.subr.bf16.mxu1 %v3175_v0 }
 0x3e6   :  { %2931 = vmatmul.mubr.msk.bf16.vlgmr.msra.gmra.mrb[16].mxu1 %vm222_vm4, %v3653_v17 }
 0x3e7   :  { %3002 = vmatprep.mubr.msk.bf16.mxu1 %vm3176_vm1, %v3175_v0  ;;  %3001 = vmatpush3.bf16.msra.mxu1 %v2433_v61 }
 0x3e8   :  { %3006 = vmatprep.subr.bf16.mxu1 %v3175_v0 }
 0x451   :  { %v1379_v18 = vpop.f32.mrb[12].mxu1 }
 0x452   :  { %v3019_v19 = vadd.f32 %v3545_v36, %v1379_v18  ;;  %v2878_v20 = vpop.f32.mrb[13].mxu1 }
 0x453   :  { %v1382_v21 = vpop.f32.mrb[14].mxu1 }
 0x454   :  { %v1386_v22 = vmax.f32 %v3019_v19, 0.0  ;;  %v2879_v23 = vpop.f32.mrb[15].mxu1 }
 0x456   :  { %1387 = vst.msk [vmem:[%s3791_s10 + $0x8] sm:$0xff] %vm813_vm5, %v1386_v22 }
 0x4b9   :  { %v1839_v25 = vpop.f32.mrb[16].mxu1 }
 0x4ba   :  { %v3020_v26 = vadd.f32 %v3430_v59, %v1839_v25  ;;  %v2932_v27 = vpop.f32.mrb[17].mxu1 }
 0x4bb   :  { %v1842_v28 = vpop.f32.mrb[18].mxu1 }
 0x4bc   :  { %v1846_v31 = vmax.f32 %v3020_v26, 0.0  ;;  %v2933_v32 = vpop.f32.mrb[19].mxu1 }
 0x4be   :  { %v1847_v34 = vpack.c.bf16 %v1846_v31, %v1846_v31 }
 0x4c0   :  { %2937 = vmatmul.mubr.msk.bf16.vlgmr.msra.gmra.mrb[20].mxu0 %vm222_vm4, %v1847_v34 }
 0x4c1   :  { %2941 = vmatpush3.bf16.msra.mxu0 %v1916_v35  ;;  %2942 = vmatprep.mubr.msk.bf16.mxu0 %vm3176_vm1, %v3175_v0 }
 0x4c2   :  { %2946 = vmatprep.subr.bf16.mxu0 %v3175_v0 }
 0x4cc   :  { %2943 = vmatmul.mubr.msk.bf16.vlgmr.msra.gmra.mrb[20].mxu0 %vm67_vm2, %v1903_v39 }
 0x4cd   :  { %2947 = vmatpush3.bf16.msra.mxu0 %v1976_v40  ;;  %2948 = vmatprep.mubr.msk.bf16.mxu0 %vm3176_vm1, %v3175_v0 }
 0x4ce   :  { %2952 = vmatprep.subr.bf16.mxu0 %v3175_v0 }
 0x4d4   :  { %2949 = vmatmul.mubr.msk.bf16.vlgmr.msra.gmra.mrb[24].mxu0 %vm222_vm4, %v3509_v24  ;;  %v2616_v24 = vld [vmem:[%s3784_s4 + $0x6] sm:$0x3] }
 0x4d5   :  { %2953 = vmatpush3.bf16.msra.mxu0 %v2026_v42  ;;  %2954 = vmatprep.mubr.msk.bf16.mxu0 %vm3176_vm1, %v3175_v0  ;;  %v2126_v45 = vsel %vm246_vm3, %v2616_v24, 0 }
 0x4d6   :  { %2958 = vmatprep.subr.bf16.mxu0 %v3175_v0 }
 0x4e0   :  { %2955 = vmatmul.mubr.msk.bf16.vlgmr.msra.gmra.mrb[24].mxu0 %vm222_vm4, %v3524_v30  ;;  %v2618_v30 = vld [vmem:[%s3784_s4 + $0x8] sm:$0x3] }
 0x4e1   :  { %2959 = vmatpush3.bf16.msra.mxu0 %v2076_v44  ;;  %2960 = vmatprep.mubr.msk.bf16.mxu0 %vm3176_vm1, %v3175_v0  ;;  %v2176_v46 = vsel %vm246_vm3, %v2618_v30, 0 }
 0x4e2   :  { %2964 = vmatprep.subr.bf16.mxu0 %v3175_v0 }
 0x4ec   :  { %2961 = vmatmul.mubr.msk.bf16.vlgmr.msra.gmra.mrb[24].mxu0 %vm222_vm4, %v3533_v33  ;;  %v2620_v33 = vld [vmem:[%s3784_s4 + $0xa] sm:$0x3] }
 0x4ed   :  { %2965 = vmatpush3.bf16.msra.mxu0 %v2126_v45  ;;  %2966 = vmatprep.mubr.msk.bf16.mxu0 %vm3176_vm1, %v3175_v0  ;;  %v2226_v47 = vsel %vm246_vm3, %v2620_v33, 0 }
 0x4ee   :  { %2970 = vmatprep.subr.bf16.mxu0 %v3175_v0 }
 0x4f8   :  { %2967 = vmatmul.mubr.msk.bf16.vlgmr.msra.gmra.mrb[24].mxu0 %vm222_vm4, %v3629_v8 }
 0x4f9   :  { %2971 = vmatpush3.bf16.msra.mxu0 %v2176_v46  ;;  %2972 = vmatprep.mubr.msk.bf16.mxu0 %vm3176_vm1, %v3175_v0 }
 0x4fa   :  { %2976 = vmatprep.subr.bf16.mxu0 %v3175_v0 }
 0x504   :  { %2973 = vmatmul.mubr.msk.bf16.vlgmr.msra.gmra.mrb[24].mxu0 %vm222_vm4, %v3644_v14  ;;  %v2489_v14 = vsel %vm83_vm0, %v2477_v10, 0 }
 0x505   :  { %2977 = vmatpush3.bf16.msra.mxu0 %v2226_v47  ;;  %2978 = vmatprep.mubr.msk.bf16.mxu0 %vm3176_vm1, %v3175_v0 }
 0x506   :  { %2982 = vmatprep.subr.bf16.mxu0 %v3175_v0 }
 0x510   :  { %2979 = vmatmul.mubr.msk.bf16.vlgmr.msra.gmra.mrb[24].mxu0 %vm222_vm4, %v3653_v17 }
 0x511   :  { %2983 = vmatpush3.bf16.msra.mxu0 %v2276_v49  ;;  %2984 = vmatprep.mubr.msk.bf16.mxu0 %vm3176_vm1, %v3175_v0 }
 0x512   :  { %2988 = vmatprep.subr.bf16.mxu0 %v3175_v0 }
 0x51c   :  { %2985 = vmatmul.mubr.msk.bf16.vlgmr.msra.gmra.mrb[24].mxu0 %vm222_vm4, %v2270_v53 }
 0x51d   :  { %2989 = vmatpush3.bf16.msra.mxu0 %v2326_v54  ;;  %2990 = vmatprep.mubr.msk.bf16.mxu0 %vm3176_vm1, %v3175_v0 }
 0x51e   :  { %2994 = vmatprep.subr.bf16.mxu0 %v3175_v0 }
 0x528   :  { %2991 = vmatmul.mubr.msk.bf16.vlgmr.msra.gmra.mrb[24].mxu0 %vm222_vm4, %v2320_v62 }
 0x529   :  { %2995 = vmatpush3.bf16.msra.mxu0 %v2376_v63  ;;  %2996 = vmatprep.mubr.msk.bf16.mxu0 %vm3176_vm1, %v3175_v0 }
 0x534   :  { %2997 = vmatmul.mubr.msk.bf16.vlgmr.msra.gmra.mrb[24].mxu0 %vm222_vm4, %v2370_v1 }
 0x59f   :  { %v1952_v55 = vpop.f32.mrb[20].mxu0 }
 0x5a0   :  { %v3022_v2 = vadd.f32 %v3545_v36, %v1952_v55  ;;  %v2944_v58 = vpop.f32.mrb[21].mxu0 }
 0x5a1   :  { %v1955_v3 = vpop.f32.mrb[22].mxu0 }
 0x5a2   :  { %v1959_v4 = vmax.f32 %v3022_v2, 0.0  ;;  %v2945_v5 = vpop.f32.mrb[23].mxu0 }
 0x5a4   :  { %1960 = vst.msk [vmem:[%s3791_s10 + $0x10] sm:$0xff] %vm813_vm5, %v1959_v4 }
 0x607   :  { %v2412_v6 = vpop.f32.mrb[24].mxu0 }
 0x608   :  { %v3023_v7 = vadd.f32 %v3430_v59, %v2412_v6  ;;  %v2998_v8 = vpop.f32.mrb[25].mxu0  ;;  %v2475_v59 = vld [vmem:[%s3782_s0 + $0x32] sm:$0xff] }
 0x609   :  { %v2415_v9 = vpop.f32.mrb[26].mxu0  ;;  %v2476_v15 = vpack.c.bf16 %v2475_v59, %v2475_v59 }
 0x60a   :  { %v2419_v11 = vmax.f32 %v3023_v7, 0.0  ;;  %v2999_v12 = vpop.f32.mrb[27].mxu0 }
 0x60c   :  { %v2420_v13 = vpack.c.bf16 %v2419_v11, %v2419_v11 }
 0x60e   :  { %3003 = vmatmul.mubr.msk.bf16.vlgmr.msra.gmra.mrb[20].mxu1 %vm222_vm4, %v2420_v13 }
 0x60f   :  { %3007 = vmatpush3.bf16.msra.mxu1 %v2489_v14  ;;  %3008 = vmatprep.mubr.msk.bf16.mxu1 %vm3176_vm1, %v3175_v0 }
 0x61a   :  { %3009 = vmatmul.mubr.msk.bf16.vlgmr.msra.gmra.mrb[20].mxu1 %vm67_vm2, %v2476_v15 }
 0x6ed   :  { %v2525_v16 = vpop.f32.mrb[20].mxu1 }
 0x6ee   :  { %v3025_v17 = vadd.f32 %v3545_v36, %v2525_v16  ;;  %v3010_v18 = vpop.f32.mrb[21].mxu1 }
 0x6ef   :  { %v2528_v19 = vpop.f32.mrb[22].mxu1 }
 0x6f0   :  { %v2532_v20 = vmax.f32 %v3025_v17, 0.0  ;;  %v3011_v21 = vpop.f32.mrb[23].mxu1 }
 0x6f2   :  { %2533 = vst.msk [vmem:[%s3791_s10 + $0x18] sm:$0xff] %vm813_vm5, %v2532_v20 }

// kernel: deeplab_resnet_forward.11
= control target key start
LH: loop header
LB: loop body
LE: loop exit
PB: predicated region body
PF: predicated region fallthrough
CT: control target
= control target key end

     0   :  { %v1330_v1 = vmov 0   ;;  %vm76_vm0 = vcmask 261120   ;;  %v1331_v33 = vmov 0.0   ;;  %vm1332_vm1 = vmmov 0   ;;  %s1586_s5 = inlined_call_operand.vmem [shape: bf16[32,16], index: 5, kind: input, shape index: {}]   ;;  %s1587_s0 = inlined_call_operand.vmem [shape: f32[18,32], index: 0, kind: input, shape index: {}]   ;;  %s1588_s1 = inlined_call_operand.vmem [shape: f32[18,32], index: 1, kind: input, shape index: {}]   ;;  %s1589_s2 = inlined_call_operand.vmem [shape: f32[18,32], index: 2, kind: input, shape index: {}]   ;;  %s1590_s4 = inlined_call_operand.vmem [shape: f32[18,1], index: 4, kind: input, shape index: {}]   ;;  %s1591_s3 = inlined_call_operand.vmem [shape: f32[18,32], index: 3, kind: input, shape index: {}]   ;;  %s1592_s7 = inlined_call_operand.vmem [shape: bf16[9,16,16], index: 7, kind: input, shape index: {}]   ;;  %s1593_s6 = inlined_call_operand.vmem [shape: f32[1,16], index: 6, kind: input, shape index: {}]   ;;  %s1594_s9 = inlined_call_operand.vmem [shape: bf16[16,64], index: 9, kind: input, shape index: {}]   ;;  %s1595_s11 = inlined_call_operand.vmem [shape: bf16[32,64], index: 11, kind: input, shape index: {}]   ;;  %s1596_s8 = inlined_call_operand.vmem [shape: f32[1,16], index: 8, kind: input, shape index: {}]   ;;  %s1597_s10 = inlined_call_operand.vmem [shape: f32[1,64], index: 10, kind: input, shape index: {}]   ;;  %s1598_s12 = inlined_call_operand.vmem [shape: f32[1,64], index: 12, kind: input, shape index: {}]   ;;  %s1599_s13 = inlined_call_operand.vmem [shape: f32[2,64], index: 13, kind: output, shape index: {}]  }
   0x1   :  { %v1310_v0 = vld [vmem:[%s1586_s5] sm:$0xff]   ;;  %1308 = vset.pattern.permute.xlu0 %v1330_v1  ;;  %1309 = vset.pattern.permute.xlu1 %v1330_v1  ;;  %v1311_v2 = vld [vmem:[%s1586_s5 + $0x8] sm:$0xff]   ;;  %v50_v6 = vld [vmem:[%s1587_s0 + $0x10] sm:$0x3]  ;;  %vm152_vm2 = vcmask 130048   ;;  %vm1062_vm3 = vcmask 517120  }
   0x2   :  { %1169 = vmatprep.subr.bf16.mxu1 %v1310_v0  ;;  %v48_v3 = vld [vmem:[%s1587_s0] sm:$0xff]  ;;  %v49_v4 = vld [vmem:[%s1587_s0 + $0x8] sm:$0xff]  ;;  %v52_v10 = vpack.c.bf16 %v50_v6, %v50_v6  ;;  %v159_v13 = vld [vmem:[%s1588_s1 + $0x10] sm:$0x3]  ;;  %1207 = vmatprep.subr.bf16.mxu0 %v1331_v33 }
   0x3   :  { %1170 = vmatpush3.bf16.msra.mxu1 %v1310_v0  ;;  %v51_v5 = vpack.c.bf16 %v49_v4, %v48_v3  ;;  %v1312_v7 = vld [vmem:[%s1586_s5] sm:$0xff]   ;;  %v158_v9 = vld [vmem:[%s1588_s1 + $0x8] sm:$0xff]  ;;  %v47_v18 = vld [vmem:[%s1590_s4 + $0x10] sm:$0x3]  ;;  %v161_v19 = vpack.c.bf16 %v159_v13, %v159_v13  ;;  %1209 = vmatprep.mubr.msk.bf16.mxu0 %vm1332_vm1, %v1331_v33 }
   0x4   :  { %1171 = vmatprep.subr.bf16.mxu1 %v1311_v2  ;;  %v157_v8 = vld [vmem:[%s1588_s1] sm:$0xff]  ;;  %v1313_v12 = vld [vmem:[%s1586_s5 + $0x8] sm:$0xff]   ;;  %146 = vperm.xlu1 %1309, %v47_v18   ;;  %v250_v23 = vld [vmem:[%s1589_s2 + $0x10] sm:$0x3] }
   0x5   :  { %1173 = vmatprep.mubr.msk.bf16.mxu1 %vm76_vm0, %v51_v5  ;;  %v160_v11 = vpack.c.bf16 %v158_v9, %v157_v8  ;;  %v1314_v14 = vld [vmem:[%s1586_s5] sm:$0xff]   ;;  %v249_v16 = vld [vmem:[%s1589_s2 + $0x8] sm:$0xff]  ;;  %v252_v27 = vpack.c.bf16 %v250_v23, %v250_v23  ;;  %v341_v30 = vld [vmem:[%s1591_s3 + $0x10] sm:$0x3] }
   0x6   :  { %v248_v15 = vld [vmem:[%s1589_s2] sm:$0xff]  ;;  %v46_v20 = vld [vmem:[%s1590_s4 + $0x8] sm:$0xff]  ;;  %v343_v31 = vpack.c.bf16 %v341_v30, %v341_v30  ;;  %v1321_v18 = vld [vmem:[%s1592_s7 + $0x18] sm:$0xff]  }
   0x7   :  { %1172 = vmatpush3.bf16.msra.mxu1 %v1311_v2  ;;  %v45_v17 = vld [vmem:[%s1590_s4] sm:$0xff]  ;;  %v251_v21 = vpack.c.bf16 %v249_v16, %v248_v15  ;;  %v1315_v22 = vld [vmem:[%s1586_s5 + $0x8] sm:$0xff]   ;;  %v1325_v30 = vld [vmem:[%s1592_s7 + $0x38] sm:$0xff]  }
   0x8   :  { %1177 = vmatprep.subr.bf16.mxu1 %v1312_v7  ;;  %136 = vperm.xlu0 %1308, %v45_v17   ;;  %v1316_v24 = vld [vmem:[%s1586_s5] sm:$0xff]   ;;  %v340_v26 = vld [vmem:[%s1591_s3 + $0x8] sm:$0xff] }
   0x9   :  { %v339_v25 = vld [vmem:[%s1591_s3] sm:$0xff]  ;;  %v1317_v29 = vld [vmem:[%s1586_s5 + $0x8] sm:$0xff]  }
   0xa   :  { %1174 = vmatmul.mubr.msk.bf16.vlgmr.msra.gmra.mrb[0].mxu1 %vm76_vm0, %v52_v10  ;;  %v342_v28 = vpack.c.bf16 %v340_v26, %v339_v25  ;;  %v1318_v32 = vld [vmem:[%s1592_s7 + $0x8] sm:$0xff]   ;;  %v1320_v34 = vld [vmem:[%s1592_s7] sm:$0xff]  }
   0xb   :  { %1178 = vmatpush3.bf16.msra.mxu1 %v1312_v7  ;;  %1181 = vmatprep.mubr.msk.bf16.mxu1 %vm76_vm0, %v160_v11  ;;  %v1068_v35 = vld [vmem:[%s1593_s6] ss:$0 sm:$0xff] }
   0xc   :  { %1179 = vmatprep.subr.bf16.mxu1 %v1313_v12  ;;  %141 = vperm.xlu0 %1308, %v46_v20  }
   0xd   :  { %1208 = vmatpush3.bf16.msra.mxu0 %v1318_v32 }
   0xe   :  { %1213 = vmatprep.subr.bf16.mxu0 %v1331_v33 }
   0xf   :  { %1180 = vmatpush3.bf16.msra.mxu1 %v1313_v12  ;;  %v1319_v12 = vld [vmem:[%s1592_s7 + $0x10] sm:$0xff]  }
  0x10   :  { %1185 = vmatprep.subr.bf16.mxu1 %v1314_v14 }
  0x12   :  { %1182 = vmatmul.mubr.msk.bf16.vlgmr.msra.gmra.mrb[4].mxu1 %vm76_vm0, %v161_v19 }
  0x13   :  { %1186 = vmatpush3.bf16.msra.mxu1 %v1314_v14  ;;  %1189 = vmatprep.mubr.msk.bf16.mxu1 %vm76_vm0, %v251_v21  ;;  %v1322_v21 = vld [vmem:[%s1592_s7 + $0x20] sm:$0xff]  }
  0x14   :  { %1187 = vmatprep.subr.bf16.mxu1 %v1315_v22 }
  0x17   :  { %1188 = vmatpush3.bf16.msra.mxu1 %v1315_v22 }
  0x18   :  { %1193 = vmatprep.subr.bf16.mxu1 %v1316_v24 }
  0x1a   :  { %1190 = vmatmul.mubr.msk.bf16.vlgmr.msra.gmra.mrb[8].mxu1 %vm76_vm0, %v252_v27  ;;  %v1324_v27 = vld [vmem:[%s1592_s7 + $0x30] sm:$0xff]  }
  0x1b   :  { %1194 = vmatpush3.bf16.msra.mxu1 %v1316_v24  ;;  %1197 = vmatprep.mubr.msk.bf16.mxu1 %vm76_vm0, %v342_v28  ;;  %v1323_v24 = vld [vmem:[%s1592_s7 + $0x28] sm:$0xff]  }
  0x1c   :  { %1195 = vmatprep.subr.bf16.mxu1 %v1317_v29 }
  0x1f   :  { %1196 = vmatpush3.bf16.msra.mxu1 %v1317_v29 }
  0x20   :  { %1201 = vmatprep.subr.bf16.mxu1 %v1331_v33 }
  0x22   :  { %1198 = vmatmul.mubr.msk.bf16.vlgmr.msra.gmra.mrb[12].mxu1 %vm76_vm0, %v343_v31 }
  0x23   :  { %1203 = vmatprep.mubr.msk.bf16.mxu1 %vm1332_vm1, %v1331_v33  ;;  %1202 = vmatpush3.bf16.msra.mxu1 %v1320_v34  ;;  %v1326_v34 = vld [vmem:[%s1592_s7 + $0x40] sm:$0xff]  }
  0x24   :  { %1255 = vmatprep.subr.bf16.mxu1 %v1331_v33 }
  0x83   :  { %v147_v40 = vpop.permute.xlu1 %146 }
  0x87   :  { %v137_v36 = vpop.permute.xlu0 %136 }
  0x8b   :  { %v142_v43 = vpop.permute.xlu0 %141 }
  0xdd   :  { %v1175_v37 = vpop.f32.mrb[0].mxu1 }
  0xde   :  { %v117_v38 = vpop.f32.mrb[1].mxu1 }
  0xdf   :  { %v1176_v39 = vpop.f32.mrb[2].mxu1  ;;  %v1327_v38 = vld [vmem:[%s1594_s9] sm:$0xff]  }
  0xe0   :  { %v120_v41 = vpop.f32.mrb[3].mxu1 }
  0xe1   :  { %v121_v42 = vadd.f32 %v1068_v35, %v120_v41 }
  0xe3   :  { %v132_v44 = vmax.f32 %v121_v42, 0.0 }
  0xe5   :  { %v150_v45 = vmul.f32 %v142_v43, %v132_v44  ;;  %v1183_v46 = vpop.f32.mrb[4].mxu1 }
  0xe6   :  { %v225_v47 = vpop.f32.mrb[5].mxu1 }
  0xe7   :  { %154 = vst.msk [vmem:[#allocation2 + $0x8] sm:$0xff] %vm152_vm2, %v150_v45  ;;  %v226_v48 = vadd.f32 %v1068_v35, %v225_v47  ;;  %v1184_v49 = vpop.f32.mrb[6].mxu1 }
  0xe8   :  { %v228_v50 = vpop.f32.mrb[7].mxu1 }
  0xe9   :  { %v239_v51 = vmax.f32 %v226_v48, 0.0  ;;  %v229_v52 = vadd.f32 %v1068_v35, %v228_v50 }
  0xeb   :  { %v242_v53 = vmul.f32 %v239_v51, %v137_v36  ;;  %v240_v54 = vmax.f32 %v229_v52, 0.0  ;;  %v1328_v51 = vld [vmem:[%s1595_s11] sm:$0xff]  }
  0xed   :  { %245 = vst.msk [vmem:[#allocation3] sm:$0xff] %vm152_vm2, %v242_v53  ;;  %v243_v55 = vmul.f32 %v240_v54, %v142_v43  ;;  %v1191_v56 = vpop.f32.mrb[8].mxu1  ;;  %v1329_v53 = vld [vmem:[%s1595_s11 + $0x8] sm:$0xff]  }
  0xee   :  { %v316_v57 = vpop.f32.mrb[9].mxu1  ;;  %v657_v23 = vld [vmem:[#allocation2 + $0x8] sm:$0x3]  ;;  %v1123_v56 = vld [vmem:[%s1597_s10] ss:$0 sm:$0xff] }
  0xef   :  { %246 = vst.msk [vmem:[#allocation3 + $0x8] sm:$0xff] %vm152_vm2, %v243_v55  ;;  %v317_v58 = vadd.f32 %v1068_v35, %v316_v57  ;;  %v1192_v59 = vpop.f32.mrb[10].mxu1  ;;  %v658_v25 = vpack.c.bf16 %v657_v23, %v657_v23  ;;  %v992_v54 = vld [vmem:[%s1587_s0 + $0x8] sm:$0x3]  ;;  %v1126_v57 = vld [vmem:[%s1598_s12] ss:$0 sm:$0xff] }
  0xf0   :  { %v319_v60 = vpop.f32.mrb[11].mxu1  ;;  %v993_v55 = vpack.c.bf16 %v992_v54, %v992_v54 }
  0xf1   :  { %v330_v61 = vmax.f32 %v317_v58, 0.0  ;;  %v320_v62 = vadd.f32 %v1068_v35, %v319_v60  ;;  %v1271_v58 = vadd.f32 %v1126_v57, %v1123_v56 }
  0xf3   :  { %v333_v63 = vmul.f32 %v330_v61, %v137_v36  ;;  %v331_v0 = vmax.f32 %v320_v62, 0.0 }
  0xf4   :  { %v602_v20 = vld [vmem:[#allocation3 + $0x6] sm:$0x3] }
  0xf5   :  { %336 = vst.msk [vmem:[#allocation4] sm:$0xff] %vm152_vm2, %v333_v63  ;;  %v334_v1 = vmul.f32 %v331_v0, %v142_v43  ;;  %v1199_v2 = vpop.f32.mrb[12].mxu1  ;;  %v603_v22 = vpack.c.bf16 %v602_v20, %v602_v20 }
  0xf6   :  { %v407_v3 = vpop.f32.mrb[13].mxu1  ;;  %v712_v26 = vld [vmem:[#allocation3 + $0x8] sm:$0x3] }
  0xf7   :  { %337 = vst.msk [vmem:[#allocation4 + $0x8] sm:$0xff] %vm152_vm2, %v334_v1  ;;  %v408_v4 = vadd.f32 %v1068_v35, %v407_v3  ;;  %v1200_v5 = vpop.f32.mrb[14].mxu1  ;;  %v713_v28 = vpack.c.bf16 %v712_v26, %v712_v26 }
  0xf8   :  { %v410_v6 = vpop.f32.mrb[15].mxu1 }
  0xf9   :  { %v421_v7 = vmax.f32 %v408_v4, 0.0  ;;  %v411_v8 = vadd.f32 %v1068_v35, %v410_v6 }
  0xfb   :  { %v424_v9 = vmul.f32 %v421_v7, %v137_v36  ;;  %v422_v10 = vmax.f32 %v411_v8, 0.0 }
  0xfc   :  { %v492_v11 = vld [vmem:[#allocation4 + $0x2] sm:$0x3] }
  0xfd   :  { %427 = vst.msk [vmem:[#allocation5] sm:$0xff] %vm152_vm2, %v424_v9  ;;  %v425_v13 = vmul.f32 %v422_v10, %v142_v43  ;;  %v493_v14 = vpack.c.bf16 %v492_v11, %v492_v11  ;;  %v1088_v43 = vld [vmem:[%s1596_s8] ss:$0 sm:$0xff] }
  0xfe   :  { %v822_v32 = vld [vmem:[#allocation4 + $0x8] sm:$0x3] }
  0xff   :  { %428 = vst.msk [vmem:[#allocation5 + $0x8] sm:$0xff] %vm152_vm2, %v425_v13  ;;  %1210 = vmatmul.mubr.msk.bf16.vlgmr.msra.gmra.mrb[0].mxu0 %vm152_vm2, %v493_v14  ;;  %v823_v35 = vpack.c.bf16 %v822_v32, %v822_v32 }
 0x100   :  { %1214 = vmatpush3.bf16.msra.mxu0 %v1319_v12  ;;  %1215 = vmatprep.mubr.msk.bf16.mxu0 %vm1332_vm1, %v1331_v33 }
 0x101   :  { %1219 = vmatprep.subr.bf16.mxu0 %v1331_v33 }
 0x104   :  { %v438_v15 = vld [vmem:[#allocation5] sm:$0x3]  ;;  %v547_v17 = vld [vmem:[#allocation5 + $0x2] sm:$0x3]  ;;  %v767_v29 = vld [vmem:[#allocation5 + $0x6] sm:$0x3] }
 0x105   :  { %v439_v16 = vpack.c.bf16 %v438_v15, %v438_v15  ;;  %v548_v19 = vpack.c.bf16 %v547_v17, %v547_v17  ;;  %v768_v31 = vpack.c.bf16 %v767_v29, %v767_v29 }
 0x106   :  { %v877_v36 = vld [vmem:[#allocation5 + $0x8] sm:$0x3] }
 0x107   :  { %1204 = vmatmul.mubr.msk.bf16.vlgmr.msra.gmra.mrb[16].mxu1 %vm152_vm2, %v439_v16  ;;  %v878_v37 = vpack.c.bf16 %v877_v36, %v877_v36 }
 0x108   :  { %1257 = vmatprep.mubr.msk.bf16.mxu1 %vm1332_vm1, %v1331_v33  ;;  %1256 = vmatpush3.bf16.msra.mxu1 %v1327_v38 }
 0x109   :  { %1261 = vmatprep.subr.bf16.mxu1 %v1331_v33 }
 0x10b   :  { %1216 = vmatmul.mubr.msk.bf16.vlgmr.msra.gmra.mrb[0].mxu0 %vm152_vm2, %v548_v19 }
 0x10c   :  { %1220 = vmatpush3.bf16.msra.mxu0 %v1321_v18  ;;  %1221 = vmatprep.mubr.msk.bf16.mxu0 %vm1332_vm1, %v1331_v33 }
 0x10d   :  { %1225 = vmatprep.subr.bf16.mxu0 %v1331_v33 }
 0x117   :  { %1222 = vmatmul.mubr.msk.bf16.vlgmr.msra.gmra.mrb[0].mxu0 %vm152_vm2, %v603_v22 }
 0x118   :  { %1226 = vmatpush3.bf16.msra.mxu0 %v1322_v21  ;;  %1227 = vmatprep.mubr.msk.bf16.mxu0 %vm1332_vm1, %v1331_v33 }
 0x119   :  { %1231 = vmatprep.subr.bf16.mxu0 %v1331_v33 }
 0x123   :  { %1228 = vmatmul.mubr.msk.bf16.vlgmr.msra.gmra.mrb[0].mxu0 %vm152_vm2, %v658_v25 }
 0x124   :  { %1232 = vmatpush3.bf16.msra.mxu0 %v1323_v24  ;;  %1233 = vmatprep.mubr.msk.bf16.mxu0 %vm1332_vm1, %v1331_v33 }
 0x125   :  { %1237 = vmatprep.subr.bf16.mxu0 %v1331_v33 }
 0x12f   :  { %1234 = vmatmul.mubr.msk.bf16.vlgmr.msra.gmra.mrb[0].mxu0 %vm152_vm2, %v713_v28 }
 0x130   :  { %1238 = vmatpush3.bf16.msra.mxu0 %v1324_v27  ;;  %1239 = vmatprep.mubr.msk.bf16.mxu0 %vm1332_vm1, %v1331_v33 }
 0x131   :  { %1243 = vmatprep.subr.bf16.mxu0 %v1331_v33 }
 0x13b   :  { %1240 = vmatmul.mubr.msk.bf16.vlgmr.msra.gmra.mrb[0].mxu0 %vm152_vm2, %v768_v31 }
 0x13c   :  { %1244 = vmatpush3.bf16.msra.mxu0 %v1325_v30  ;;  %1245 = vmatprep.mubr.msk.bf16.mxu0 %vm1332_vm1, %v1331_v33 }
 0x13d   :  { %1249 = vmatprep.subr.bf16.mxu0 %v1331_v33 }
 0x147   :  { %1246 = vmatmul.mubr.msk.bf16.vlgmr.msra.gmra.mrb[0].mxu0 %vm152_vm2, %v823_v35 }
 0x148   :  { %1250 = vmatpush3.bf16.msra.mxu0 %v1326_v34  ;;  %1251 = vmatprep.mubr.msk.bf16.mxu0 %vm1332_vm1, %v1331_v33 }
 0x153   :  { %1252 = vmatmul.mubr.msk.bf16.vlgmr.msra.gmra.mrb[0].mxu0 %vm152_vm2, %v878_v37 }
 0x1da   :  { %v485_v39 = vpop.f32.mrb[16].mxu1 }
 0x1db   :  { %v1205_v40 = vpop.f32.mrb[17].mxu1  ;;  %v491_v44 = vadd.f32 %v1088_v43, %v485_v39 }
 0x1dc   :  { %v488_v41 = vpop.f32.mrb[18].mxu1 }
 0x1dd   :  { %v1206_v42 = vpop.f32.mrb[19].mxu1 }
 0x226   :  { %v925_v45 = vpop.f32.mrb[0].mxu0 }
 0x227   :  { %v1270_v46 = vadd.f32 %v925_v45, %v491_v44  ;;  %v1253_v47 = vpop.f32.mrb[1].mxu0 }
 0x228   :  { %v928_v48 = vpop.f32.mrb[2].mxu0 }
 0x229   :  { %v932_v49 = vmax.f32 %v1270_v46, 0.0  ;;  %v1254_v50 = vpop.f32.mrb[3].mxu0 }
 0x22b   :  { %v933_v52 = vpack.c.bf16 %v932_v49, %v932_v49 }
 0x22d   :  { %1258 = vmatmul.mubr.msk.bf16.vlgmr.msra.gmra.mrb[20].mxu1 %vm152_vm2, %v933_v52 }
 0x22e   :  { %1262 = vmatpush3.bf16.msra.mxu1 %v1328_v51  ;;  %1265 = vmatprep.mubr.msk.bf16.mxu1 %vm1332_vm1, %v1331_v33 }
 0x22f   :  { %1263 = vmatprep.subr.bf16.mxu1 %v1331_v33 }
 0x232   :  { %1264 = vmatpush3.bf16.msra.mxu1 %v1329_v53 }
 0x239   :  { %1266 = vmatmul.mubr.msk.bf16.vlgmr.msra.gmra.mrb[20].mxu1 %vm76_vm0, %v993_v55 }
 0x30c   :  { %v1054_v59 = vpop.f32.mrb[20].mxu1 }
 0x30d   :  { %v1272_v60 = vadd.f32 %v1271_v58, %v1054_v59  ;;  %v1267_v33 = vpop.f32.mrb[21].mxu1 }
 0x30e   :  { %v1057_v61 = vpop.f32.mrb[22].mxu1 }
 0x30f   :  { %v1061_v62 = vmax.f32 %v1272_v60, 0.0  ;;  %v1268_v63 = vpop.f32.mrb[23].mxu1 }
 0x311   :  { %1063 = vst.msk [vmem:[%s1599_s13] sm:$0x3] %vm1062_vm3, %v1061_v62 }

// kernel: deeplab_resnet_forward.12
= control target key start
LH: loop header
LB: loop body
LE: loop exit
PB: predicated region body
PF: predicated region fallthrough
CT: control target
= control target key end

     0   :  { %v921_v1 = vmov 0   ;;  %vm77_vm0 = vcmask 523264   ;;  %v922_v13 = vmov 0.0   ;;  %vm923_vm1 = vmmov 0   ;;  %s1088_s2 = inlined_call_operand.vmem [shape: bf16[64,16], index: 2, kind: input, shape index: {}]   ;;  %s1089_s0 = inlined_call_operand.vmem [shape: f32[18,64], index: 0, kind: input, shape index: {}]   ;;  %s1090_s1 = inlined_call_operand.vmem [shape: f32[18,1], index: 1, kind: input, shape index: {}]   ;;  %s1091_s4 = inlined_call_operand.vmem [shape: bf16[9,16,16], index: 4, kind: input, shape index: {}]   ;;  %s1092_s3 = inlined_call_operand.vmem [shape: f32[1,16], index: 3, kind: input, shape index: {}]   ;;  %s1093_s6 = inlined_call_operand.vmem [shape: bf16[16,64], index: 6, kind: input, shape index: {}]   ;;  %s1094_s5 = inlined_call_operand.vmem [shape: f32[1,16], index: 5, kind: input, shape index: {}]   ;;  %s1095_s7 = inlined_call_operand.vmem [shape: f32[1,64], index: 7, kind: input, shape index: {}]   ;;  %s1096_s8 = inlined_call_operand.vmem [shape: f32[2,64], index: 8, kind: output, shape index: {}]  }
   0x1   :  { %v907_v0 = vld [vmem:[%s1088_s2] sm:$0xff]   ;;  %905 = vset.pattern.permute.xlu0 %v921_v1  ;;  %906 = vset.pattern.permute.xlu1 %v921_v1  ;;  %v908_v2 = vld [vmem:[%s1088_s2 + $0x8] sm:$0xff]   ;;  %v909_v3 = vld [vmem:[%s1088_s2 + $0x10] sm:$0xff]   ;;  %vm156_vm2 = vcmask 123904   ;;  %vm153_vm3 = vcmask 130048   ;;  %vm723_vm4 = vcmask 517120  }
   0x2   :  { %800 = vmatprep.subr.bf16.mxu0 %v907_v0  ;;  %v33_v4 = vld [vmem:[%s1089_s0] sm:$0xff]  ;;  %v34_v5 = vld [vmem:[%s1089_s0 + $0x8] sm:$0xff]  ;;  %v32_v8 = vld [vmem:[%s1090_s1 + $0x10] sm:$0x3]  ;;  %830 = vmatprep.subr.bf16.mxu1 %v922_v13 }
   0x3   :  { %801 = vmatpush3.bf16.msra.mxu0 %v907_v0  ;;  %v36_v6 = vpack.c.bf16 %v34_v5, %v33_v4  ;;  %v30_v7 = vld [vmem:[%s1090_s1] sm:$0xff]  ;;  %147 = vperm.xlu1 %906, %v32_v8   ;;  %v31_v9 = vld [vmem:[%s1090_s1 + $0x8] sm:$0xff]  ;;  %v910_v10 = vld [vmem:[%s1088_s2 + $0x18] sm:$0xff]  }
   0x4   :  { %802 = vmatprep.subr.bf16.mxu0 %v908_v2  ;;  %137 = vperm.xlu0 %905, %v30_v7   ;;  %v35_v11 = vld [vmem:[%s1089_s0 + $0x10] sm:$0x3]  ;;  %v911_v14 = vld [vmem:[%s1091_s4 + $0x18] sm:$0xff]   ;;  %v912_v15 = vld [vmem:[%s1091_s4] sm:$0xff]  }
   0x5   :  { %808 = vmatprep.mubr.msk.bf16.mxu0 %vm77_vm0, %v36_v6  ;;  %v37_v12 = vpack.c.bf16 %v35_v11, %v35_v11  ;;  %832 = vmatprep.mubr.msk.bf16.mxu1 %vm923_vm1, %v922_v13  ;;  %v729_v16 = vld [vmem:[%s1092_s3] ss:$0 sm:$0xff]  ;;  %v914_v36 = vld [vmem:[%s1091_s4 + $0x8] sm:$0xff]   ;;  %v916_v42 = vld [vmem:[%s1091_s4 + $0x10] sm:$0xff]  }
   0x6   :  { %831 = vmatpush3.bf16.msra.mxu1 %v911_v14  ;;  %v913_v33 = vld [vmem:[%s1091_s4 + $0x20] sm:$0xff]   ;;  %v915_v41 = vld [vmem:[%s1091_s4 + $0x28] sm:$0xff]   ;;  %v917_v47 = vld [vmem:[%s1091_s4 + $0x30] sm:$0xff]  }
   0x7   :  { %803 = vmatpush3.bf16.msra.mxu0 %v908_v2  ;;  %836 = vmatprep.subr.bf16.mxu1 %v922_v13  ;;  %v918_v51 = vld [vmem:[%s1091_s4 + $0x38] sm:$0xff]   ;;  %v919_v54 = vld [vmem:[%s1091_s4 + $0x40] sm:$0xff]  }
   0x8   :  { %804 = vmatprep.subr.bf16.mxu0 %v909_v3  ;;  %142 = vperm.xlu0 %905, %v31_v9   ;;  %v920_v58 = vld [vmem:[%s1093_s6] sm:$0xff]  }
   0x9   :  { %v736_v63 = vld [vmem:[%s1094_s5] ss:$0 sm:$0xff] }
   0xa   :  { %v771_v8 = vld [vmem:[%s1095_s7] ss:$0 sm:$0xff] }
   0xb   :  { %805 = vmatpush3.bf16.msra.mxu0 %v909_v3 }
   0xc   :  { %806 = vmatprep.subr.bf16.mxu0 %v910_v10 }
   0xf   :  { %807 = vmatpush3.bf16.msra.mxu0 %v910_v10  ;;  %v720_v10 = vld [vmem:[%s1089_s0 + $0x8] sm:$0x3] }
  0x10   :  { %812 = vmatprep.subr.bf16.mxu0 %v922_v13 }
  0x12   :  { %809 = vmatmul.mubr.msk.bf16.vlgmr.msra.gmra.mrb[0].mxu0 %vm77_vm0, %v37_v12 }
  0x13   :  { %814 = vmatprep.mubr.msk.bf16.mxu0 %vm923_vm1, %v922_v13  ;;  %813 = vmatpush3.bf16.msra.mxu0 %v912_v15 }
  0x14   :  { %818 = vmatprep.subr.bf16.mxu0 %v922_v13 }
  0x82   :  { %v148_v23 = vpop.permute.xlu1 %147 }
  0x83   :  { %v138_v19 = vpop.permute.xlu0 %137 }
  0x87   :  { %v143_v31 = vpop.permute.xlu0 %142 }
  0xe5   :  { %v810_v17 = vpop.f32.mrb[0].mxu0 }
  0xe6   :  { %v127_v18 = vadd.f32 %v810_v17, %v729_v16  ;;  %v118_v20 = vpop.f32.mrb[1].mxu0 }
  0xe7   :  { %v119_v21 = vadd.f32 %v729_v16, %v118_v20  ;;  %v811_v22 = vpop.f32.mrb[2].mxu0 }
  0xe8   :  { %v134_v24 = vmax.f32 %v127_v18, 0.0  ;;  %v121_v25 = vpop.f32.mrb[3].mxu0 }
  0xe9   :  { %v132_v26 = vmax.f32 %v119_v21, 0.0  ;;  %v122_v27 = vadd.f32 %v729_v16, %v121_v25 }
  0xea   :  { %v152_v28 = vmul.f32 %v148_v23, %v134_v24 }
  0xeb   :  { %v150_v29 = vmul.f32 %v138_v19, %v132_v26  ;;  %v133_v30 = vmax.f32 %v122_v27, 0.0 }
  0xec   :  { %157 = vst.msk [vmem:[#allocation2 + $0x10] sm:$0x3] %vm156_vm2, %v152_v28 }
  0xed   :  { %154 = vst.msk [vmem:[#allocation2] sm:$0xff] %vm153_vm3, %v150_v29  ;;  %v151_v32 = vmul.f32 %v143_v31, %v133_v30 }
  0xef   :  { %155 = vst.msk [vmem:[#allocation2 + $0x8] sm:$0xff] %vm153_vm3, %v151_v32 }
  0xf3   :  { %v605_v56 = vld [vmem:[#allocation2 + $0x10] sm:$0x3] }
  0xf4   :  { %v166_v34 = vld [vmem:[#allocation2] sm:$0x3]  ;;  %v330_v35 = vld [vmem:[#allocation2 + $0x6] sm:$0x3]  ;;  %v220_v39 = vld [vmem:[#allocation2 + $0x2] sm:$0x3]  ;;  %v606_v57 = vpack.c.bf16 %v605_v56, %v605_v56 }
  0xf5   :  { %v167_v37 = vpack.c.bf16 %v166_v34, %v166_v34  ;;  %v331_v38 = vpack.c.bf16 %v330_v35, %v330_v35  ;;  %v221_v43 = vpack.c.bf16 %v220_v39, %v220_v39  ;;  %v275_v45 = vld [vmem:[#allocation2 + $0x4] sm:$0x3] }
  0xf6   :  { %v385_v40 = vld [vmem:[#allocation2 + $0x8] sm:$0x3]  ;;  %v440_v46 = vld [vmem:[#allocation2 + $0xa] sm:$0x3]  ;;  %v276_v48 = vpack.c.bf16 %v275_v45, %v275_v45  ;;  %v495_v50 = vld [vmem:[#allocation2 + $0xc] sm:$0x3] }
  0xf7   :  { %815 = vmatmul.mubr.msk.bf16.vlgmr.msra.gmra.mrb[4].mxu0 %vm153_vm3, %v167_v37  ;;  %833 = vmatmul.mubr.msk.bf16.vlgmr.msra.gmra.mrb[0].mxu1 %vm153_vm3, %v331_v38  ;;  %v386_v44 = vpack.c.bf16 %v385_v40, %v385_v40  ;;  %v441_v49 = vpack.c.bf16 %v440_v46, %v440_v46  ;;  %v496_v52 = vpack.c.bf16 %v495_v50, %v495_v50  ;;  %v550_v53 = vld [vmem:[#allocation2 + $0xe] sm:$0x3] }
  0xf8   :  { %837 = vmatpush3.bf16.msra.mxu1 %v913_v33  ;;  %819 = vmatpush3.bf16.msra.mxu0 %v914_v36  ;;  %v551_v55 = vpack.c.bf16 %v550_v53, %v550_v53 }
  0xf9   :  { %820 = vmatprep.mubr.msk.bf16.mxu0 %vm923_vm1, %v922_v13  ;;  %838 = vmatprep.mubr.msk.bf16.mxu1 %vm923_vm1, %v922_v13 }
  0xfa   :  { %842 = vmatprep.subr.bf16.mxu1 %v922_v13  ;;  %824 = vmatprep.subr.bf16.mxu0 %v922_v13 }
 0x103   :  { %821 = vmatmul.mubr.msk.bf16.vlgmr.msra.gmra.mrb[4].mxu0 %vm153_vm3, %v221_v43  ;;  %839 = vmatmul.mubr.msk.bf16.vlgmr.msra.gmra.mrb[0].mxu1 %vm153_vm3, %v386_v44 }
 0x104   :  { %843 = vmatpush3.bf16.msra.mxu1 %v915_v41  ;;  %825 = vmatpush3.bf16.msra.mxu0 %v916_v42 }
 0x105   :  { %826 = vmatprep.mubr.msk.bf16.mxu0 %vm923_vm1, %v922_v13  ;;  %844 = vmatprep.mubr.msk.bf16.mxu1 %vm923_vm1, %v922_v13 }
 0x106   :  { %848 = vmatprep.subr.bf16.mxu1 %v922_v13  ;;  %866 = vmatprep.subr.bf16.mxu0 %v922_v13 }
 0x10f   :  { %827 = vmatmul.mubr.msk.bf16.vlgmr.msra.gmra.mrb[4].mxu0 %vm153_vm3, %v276_v48  ;;  %845 = vmatmul.mubr.msk.bf16.vlgmr.msra.gmra.mrb[0].mxu1 %vm153_vm3, %v441_v49 }
 0x110   :  { %849 = vmatpush3.bf16.msra.mxu1 %v917_v47  ;;  %850 = vmatprep.mubr.msk.bf16.mxu1 %vm923_vm1, %v922_v13 }
 0x111   :  { %854 = vmatprep.subr.bf16.mxu1 %v922_v13  ;;  %868 = vmatprep.mubr.msk.bf16.mxu0 %vm923_vm1, %v922_v13 }
 0x112   :  { %867 = vmatpush3.bf16.msra.mxu0 %v920_v58 }
 0x11b   :  { %851 = vmatmul.mubr.msk.bf16.vlgmr.msra.gmra.mrb[0].mxu1 %vm153_vm3, %v496_v52 }
 0x11c   :  { %855 = vmatpush3.bf16.msra.mxu1 %v918_v51  ;;  %856 = vmatprep.mubr.msk.bf16.mxu1 %vm923_vm1, %v922_v13 }
 0x11d   :  { %860 = vmatprep.subr.bf16.mxu1 %v922_v13 }
 0x127   :  { %857 = vmatmul.mubr.msk.bf16.vlgmr.msra.gmra.mrb[0].mxu1 %vm153_vm3, %v551_v55 }
 0x128   :  { %861 = vmatpush3.bf16.msra.mxu1 %v919_v54  ;;  %862 = vmatprep.mubr.msk.bf16.mxu1 %vm923_vm1, %v922_v13 }
 0x133   :  { %863 = vmatmul.mubr.msk.bf16.vlgmr.msra.gmra.mrb[0].mxu1 %vm153_vm3, %v606_v57 }
 0x1e2   :  { %v323_v59 = vpop.f32.mrb[4].mxu0 }
 0x1e3   :  { %v828_v60 = vpop.f32.mrb[5].mxu0  ;;  %v872_v0 = vadd.f32 %v736_v63, %v323_v59 }
 0x1e4   :  { %v326_v61 = vpop.f32.mrb[6].mxu0 }
 0x1e5   :  { %v829_v62 = vpop.f32.mrb[7].mxu0 }
 0x206   :  { %v653_v1 = vpop.f32.mrb[0].mxu1 }
 0x207   :  { %v873_v2 = vadd.f32 %v872_v0, %v653_v1  ;;  %v864_v3 = vpop.f32.mrb[1].mxu1 }
 0x208   :  { %v656_v4 = vpop.f32.mrb[2].mxu1 }
 0x209   :  { %v660_v5 = vmax.f32 %v873_v2, 0.0  ;;  %v865_v6 = vpop.f32.mrb[3].mxu1 }
 0x20b   :  { %v661_v7 = vpack.c.bf16 %v660_v5, %v660_v5 }
 0x20d   :  { %869 = vmatmul.mubr.msk.bf16.vlgmr.msra.gmra.mrb[8].mxu0 %vm153_vm3, %v661_v7 }
 0x2e0   :  { %v714_v9 = vpop.f32.mrb[8].mxu0 }
 0x2e1   :  { %v715_v11 = vadd.f32 %v771_v8, %v714_v9  ;;  %v870_v12 = vpop.f32.mrb[9].mxu0 }
 0x2e2   :  { %v717_v13 = vpop.f32.mrb[10].mxu0 }
 0x2e3   :  { %v721_v14 = vadd.f32 %v720_v10, %v715_v11  ;;  %v871_v15 = vpop.f32.mrb[11].mxu0 }
 0x2e5   :  { %v722_v16 = vmax.f32 %v721_v14, 0.0 }
 0x2e7   :  { %724 = vst.msk [vmem:[%s1096_s8] sm:$0x3] %vm723_vm4, %v722_v16 }

// kernel: deeplab_resnet_forward.13
= control target key start
LH: loop header
LB: loop body
LE: loop exit
PB: predicated region body
PF: predicated region fallthrough
CT: control target
= control target key end

     0   :  { %v172_v1 = vmov 0.0   ;;  %vm173_vm0 = vmmov 0   ;;  %s225_s0 = inlined_call_operand.vmem [shape: f32[1,2,64], index: 0, kind: input, shape index: {}]   ;;  %s226_s1 = inlined_call_operand.vmem [shape: bf16[64,10], index: 1, kind: input, shape index: {}]   ;;  %s227_s2 = inlined_call_operand.vmem [shape: f32[1,10], index: 2, kind: input, shape index: {}]   ;;  %s228_s3 = inlined_call_operand.hbm [shape: f32[2,10], index: 3, kind: output, shape index: {}]  }
   0x1   :  { %v144_v0 = vld [vmem:[%s226_s1] sm:$0xff]   ;;  %129 = vmatprep.subr.bf16.mxu0 %v172_v1  ;;  %v145_v2 = vld [vmem:[%s226_s1 + $0x8] sm:$0xff]   ;;  %137 = vmatprep.mubr.msk.bf16.mxu0 %vm173_vm0, %v172_v1 }
   0x2   :  { %130 = vmatpush3.bf16.msra.mxu0 %v144_v0 }
   0x3   :  { %131 = vmatprep.subr.bf16.mxu0 %v172_v1 }
   0x4   :  { %8 = vsyncpa [#allocation3], 0  ;;  %v146_v3 = vld [vmem:[%s226_s1 + $0x10] sm:$0xff]   ;;  %v147_v4 = vld [vmem:[%s226_s1 + $0x18] sm:$0xff]   ;;  %vm58_vm1 = vcmask 523264   ;;  %s174_s24 = smov [#allocation2]  }
   0x5   :  { %v16_v5 = vld [vmem:[%s225_s0] sm:$0x3]  ;;  %s110_s25 = sshll.u32 %s174_s24, 4  ;;  %vm102_vm2 = vcmask 74752   ;;  %s111_s25 = int_to_ptr.vmem [resolvable:$true] %s110_s25 }
   0x6   :  { %132 = vmatpush3.bf16.msra.mxu0 %v145_v2  ;;  %v18_v6 = vpack.c.bf16 %v16_v5, %v16_v5  ;;  %v118_v7 = vld [vmem:[%s227_s2] ss:$0 sm:$0xff]  ;;  %s148_s0 = scalar_lea.vmem %s111_s25, 32  ;;  %p153_p1 = scmp.lt.s32.totalorder %s111_s25, %s111_s25 }
   0x7   :  { %133 = vmatprep.subr.bf16.mxu0 %v172_v1  ;;  %p149_p0 = scmp.ne.s32.totalorder %s111_s25, %s148_s0  ;;  %p154_p2 = scmp.lt.s32.totalorder %s148_s0, %s148_s0 }
   0x9   :  { %p155_p3 = por %p154_p2, %p153_p1 }
   0xa   :  { %134 = vmatpush3.bf16.msra.mxu0 %v146_v3 }
   0xb   :  { %135 = vmatprep.subr.bf16.mxu0 %v172_v1  ;;  %p156_p4 = pnand %p155_p3, %p149_p0 }
   0xe   :  { %136 = vmatpush3.bf16.msra.mxu0 %v147_v4 }
  0x11   :  { %138 = vmatmul.mubr.msk.bf16.vlgmr.msra.gmra.mrb[0].mxu0 %vm58_vm1, %v18_v6 }
  0xe4   :  { %v96_v8 = vpop.f32.mrb[0].mxu0 }
  0xe5   :  { %v97_v9 = vadd.f32 %v118_v7, %v96_v8  ;;  %v139_v10 = vpop.f32.mrb[1].mxu0 }
  0xe6   :  { %v99_v11 = vpop.f32.mrb[2].mxu0 }
  0xe7   :  { %v140_v12 = vpop.f32.mrb[3].mxu0  ;;  %103 = vst.msk [vmem:[#allocation2] sm:$0x3] %vm102_vm2, %v97_v9 }
  0xe8   :  { %159 = shalt.err (!%p156_p4)
}
  0xe9   :  { %s160_s2 = scalar_lea.hbm %s228_s3, 32 }
  0xea   :  { %p161_p5 = scmp.ne.s32.totalorder %s228_s3, %s160_s2  ;;  %p164_p6 = scmp.lt.u32.totalorder %s160_s2, %s228_s3 }
  0xec   :  { %p166_p7 = pnand %p164_p6, %p161_p5 }
  0xee   :  { %169 = shalt.err (!%p166_p7)
}
  0xef   :  { %113 = dma.vmem_to_hbm [thread:$0]  %s111_s25, 32, %s228_s3, [#allocation3]  }
  0xf0   :  { %170 = dma.done.wait [#allocation3], 32  }
  0xf1   :  { %171 = vsyncadd [#allocation3], 4294967264 }
  0xf2   :  { %117 = vsyncpa [#allocation3], 1 }

</bundles_post_ra>
